<compile_context>
chip_gen: v7x
topology: tpu7x:2x2x1
jax: 0.10.0
libtpu: 0.0.40
codegen_flags: <defaults>
</compile_context>

<pallas_src>
import functools

import jax
import jax.numpy as jnp
from jax.experimental import pallas as pl
from jax.experimental.pallas import tpu as pltpu

EPS = 1e-5


# -----------------------------------------------------------------------------
# Pallas GEMM kernel (single K block, fused bias, optional BN+ReLU prologue,
# optional fused per-column batch-stat partials)
# -----------------------------------------------------------------------------
def _round_up(x, m):
    return (x + m - 1) // m * m


def _pick_tm(M):
    """Largest tile that divides M (so A never gets padded); fall back to padding."""
    for t in (512, 256, 128, 64, 32, 16, 8):
        if M % t == 0:
            return t, M
    return 128, _round_up(M, 128)


def _pick_tn(Np):
    """Full-N tile when it fits (A is read from HBM exactly once)."""
    if Np <= 1024:
        return Np
    for t in (1024, 512, 256, 128):
        if Np % t == 0:
            return t
    return 128


def _fold_colsum_8(y, sub):
    """Partial column sums of a (sub*8, tn) f32 tile folded onto 8 sublanes.

    Only uses 8-aligned static slices + VPU adds (no cross-lane reshapes), so it
    lowers cheaply and never crosses an (8,128) tile boundary.
    """
    acc = y[0:8, :]
    for k in range(1, sub):
        acc = acc + y[k * 8:(k + 1) * 8, :]
    return acc


@functools.lru_cache(maxsize=None)
def _build_gemm(Mp, Kp, Np, tm, tn, fused, with_stats, out_dtype_name, a_dtype_name):
    out_dtype = jnp.dtype(out_dtype_name)
    a_itemsize = jnp.dtype(a_dtype_name).itemsize
    grid = (Mp // tm, Np // tn)
    sub = tm // 8

    def _compute(a_ref, b_ref, bias_ref, scale_ref=None, shift_ref=None):
        if fused:
            # Per-input-channel BN affine + ReLU prologue on the VPU (f32),
            # then bf16 operands on the MXU with f32 accumulation.
            a = jnp.maximum(a_ref[...] * scale_ref[...] + shift_ref[...], 0.0)
            a = a.astype(jnp.bfloat16)
        else:
            a = a_ref[...]
        acc = jnp.dot(a, b_ref[...], preferred_element_type=jnp.float32)
        return acc + bias_ref[...]

    if fused and with_stats:
        def kernel(a_ref, b_ref, bias_ref, scale_ref, shift_ref, o_ref, ps_ref, pq_ref):
            y = _compute(a_ref, b_ref, bias_ref, scale_ref, shift_ref)
            o_ref[...] = y.astype(o_ref.dtype)
            ps_ref[...] = _fold_colsum_8(y, sub)
            pq_ref[...] = _fold_colsum_8(y * y, sub)
    elif fused:
        def kernel(a_ref, b_ref, bias_ref, scale_ref, shift_ref, o_ref):
            o_ref[...] = _compute(a_ref, b_ref, bias_ref, scale_ref,
                                  shift_ref).astype(o_ref.dtype)
    elif with_stats:
        def kernel(a_ref, b_ref, bias_ref, o_ref, ps_ref, pq_ref):
            y = _compute(a_ref, b_ref, bias_ref)
            o_ref[...] = y.astype(o_ref.dtype)
            ps_ref[...] = _fold_colsum_8(y, sub)
            pq_ref[...] = _fold_colsum_8(y * y, sub)
    else:
        def kernel(a_ref, b_ref, bias_ref, o_ref):
            o_ref[...] = _compute(a_ref, b_ref, bias_ref).astype(o_ref.dtype)

    in_specs = [
        pl.BlockSpec((tm, Kp), lambda i, j: (i, 0)),   # A (whole K in one block)
        pl.BlockSpec((Kp, tn), lambda i, j: (0, j)),   # B (bf16 weights)
        pl.BlockSpec((1, tn), lambda i, j: (0, j)),    # bias
    ]
    if fused:
        in_specs += [pl.BlockSpec((1, Kp), lambda i, j: (0, 0)),   # BN scale (per-K)
                     pl.BlockSpec((1, Kp), lambda i, j: (0, 0))]   # BN shift (per-K)

    main_spec = pl.BlockSpec((tm, tn), lambda i, j: (i, j))
    if with_stats:
        out_shape = (jax.ShapeDtypeStruct((Mp, Np), out_dtype),
                     jax.ShapeDtypeStruct((grid[0] * 8, Np), jnp.float32),
                     jax.ShapeDtypeStruct((grid[0] * 8, Np), jnp.float32))
        out_specs = [main_spec,
                     pl.BlockSpec((8, tn), lambda i, j: (i, j)),
                     pl.BlockSpec((8, tn), lambda i, j: (i, j))]
    else:
        out_shape = jax.ShapeDtypeStruct((Mp, Np), out_dtype)
        out_specs = main_spec

    cost = pl.CostEstimate(
        flops=2 * Mp * Kp * Np,
        transcendentals=0,
        bytes_accessed=(Mp * Kp * a_itemsize + Kp * Np * 2
                        + Mp * Np * out_dtype.itemsize
                        + (2 * grid[0] * 8 * Np * 4 if with_stats else 0)))

    return pl.pallas_call(
        kernel,
        out_shape=out_shape,
        grid_spec=pltpu.PrefetchScalarGridSpec(
            num_scalar_prefetch=0,
            grid=grid,
            in_specs=in_specs,
            out_specs=out_specs,
        ),
        compiler_params=pltpu.CompilerParams(
            dimension_semantics=("parallel", "parallel")),
        cost_estimate=cost,
    )


def gemm_bias(a, b, bias, *, scale=None, shift=None, out_dtype=jnp.float32,
              return_stats=False):
    """(M,K)@(K,N) + bias on the MXU.

    Optional fused per-K BN-affine+ReLU prologue (a := relu(a*scale + shift)).
    If return_stats, also returns per-column sum and sum-of-squares of the
    result (computed inside the kernel whenever M needs no padding).
    """
    M, K = a.shape
    K2, N = b.shape
    assert K == K2 and bias.shape == (N,)
    fused = scale is not None
    Kp = _round_up(K, 128)
    Np = _round_up(N, 128)
    tm, Mp = _pick_tm(M)
    tn = _pick_tn(Np)
    stats_in_kernel = return_stats and (Mp == M)

    if not fused:
        a = a.astype(jnp.bfloat16)
    if (Mp, Kp) != (M, K):                       # never triggers for this module
        a = jnp.pad(a, ((0, Mp - M), (0, Kp - K)))
    b_p = jnp.pad(b, ((0, Kp - K), (0, Np - N))).astype(jnp.bfloat16)
    bias_p = jnp.pad(bias.astype(jnp.float32), (0, Np - N)).reshape(1, Np)

    args = [a, b_p, bias_p]
    if fused:
        args += [jnp.pad(scale.astype(jnp.float32), (0, Kp - K)).reshape(1, Kp),
                 jnp.pad(shift.astype(jnp.float32), (0, Kp - K)).reshape(1, Kp)]

    fn = _build_gemm(Mp, Kp, Np, tm, tn, fused, stats_in_kernel,
                     jnp.dtype(out_dtype).name, str(a.dtype))
    res = fn(*args)

    if stats_in_kernel:
        out, psum, psumsq = res
        col_sum = psum.sum(axis=0)[:N]
        col_sq = psumsq.sum(axis=0)[:N]
    else:
        out = res
    if (Mp, Np) != (M, N):
        out = out[:M, :N]
    if return_stats:
        if not stats_in_kernel:       # M was padded: fall back to an XLA reduction
            out_f32 = out.astype(jnp.float32)
            col_sum = out_f32.sum(axis=0)
            col_sq = (out_f32 * out_f32).sum(axis=0)
        return out, col_sum, col_sq
    return out


# -----------------------------------------------------------------------------
# Module glue (plain JAX): upsampling, weight folding, pixel-shuffle, BN stats
# -----------------------------------------------------------------------------
def _upsample(x, s):
    # F.upsample(mode='bilinear'); current PyTorch default is align_corners=False,
    # which matches jax.image.resize 'bilinear' (half-pixel centers).
    # TODO(synk): legacy PyTorch (<0.4) F.upsample behaved like align_corners=True.
    n, h, w, c = x.shape
    return jax.image.resize(x, (n, h * s, w * s, c), method="bilinear")


def _sum_features(f3, f4, f7, f8, f9):
    return (f3 + _upsample(f4, 2) + _upsample(f7, 4)
            + _upsample(f8, 8) + _upsample(f9, 16))


def _conv_transpose_2x2_as_gemm_weights(w):
    # PyTorch ConvTranspose2d weight layout: (Cin, Cout, kh=2, kw=2).
    # GEMM column index = (di*2 + dj)*Cout + co (zero spatial overlap at stride 2).
    cin, cout = w.shape[0], w.shape[1]
    return jnp.transpose(w, (0, 2, 3, 1)).reshape(cin, 4 * cout), cout


def _double_depth_to_space_2x2x2(y, n, h, w, cout):
    # y: (n*h*w*4, 16) with rows ordered (n,h,w,di,dj) and cols (di2,dj2,c).
    # Output index: H = 4h + 2*di + di2, W = 4w + 2*dj + dj2.
    y = y.reshape(n, h, w, 2, 2, 2, 2, cout)
    y = jnp.transpose(y, (0, 1, 3, 5, 2, 4, 6, 7))
    return y.reshape(n, 4 * h, 4 * w, cout)


def _bn_affine_from_sums(col_sum, col_sumsq, count, gamma, beta, eps=EPS):
    # nn.BatchNorm2d in training mode: biased batch statistics over (N,H,W).
    mean = col_sum / count
    var = jnp.maximum(col_sumsq / count - mean * mean, 0.0)
    scale = gamma * jax.lax.rsqrt(var + eps)
    shift = beta - mean * scale
    return scale, shift


# -----------------------------------------------------------------------------
# Forward pass
# -----------------------------------------------------------------------------
def pps_forward_nhwc(summed, params):
    """Runs the Sequential stack on the pre-summed NHWC feature map."""
    n, h, w, c = summed.shape
    m1 = n * h * w
    HIGH = jax.lax.Precision.HIGHEST

    # [1] Conv2d(256,256,1) + bias; BN1 batch-stat partials fused in the kernel.
    y1, sum1, sq1 = gemm_bias(summed.reshape(m1, c),
                              params["conv1"]["w"], params["conv1"]["b"],
                              out_dtype=jnp.float32, return_stats=True)
    scale1, shift1 = _bn_affine_from_sums(
        sum1, sq1, m1, params["bn1"]["gamma"], params["bn1"]["beta"])

    # [2] BN1+ReLU (prologue) -> ConvTranspose2d(256,256,2,s2) with the next
    #     Conv2d(256,256,1) folded into its per-quadrant weights:
    #     y3_block_q = relu(bn1(y1)) @ (B_T1_q @ W2) + (b_T1 @ W2 + b2).
    bT1, cout1 = _conv_transpose_2x2_as_gemm_weights(params["convT1"]["w"])
    w2, b2 = params["conv2"]["w"], params["conv2"]["b"]
    c2 = w2.shape[1]
    b_fold = jnp.einsum("kqc,cd->kqd", bT1.reshape(c, 4, cout1), w2,
                        precision=HIGH).reshape(c, 4 * c2)
    bias_fold = jnp.tile(jnp.dot(params["convT1"]["b"], w2, precision=HIGH) + b2, 4)
    y3b, sum2, sq2 = gemm_bias(y1, b_fold, bias_fold, scale=scale1, shift=shift1,
                               out_dtype=jnp.float32, return_stats=True)
    # BN2 batch stats: per conv2-channel over all 4*m1 spatial positions
    # (the blocked layout holds exactly the same value set, just rearranged).
    scale2, shift2 = _bn_affine_from_sums(
        sum2.reshape(4, c2).sum(0), sq2.reshape(4, c2).sum(0), 4 * m1,
        params["bn2"]["gamma"], params["bn2"]["beta"])

    # [3] BN2+ReLU (prologue) -> ConvTranspose2d(256,4,2,s2).
    #     (m1, 4*c2) -> (4*m1, c2) is a contiguous (free) reshape.
    bT2, cout2 = _conv_transpose_2x2_as_gemm_weights(params["convT2"]["w"])
    y4 = gemm_bias(y3b.reshape(4 * m1, c2), bT2,
                   jnp.tile(params["convT2"]["b"], 4),
                   scale=scale2, shift=shift2, out_dtype=jnp.float32)
    return _double_depth_to_space_2x2x2(y4, n, h, w, cout2)   # (n, 4h, 4w, 4)


def position_sensitive_segmentation_forward(f3, f4, f7, f8, f9, params):
    """PyTorch-compatible entry point: NCHW inputs, NCHW output."""
    nhwc = lambda t: jnp.transpose(t, (0, 2, 3, 1))
    summed = _sum_features(nhwc(f3), nhwc(f4), nhwc(f7), nhwc(f8), nhwc(f9))
    out = pps_forward_nhwc(summed, params)
    return jnp.transpose(out, (0, 3, 1, 2))


# -----------------------------------------------------------------------------
# Parameters (deterministic init; 1x1 conv weights stored directly as (Cin,Cout))
# -----------------------------------------------------------------------------
def init_pps_params(key):
    ks = jax.random.split(key, 12)

    def conv1x1(kw, kb, cin, cout):
        std = (1.0 / cin) ** 0.5
        return {"w": jax.random.normal(kw, (cin, cout), jnp.float32) * std,
                "b": jax.random.normal(kb, (cout,), jnp.float32) * 0.01}

    def convT(kw, kb, cin, cout):
        std = (1.0 / (cin * 4)) ** 0.5
        return {"w": jax.random.normal(kw, (cin, cout, 2, 2), jnp.float32) * std,
                "b": jax.random.normal(kb, (cout,), jnp.float32) * 0.01}

    def bn(kg, kb, c):
        return {"gamma": 1.0 + 0.1 * jax.random.normal(kg, (c,), jnp.float32),
                "beta": 0.1 * jax.random.normal(kb, (c,), jnp.float32)}

    return {
        "conv1": conv1x1(ks[0], ks[1], 256, 256),
        "bn1": bn(ks[2], ks[3], 256),
        "convT1": convT(ks[4], ks[5], 256, 256),
        "conv2": conv1x1(ks[6], ks[7], 256, 256),
        "bn2": bn(ks[8], ks[9], 256),
        "convT2": convT(ks[10], ks[11], 256, 4),
    }


# -----------------------------------------------------------------------------
# Pure-JAX f32 reference (for a numerical sanity check of the Pallas stack)
# -----------------------------------------------------------------------------
def pps_reference_nhwc(summed, params, eps=EPS):
    HIGH = jax.lax.Precision.HIGHEST

    def conv1x1(x, p):
        return jnp.einsum("nhwc,cd->nhwd", x, p["w"], precision=HIGH) + p["b"]

    def bn_relu(x, p):
        mean = jnp.mean(x, axis=(0, 1, 2))
        var = jnp.var(x, axis=(0, 1, 2))
        y = (x - mean) * jax.lax.rsqrt(var + eps) * p["gamma"] + p["beta"]
        return jnp.maximum(y, 0.0)

    def convT2x2(x, p):
        n, h, w, _ = x.shape
        cout = p["w"].shape[1]
        y = jnp.einsum("nhwc,coij->nhwijo", x, p["w"], precision=HIGH)
        y = jnp.transpose(y, (0, 1, 3, 2, 4, 5)).reshape(n, 2 * h, 2 * w, cout)
        return y + p["b"]

    x = conv1x1(summed, params["conv1"])
    x = bn_relu(x, params["bn1"])
    x = convT2x2(x, params["convT1"])
    x = conv1x1(x, params["conv2"])
    x = bn_relu(x, params["bn2"])
    x = convT2x2(x, params["convT2"])
    return x


# -----------------------------------------------------------------------------
if __name__ == "__main__":
    key = jax.random.PRNGKey(0)
    kp, k3, k4, k7, k8, k9 = jax.random.split(key, 6)
    params = init_pps_params(kp)

    # Small shapes consistent with the module: channels fixed at 256 by the
    # layer definitions; f4/f7/f8/f9 are f3's resolution divided by 2/4/8/16.
    N, C, H = 2, 256, 16
    f3 = jax.random.normal(k3, (N, C, H, H), jnp.float32)
    f4 = jax.random.normal(k4, (N, C, H // 2, H // 2), jnp.float32)
    f7 = jax.random.normal(k7, (N, C, H // 4, H // 4), jnp.float32)
    f8 = jax.random.normal(k8, (N, C, H // 8, H // 8), jnp.float32)
    f9 = jax.random.normal(k9, (N, C, H // 16, H // 16), jnp.float32)

    fwd = jax.jit(position_sensitive_segmentation_forward)
    out = fwd(f3, f4, f7, f8, f9, params)
    jax.block_until_ready(out)
    assert out.shape == (N, 4, 4 * H, 4 * H), out.shape

    # Numerical check of the Pallas path against a pure-JAX f32 reference
    # (loose tolerance: bf16 operands with f32 accumulation in the kernels).
    nhwc = lambda t: jnp.transpose(t, (0, 2, 3, 1))
    summed = _sum_features(nhwc(f3), nhwc(f4), nhwc(f7), nhwc(f8), nhwc(f9))
    ref = jnp.transpose(pps_reference_nhwc(summed, params), (0, 3, 1, 2))
    max_err = float(jnp.max(jnp.abs(out - ref)))
    assert max_err < 0.15, f"max |pallas - ref| = {max_err}"

    print("KERNEL_OK")
</pallas_src>

<mosaic_0001>
module attributes {stable_mosaic.version = 11 : i64} {
  func.func @kernel(%arg0: i32, %arg1: i32, %arg2: memref<512x256xbf16, #tpu.memory_space<vmem>>, %arg3: memref<256x256xbf16, #tpu.memory_space<vmem>>, %arg4: memref<1x256xf32, #tpu.memory_space<vmem>>, %arg5: memref<512x256xf32, #tpu.memory_space<vmem>>, %arg6: memref<8x256xf32, #tpu.memory_space<vmem>>, %arg7: memref<8x256xf32, #tpu.memory_space<vmem>>) attributes {dimension_semantics = [#tpu.dimension_semantics<parallel>, #tpu.dimension_semantics<parallel>], iteration_bounds = array<i64: 1, 1>, scalar_prefetch = 0 : i64, scratch_operands = 0 : i64, tpu.core_type = #tpu.core_type<tc>, window_params = [{transform_indices = @transform_0, window_bounds = array<i64: 512, 256>}, {transform_indices = @transform_1, window_bounds = array<i64: 256, 256>}, {transform_indices = @transform_2, window_bounds = array<i64: 1, 256>}, {transform_indices = @transform_3, window_bounds = array<i64: 512, 256>}, {transform_indices = @transform_4, window_bounds = array<i64: 8, 256>}, {transform_indices = @transform_5, window_bounds = array<i64: 8, 256>}]} {
    %c0 = arith.constant 0 : index
    %c0_0 = arith.constant 0 : index
    %0 = vector.load %arg2[%c0, %c0_0] : memref<512x256xbf16, #tpu.memory_space<vmem>>, vector<512x256xbf16>
    %c0_1 = arith.constant 0 : index
    %c0_2 = arith.constant 0 : index
    %1 = vector.load %arg3[%c0_1, %c0_2] : memref<256x256xbf16, #tpu.memory_space<vmem>>, vector<256x256xbf16>
    %cst = arith.constant dense<0.000000e+00> : vector<512x256xf32>
    %2 = tpu.matmul %0, %1, %cst {dimension_numbers = #tpu.dot_dimension_numbers<[1], [0], [0], [1], [0, 0, 1, 1], [], []>} : vector<512x256xbf16>, vector<256x256xbf16>, vector<512x256xf32> -> vector<512x256xf32>
    %c0_3 = arith.constant 0 : index
    %c0_4 = arith.constant 0 : index
    %3 = vector.load %arg4[%c0_3, %c0_4] : memref<1x256xf32, #tpu.memory_space<vmem>>, vector<1x256xf32>
    %4 = vector.broadcast %3 : vector<1x256xf32> to vector<512x256xf32>
    %5 = arith.addf %2, %4 : vector<512x256xf32>
    %c0_5 = arith.constant 0 : index
    %c0_6 = arith.constant 0 : index
    %6 = vector.load %arg5[%c0_5, %c0_6] : memref<512x256xf32, #tpu.memory_space<vmem>>, vector<512x256xf32>
    tpu.vector_store %arg5[%c0_5, %c0_6], %5 {strides = array<i32>} : memref<512x256xf32, #tpu.memory_space<vmem>>, vector<512x256xf32>,
    %7 = vector.extract_strided_slice %5 {offsets = [0, 0], sizes = [8, 256], strides = [1, 1]} : vector<512x256xf32> to vector<8x256xf32>
    %8 = vector.extract_strided_slice %5 {offsets = [8, 0], sizes = [8, 256], strides = [1, 1]} : vector<512x256xf32> to vector<8x256xf32>
    %9 = arith.addf %7, %8 : vector<8x256xf32>
    %10 = vector.extract_strided_slice %5 {offsets = [16, 0], sizes = [8, 256], strides = [1, 1]} : vector<512x256xf32> to vector<8x256xf32>
    %11 = arith.addf %9, %10 : vector<8x256xf32>
    %12 = vector.extract_strided_slice %5 {offsets = [24, 0], sizes = [8, 256], strides = [1, 1]} : vector<512x256xf32> to vector<8x256xf32>
    %13 = arith.addf %11, %12 : vector<8x256xf32>
    %14 = vector.extract_strided_slice %5 {offsets = [32, 0], sizes = [8, 256], strides = [1, 1]} : vector<512x256xf32> to vector<8x256xf32>
    %15 = arith.addf %13, %14 : vector<8x256xf32>
    %16 = vector.extract_strided_slice %5 {offsets = [40, 0], sizes = [8, 256], strides = [1, 1]} : vector<512x256xf32> to vector<8x256xf32>
    %17 = arith.addf %15, %16 : vector<8x256xf32>
    %18 = vector.extract_strided_slice %5 {offsets = [48, 0], sizes = [8, 256], strides = [1, 1]} : vector<512x256xf32> to vector<8x256xf32>
    %19 = arith.addf %17, %18 : vector<8x256xf32>
    %20 = vector.extract_strided_slice %5 {offsets = [56, 0], sizes = [8, 256], strides = [1, 1]} : vector<512x256xf32> to vector<8x256xf32>
    %21 = arith.addf %19, %20 : vector<8x256xf32>
    %22 = vector.extract_strided_slice %5 {offsets = [64, 0], sizes = [8, 256], strides = [1, 1]} : vector<512x256xf32> to vector<8x256xf32>
    %23 = arith.addf %21, %22 : vector<8x256xf32>
    %24 = vector.extract_strided_slice %5 {offsets = [72, 0], sizes = [8, 256], strides = [1, 1]} : vector<512x256xf32> to vector<8x256xf32>
    %25 = arith.addf %23, %24 : vector<8x256xf32>
    %26 = vector.extract_strided_slice %5 {offsets = [80, 0], sizes = [8, 256], strides = [1, 1]} : vector<512x256xf32> to vector<8x256xf32>
    %27 = arith.addf %25, %26 : vector<8x256xf32>
    %28 = vector.extract_strided_slice %5 {offsets = [88, 0], sizes = [8, 256], strides = [1, 1]} : vector<512x256xf32> to vector<8x256xf32>
    %29 = arith.addf %27, %28 : vector<8x256xf32>
    %30 = vector.extract_strided_slice %5 {offsets = [96, 0], sizes = [8, 256], strides = [1, 1]} : vector<512x256xf32> to vector<8x256xf32>
    %31 = arith.addf %29, %30 : vector<8x256xf32>
    %32 = vector.extract_strided_slice %5 {offsets = [104, 0], sizes = [8, 256], strides = [1, 1]} : vector<512x256xf32> to vector<8x256xf32>
    %33 = arith.addf %31, %32 : vector<8x256xf32>
    %34 = vector.extract_strided_slice %5 {offsets = [112, 0], sizes = [8, 256], strides = [1, 1]} : vector<512x256xf32> to vector<8x256xf32>
    %35 = arith.addf %33, %34 : vector<8x256xf32>
    %36 = vector.extract_strided_slice %5 {offsets = [120, 0], sizes = [8, 256], strides = [1, 1]} : vector<512x256xf32> to vector<8x256xf32>
    %37 = arith.addf %35, %36 : vector<8x256xf32>
    %38 = vector.extract_strided_slice %5 {offsets = [128, 0], sizes = [8, 256], strides = [1, 1]} : vector<512x256xf32> to vector<8x256xf32>
    %39 = arith.addf %37, %38 : vector<8x256xf32>
    %40 = vector.extract_strided_slice %5 {offsets = [136, 0], sizes = [8, 256], strides = [1, 1]} : vector<512x256xf32> to vector<8x256xf32>
    %41 = arith.addf %39, %40 : vector<8x256xf32>
    %42 = vector.extract_strided_slice %5 {offsets = [144, 0], sizes = [8, 256], strides = [1, 1]} : vector<512x256xf32> to vector<8x256xf32>
    %43 = arith.addf %41, %42 : vector<8x256xf32>
    %44 = vector.extract_strided_slice %5 {offsets = [152, 0], sizes = [8, 256], strides = [1, 1]} : vector<512x256xf32> to vector<8x256xf32>
    %45 = arith.addf %43, %44 : vector<8x256xf32>
    %46 = vector.extract_strided_slice %5 {offsets = [160, 0], sizes = [8, 256], strides = [1, 1]} : vector<512x256xf32> to vector<8x256xf32>
    %47 = arith.addf %45, %46 : vector<8x256xf32>
    %48 = vector.extract_strided_slice %5 {offsets = [168, 0], sizes = [8, 256], strides = [1, 1]} : vector<512x256xf32> to vector<8x256xf32>
    %49 = arith.addf %47, %48 : vector<8x256xf32>
    %50 = vector.extract_strided_slice %5 {offsets = [176, 0], sizes = [8, 256], strides = [1, 1]} : vector<512x256xf32> to vector<8x256xf32>
    %51 = arith.addf %49, %50 : vector<8x256xf32>
    %52 = vector.extract_strided_slice %5 {offsets = [184, 0], sizes = [8, 256], strides = [1, 1]} : vector<512x256xf32> to vector<8x256xf32>
    %53 = arith.addf %51, %52 : vector<8x256xf32>
    %54 = vector.extract_strided_slice %5 {offsets = [192, 0], sizes = [8, 256], strides = [1, 1]} : vector<512x256xf32> to vector<8x256xf32>
    %55 = arith.addf %53, %54 : vector<8x256xf32>
    %56 = vector.extract_strided_slice %5 {offsets = [200, 0], sizes = [8, 256], strides = [1, 1]} : vector<512x256xf32> to vector<8x256xf32>
    %57 = arith.addf %55, %56 : vector<8x256xf32>
    %58 = vector.extract_strided_slice %5 {offsets = [208, 0], sizes = [8, 256], strides = [1, 1]} : vector<512x256xf32> to vector<8x256xf32>
    %59 = arith.addf %57, %58 : vector<8x256xf32>
    %60 = vector.extract_strided_slice %5 {offsets = [216, 0], sizes = [8, 256], strides = [1, 1]} : vector<512x256xf32> to vector<8x256xf32>
    %61 = arith.addf %59, %60 : vector<8x256xf32>
    %62 = vector.extract_strided_slice %5 {offsets = [224, 0], sizes = [8, 256], strides = [1, 1]} : vector<512x256xf32> to vector<8x256xf32>
    %63 = arith.addf %61, %62 : vector<8x256xf32>
    %64 = vector.extract_strided_slice %5 {offsets = [232, 0], sizes = [8, 256], strides = [1, 1]} : vector<512x256xf32> to vector<8x256xf32>
    %65 = arith.addf %63, %64 : vector<8x256xf32>
    %66 = vector.extract_strided_slice %5 {offsets = [240, 0], sizes = [8, 256], strides = [1, 1]} : vector<512x256xf32> to vector<8x256xf32>
    %67 = arith.addf %65, %66 : vector<8x256xf32>
    %68 = vector.extract_strided_slice %5 {offsets = [248, 0], sizes = [8, 256], strides = [1, 1]} : vector<512x256xf32> to vector<8x256xf32>
    %69 = arith.addf %67, %68 : vector<8x256xf32>
    %70 = vector.extract_strided_slice %5 {offsets = [256, 0], sizes = [8, 256], strides = [1, 1]} : vector<512x256xf32> to vector<8x256xf32>
    %71 = arith.addf %69, %70 : vector<8x256xf32>
    %72 = vector.extract_strided_slice %5 {offsets = [264, 0], sizes = [8, 256], strides = [1, 1]} : vector<512x256xf32> to vector<8x256xf32>
    %73 = arith.addf %71, %72 : vector<8x256xf32>
    %74 = vector.extract_strided_slice %5 {offsets = [272, 0], sizes = [8, 256], strides = [1, 1]} : vector<512x256xf32> to vector<8x256xf32>
    %75 = arith.addf %73, %74 : vector<8x256xf32>
    %76 = vector.extract_strided_slice %5 {offsets = [280, 0], sizes = [8, 256], strides = [1, 1]} : vector<512x256xf32> to vector<8x256xf32>
    %77 = arith.addf %75, %76 : vector<8x256xf32>
    %78 = vector.extract_strided_slice %5 {offsets = [288, 0], sizes = [8, 256], strides = [1, 1]} : vector<512x256xf32> to vector<8x256xf32>
    %79 = arith.addf %77, %78 : vector<8x256xf32>
    %80 = vector.extract_strided_slice %5 {offsets = [296, 0], sizes = [8, 256], strides = [1, 1]} : vector<512x256xf32> to vector<8x256xf32>
    %81 = arith.addf %79, %80 : vector<8x256xf32>
    %82 = vector.extract_strided_slice %5 {offsets = [304, 0], sizes = [8, 256], strides = [1, 1]} : vector<512x256xf32> to vector<8x256xf32>
    %83 = arith.addf %81, %82 : vector<8x256xf32>
    %84 = vector.extract_strided_slice %5 {offsets = [312, 0], sizes = [8, 256], strides = [1, 1]} : vector<512x256xf32> to vector<8x256xf32>
    %85 = arith.addf %83, %84 : vector<8x256xf32>
    %86 = vector.extract_strided_slice %5 {offsets = [320, 0], sizes = [8, 256], strides = [1, 1]} : vector<512x256xf32> to vector<8x256xf32>
    %87 = arith.addf %85, %86 : vector<8x256xf32>
    %88 = vector.extract_strided_slice %5 {offsets = [328, 0], sizes = [8, 256], strides = [1, 1]} : vector<512x256xf32> to vector<8x256xf32>
    %89 = arith.addf %87, %88 : vector<8x256xf32>
    %90 = vector.extract_strided_slice %5 {offsets = [336, 0], sizes = [8, 256], strides = [1, 1]} : vector<512x256xf32> to vector<8x256xf32>
    %91 = arith.addf %89, %90 : vector<8x256xf32>
    %92 = vector.extract_strided_slice %5 {offsets = [344, 0], sizes = [8, 256], strides = [1, 1]} : vector<512x256xf32> to vector<8x256xf32>
    %93 = arith.addf %91, %92 : vector<8x256xf32>
    %94 = vector.extract_strided_slice %5 {offsets = [352, 0], sizes = [8, 256], strides = [1, 1]} : vector<512x256xf32> to vector<8x256xf32>
    %95 = arith.addf %93, %94 : vector<8x256xf32>
    %96 = vector.extract_strided_slice %5 {offsets = [360, 0], sizes = [8, 256], strides = [1, 1]} : vector<512x256xf32> to vector<8x256xf32>
    %97 = arith.addf %95, %96 : vector<8x256xf32>
    %98 = vector.extract_strided_slice %5 {offsets = [368, 0], sizes = [8, 256], strides = [1, 1]} : vector<512x256xf32> to vector<8x256xf32>
    %99 = arith.addf %97, %98 : vector<8x256xf32>
    %100 = vector.extract_strided_slice %5 {offsets = [376, 0], sizes = [8, 256], strides = [1, 1]} : vector<512x256xf32> to vector<8x256xf32>
    %101 = arith.addf %99, %100 : vector<8x256xf32>
    %102 = vector.extract_strided_slice %5 {offsets = [384, 0], sizes = [8, 256], strides = [1, 1]} : vector<512x256xf32> to vector<8x256xf32>
    %103 = arith.addf %101, %102 : vector<8x256xf32>
    %104 = vector.extract_strided_slice %5 {offsets = [392, 0], sizes = [8, 256], strides = [1, 1]} : vector<512x256xf32> to vector<8x256xf32>
    %105 = arith.addf %103, %104 : vector<8x256xf32>
    %106 = vector.extract_strided_slice %5 {offsets = [400, 0], sizes = [8, 256], strides = [1, 1]} : vector<512x256xf32> to vector<8x256xf32>
    %107 = arith.addf %105, %106 : vector<8x256xf32>
    %108 = vector.extract_strided_slice %5 {offsets = [408, 0], sizes = [8, 256], strides = [1, 1]} : vector<512x256xf32> to vector<8x256xf32>
    %109 = arith.addf %107, %108 : vector<8x256xf32>
    %110 = vector.extract_strided_slice %5 {offsets = [416, 0], sizes = [8, 256], strides = [1, 1]} : vector<512x256xf32> to vector<8x256xf32>
    %111 = arith.addf %109, %110 : vector<8x256xf32>
    %112 = vector.extract_strided_slice %5 {offsets = [424, 0], sizes = [8, 256], strides = [1, 1]} : vector<512x256xf32> to vector<8x256xf32>
    %113 = arith.addf %111, %112 : vector<8x256xf32>
    %114 = vector.extract_strided_slice %5 {offsets = [432, 0], sizes = [8, 256], strides = [1, 1]} : vector<512x256xf32> to vector<8x256xf32>
    %115 = arith.addf %113, %114 : vector<8x256xf32>
    %116 = vector.extract_strided_slice %5 {offsets = [440, 0], sizes = [8, 256], strides = [1, 1]} : vector<512x256xf32> to vector<8x256xf32>
    %117 = arith.addf %115, %116 : vector<8x256xf32>
    %118 = vector.extract_strided_slice %5 {offsets = [448, 0], sizes = [8, 256], strides = [1, 1]} : vector<512x256xf32> to vector<8x256xf32>
    %119 = arith.addf %117, %118 : vector<8x256xf32>
    %120 = vector.extract_strided_slice %5 {offsets = [456, 0], sizes = [8, 256], strides = [1, 1]} : vector<512x256xf32> to vector<8x256xf32>
    %121 = arith.addf %119, %120 : vector<8x256xf32>
    %122 = vector.extract_strided_slice %5 {offsets = [464, 0], sizes = [8, 256], strides = [1, 1]} : vector<512x256xf32> to vector<8x256xf32>
    %123 = arith.addf %121, %122 : vector<8x256xf32>
    %124 = vector.extract_strided_slice %5 {offsets = [472, 0], sizes = [8, 256], strides = [1, 1]} : vector<512x256xf32> to vector<8x256xf32>
    %125 = arith.addf %123, %124 : vector<8x256xf32>
    %126 = vector.extract_strided_slice %5 {offsets = [480, 0], sizes = [8, 256], strides = [1, 1]} : vector<512x256xf32> to vector<8x256xf32>
    %127 = arith.addf %125, %126 : vector<8x256xf32>
    %128 = vector.extract_strided_slice %5 {offsets = [488, 0], sizes = [8, 256], strides = [1, 1]} : vector<512x256xf32> to vector<8x256xf32>
    %129 = arith.addf %127, %128 : vector<8x256xf32>
    %130 = vector.extract_strided_slice %5 {offsets = [496, 0], sizes = [8, 256], strides = [1, 1]} : vector<512x256xf32> to vector<8x256xf32>
    %131 = arith.addf %129, %130 : vector<8x256xf32>
    %132 = vector.extract_strided_slice %5 {offsets = [504, 0], sizes = [8, 256], strides = [1, 1]} : vector<512x256xf32> to vector<8x256xf32>
    %133 = arith.addf %131, %132 : vector<8x256xf32>
    %c0_7 = arith.constant 0 : index
    %c0_8 = arith.constant 0 : index
    %134 = vector.load %arg6[%c0_7, %c0_8] : memref<8x256xf32, #tpu.memory_space<vmem>>, vector<8x256xf32>
    tpu.vector_store %arg6[%c0_7, %c0_8], %133 {strides = array<i32>} : memref<8x256xf32, #tpu.memory_space<vmem>>, vector<8x256xf32>,
    %135 = arith.mulf %5, %5 : vector<512x256xf32>
    %136 = vector.extract_strided_slice %135 {offsets = [0, 0], sizes = [8, 256], strides = [1, 1]} : vector<512x256xf32> to vector<8x256xf32>
    %137 = vector.extract_strided_slice %135 {offsets = [8, 0], sizes = [8, 256], strides = [1, 1]} : vector<512x256xf32> to vector<8x256xf32>
    %138 = arith.addf %136, %137 : vector<8x256xf32>
    %139 = vector.extract_strided_slice %135 {offsets = [16, 0], sizes = [8, 256], strides = [1, 1]} : vector<512x256xf32> to vector<8x256xf32>
    %140 = arith.addf %138, %139 : vector<8x256xf32>
    %141 = vector.extract_strided_slice %135 {offsets = [24, 0], sizes = [8, 256], strides = [1, 1]} : vector<512x256xf32> to vector<8x256xf32>
    %142 = arith.addf %140, %141 : vector<8x256xf32>
    %143 = vector.extract_strided_slice %135 {offsets = [32, 0], sizes = [8, 256], strides = [1, 1]} : vector<512x256xf32> to vector<8x256xf32>
    %144 = arith.addf %142, %143 : vector<8x256xf32>
    %145 = vector.extract_strided_slice %135 {offsets = [40, 0], sizes = [8, 256], strides = [1, 1]} : vector<512x256xf32> to vector<8x256xf32>
    %146 = arith.addf %144, %145 : vector<8x256xf32>
    %147 = vector.extract_strided_slice %135 {offsets = [48, 0], sizes = [8, 256], strides = [1, 1]} : vector<512x256xf32> to vector<8x256xf32>
    %148 = arith.addf %146, %147 : vector<8x256xf32>
    %149 = vector.extract_strided_slice %135 {offsets = [56, 0], sizes = [8, 256], strides = [1, 1]} : vector<512x256xf32> to vector<8x256xf32>
    %150 = arith.addf %148, %149 : vector<8x256xf32>
    %151 = vector.extract_strided_slice %135 {offsets = [64, 0], sizes = [8, 256], strides = [1, 1]} : vector<512x256xf32> to vector<8x256xf32>
    %152 = arith.addf %150, %151 : vector<8x256xf32>
    %153 = vector.extract_strided_slice %135 {offsets = [72, 0], sizes = [8, 256], strides = [1, 1]} : vector<512x256xf32> to vector<8x256xf32>
    %154 = arith.addf %152, %153 : vector<8x256xf32>
    %155 = vector.extract_strided_slice %135 {offsets = [80, 0], sizes = [8, 256], strides = [1, 1]} : vector<512x256xf32> to vector<8x256xf32>
    %156 = arith.addf %154, %155 : vector<8x256xf32>
    %157 = vector.extract_strided_slice %135 {offsets = [88, 0], sizes = [8, 256], strides = [1, 1]} : vector<512x256xf32> to vector<8x256xf32>
    %158 = arith.addf %156, %157 : vector<8x256xf32>
    %159 = vector.extract_strided_slice %135 {offsets = [96, 0], sizes = [8, 256], strides = [1, 1]} : vector<512x256xf32> to vector<8x256xf32>
    %160 = arith.addf %158, %159 : vector<8x256xf32>
    %161 = vector.extract_strided_slice %135 {offsets = [104, 0], sizes = [8, 256], strides = [1, 1]} : vector<512x256xf32> to vector<8x256xf32>
    %162 = arith.addf %160, %161 : vector<8x256xf32>
    %163 = vector.extract_strided_slice %135 {offsets = [112, 0], sizes = [8, 256], strides = [1, 1]} : vector<512x256xf32> to vector<8x256xf32>
    %164 = arith.addf %162, %163 : vector<8x256xf32>
    %165 = vector.extract_strided_slice %135 {offsets = [120, 0], sizes = [8, 256], strides = [1, 1]} : vector<512x256xf32> to vector<8x256xf32>
    %166 = arith.addf %164, %165 : vector<8x256xf32>
    %167 = vector.extract_strided_slice %135 {offsets = [128, 0], sizes = [8, 256], strides = [1, 1]} : vector<512x256xf32> to vector<8x256xf32>
    %168 = arith.addf %166, %167 : vector<8x256xf32>
    %169 = vector.extract_strided_slice %135 {offsets = [136, 0], sizes = [8, 256], strides = [1, 1]} : vector<512x256xf32> to vector<8x256xf32>
    %170 = arith.addf %168, %169 : vector<8x256xf32>
    %171 = vector.extract_strided_slice %135 {offsets = [144, 0], sizes = [8, 256], strides = [1, 1]} : vector<512x256xf32> to vector<8x256xf32>
    %172 = arith.addf %170, %171 : vector<8x256xf32>
    %173 = vector.extract_strided_slice %135 {offsets = [152, 0], sizes = [8, 256], strides = [1, 1]} : vector<512x256xf32> to vector<8x256xf32>
    %174 = arith.addf %172, %173 : vector<8x256xf32>
    %175 = vector.extract_strided_slice %135 {offsets = [160, 0], sizes = [8, 256], strides = [1, 1]} : vector<512x256xf32> to vector<8x256xf32>
    %176 = arith.addf %174, %175 : vector<8x256xf32>
    %177 = vector.extract_strided_slice %135 {offsets = [168, 0], sizes = [8, 256], strides = [1, 1]} : vector<512x256xf32> to vector<8x256xf32>
    %178 = arith.addf %176, %177 : vector<8x256xf32>
    %179 = vector.extract_strided_slice %135 {offsets = [176, 0], sizes = [8, 256], strides = [1, 1]} : vector<512x256xf32> to vector<8x256xf32>
    %180 = arith.addf %178, %179 : vector<8x256xf32>
    %181 = vector.extract_strided_slice %135 {offsets = [184, 0], sizes = [8, 256], strides = [1, 1]} : vector<512x256xf32> to vector<8x256xf32>
    %182 = arith.addf %180, %181 : vector<8x256xf32>
    %183 = vector.extract_strided_slice %135 {offsets = [192, 0], sizes = [8, 256], strides = [1, 1]} : vector<512x256xf32> to vector<8x256xf32>
    %184 = arith.addf %182, %183 : vector<8x256xf32>
    %185 = vector.extract_strided_slice %135 {offsets = [200, 0], sizes = [8, 256], strides = [1, 1]} : vector<512x256xf32> to vector<8x256xf32>
    %186 = arith.addf %184, %185 : vector<8x256xf32>
    %187 = vector.extract_strided_slice %135 {offsets = [208, 0], sizes = [8, 256], strides = [1, 1]} : vector<512x256xf32> to vector<8x256xf32>
    %188 = arith.addf %186, %187 : vector<8x256xf32>
    %189 = vector.extract_strided_slice %135 {offsets = [216, 0], sizes = [8, 256], strides = [1, 1]} : vector<512x256xf32> to vector<8x256xf32>
    %190 = arith.addf %188, %189 : vector<8x256xf32>
    %191 = vector.extract_strided_slice %135 {offsets = [224, 0], sizes = [8, 256], strides = [1, 1]} : vector<512x256xf32> to vector<8x256xf32>
    %192 = arith.addf %190, %191 : vector<8x256xf32>
    %193 = vector.extract_strided_slice %135 {offsets = [232, 0], sizes = [8, 256], strides = [1, 1]} : vector<512x256xf32> to vector<8x256xf32>
    %194 = arith.addf %192, %193 : vector<8x256xf32>
    %195 = vector.extract_strided_slice %135 {offsets = [240, 0], sizes = [8, 256], strides = [1, 1]} : vector<512x256xf32> to vector<8x256xf32>
    %196 = arith.addf %194, %195 : vector<8x256xf32>
    %197 = vector.extract_strided_slice %135 {offsets = [248, 0], sizes = [8, 256], strides = [1, 1]} : vector<512x256xf32> to vector<8x256xf32>
    %198 = arith.addf %196, %197 : vector<8x256xf32>
    %199 = vector.extract_strided_slice %135 {offsets = [256, 0], sizes = [8, 256], strides = [1, 1]} : vector<512x256xf32> to vector<8x256xf32>
    %200 = arith.addf %198, %199 : vector<8x256xf32>
    %201 = vector.extract_strided_slice %135 {offsets = [264, 0], sizes = [8, 256], strides = [1, 1]} : vector<512x256xf32> to vector<8x256xf32>
    %202 = arith.addf %200, %201 : vector<8x256xf32>
    %203 = vector.extract_strided_slice %135 {offsets = [272, 0], sizes = [8, 256], strides = [1, 1]} : vector<512x256xf32> to vector<8x256xf32>
    %204 = arith.addf %202, %203 : vector<8x256xf32>
    %205 = vector.extract_strided_slice %135 {offsets = [280, 0], sizes = [8, 256], strides = [1, 1]} : vector<512x256xf32> to vector<8x256xf32>
    %206 = arith.addf %204, %205 : vector<8x256xf32>
    %207 = vector.extract_strided_slice %135 {offsets = [288, 0], sizes = [8, 256], strides = [1, 1]} : vector<512x256xf32> to vector<8x256xf32>
    %208 = arith.addf %206, %207 : vector<8x256xf32>
    %209 = vector.extract_strided_slice %135 {offsets = [296, 0], sizes = [8, 256], strides = [1, 1]} : vector<512x256xf32> to vector<8x256xf32>
    %210 = arith.addf %208, %209 : vector<8x256xf32>
    %211 = vector.extract_strided_slice %135 {offsets = [304, 0], sizes = [8, 256], strides = [1, 1]} : vector<512x256xf32> to vector<8x256xf32>
    %212 = arith.addf %210, %211 : vector<8x256xf32>
    %213 = vector.extract_strided_slice %135 {offsets = [312, 0], sizes = [8, 256], strides = [1, 1]} : vector<512x256xf32> to vector<8x256xf32>
    %214 = arith.addf %212, %213 : vector<8x256xf32>
    %215 = vector.extract_strided_slice %135 {offsets = [320, 0], sizes = [8, 256], strides = [1, 1]} : vector<512x256xf32> to vector<8x256xf32>
    %216 = arith.addf %214, %215 : vector<8x256xf32>
    %217 = vector.extract_strided_slice %135 {offsets = [328, 0], sizes = [8, 256], strides = [1, 1]} : vector<512x256xf32> to vector<8x256xf32>
    %218 = arith.addf %216, %217 : vector<8x256xf32>
    %219 = vector.extract_strided_slice %135 {offsets = [336, 0], sizes = [8, 256], strides = [1, 1]} : vector<512x256xf32> to vector<8x256xf32>
    %220 = arith.addf %218, %219 : vector<8x256xf32>
    %221 = vector.extract_strided_slice %135 {offsets = [344, 0], sizes = [8, 256], strides = [1, 1]} : vector<512x256xf32> to vector<8x256xf32>
    %222 = arith.addf %220, %221 : vector<8x256xf32>
    %223 = vector.extract_strided_slice %135 {offsets = [352, 0], sizes = [8, 256], strides = [1, 1]} : vector<512x256xf32> to vector<8x256xf32>
    %224 = arith.addf %222, %223 : vector<8x256xf32>
    %225 = vector.extract_strided_slice %135 {offsets = [360, 0], sizes = [8, 256], strides = [1, 1]} : vector<512x256xf32> to vector<8x256xf32>
    %226 = arith.addf %224, %225 : vector<8x256xf32>
    %227 = vector.extract_strided_slice %135 {offsets = [368, 0], sizes = [8, 256], strides = [1, 1]} : vector<512x256xf32> to vector<8x256xf32>
    %228 = arith.addf %226, %227 : vector<8x256xf32>
    %229 = vector.extract_strided_slice %135 {offsets = [376, 0], sizes = [8, 256], strides = [1, 1]} : vector<512x256xf32> to vector<8x256xf32>
    %230 = arith.addf %228, %229 : vector<8x256xf32>
    %231 = vector.extract_strided_slice %135 {offsets = [384, 0], sizes = [8, 256], strides = [1, 1]} : vector<512x256xf32> to vector<8x256xf32>
    %232 = arith.addf %230, %231 : vector<8x256xf32>
    %233 = vector.extract_strided_slice %135 {offsets = [392, 0], sizes = [8, 256], strides = [1, 1]} : vector<512x256xf32> to vector<8x256xf32>
    %234 = arith.addf %232, %233 : vector<8x256xf32>
    %235 = vector.extract_strided_slice %135 {offsets = [400, 0], sizes = [8, 256], strides = [1, 1]} : vector<512x256xf32> to vector<8x256xf32>
    %236 = arith.addf %234, %235 : vector<8x256xf32>
    %237 = vector.extract_strided_slice %135 {offsets = [408, 0], sizes = [8, 256], strides = [1, 1]} : vector<512x256xf32> to vector<8x256xf32>
    %238 = arith.addf %236, %237 : vector<8x256xf32>
    %239 = vector.extract_strided_slice %135 {offsets = [416, 0], sizes = [8, 256], strides = [1, 1]} : vector<512x256xf32> to vector<8x256xf32>
    %240 = arith.addf %238, %239 : vector<8x256xf32>
    %241 = vector.extract_strided_slice %135 {offsets = [424, 0], sizes = [8, 256], strides = [1, 1]} : vector<512x256xf32> to vector<8x256xf32>
    %242 = arith.addf %240, %241 : vector<8x256xf32>
    %243 = vector.extract_strided_slice %135 {offsets = [432, 0], sizes = [8, 256], strides = [1, 1]} : vector<512x256xf32> to vector<8x256xf32>
    %244 = arith.addf %242, %243 : vector<8x256xf32>
    %245 = vector.extract_strided_slice %135 {offsets = [440, 0], sizes = [8, 256], strides = [1, 1]} : vector<512x256xf32> to vector<8x256xf32>
    %246 = arith.addf %244, %245 : vector<8x256xf32>
    %247 = vector.extract_strided_slice %135 {offsets = [448, 0], sizes = [8, 256], strides = [1, 1]} : vector<512x256xf32> to vector<8x256xf32>
    %248 = arith.addf %246, %247 : vector<8x256xf32>
    %249 = vector.extract_strided_slice %135 {offsets = [456, 0], sizes = [8, 256], strides = [1, 1]} : vector<512x256xf32> to vector<8x256xf32>
    %250 = arith.addf %248, %249 : vector<8x256xf32>
    %251 = vector.extract_strided_slice %135 {offsets = [464, 0], sizes = [8, 256], strides = [1, 1]} : vector<512x256xf32> to vector<8x256xf32>
    %252 = arith.addf %250, %251 : vector<8x256xf32>
    %253 = vector.extract_strided_slice %135 {offsets = [472, 0], sizes = [8, 256], strides = [1, 1]} : vector<512x256xf32> to vector<8x256xf32>
    %254 = arith.addf %252, %253 : vector<8x256xf32>
    %255 = vector.extract_strided_slice %135 {offsets = [480, 0], sizes = [8, 256], strides = [1, 1]} : vector<512x256xf32> to vector<8x256xf32>
    %256 = arith.addf %254, %255 : vector<8x256xf32>
    %257 = vector.extract_strided_slice %135 {offsets = [488, 0], sizes = [8, 256], strides = [1, 1]} : vector<512x256xf32> to vector<8x256xf32>
    %258 = arith.addf %256, %257 : vector<8x256xf32>
    %259 = vector.extract_strided_slice %135 {offsets = [496, 0], sizes = [8, 256], strides = [1, 1]} : vector<512x256xf32> to vector<8x256xf32>
    %260 = arith.addf %258, %259 : vector<8x256xf32>
    %261 = vector.extract_strided_slice %135 {offsets = [504, 0], sizes = [8, 256], strides = [1, 1]} : vector<512x256xf32> to vector<8x256xf32>
    %262 = arith.addf %260, %261 : vector<8x256xf32>
    %c0_9 = arith.constant 0 : index
    %c0_10 = arith.constant 0 : index
    %263 = vector.load %arg7[%c0_9, %c0_10] : memref<8x256xf32, #tpu.memory_space<vmem>>, vector<8x256xf32>
    tpu.vector_store %arg7[%c0_9, %c0_10], %262 {strides = array<i32>} : memref<8x256xf32, #tpu.memory_space<vmem>>, vector<8x256xf32>,
    return
  }
  func.func @transform_0(%arg0: i32, %arg1: i32) -> (i32, i32) {
    %c0_i32 = arith.constant 0 : i32
    %c0_i32_0 = arith.constant 0 : i32
    return %arg0, %c0_i32 : i32, i32
  }
  func.func @transform_1(%arg0: i32, %arg1: i32) -> (i32, i32) {
    %c0_i32 = arith.constant 0 : i32
    %c0_i32_0 = arith.constant 0 : i32
    return %c0_i32, %arg1 : i32, i32
  }
  func.func @transform_2(%arg0: i32, %arg1: i32) -> (i32, i32) {
    %c0_i32 = arith.constant 0 : i32
    %c0_i32_0 = arith.constant 0 : i32
    return %c0_i32, %arg1 : i32, i32
  }
  func.func @transform_3(%arg0: i32, %arg1: i32) -> (i32, i32) {
    %c0_i32 = arith.constant 0 : i32
    return %arg0, %arg1 : i32, i32
  }
  func.func @transform_4(%arg0: i32, %arg1: i32) -> (i32, i32) {
    %c0_i32 = arith.constant 0 : i32
    return %arg0, %arg1 : i32, i32
  }
  func.func @transform_5(%arg0: i32, %arg1: i32) -> (i32, i32) {
    %c0_i32 = arith.constant 0 : i32
    return %arg0, %arg1 : i32, i32
  }
}

module attributes {stable_mosaic.version = 11 : i64} {
  func.func @kernel(%arg0: i32, %arg1: i32, %arg2: memref<512x256xf32, #tpu.memory_space<vmem>>, %arg3: memref<256x1024xbf16, #tpu.memory_space<vmem>>, %arg4: memref<1x1024xf32, #tpu.memory_space<vmem>>, %arg5: memref<1x256xf32, #tpu.memory_space<vmem>>, %arg6: memref<1x256xf32, #tpu.memory_space<vmem>>, %arg7: memref<512x1024xf32, #tpu.memory_space<vmem>>, %arg8: memref<8x1024xf32, #tpu.memory_space<vmem>>, %arg9: memref<8x1024xf32, #tpu.memory_space<vmem>>) attributes {dimension_semantics = [#tpu.dimension_semantics<parallel>, #tpu.dimension_semantics<parallel>], iteration_bounds = array<i64: 1, 1>, scalar_prefetch = 0 : i64, scratch_operands = 0 : i64, tpu.core_type = #tpu.core_type<tc>, window_params = [{transform_indices = @transform_0, window_bounds = array<i64: 512, 256>}, {transform_indices = @transform_1, window_bounds = array<i64: 256, 1024>}, {transform_indices = @transform_2, window_bounds = array<i64: 1, 1024>}, {pipeline_mode = #tpu.pipeline_mode<synchronous>, transform_indices = @transform_3, window_bounds = array<i64: 1, 256>}, {pipeline_mode = #tpu.pipeline_mode<synchronous>, transform_indices = @transform_4, window_bounds = array<i64: 1, 256>}, {transform_indices = @transform_5, window_bounds = array<i64: 512, 1024>}, {transform_indices = @transform_6, window_bounds = array<i64: 8, 1024>}, {transform_indices = @transform_7, window_bounds = array<i64: 8, 1024>}]} {
    %c0 = arith.constant 0 : index
    %c0_0 = arith.constant 0 : index
    %0 = vector.load %arg2[%c0, %c0_0] : memref<512x256xf32, #tpu.memory_space<vmem>>, vector<512x256xf32>
    %c0_1 = arith.constant 0 : index
    %c0_2 = arith.constant 0 : index
    %1 = vector.load %arg5[%c0_1, %c0_2] : memref<1x256xf32, #tpu.memory_space<vmem>>, vector<1x256xf32>
    %2 = vector.broadcast %1 : vector<1x256xf32> to vector<512x256xf32>
    %3 = arith.mulf %0, %2 : vector<512x256xf32>
    %c0_3 = arith.constant 0 : index
    %c0_4 = arith.constant 0 : index
    %4 = vector.load %arg6[%c0_3, %c0_4] : memref<1x256xf32, #tpu.memory_space<vmem>>, vector<1x256xf32>
    %5 = vector.broadcast %4 : vector<1x256xf32> to vector<512x256xf32>
    %6 = arith.addf %3, %5 : vector<512x256xf32>
    %cst = arith.constant 0.000000e+00 : f32
    %7 = vector.broadcast %cst : f32 to vector<512x256xf32>
    %8 = arith.maximumf %6, %7 : vector<512x256xf32>
    %9 = arith.truncf %8 : vector<512x256xf32> to vector<512x256xbf16>
    %c0_5 = arith.constant 0 : index
    %c0_6 = arith.constant 0 : index
    %10 = vector.load %arg3[%c0_5, %c0_6] : memref<256x1024xbf16, #tpu.memory_space<vmem>>, vector<256x1024xbf16>
    %cst_7 = arith.constant dense<0.000000e+00> : vector<512x1024xf32>
    %11 = tpu.matmul %9, %10, %cst_7 {dimension_numbers = #tpu.dot_dimension_numbers<[1], [0], [0], [1], [0, 0, 1, 1], [], []>} : vector<512x256xbf16>, vector<256x1024xbf16>, vector<512x1024xf32> -> vector<512x1024xf32>
    %c0_8 = arith.constant 0 : index
    %c0_9 = arith.constant 0 : index
    %12 = vector.load %arg4[%c0_8, %c0_9] : memref<1x1024xf32, #tpu.memory_space<vmem>>, vector<1x1024xf32>
    %13 = vector.broadcast %12 : vector<1x1024xf32> to vector<512x1024xf32>
    %14 = arith.addf %11, %13 : vector<512x1024xf32>
    %c0_10 = arith.constant 0 : index
    %c0_11 = arith.constant 0 : index
    %15 = vector.load %arg7[%c0_10, %c0_11] : memref<512x1024xf32, #tpu.memory_space<vmem>>, vector<512x1024xf32>
    tpu.vector_store %arg7[%c0_10, %c0_11], %14 {strides = array<i32>} : memref<512x1024xf32, #tpu.memory_space<vmem>>, vector<512x1024xf32>,
    %16 = vector.extract_strided_slice %14 {offsets = [0, 0], sizes = [8, 1024], strides = [1, 1]} : vector<512x1024xf32> to vector<8x1024xf32>
    %17 = vector.extract_strided_slice %14 {offsets = [8, 0], sizes = [8, 1024], strides = [1, 1]} : vector<512x1024xf32> to vector<8x1024xf32>
    %18 = arith.addf %16, %17 : vector<8x1024xf32>
    %19 = vector.extract_strided_slice %14 {offsets = [16, 0], sizes = [8, 1024], strides = [1, 1]} : vector<512x1024xf32> to vector<8x1024xf32>
    %20 = arith.addf %18, %19 : vector<8x1024xf32>
    %21 = vector.extract_strided_slice %14 {offsets = [24, 0], sizes = [8, 1024], strides = [1, 1]} : vector<512x1024xf32> to vector<8x1024xf32>
    %22 = arith.addf %20, %21 : vector<8x1024xf32>
    %23 = vector.extract_strided_slice %14 {offsets = [32, 0], sizes = [8, 1024], strides = [1, 1]} : vector<512x1024xf32> to vector<8x1024xf32>
    %24 = arith.addf %22, %23 : vector<8x1024xf32>
    %25 = vector.extract_strided_slice %14 {offsets = [40, 0], sizes = [8, 1024], strides = [1, 1]} : vector<512x1024xf32> to vector<8x1024xf32>
    %26 = arith.addf %24, %25 : vector<8x1024xf32>
    %27 = vector.extract_strided_slice %14 {offsets = [48, 0], sizes = [8, 1024], strides = [1, 1]} : vector<512x1024xf32> to vector<8x1024xf32>
    %28 = arith.addf %26, %27 : vector<8x1024xf32>
    %29 = vector.extract_strided_slice %14 {offsets = [56, 0], sizes = [8, 1024], strides = [1, 1]} : vector<512x1024xf32> to vector<8x1024xf32>
    %30 = arith.addf %28, %29 : vector<8x1024xf32>
    %31 = vector.extract_strided_slice %14 {offsets = [64, 0], sizes = [8, 1024], strides = [1, 1]} : vector<512x1024xf32> to vector<8x1024xf32>
    %32 = arith.addf %30, %31 : vector<8x1024xf32>
    %33 = vector.extract_strided_slice %14 {offsets = [72, 0], sizes = [8, 1024], strides = [1, 1]} : vector<512x1024xf32> to vector<8x1024xf32>
    %34 = arith.addf %32, %33 : vector<8x1024xf32>
    %35 = vector.extract_strided_slice %14 {offsets = [80, 0], sizes = [8, 1024], strides = [1, 1]} : vector<512x1024xf32> to vector<8x1024xf32>
    %36 = arith.addf %34, %35 : vector<8x1024xf32>
    %37 = vector.extract_strided_slice %14 {offsets = [88, 0], sizes = [8, 1024], strides = [1, 1]} : vector<512x1024xf32> to vector<8x1024xf32>
    %38 = arith.addf %36, %37 : vector<8x1024xf32>
    %39 = vector.extract_strided_slice %14 {offsets = [96, 0], sizes = [8, 1024], strides = [1, 1]} : vector<512x1024xf32> to vector<8x1024xf32>
    %40 = arith.addf %38, %39 : vector<8x1024xf32>
    %41 = vector.extract_strided_slice %14 {offsets = [104, 0], sizes = [8, 1024], strides = [1, 1]} : vector<512x1024xf32> to vector<8x1024xf32>
    %42 = arith.addf %40, %41 : vector<8x1024xf32>
    %43 = vector.extract_strided_slice %14 {offsets = [112, 0], sizes = [8, 1024], strides = [1, 1]} : vector<512x1024xf32> to vector<8x1024xf32>
    %44 = arith.addf %42, %43 : vector<8x1024xf32>
    %45 = vector.extract_strided_slice %14 {offsets = [120, 0], sizes = [8, 1024], strides = [1, 1]} : vector<512x1024xf32> to vector<8x1024xf32>
    %46 = arith.addf %44, %45 : vector<8x1024xf32>
    %47 = vector.extract_strided_slice %14 {offsets = [128, 0], sizes = [8, 1024], strides = [1, 1]} : vector<512x1024xf32> to vector<8x1024xf32>
    %48 = arith.addf %46, %47 : vector<8x1024xf32>
    %49 = vector.extract_strided_slice %14 {offsets = [136, 0], sizes = [8, 1024], strides = [1, 1]} : vector<512x1024xf32> to vector<8x1024xf32>
    %50 = arith.addf %48, %49 : vector<8x1024xf32>
    %51 = vector.extract_strided_slice %14 {offsets = [144, 0], sizes = [8, 1024], strides = [1, 1]} : vector<512x1024xf32> to vector<8x1024xf32>
    %52 = arith.addf %50, %51 : vector<8x1024xf32>
    %53 = vector.extract_strided_slice %14 {offsets = [152, 0], sizes = [8, 1024], strides = [1, 1]} : vector<512x1024xf32> to vector<8x1024xf32>
    %54 = arith.addf %52, %53 : vector<8x1024xf32>
    %55 = vector.extract_strided_slice %14 {offsets = [160, 0], sizes = [8, 1024], strides = [1, 1]} : vector<512x1024xf32> to vector<8x1024xf32>
    %56 = arith.addf %54, %55 : vector<8x1024xf32>
    %57 = vector.extract_strided_slice %14 {offsets = [168, 0], sizes = [8, 1024], strides = [1, 1]} : vector<512x1024xf32> to vector<8x1024xf32>
    %58 = arith.addf %56, %57 : vector<8x1024xf32>
    %59 = vector.extract_strided_slice %14 {offsets = [176, 0], sizes = [8, 1024], strides = [1, 1]} : vector<512x1024xf32> to vector<8x1024xf32>
    %60 = arith.addf %58, %59 : vector<8x1024xf32>
    %61 = vector.extract_strided_slice %14 {offsets = [184, 0], sizes = [8, 1024], strides = [1, 1]} : vector<512x1024xf32> to vector<8x1024xf32>
    %62 = arith.addf %60, %61 : vector<8x1024xf32>
    %63 = vector.extract_strided_slice %14 {offsets = [192, 0], sizes = [8, 1024], strides = [1, 1]} : vector<512x1024xf32> to vector<8x1024xf32>
    %64 = arith.addf %62, %63 : vector<8x1024xf32>
    %65 = vector.extract_strided_slice %14 {offsets = [200, 0], sizes = [8, 1024], strides = [1, 1]} : vector<512x1024xf32> to vector<8x1024xf32>
    %66 = arith.addf %64, %65 : vector<8x1024xf32>
    %67 = vector.extract_strided_slice %14 {offsets = [208, 0], sizes = [8, 1024], strides = [1, 1]} : vector<512x1024xf32> to vector<8x1024xf32>
    %68 = arith.addf %66, %67 : vector<8x1024xf32>
    %69 = vector.extract_strided_slice %14 {offsets = [216, 0], sizes = [8, 1024], strides = [1, 1]} : vector<512x1024xf32> to vector<8x1024xf32>
    %70 = arith.addf %68, %69 : vector<8x1024xf32>
    %71 = vector.extract_strided_slice %14 {offsets = [224, 0], sizes = [8, 1024], strides = [1, 1]} : vector<512x1024xf32> to vector<8x1024xf32>
    %72 = arith.addf %70, %71 : vector<8x1024xf32>
    %73 = vector.extract_strided_slice %14 {offsets = [232, 0], sizes = [8, 1024], strides = [1, 1]} : vector<512x1024xf32> to vector<8x1024xf32>
    %74 = arith.addf %72, %73 : vector<8x1024xf32>
    %75 = vector.extract_strided_slice %14 {offsets = [240, 0], sizes = [8, 1024], strides = [1, 1]} : vector<512x1024xf32> to vector<8x1024xf32>
    %76 = arith.addf %74, %75 : vector<8x1024xf32>
    %77 = vector.extract_strided_slice %14 {offsets = [248, 0], sizes = [8, 1024], strides = [1, 1]} : vector<512x1024xf32> to vector<8x1024xf32>
    %78 = arith.addf %76, %77 : vector<8x1024xf32>
    %79 = vector.extract_strided_slice %14 {offsets = [256, 0], sizes = [8, 1024], strides = [1, 1]} : vector<512x1024xf32> to vector<8x1024xf32>
    %80 = arith.addf %78, %79 : vector<8x1024xf32>
    %81 = vector.extract_strided_slice %14 {offsets = [264, 0], sizes = [8, 1024], strides = [1, 1]} : vector<512x1024xf32> to vector<8x1024xf32>
    %82 = arith.addf %80, %81 : vector<8x1024xf32>
    %83 = vector.extract_strided_slice %14 {offsets = [272, 0], sizes = [8, 1024], strides = [1, 1]} : vector<512x1024xf32> to vector<8x1024xf32>
    %84 = arith.addf %82, %83 : vector<8x1024xf32>
    %85 = vector.extract_strided_slice %14 {offsets = [280, 0], sizes = [8, 1024], strides = [1, 1]} : vector<512x1024xf32> to vector<8x1024xf32>
    %86 = arith.addf %84, %85 : vector<8x1024xf32>
    %87 = vector.extract_strided_slice %14 {offsets = [288, 0], sizes = [8, 1024], strides = [1, 1]} : vector<512x1024xf32> to vector<8x1024xf32>
    %88 = arith.addf %86, %87 : vector<8x1024xf32>
    %89 = vector.extract_strided_slice %14 {offsets = [296, 0], sizes = [8, 1024], strides = [1, 1]} : vector<512x1024xf32> to vector<8x1024xf32>
    %90 = arith.addf %88, %89 : vector<8x1024xf32>
    %91 = vector.extract_strided_slice %14 {offsets = [304, 0], sizes = [8, 1024], strides = [1, 1]} : vector<512x1024xf32> to vector<8x1024xf32>
    %92 = arith.addf %90, %91 : vector<8x1024xf32>
    %93 = vector.extract_strided_slice %14 {offsets = [312, 0], sizes = [8, 1024], strides = [1, 1]} : vector<512x1024xf32> to vector<8x1024xf32>
    %94 = arith.addf %92, %93 : vector<8x1024xf32>
    %95 = vector.extract_strided_slice %14 {offsets = [320, 0], sizes = [8, 1024], strides = [1, 1]} : vector<512x1024xf32> to vector<8x1024xf32>
    %96 = arith.addf %94, %95 : vector<8x1024xf32>
    %97 = vector.extract_strided_slice %14 {offsets = [328, 0], sizes = [8, 1024], strides = [1, 1]} : vector<512x1024xf32> to vector<8x1024xf32>
    %98 = arith.addf %96, %97 : vector<8x1024xf32>
    %99 = vector.extract_strided_slice %14 {offsets = [336, 0], sizes = [8, 1024], strides = [1, 1]} : vector<512x1024xf32> to vector<8x1024xf32>
    %100 = arith.addf %98, %99 : vector<8x1024xf32>
    %101 = vector.extract_strided_slice %14 {offsets = [344, 0], sizes = [8, 1024], strides = [1, 1]} : vector<512x1024xf32> to vector<8x1024xf32>
    %102 = arith.addf %100, %101 : vector<8x1024xf32>
    %103 = vector.extract_strided_slice %14 {offsets = [352, 0], sizes = [8, 1024], strides = [1, 1]} : vector<512x1024xf32> to vector<8x1024xf32>
    %104 = arith.addf %102, %103 : vector<8x1024xf32>
    %105 = vector.extract_strided_slice %14 {offsets = [360, 0], sizes = [8, 1024], strides = [1, 1]} : vector<512x1024xf32> to vector<8x1024xf32>
    %106 = arith.addf %104, %105 : vector<8x1024xf32>
    %107 = vector.extract_strided_slice %14 {offsets = [368, 0], sizes = [8, 1024], strides = [1, 1]} : vector<512x1024xf32> to vector<8x1024xf32>
    %108 = arith.addf %106, %107 : vector<8x1024xf32>
    %109 = vector.extract_strided_slice %14 {offsets = [376, 0], sizes = [8, 1024], strides = [1, 1]} : vector<512x1024xf32> to vector<8x1024xf32>
    %110 = arith.addf %108, %109 : vector<8x1024xf32>
    %111 = vector.extract_strided_slice %14 {offsets = [384, 0], sizes = [8, 1024], strides = [1, 1]} : vector<512x1024xf32> to vector<8x1024xf32>
    %112 = arith.addf %110, %111 : vector<8x1024xf32>
    %113 = vector.extract_strided_slice %14 {offsets = [392, 0], sizes = [8, 1024], strides = [1, 1]} : vector<512x1024xf32> to vector<8x1024xf32>
    %114 = arith.addf %112, %113 : vector<8x1024xf32>
    %115 = vector.extract_strided_slice %14 {offsets = [400, 0], sizes = [8, 1024], strides = [1, 1]} : vector<512x1024xf32> to vector<8x1024xf32>
    %116 = arith.addf %114, %115 : vector<8x1024xf32>
    %117 = vector.extract_strided_slice %14 {offsets = [408, 0], sizes = [8, 1024], strides = [1, 1]} : vector<512x1024xf32> to vector<8x1024xf32>
    %118 = arith.addf %116, %117 : vector<8x1024xf32>
    %119 = vector.extract_strided_slice %14 {offsets = [416, 0], sizes = [8, 1024], strides = [1, 1]} : vector<512x1024xf32> to vector<8x1024xf32>
    %120 = arith.addf %118, %119 : vector<8x1024xf32>
    %121 = vector.extract_strided_slice %14 {offsets = [424, 0], sizes = [8, 1024], strides = [1, 1]} : vector<512x1024xf32> to vector<8x1024xf32>
    %122 = arith.addf %120, %121 : vector<8x1024xf32>
    %123 = vector.extract_strided_slice %14 {offsets = [432, 0], sizes = [8, 1024], strides = [1, 1]} : vector<512x1024xf32> to vector<8x1024xf32>
    %124 = arith.addf %122, %123 : vector<8x1024xf32>
    %125 = vector.extract_strided_slice %14 {offsets = [440, 0], sizes = [8, 1024], strides = [1, 1]} : vector<512x1024xf32> to vector<8x1024xf32>
    %126 = arith.addf %124, %125 : vector<8x1024xf32>
    %127 = vector.extract_strided_slice %14 {offsets = [448, 0], sizes = [8, 1024], strides = [1, 1]} : vector<512x1024xf32> to vector<8x1024xf32>
    %128 = arith.addf %126, %127 : vector<8x1024xf32>
    %129 = vector.extract_strided_slice %14 {offsets = [456, 0], sizes = [8, 1024], strides = [1, 1]} : vector<512x1024xf32> to vector<8x1024xf32>
    %130 = arith.addf %128, %129 : vector<8x1024xf32>
    %131 = vector.extract_strided_slice %14 {offsets = [464, 0], sizes = [8, 1024], strides = [1, 1]} : vector<512x1024xf32> to vector<8x1024xf32>
    %132 = arith.addf %130, %131 : vector<8x1024xf32>
    %133 = vector.extract_strided_slice %14 {offsets = [472, 0], sizes = [8, 1024], strides = [1, 1]} : vector<512x1024xf32> to vector<8x1024xf32>
    %134 = arith.addf %132, %133 : vector<8x1024xf32>
    %135 = vector.extract_strided_slice %14 {offsets = [480, 0], sizes = [8, 1024], strides = [1, 1]} : vector<512x1024xf32> to vector<8x1024xf32>
    %136 = arith.addf %134, %135 : vector<8x1024xf32>
    %137 = vector.extract_strided_slice %14 {offsets = [488, 0], sizes = [8, 1024], strides = [1, 1]} : vector<512x1024xf32> to vector<8x1024xf32>
    %138 = arith.addf %136, %137 : vector<8x1024xf32>
    %139 = vector.extract_strided_slice %14 {offsets = [496, 0], sizes = [8, 1024], strides = [1, 1]} : vector<512x1024xf32> to vector<8x1024xf32>
    %140 = arith.addf %138, %139 : vector<8x1024xf32>
    %141 = vector.extract_strided_slice %14 {offsets = [504, 0], sizes = [8, 1024], strides = [1, 1]} : vector<512x1024xf32> to vector<8x1024xf32>
    %142 = arith.addf %140, %141 : vector<8x1024xf32>
    %c0_12 = arith.constant 0 : index
    %c0_13 = arith.constant 0 : index
    %143 = vector.load %arg8[%c0_12, %c0_13] : memref<8x1024xf32, #tpu.memory_space<vmem>>, vector<8x1024xf32>
    tpu.vector_store %arg8[%c0_12, %c0_13], %142 {strides = array<i32>} : memref<8x1024xf32, #tpu.memory_space<vmem>>, vector<8x1024xf32>,
    %144 = arith.mulf %14, %14 : vector<512x1024xf32>
    %145 = vector.extract_strided_slice %144 {offsets = [0, 0], sizes = [8, 1024], strides = [1, 1]} : vector<512x1024xf32> to vector<8x1024xf32>
    %146 = vector.extract_strided_slice %144 {offsets = [8, 0], sizes = [8, 1024], strides = [1, 1]} : vector<512x1024xf32> to vector<8x1024xf32>
    %147 = arith.addf %145, %146 : vector<8x1024xf32>
    %148 = vector.extract_strided_slice %144 {offsets = [16, 0], sizes = [8, 1024], strides = [1, 1]} : vector<512x1024xf32> to vector<8x1024xf32>
    %149 = arith.addf %147, %148 : vector<8x1024xf32>
    %150 = vector.extract_strided_slice %144 {offsets = [24, 0], sizes = [8, 1024], strides = [1, 1]} : vector<512x1024xf32> to vector<8x1024xf32>
    %151 = arith.addf %149, %150 : vector<8x1024xf32>
    %152 = vector.extract_strided_slice %144 {offsets = [32, 0], sizes = [8, 1024], strides = [1, 1]} : vector<512x1024xf32> to vector<8x1024xf32>
    %153 = arith.addf %151, %152 : vector<8x1024xf32>
    %154 = vector.extract_strided_slice %144 {offsets = [40, 0], sizes = [8, 1024], strides = [1, 1]} : vector<512x1024xf32> to vector<8x1024xf32>
    %155 = arith.addf %153, %154 : vector<8x1024xf32>
    %156 = vector.extract_strided_slice %144 {offsets = [48, 0], sizes = [8, 1024], strides = [1, 1]} : vector<512x1024xf32> to vector<8x1024xf32>
    %157 = arith.addf %155, %156 : vector<8x1024xf32>
    %158 = vector.extract_strided_slice %144 {offsets = [56, 0], sizes = [8, 1024], strides = [1, 1]} : vector<512x1024xf32> to vector<8x1024xf32>
    %159 = arith.addf %157, %158 : vector<8x1024xf32>
    %160 = vector.extract_strided_slice %144 {offsets = [64, 0], sizes = [8, 1024], strides = [1, 1]} : vector<512x1024xf32> to vector<8x1024xf32>
    %161 = arith.addf %159, %160 : vector<8x1024xf32>
    %162 = vector.extract_strided_slice %144 {offsets = [72, 0], sizes = [8, 1024], strides = [1, 1]} : vector<512x1024xf32> to vector<8x1024xf32>
    %163 = arith.addf %161, %162 : vector<8x1024xf32>
    %164 = vector.extract_strided_slice %144 {offsets = [80, 0], sizes = [8, 1024], strides = [1, 1]} : vector<512x1024xf32> to vector<8x1024xf32>
    %165 = arith.addf %163, %164 : vector<8x1024xf32>
    %166 = vector.extract_strided_slice %144 {offsets = [88, 0], sizes = [8, 1024], strides = [1, 1]} : vector<512x1024xf32> to vector<8x1024xf32>
    %167 = arith.addf %165, %166 : vector<8x1024xf32>
    %168 = vector.extract_strided_slice %144 {offsets = [96, 0], sizes = [8, 1024], strides = [1, 1]} : vector<512x1024xf32> to vector<8x1024xf32>
    %169 = arith.addf %167, %168 : vector<8x1024xf32>
    %170 = vector.extract_strided_slice %144 {offsets = [104, 0], sizes = [8, 1024], strides = [1, 1]} : vector<512x1024xf32> to vector<8x1024xf32>
    %171 = arith.addf %169, %170 : vector<8x1024xf32>
    %172 = vector.extract_strided_slice %144 {offsets = [112, 0], sizes = [8, 1024], strides = [1, 1]} : vector<512x1024xf32> to vector<8x1024xf32>
    %173 = arith.addf %171, %172 : vector<8x1024xf32>
    %174 = vector.extract_strided_slice %144 {offsets = [120, 0], sizes = [8, 1024], strides = [1, 1]} : vector<512x1024xf32> to vector<8x1024xf32>
    %175 = arith.addf %173, %174 : vector<8x1024xf32>
    %176 = vector.extract_strided_slice %144 {offsets = [128, 0], sizes = [8, 1024], strides = [1, 1]} : vector<512x1024xf32> to vector<8x1024xf32>
    %177 = arith.addf %175, %176 : vector<8x1024xf32>
    %178 = vector.extract_strided_slice %144 {offsets = [136, 0], sizes = [8, 1024], strides = [1, 1]} : vector<512x1024xf32> to vector<8x1024xf32>
    %179 = arith.addf %177, %178 : vector<8x1024xf32>
    %180 = vector.extract_strided_slice %144 {offsets = [144, 0], sizes = [8, 1024], strides = [1, 1]} : vector<512x1024xf32> to vector<8x1024xf32>
    %181 = arith.addf %179, %180 : vector<8x1024xf32>
    %182 = vector.extract_strided_slice %144 {offsets = [152, 0], sizes = [8, 1024], strides = [1, 1]} : vector<512x1024xf32> to vector<8x1024xf32>
    %183 = arith.addf %181, %182 : vector<8x1024xf32>
    %184 = vector.extract_strided_slice %144 {offsets = [160, 0], sizes = [8, 1024], strides = [1, 1]} : vector<512x1024xf32> to vector<8x1024xf32>
    %185 = arith.addf %183, %184 : vector<8x1024xf32>
    %186 = vector.extract_strided_slice %144 {offsets = [168, 0], sizes = [8, 1024], strides = [1, 1]} : vector<512x1024xf32> to vector<8x1024xf32>
    %187 = arith.addf %185, %186 : vector<8x1024xf32>
    %188 = vector.extract_strided_slice %144 {offsets = [176, 0], sizes = [8, 1024], strides = [1, 1]} : vector<512x1024xf32> to vector<8x1024xf32>
    %189 = arith.addf %187, %188 : vector<8x1024xf32>
    %190 = vector.extract_strided_slice %144 {offsets = [184, 0], sizes = [8, 1024], strides = [1, 1]} : vector<512x1024xf32> to vector<8x1024xf32>
    %191 = arith.addf %189, %190 : vector<8x1024xf32>
    %192 = vector.extract_strided_slice %144 {offsets = [192, 0], sizes = [8, 1024], strides = [1, 1]} : vector<512x1024xf32> to vector<8x1024xf32>
    %193 = arith.addf %191, %192 : vector<8x1024xf32>
    %194 = vector.extract_strided_slice %144 {offsets = [200, 0], sizes = [8, 1024], strides = [1, 1]} : vector<512x1024xf32> to vector<8x1024xf32>
    %195 = arith.addf %193, %194 : vector<8x1024xf32>
    %196 = vector.extract_strided_slice %144 {offsets = [208, 0], sizes = [8, 1024], strides = [1, 1]} : vector<512x1024xf32> to vector<8x1024xf32>
    %197 = arith.addf %195, %196 : vector<8x1024xf32>
    %198 = vector.extract_strided_slice %144 {offsets = [216, 0], sizes = [8, 1024], strides = [1, 1]} : vector<512x1024xf32> to vector<8x1024xf32>
    %199 = arith.addf %197, %198 : vector<8x1024xf32>
    %200 = vector.extract_strided_slice %144 {offsets = [224, 0], sizes = [8, 1024], strides = [1, 1]} : vector<512x1024xf32> to vector<8x1024xf32>
    %201 = arith.addf %199, %200 : vector<8x1024xf32>
    %202 = vector.extract_strided_slice %144 {offsets = [232, 0], sizes = [8, 1024], strides = [1, 1]} : vector<512x1024xf32> to vector<8x1024xf32>
    %203 = arith.addf %201, %202 : vector<8x1024xf32>
    %204 = vector.extract_strided_slice %144 {offsets = [240, 0], sizes = [8, 1024], strides = [1, 1]} : vector<512x1024xf32> to vector<8x1024xf32>
    %205 = arith.addf %203, %204 : vector<8x1024xf32>
    %206 = vector.extract_strided_slice %144 {offsets = [248, 0], sizes = [8, 1024], strides = [1, 1]} : vector<512x1024xf32> to vector<8x1024xf32>
    %207 = arith.addf %205, %206 : vector<8x1024xf32>
    %208 = vector.extract_strided_slice %144 {offsets = [256, 0], sizes = [8, 1024], strides = [1, 1]} : vector<512x1024xf32> to vector<8x1024xf32>
    %209 = arith.addf %207, %208 : vector<8x1024xf32>
    %210 = vector.extract_strided_slice %144 {offsets = [264, 0], sizes = [8, 1024], strides = [1, 1]} : vector<512x1024xf32> to vector<8x1024xf32>
    %211 = arith.addf %209, %210 : vector<8x1024xf32>
    %212 = vector.extract_strided_slice %144 {offsets = [272, 0], sizes = [8, 1024], strides = [1, 1]} : vector<512x1024xf32> to vector<8x1024xf32>
    %213 = arith.addf %211, %212 : vector<8x1024xf32>
    %214 = vector.extract_strided_slice %144 {offsets = [280, 0], sizes = [8, 1024], strides = [1, 1]} : vector<512x1024xf32> to vector<8x1024xf32>
    %215 = arith.addf %213, %214 : vector<8x1024xf32>
    %216 = vector.extract_strided_slice %144 {offsets = [288, 0], sizes = [8, 1024], strides = [1, 1]} : vector<512x1024xf32> to vector<8x1024xf32>
    %217 = arith.addf %215, %216 : vector<8x1024xf32>
    %218 = vector.extract_strided_slice %144 {offsets = [296, 0], sizes = [8, 1024], strides = [1, 1]} : vector<512x1024xf32> to vector<8x1024xf32>
    %219 = arith.addf %217, %218 : vector<8x1024xf32>
    %220 = vector.extract_strided_slice %144 {offsets = [304, 0], sizes = [8, 1024], strides = [1, 1]} : vector<512x1024xf32> to vector<8x1024xf32>
    %221 = arith.addf %219, %220 : vector<8x1024xf32>
    %222 = vector.extract_strided_slice %144 {offsets = [312, 0], sizes = [8, 1024], strides = [1, 1]} : vector<512x1024xf32> to vector<8x1024xf32>
    %223 = arith.addf %221, %222 : vector<8x1024xf32>
    %224 = vector.extract_strided_slice %144 {offsets = [320, 0], sizes = [8, 1024], strides = [1, 1]} : vector<512x1024xf32> to vector<8x1024xf32>
    %225 = arith.addf %223, %224 : vector<8x1024xf32>
    %226 = vector.extract_strided_slice %144 {offsets = [328, 0], sizes = [8, 1024], strides = [1, 1]} : vector<512x1024xf32> to vector<8x1024xf32>
    %227 = arith.addf %225, %226 : vector<8x1024xf32>
    %228 = vector.extract_strided_slice %144 {offsets = [336, 0], sizes = [8, 1024], strides = [1, 1]} : vector<512x1024xf32> to vector<8x1024xf32>
    %229 = arith.addf %227, %228 : vector<8x1024xf32>
    %230 = vector.extract_strided_slice %144 {offsets = [344, 0], sizes = [8, 1024], strides = [1, 1]} : vector<512x1024xf32> to vector<8x1024xf32>
    %231 = arith.addf %229, %230 : vector<8x1024xf32>
    %232 = vector.extract_strided_slice %144 {offsets = [352, 0], sizes = [8, 1024], strides = [1, 1]} : vector<512x1024xf32> to vector<8x1024xf32>
    %233 = arith.addf %231, %232 : vector<8x1024xf32>
    %234 = vector.extract_strided_slice %144 {offsets = [360, 0], sizes = [8, 1024], strides = [1, 1]} : vector<512x1024xf32> to vector<8x1024xf32>
    %235 = arith.addf %233, %234 : vector<8x1024xf32>
    %236 = vector.extract_strided_slice %144 {offsets = [368, 0], sizes = [8, 1024], strides = [1, 1]} : vector<512x1024xf32> to vector<8x1024xf32>
    %237 = arith.addf %235, %236 : vector<8x1024xf32>
    %238 = vector.extract_strided_slice %144 {offsets = [376, 0], sizes = [8, 1024], strides = [1, 1]} : vector<512x1024xf32> to vector<8x1024xf32>
    %239 = arith.addf %237, %238 : vector<8x1024xf32>
    %240 = vector.extract_strided_slice %144 {offsets = [384, 0], sizes = [8, 1024], strides = [1, 1]} : vector<512x1024xf32> to vector<8x1024xf32>
    %241 = arith.addf %239, %240 : vector<8x1024xf32>
    %242 = vector.extract_strided_slice %144 {offsets = [392, 0], sizes = [8, 1024], strides = [1, 1]} : vector<512x1024xf32> to vector<8x1024xf32>
    %243 = arith.addf %241, %242 : vector<8x1024xf32>
    %244 = vector.extract_strided_slice %144 {offsets = [400, 0], sizes = [8, 1024], strides = [1, 1]} : vector<512x1024xf32> to vector<8x1024xf32>
    %245 = arith.addf %243, %244 : vector<8x1024xf32>
    %246 = vector.extract_strided_slice %144 {offsets = [408, 0], sizes = [8, 1024], strides = [1, 1]} : vector<512x1024xf32> to vector<8x1024xf32>
    %247 = arith.addf %245, %246 : vector<8x1024xf32>
    %248 = vector.extract_strided_slice %144 {offsets = [416, 0], sizes = [8, 1024], strides = [1, 1]} : vector<512x1024xf32> to vector<8x1024xf32>
    %249 = arith.addf %247, %248 : vector<8x1024xf32>
    %250 = vector.extract_strided_slice %144 {offsets = [424, 0], sizes = [8, 1024], strides = [1, 1]} : vector<512x1024xf32> to vector<8x1024xf32>
    %251 = arith.addf %249, %250 : vector<8x1024xf32>
    %252 = vector.extract_strided_slice %144 {offsets = [432, 0], sizes = [8, 1024], strides = [1, 1]} : vector<512x1024xf32> to vector<8x1024xf32>
    %253 = arith.addf %251, %252 : vector<8x1024xf32>
    %254 = vector.extract_strided_slice %144 {offsets = [440, 0], sizes = [8, 1024], strides = [1, 1]} : vector<512x1024xf32> to vector<8x1024xf32>
    %255 = arith.addf %253, %254 : vector<8x1024xf32>
    %256 = vector.extract_strided_slice %144 {offsets = [448, 0], sizes = [8, 1024], strides = [1, 1]} : vector<512x1024xf32> to vector<8x1024xf32>
    %257 = arith.addf %255, %256 : vector<8x1024xf32>
    %258 = vector.extract_strided_slice %144 {offsets = [456, 0], sizes = [8, 1024], strides = [1, 1]} : vector<512x1024xf32> to vector<8x1024xf32>
    %259 = arith.addf %257, %258 : vector<8x1024xf32>
    %260 = vector.extract_strided_slice %144 {offsets = [464, 0], sizes = [8, 1024], strides = [1, 1]} : vector<512x1024xf32> to vector<8x1024xf32>
    %261 = arith.addf %259, %260 : vector<8x1024xf32>
    %262 = vector.extract_strided_slice %144 {offsets = [472, 0], sizes = [8, 1024], strides = [1, 1]} : vector<512x1024xf32> to vector<8x1024xf32>
    %263 = arith.addf %261, %262 : vector<8x1024xf32>
    %264 = vector.extract_strided_slice %144 {offsets = [480, 0], sizes = [8, 1024], strides = [1, 1]} : vector<512x1024xf32> to vector<8x1024xf32>
    %265 = arith.addf %263, %264 : vector<8x1024xf32>
    %266 = vector.extract_strided_slice %144 {offsets = [488, 0], sizes = [8, 1024], strides = [1, 1]} : vector<512x1024xf32> to vector<8x1024xf32>
    %267 = arith.addf %265, %266 : vector<8x1024xf32>
    %268 = vector.extract_strided_slice %144 {offsets = [496, 0], sizes = [8, 1024], strides = [1, 1]} : vector<512x1024xf32> to vector<8x1024xf32>
    %269 = arith.addf %267, %268 : vector<8x1024xf32>
    %270 = vector.extract_strided_slice %144 {offsets = [504, 0], sizes = [8, 1024], strides = [1, 1]} : vector<512x1024xf32> to vector<8x1024xf32>
    %271 = arith.addf %269, %270 : vector<8x1024xf32>
    %c0_14 = arith.constant 0 : index
    %c0_15 = arith.constant 0 : index
    %272 = vector.load %arg9[%c0_14, %c0_15] : memref<8x1024xf32, #tpu.memory_space<vmem>>, vector<8x1024xf32>
    tpu.vector_store %arg9[%c0_14, %c0_15], %271 {strides = array<i32>} : memref<8x1024xf32, #tpu.memory_space<vmem>>, vector<8x1024xf32>,
    return
  }
  func.func @transform_0(%arg0: i32, %arg1: i32) -> (i32, i32) {
    %c0_i32 = arith.constant 0 : i32
    %c0_i32_0 = arith.constant 0 : i32
    return %arg0, %c0_i32 : i32, i32
  }
  func.func @transform_1(%arg0: i32, %arg1: i32) -> (i32, i32) {
    %c0_i32 = arith.constant 0 : i32
    %c0_i32_0 = arith.constant 0 : i32
    return %c0_i32, %arg1 : i32, i32
  }
  func.func @transform_2(%arg0: i32, %arg1: i32) -> (i32, i32) {
    %c0_i32 = arith.constant 0 : i32
    %c0_i32_0 = arith.constant 0 : i32
    return %c0_i32, %arg1 : i32, i32
  }
  func.func @transform_3(%arg0: i32, %arg1: i32) -> (i32, i32) {
    %c0_i32 = arith.constant 0 : i32
    %c0_i32_0 = arith.constant 0 : i32
    %c0_i32_1 = arith.constant 0 : i32
    return %c0_i32, %c0_i32_0 : i32, i32
  }
  func.func @transform_4(%arg0: i32, %arg1: i32) -> (i32, i32) {
    %c0_i32 = arith.constant 0 : i32
    %c0_i32_0 = arith.constant 0 : i32
    %c0_i32_1 = arith.constant 0 : i32
    return %c0_i32, %c0_i32_0 : i32, i32
  }
  func.func @transform_5(%arg0: i32, %arg1: i32) -> (i32, i32) {
    %c0_i32 = arith.constant 0 : i32
    return %arg0, %arg1 : i32, i32
  }
  func.func @transform_6(%arg0: i32, %arg1: i32) -> (i32, i32) {
    %c0_i32 = arith.constant 0 : i32
    return %arg0, %arg1 : i32, i32
  }
  func.func @transform_7(%arg0: i32, %arg1: i32) -> (i32, i32) {
    %c0_i32 = arith.constant 0 : i32
    return %arg0, %arg1 : i32, i32
  }
}

module attributes {stable_mosaic.version = 11 : i64} {
  func.func @kernel(%arg0: i32, %arg1: i32, %arg2: memref<512x256xf32, #tpu.memory_space<vmem>>, %arg3: memref<256x128xbf16, #tpu.memory_space<vmem>>, %arg4: memref<1x128xf32, #tpu.memory_space<vmem>>, %arg5: memref<1x256xf32, #tpu.memory_space<vmem>>, %arg6: memref<1x256xf32, #tpu.memory_space<vmem>>, %arg7: memref<512x128xf32, #tpu.memory_space<vmem>>) attributes {dimension_semantics = [#tpu.dimension_semantics<parallel>, #tpu.dimension_semantics<parallel>], iteration_bounds = array<i64: 4, 1>, scalar_prefetch = 0 : i64, scratch_operands = 0 : i64, tpu.core_type = #tpu.core_type<tc>, window_params = [{transform_indices = @transform_0, window_bounds = array<i64: 512, 256>}, {transform_indices = @transform_1, window_bounds = array<i64: 256, 128>}, {transform_indices = @transform_2, window_bounds = array<i64: 1, 128>}, {pipeline_mode = #tpu.pipeline_mode<synchronous>, transform_indices = @transform_3, window_bounds = array<i64: 1, 256>}, {pipeline_mode = #tpu.pipeline_mode<synchronous>, transform_indices = @transform_4, window_bounds = array<i64: 1, 256>}, {transform_indices = @transform_5, window_bounds = array<i64: 512, 128>}]} {
    %c0 = arith.constant 0 : index
    %c0_0 = arith.constant 0 : index
    %0 = vector.load %arg2[%c0, %c0_0] : memref<512x256xf32, #tpu.memory_space<vmem>>, vector<512x256xf32>
    %c0_1 = arith.constant 0 : index
    %c0_2 = arith.constant 0 : index
    %1 = vector.load %arg5[%c0_1, %c0_2] : memref<1x256xf32, #tpu.memory_space<vmem>>, vector<1x256xf32>
    %2 = vector.broadcast %1 : vector<1x256xf32> to vector<512x256xf32>
    %3 = arith.mulf %0, %2 : vector<512x256xf32>
    %c0_3 = arith.constant 0 : index
    %c0_4 = arith.constant 0 : index
    %4 = vector.load %arg6[%c0_3, %c0_4] : memref<1x256xf32, #tpu.memory_space<vmem>>, vector<1x256xf32>
    %5 = vector.broadcast %4 : vector<1x256xf32> to vector<512x256xf32>
    %6 = arith.addf %3, %5 : vector<512x256xf32>
    %cst = arith.constant 0.000000e+00 : f32
    %7 = vector.broadcast %cst : f32 to vector<512x256xf32>
    %8 = arith.maximumf %6, %7 : vector<512x256xf32>
    %9 = arith.truncf %8 : vector<512x256xf32> to vector<512x256xbf16>
    %c0_5 = arith.constant 0 : index
    %c0_6 = arith.constant 0 : index
    %10 = vector.load %arg3[%c0_5, %c0_6] : memref<256x128xbf16, #tpu.memory_space<vmem>>, vector<256x128xbf16>
    %cst_7 = arith.constant dense<0.000000e+00> : vector<512x128xf32>
    %11 = tpu.matmul %9, %10, %cst_7 {dimension_numbers = #tpu.dot_dimension_numbers<[1], [0], [0], [1], [0, 0, 1, 1], [], []>} : vector<512x256xbf16>, vector<256x128xbf16>, vector<512x128xf32> -> vector<512x128xf32>
    %c0_8 = arith.constant 0 : index
    %c0_9 = arith.constant 0 : index
    %12 = vector.load %arg4[%c0_8, %c0_9] : memref<1x128xf32, #tpu.memory_space<vmem>>, vector<1x128xf32>
    %13 = vector.broadcast %12 : vector<1x128xf32> to vector<512x128xf32>
    %14 = arith.addf %11, %13 : vector<512x128xf32>
    %c0_10 = arith.constant 0 : index
    %c0_11 = arith.constant 0 : index
    %15 = vector.load %arg7[%c0_10, %c0_11] : memref<512x128xf32, #tpu.memory_space<vmem>>, vector<512x128xf32>
    tpu.vector_store %arg7[%c0_10, %c0_11], %14 {strides = array<i32>} : memref<512x128xf32, #tpu.memory_space<vmem>>, vector<512x128xf32>,
    return
  }
  func.func @transform_0(%arg0: i32, %arg1: i32) -> (i32, i32) {
    %c0_i32 = arith.constant 0 : i32
    %c0_i32_0 = arith.constant 0 : i32
    return %arg0, %c0_i32 : i32, i32
  }
  func.func @transform_1(%arg0: i32, %arg1: i32) -> (i32, i32) {
    %c0_i32 = arith.constant 0 : i32
    %c0_i32_0 = arith.constant 0 : i32
    return %c0_i32, %arg1 : i32, i32
  }
  func.func @transform_2(%arg0: i32, %arg1: i32) -> (i32, i32) {
    %c0_i32 = arith.constant 0 : i32
    %c0_i32_0 = arith.constant 0 : i32
    return %c0_i32, %arg1 : i32, i32
  }
  func.func @transform_3(%arg0: i32, %arg1: i32) -> (i32, i32) {
    %c0_i32 = arith.constant 0 : i32
    %c0_i32_0 = arith.constant 0 : i32
    %c0_i32_1 = arith.constant 0 : i32
    return %c0_i32, %c0_i32_0 : i32, i32
  }
  func.func @transform_4(%arg0: i32, %arg1: i32) -> (i32, i32) {
    %c0_i32 = arith.constant 0 : i32
    %c0_i32_0 = arith.constant 0 : i32
    %c0_i32_1 = arith.constant 0 : i32
    return %c0_i32, %c0_i32_0 : i32, i32
  }
  func.func @transform_5(%arg0: i32, %arg1: i32) -> (i32, i32) {
    %c0_i32 = arith.constant 0 : i32
    return %arg0, %arg1 : i32, i32
  }
}

</mosaic_0001>

<bundles_post_ra>
// kernel: tile.18
= control target key start
LH: loop header
LB: loop body
LE: loop exit
PB: predicated region body
PF: predicated region fallthrough
CT: control target
= control target key end

     0   :  { %2 = vsyncpa [#allocation1], 0  ;;  %s44_s6 = smov [#allocation0]   ;;  %s70_s0 = inlined_call_operand.hbm [shape: f32[4], index: 0, kind: input, shape index: {}]   ;;  %s71_s1 = inlined_call_operand.vmem [shape: f32[4,4], index: 1, kind: output, shape index: {}]  }
   0x1   :  { %s9_s7 = sshll.u32 %s44_s6, 4  ;;  %s20_s10 = scalar_lea.hbm %s70_s0, 16  ;;  %s10_s7 = int_to_ptr.vmem [resolvable:$true] %s9_s7 }
   0x2   :  { %p21_p0 = scmp.ne.s32.totalorder %s70_s0, %s20_s10  ;;  %p24_p1 = scmp.lt.u32.totalorder %s20_s10, %s70_s0 }
   0x4   :  { %p26_p2 = pnand %p24_p1, %p21_p0 }
   0x6   :  { %29 = shalt.err (!%p26_p2)
}
   0x7   :  { %s30_s15 = scalar_lea.vmem %s10_s7, 16  ;;  %s34_s16 = scalar_lea.vmem %s10_s7, 32 }
   0x8   :  { %p31_p3 = scmp.ne.s32.totalorder %s10_s7, %s30_s15  ;;  %p35_p4 = scmp.lt.s32.totalorder %s10_s7, %s10_s7 }
   0x9   :  { %p36_p5 = scmp.lt.s32.totalorder %s34_s16, %s30_s15 }
   0xb   :  { %p37_p6 = por %p36_p5, %p35_p4 }
   0xd   :  { %p38_p7 = pnand %p37_p6, %p31_p3 }
   0xf   :  { %41 = shalt.err (!%p38_p7)
}
  0x10   :  { %12 = dma.hbm_to_vmem [thread:$0]  %s70_s0, 16, %s10_s7, [#allocation1]  }
  0x11   :  { %42 = dma.done.wait [#allocation1], 16  }
  0x12   :  { %43 = vsyncadd [#allocation1], 4294967280  ;;  %v16_v0 = vld [vmem:[#allocation0] ss:$0 sm:$0xff] }
  0x13   :  { %17 = vst [vmem:[%s71_s1] sm:$0xf] %v16_v0 }
  0x14   :  { %18 = vsyncpa [#allocation1], 1 }

// kernel: tile.19
= control target key start
LH: loop header
LB: loop body
LE: loop exit
PB: predicated region body
PF: predicated region fallthrough
CT: control target
= control target key end

     0   :  { %vm7_vm0 = vcmask 31744   ;;  %s37_s8 = smov 4   ;;  %s38_s9 = smov 8   ;;  %vm13_vm1 = vcmask 130144   ;;  %vm19_vm2 = vcmask 97344   ;;  %vm25_vm3 = vcmask 64544   ;;  %s55_s0 = inlined_call_operand.vmem [shape: f32[4,4], index: 0, kind: input, shape index: {}]   ;;  %s56_s1 = inlined_call_operand.vmem [shape: f32[16], index: 1, kind: output, shape index: {}]  }
   0x1   :  { %v4_v0 = vld [vmem:[%s55_s0] sm:$0xf]  ;;  %s36_s0 = smov 12  }
   0x2   :  { %5 = vst [vmem:[#allocation1] sm:$0xf] %v4_v0 }
   0x9   :  { %v10_v1 = vld [vmem:[#allocation1 + $0x3] sm:$0x1]   ;;  %v22_v2 = vld [vmem:[#allocation1 + $0x1] sm:$0x1]   ;;  %v6_v3 = vld [vmem:[#allocation1] sm:$0x1]  }
   0xa   :  { %11 = vrot.lane.b32.xlu0 %v10_v1, %s36_s0  ;;  %23 = vrot.lane.b32.xlu1 %v22_v2, %s37_s8  ;;  %v16_v4 = vld [vmem:[#allocation1 + $0x2] sm:$0x1]   ;;  %8 = vst.msk [vmem:[#allocation0] sm:$0x1] %vm7_vm0, %v6_v3  }
   0xe   :  { %17 = vrot.lane.b32.xlu0 %v16_v4, %s38_s9 }
  0x7c   :  { %v12_v5 = vpop.permute.xlu0 %11   ;;  %v24_v6 = vpop.permute.xlu1 %23  }
  0x7d   :  { %14 = vst.msk [vmem:[#allocation0] sm:$0x1] %vm13_vm1, %v12_v5  }
  0x80   :  { %v18_v7 = vpop.permute.xlu0 %17  }
  0x81   :  { %20 = vst.msk [vmem:[#allocation0] sm:$0x1] %vm19_vm2, %v18_v7  }
  0x82   :  { %26 = vst.msk [vmem:[#allocation0] sm:$0x1] %vm25_vm3, %v24_v6  }
  0x89   :  { %v30_v8 = vld [vmem:[#allocation0] sm:$0x1] }
  0x8a   :  { %32 = vst [vmem:[%s56_s1] sm:$0x1] %v30_v8 }

// kernel: position_sensitive_segmentation_forward.3
= control target key start
LH: loop header
LB: loop body
LE: loop exit
PB: predicated region body
PF: predicated region fallthrough
CT: control target
= control target key end

     0   :  { %s2974_s1 = inlined_call_operand.vmem [shape: bf16[256,256], index: 1, kind: input, shape index: {}]   ;;  %s2975_s0 = inlined_call_operand.vmem [shape: bf16[512,256], index: 0, kind: input, shape index: {}]   ;;  %s2976_s2 = inlined_call_operand.vmem [shape: f32[1,256], index: 2, kind: input, shape index: {}]   ;;  %s2977_s3 = inlined_call_operand.vmem [shape: f32[512,256], index: 3, kind: output, shape index: {0}]   ;;  %s2978_s4 = inlined_call_operand.vmem [shape: f32[8,256], index: 4, kind: output, shape index: {1}]   ;;  %s2979_s5 = inlined_call_operand.vmem [shape: f32[8,256], index: 5, kind: output, shape index: {2}]  }
   0x1   :  { %v1610_v0 = vld [vmem:[%s2974_s1 + $0x4] ss:$8 sps:$4 sm:$0xff]   ;;  %v1612_v1 = vld [vmem:[%s2974_s1] ss:$8 sps:$4 sm:$0xff]   ;;  %v1613_v2 = vld [vmem:[%s2974_s1 + $0x14] ss:$8 sps:$4 sm:$0xff]  }
   0x2   :  { %605 = vmatprep.subr.bf16.mxu0 %v1610_v0  ;;  %1578 = vmatprep.subr.bf16.mxu1 %v1610_v0  ;;  %v1615_v3 = vld [vmem:[%s2974_s1 + $0x10] ss:$8 sps:$4 sm:$0xff]   ;;  %v1616_v4 = vld [vmem:[%s2974_s1 + $0x24] ss:$8 sps:$4 sm:$0xff]   ;;  %v1618_v5 = vld [vmem:[%s2974_s1 + $0x20] ss:$8 sps:$4 sm:$0xff]  }
   0x3   :  { %606 = vmatpush1.bf16.msra.mxu0 %v1612_v1  ;;  %1594 = vmatpush1.bf16.msra.mxu1 %v1612_v1  ;;  %v1619_v6 = vld [vmem:[%s2974_s1 + $0x34] ss:$8 sps:$4 sm:$0xff]   ;;  %v1621_v7 = vld [vmem:[%s2974_s1 + $0x30] ss:$8 sps:$4 sm:$0xff]   ;;  %v1622_v8 = vld [vmem:[%s2974_s1 + $0x44] ss:$8 sps:$4 sm:$0xff]  }
   0x4   :  { %607 = vmatprep.subr.bf16.mxu0 %v1613_v2  ;;  %1579 = vmatprep.subr.bf16.mxu1 %v1613_v2  ;;  %v1624_v9 = vld [vmem:[%s2974_s1 + $0x40] ss:$8 sps:$4 sm:$0xff]   ;;  %v1625_v10 = vld [vmem:[%s2974_s1 + $0x54] ss:$8 sps:$4 sm:$0xff]   ;;  %v1627_v11 = vld [vmem:[%s2974_s1 + $0x50] ss:$8 sps:$4 sm:$0xff]  }
   0x5   :  { %v1628_v12 = vld [vmem:[%s2974_s1 + $0x64] ss:$8 sps:$4 sm:$0xff]   ;;  %v1630_v14 = vld [vmem:[%s2974_s1 + $0x60] ss:$8 sps:$4 sm:$0xff]   ;;  %v1631_v15 = vld [vmem:[%s2974_s1 + $0x74] ss:$8 sps:$4 sm:$0xff]  }
   0x6   :  { %v1660_v13 = vld [vmem:[%s2975_s0 + $0x4] ss:$8 sps:$4 sm:$0xff]   ;;  %v1633_v16 = vld [vmem:[%s2974_s1 + $0x70] ss:$8 sps:$4 sm:$0xff]   ;;  %v1636_v18 = vld [vmem:[%s2974_s1 + $0x80] ss:$8 sps:$4 sm:$0xff]  }
   0x7   :  { %608 = vmatpush1.bf16.msra.mxu0 %v1615_v3  ;;  %1595 = vmatpush1.bf16.msra.mxu1 %v1615_v3  ;;  %v1634_v17 = vld [vmem:[%s2974_s1 + $0x84] ss:$8 sps:$4 sm:$0xff]   ;;  %v1637_v19 = vld [vmem:[%s2974_s1 + $0x94] ss:$8 sps:$4 sm:$0xff]   ;;  %v1639_v21 = vld [vmem:[%s2974_s1 + $0x90] ss:$8 sps:$4 sm:$0xff]  }
   0x8   :  { %609 = vmatprep.subr.bf16.mxu0 %v1616_v4  ;;  %1580 = vmatprep.subr.bf16.mxu1 %v1616_v4  ;;  %v1684_v20 = vld [vmem:[%s2975_s0 + $0x104] ss:$8 sps:$4 sm:$0xff]   ;;  %v1642_v23 = vld [vmem:[%s2974_s1 + $0xa0] ss:$8 sps:$4 sm:$0xff]   ;;  %v1643_v24 = vld [vmem:[%s2974_s1 + $0xb4] ss:$8 sps:$4 sm:$0xff]  }
   0x9   :  { %637 = vmatprep.mubr.bf16.mxu0 %v1660_v13  ;;  %v1640_v22 = vld [vmem:[%s2974_s1 + $0xa4] ss:$8 sps:$4 sm:$0xff]   ;;  %797 = vmatprep.mubr.bf16.mxu1 %v1684_v20  ;;  %v1645_v25 = vld [vmem:[%s2974_s1 + $0xb0] ss:$8 sps:$4 sm:$0xff]   ;;  %v1648_v27 = vld [vmem:[%s2974_s1 + $0xc0] ss:$8 sps:$4 sm:$0xff]  }
   0xa   :  { %v1646_v26 = vld [vmem:[%s2974_s1 + $0xc4] ss:$8 sps:$4 sm:$0xff]   ;;  %v1649_v28 = vld [vmem:[%s2974_s1 + $0xd4] ss:$8 sps:$4 sm:$0xff]   ;;  %v1651_v29 = vld [vmem:[%s2974_s1 + $0xd0] ss:$8 sps:$4 sm:$0xff]  }
   0xb   :  { %610 = vmatpush1.bf16.msra.mxu0 %v1618_v5  ;;  %1596 = vmatpush1.bf16.msra.mxu1 %v1618_v5  ;;  %v1652_v30 = vld [vmem:[%s2974_s1 + $0xe4] ss:$8 sps:$4 sm:$0xff]   ;;  %v1654_v31 = vld [vmem:[%s2974_s1 + $0xe0] ss:$8 sps:$4 sm:$0xff]   ;;  %v1655_v32 = vld [vmem:[%s2974_s1 + $0xf4] ss:$8 sps:$4 sm:$0xff]  }
   0xc   :  { %611 = vmatprep.subr.bf16.mxu0 %v1619_v6  ;;  %1581 = vmatprep.subr.bf16.mxu1 %v1619_v6  ;;  %v1657_v33 = vld [vmem:[%s2974_s1 + $0xf0] ss:$8 sps:$4 sm:$0xff]   ;;  %v1658_v34 = vld [vmem:[%s2975_s0] ss:$8 sps:$4 sm:$0xff]   ;;  %v1661_v36 = vld [vmem:[%s2975_s0 + $0x14] ss:$8 sps:$4 sm:$0xff]  }
   0xd   :  { %v1682_v35 = vld [vmem:[%s2975_s0 + $0x100] ss:$8 sps:$4 sm:$0xff]   ;;  %v1688_v37 = vld [vmem:[%s2975_s0 + $0x114] ss:$8 sps:$4 sm:$0xff]   ;;  %v1663_v38 = vld [vmem:[%s2975_s0 + $0x10] ss:$8 sps:$4 sm:$0xff]  }
   0xe   :  { %v1690_v39 = vld [vmem:[%s2975_s0 + $0x110] ss:$8 sps:$4 sm:$0xff]   ;;  %v1664_v40 = vld [vmem:[%s2975_s0 + $0x24] ss:$8 sps:$4 sm:$0xff]   ;;  %v1666_v42 = vld [vmem:[%s2975_s0 + $0x20] ss:$8 sps:$4 sm:$0xff]  }
   0xf   :  { %612 = vmatpush1.bf16.msra.mxu0 %v1621_v7  ;;  %1597 = vmatpush1.bf16.msra.mxu1 %v1621_v7  ;;  %v1694_v41 = vld [vmem:[%s2975_s0 + $0x124] ss:$8 sps:$4 sm:$0xff]   ;;  %v1696_v43 = vld [vmem:[%s2975_s0 + $0x120] ss:$8 sps:$4 sm:$0xff]   ;;  %v1667_v44 = vld [vmem:[%s2975_s0 + $0x34] ss:$8 sps:$4 sm:$0xff]  }
  0x10   :  { %613 = vmatprep.subr.bf16.mxu0 %v1622_v8  ;;  %1582 = vmatprep.subr.bf16.mxu1 %v1622_v8  ;;  %v1700_v45 = vld [vmem:[%s2975_s0 + $0x134] ss:$8 sps:$4 sm:$0xff]   ;;  %v1669_v46 = vld [vmem:[%s2975_s0 + $0x30] ss:$8 sps:$4 sm:$0xff]   ;;  %v1670_v48 = vld [vmem:[%s2975_s0 + $0x44] ss:$8 sps:$4 sm:$0xff]  }
  0x11   :  { %v1702_v47 = vld [vmem:[%s2975_s0 + $0x130] ss:$8 sps:$4 sm:$0xff]   ;;  %v1706_v49 = vld [vmem:[%s2975_s0 + $0x144] ss:$8 sps:$4 sm:$0xff]   ;;  %v1672_v50 = vld [vmem:[%s2975_s0 + $0x40] ss:$8 sps:$4 sm:$0xff]  }
  0x12   :  { %v1708_v51 = vld [vmem:[%s2975_s0 + $0x140] ss:$8 sps:$4 sm:$0xff]   ;;  %v1673_v52 = vld [vmem:[%s2975_s0 + $0x54] ss:$8 sps:$4 sm:$0xff]   ;;  %v1675_v54 = vld [vmem:[%s2975_s0 + $0x50] ss:$8 sps:$4 sm:$0xff]  }
  0x13   :  { %614 = vmatpush1.bf16.msra.mxu0 %v1624_v9  ;;  %1598 = vmatpush1.bf16.msra.mxu1 %v1624_v9  ;;  %v1712_v53 = vld [vmem:[%s2975_s0 + $0x154] ss:$8 sps:$4 sm:$0xff]   ;;  %v1714_v55 = vld [vmem:[%s2975_s0 + $0x150] ss:$8 sps:$4 sm:$0xff]   ;;  %v1676_v56 = vld [vmem:[%s2975_s0 + $0x64] ss:$8 sps:$4 sm:$0xff]  }
  0x14   :  { %615 = vmatprep.subr.bf16.mxu0 %v1625_v10  ;;  %1583 = vmatprep.subr.bf16.mxu1 %v1625_v10  ;;  %v1718_v57 = vld [vmem:[%s2975_s0 + $0x164] ss:$8 sps:$4 sm:$0xff]   ;;  %v1678_v58 = vld [vmem:[%s2975_s0 + $0x60] ss:$8 sps:$4 sm:$0xff]   ;;  %v1679_v60 = vld [vmem:[%s2975_s0 + $0x74] ss:$8 sps:$4 sm:$0xff]  }
  0x15   :  { %v1720_v59 = vld [vmem:[%s2975_s0 + $0x160] ss:$8 sps:$4 sm:$0xff]   ;;  %v1724_v61 = vld [vmem:[%s2975_s0 + $0x174] ss:$8 sps:$4 sm:$0xff]   ;;  %v1681_v62 = vld [vmem:[%s2975_s0 + $0x70] ss:$8 sps:$4 sm:$0xff]  }
  0x16   :  { %v1726_v63 = vld [vmem:[%s2975_s0 + $0x170] ss:$8 sps:$4 sm:$0xff]   ;;  %v1685_v0 = vld [vmem:[%s2975_s0 + $0x84] ss:$8 sps:$4 sm:$0xff]   ;;  %v1687_v2 = vld [vmem:[%s2975_s0 + $0x80] ss:$8 sps:$4 sm:$0xff]  }
  0x17   :  { %616 = vmatpush1.bf16.msra.mxu0 %v1627_v11  ;;  %1599 = vmatpush1.bf16.msra.mxu1 %v1627_v11  ;;  %v1730_v1 = vld [vmem:[%s2975_s0 + $0x184] ss:$8 sps:$4 sm:$0xff]   ;;  %v1732_v3 = vld [vmem:[%s2975_s0 + $0x180] ss:$8 sps:$4 sm:$0xff]   ;;  %v1691_v4 = vld [vmem:[%s2975_s0 + $0x94] ss:$8 sps:$4 sm:$0xff]  }
  0x18   :  { %617 = vmatprep.subr.bf16.mxu0 %v1628_v12  ;;  %1584 = vmatprep.subr.bf16.mxu1 %v1628_v12  ;;  %v1733_v5 = vld [vmem:[%s2975_s0 + $0x194] ss:$8 sps:$4 sm:$0xff]   ;;  %v1693_v6 = vld [vmem:[%s2975_s0 + $0x90] ss:$8 sps:$4 sm:$0xff]   ;;  %v1697_v8 = vld [vmem:[%s2975_s0 + $0xa4] ss:$8 sps:$4 sm:$0xff]  }
  0x19   :  { %v1735_v7 = vld [vmem:[%s2975_s0 + $0x190] ss:$8 sps:$4 sm:$0xff]   ;;  %v1736_v9 = vld [vmem:[%s2975_s0 + $0x1a4] ss:$8 sps:$4 sm:$0xff]   ;;  %v1699_v10 = vld [vmem:[%s2975_s0 + $0xa0] ss:$8 sps:$4 sm:$0xff]  }
  0x1a   :  { %v1738_v11 = vld [vmem:[%s2975_s0 + $0x1a0] ss:$8 sps:$4 sm:$0xff]   ;;  %v1703_v12 = vld [vmem:[%s2975_s0 + $0xb4] ss:$8 sps:$4 sm:$0xff]  }
  0x1b   :  { %618 = vmatpush1.bf16.msra.mxu0 %v1630_v14  ;;  %1600 = vmatpush1.bf16.msra.mxu1 %v1630_v14  ;;  %v1739_v13 = vld [vmem:[%s2975_s0 + $0x1b4] ss:$8 sps:$4 sm:$0xff]   ;;  %v1705_v14 = vld [vmem:[%s2975_s0 + $0xb0] ss:$8 sps:$4 sm:$0xff]  }
  0x1c   :  { %619 = vmatprep.subr.bf16.mxu0 %v1631_v15  ;;  %1585 = vmatprep.subr.bf16.mxu1 %v1631_v15  ;;  %v1741_v15 = vld [vmem:[%s2975_s0 + $0x1b0] ss:$8 sps:$4 sm:$0xff]   ;;  %v1715_v20 = vld [vmem:[%s2975_s0 + $0xd4] ss:$8 sps:$4 sm:$0xff]  }
  0x1f   :  { %620 = vmatpush1.bf16.msra.mxu0 %v1633_v16  ;;  %1601 = vmatpush1.bf16.msra.mxu1 %v1633_v16  ;;  %v1709_v16 = vld [vmem:[%s2975_s0 + $0xc4] ss:$8 sps:$4 sm:$0xff]  }
  0x20   :  { %621 = vmatprep.subr.bf16.mxu0 %v1634_v17  ;;  %1586 = vmatprep.subr.bf16.mxu1 %v1634_v17  ;;  %v1742_v17 = vld [vmem:[%s2975_s0 + $0x1c4] ss:$8 sps:$4 sm:$0xff]  }
  0x23   :  { %622 = vmatpush1.bf16.msra.mxu0 %v1636_v18  ;;  %1602 = vmatpush1.bf16.msra.mxu1 %v1636_v18  ;;  %v1711_v18 = vld [vmem:[%s2975_s0 + $0xc0] ss:$8 sps:$4 sm:$0xff]  }
  0x24   :  { %623 = vmatprep.subr.bf16.mxu0 %v1637_v19  ;;  %1587 = vmatprep.subr.bf16.mxu1 %v1637_v19  ;;  %v1744_v19 = vld [vmem:[%s2975_s0 + $0x1c0] ss:$8 sps:$4 sm:$0xff]  }
  0x27   :  { %624 = vmatpush1.bf16.msra.mxu0 %v1639_v21  ;;  %1603 = vmatpush1.bf16.msra.mxu1 %v1639_v21  ;;  %v1745_v21 = vld [vmem:[%s2975_s0 + $0x1d4] ss:$8 sps:$4 sm:$0xff]  }
  0x28   :  { %625 = vmatprep.subr.bf16.mxu0 %v1640_v22  ;;  %1588 = vmatprep.subr.bf16.mxu1 %v1640_v22  ;;  %v1717_v22 = vld [vmem:[%s2975_s0 + $0xd0] ss:$8 sps:$4 sm:$0xff]  }
  0x2b   :  { %626 = vmatpush1.bf16.msra.mxu0 %v1642_v23  ;;  %1604 = vmatpush1.bf16.msra.mxu1 %v1642_v23  ;;  %v1747_v23 = vld [vmem:[%s2975_s0 + $0x1d0] ss:$8 sps:$4 sm:$0xff]  }
  0x2c   :  { %627 = vmatprep.subr.bf16.mxu0 %v1643_v24  ;;  %1589 = vmatprep.subr.bf16.mxu1 %v1643_v24  ;;  %v1721_v24 = vld [vmem:[%s2975_s0 + $0xe4] ss:$8 sps:$4 sm:$0xff]  }
  0x2f   :  { %628 = vmatpush1.bf16.msra.mxu0 %v1645_v25  ;;  %1605 = vmatpush1.bf16.msra.mxu1 %v1645_v25  ;;  %v1748_v25 = vld [vmem:[%s2975_s0 + $0x1e4] ss:$8 sps:$4 sm:$0xff]  }
  0x30   :  { %629 = vmatprep.subr.bf16.mxu0 %v1646_v26  ;;  %1590 = vmatprep.subr.bf16.mxu1 %v1646_v26  ;;  %v1723_v26 = vld [vmem:[%s2975_s0 + $0xe0] ss:$8 sps:$4 sm:$0xff]  }
  0x33   :  { %630 = vmatpush1.bf16.msra.mxu0 %v1648_v27  ;;  %1606 = vmatpush1.bf16.msra.mxu1 %v1648_v27  ;;  %v1750_v27 = vld [vmem:[%s2975_s0 + $0x1e0] ss:$8 sps:$4 sm:$0xff]  }
  0x34   :  { %631 = vmatprep.subr.bf16.mxu0 %v1649_v28  ;;  %1591 = vmatprep.subr.bf16.mxu1 %v1649_v28  ;;  %v1727_v28 = vld [vmem:[%s2975_s0 + $0xf4] ss:$8 sps:$4 sm:$0xff]  }
  0x37   :  { %632 = vmatpush1.bf16.msra.mxu0 %v1651_v29  ;;  %1607 = vmatpush1.bf16.msra.mxu1 %v1651_v29  ;;  %v1751_v29 = vld [vmem:[%s2975_s0 + $0x1f4] ss:$8 sps:$4 sm:$0xff]  }
  0x38   :  { %633 = vmatprep.subr.bf16.mxu0 %v1652_v30  ;;  %1592 = vmatprep.subr.bf16.mxu1 %v1652_v30  ;;  %v1729_v30 = vld [vmem:[%s2975_s0 + $0xf0] ss:$8 sps:$4 sm:$0xff]  }
  0x3b   :  { %634 = vmatpush1.bf16.msra.mxu0 %v1654_v31  ;;  %1608 = vmatpush1.bf16.msra.mxu1 %v1654_v31  ;;  %v1753_v31 = vld [vmem:[%s2975_s0 + $0x1f0] ss:$8 sps:$4 sm:$0xff]  }
  0x3c   :  { %635 = vmatprep.subr.bf16.mxu0 %v1655_v32  ;;  %1593 = vmatprep.subr.bf16.mxu1 %v1655_v32  ;;  %v115_v32 = vlaneseq }
  0x3f   :  { %636 = vmatpush1.bf16.msra.mxu0 %v1657_v33  ;;  %1609 = vmatpush1.bf16.msra.mxu1 %v1657_v33  ;;  %v116_v33 = vshrl.u32 %v115_v32, 7 }
  0x42   :  { %638 = vmatmul.mubr.bf16.vlgmr.msra.gmra.mrb[0].mxu0 %v1658_v34  ;;  %798 = vmatmul.mubr.bf16.vlgmr.msra.gmra.mrb[0].mxu1 %v1682_v35  ;;  %v117_v34 = vsub.s32 0, %v116_v33  ;;  %v113_v35 = vld [vmem:[%s2976_s2] sm:$0x3] }
  0x43   :  { %647 = vmatprep.mubr.bf16.mxu0 %v1661_v36  ;;  %807 = vmatprep.mubr.bf16.mxu1 %v1688_v37  ;;  %v121_v36 = vsub.s32 1, %v116_v33 }
  0x44   :  { %v2084_v37 = vrot.slane %v113_v35, %v117_v34 }
  0x4a   :  { %648 = vmatmul.mubr.bf16.gmra.mrb[4].mxu0 %v1663_v38  ;;  %808 = vmatmul.mubr.bf16.gmra.mrb[4].mxu1 %v1690_v39  ;;  %v2086_v38 = vrot.slane %v113_v35, %v121_v36 }
  0x4b   :  { %657 = vmatprep.mubr.bf16.mxu0 %v1664_v40  ;;  %817 = vmatprep.mubr.bf16.mxu1 %v1694_v41 }
  0x52   :  { %658 = vmatmul.mubr.bf16.gmra.mrb[8].mxu0 %v1666_v42  ;;  %818 = vmatmul.mubr.bf16.gmra.mrb[8].mxu1 %v1696_v43 }
  0x53   :  { %667 = vmatprep.mubr.bf16.mxu0 %v1667_v44  ;;  %827 = vmatprep.mubr.bf16.mxu1 %v1700_v45 }
  0x5a   :  { %668 = vmatmul.mubr.bf16.gmra.mrb[12].mxu0 %v1669_v46  ;;  %828 = vmatmul.mubr.bf16.gmra.mrb[12].mxu1 %v1702_v47 }
  0x5b   :  { %677 = vmatprep.mubr.bf16.mxu0 %v1670_v48  ;;  %837 = vmatprep.mubr.bf16.mxu1 %v1706_v49 }
  0x62   :  { %678 = vmatmul.mubr.bf16.gmra.mrb[16].mxu0 %v1672_v50  ;;  %838 = vmatmul.mubr.bf16.gmra.mrb[16].mxu1 %v1708_v51 }
  0x63   :  { %687 = vmatprep.mubr.bf16.mxu0 %v1673_v52  ;;  %847 = vmatprep.mubr.bf16.mxu1 %v1712_v53 }
  0x6a   :  { %688 = vmatmul.mubr.bf16.gmra.mrb[20].mxu0 %v1675_v54  ;;  %848 = vmatmul.mubr.bf16.gmra.mrb[20].mxu1 %v1714_v55 }
  0x6b   :  { %697 = vmatprep.mubr.bf16.mxu0 %v1676_v56  ;;  %857 = vmatprep.mubr.bf16.mxu1 %v1718_v57 }
  0x72   :  { %698 = vmatmul.mubr.bf16.gmra.mrb[24].mxu0 %v1678_v58  ;;  %858 = vmatmul.mubr.bf16.gmra.mrb[24].mxu1 %v1720_v59 }
  0x73   :  { %707 = vmatprep.mubr.bf16.mxu0 %v1679_v60  ;;  %867 = vmatprep.mubr.bf16.mxu1 %v1724_v61 }
  0x7a   :  { %708 = vmatmul.mubr.bf16.gmra.mrb[28].mxu0 %v1681_v62  ;;  %868 = vmatmul.mubr.bf16.gmra.mrb[28].mxu1 %v1726_v63 }
  0x7b   :  { %717 = vmatprep.mubr.bf16.mxu0 %v1685_v0  ;;  %877 = vmatprep.mubr.bf16.mxu1 %v1730_v1 }
  0x82   :  { %718 = vmatmul.mubr.bf16.gmra.mrb[32].mxu0 %v1687_v2  ;;  %878 = vmatmul.mubr.bf16.gmra.mrb[32].mxu1 %v1732_v3 }
  0x83   :  { %727 = vmatprep.mubr.bf16.mxu0 %v1691_v4  ;;  %887 = vmatprep.mubr.bf16.mxu1 %v1733_v5 }
  0x8a   :  { %728 = vmatmul.mubr.bf16.gmra.mrb[36].mxu0 %v1693_v6  ;;  %888 = vmatmul.mubr.bf16.gmra.mrb[36].mxu1 %v1735_v7 }
  0x8b   :  { %737 = vmatprep.mubr.bf16.mxu0 %v1697_v8  ;;  %897 = vmatprep.mubr.bf16.mxu1 %v1736_v9 }
  0x92   :  { %738 = vmatmul.mubr.bf16.gmra.mrb[40].mxu0 %v1699_v10  ;;  %898 = vmatmul.mubr.bf16.gmra.mrb[40].mxu1 %v1738_v11 }
  0x93   :  { %747 = vmatprep.mubr.bf16.mxu0 %v1703_v12  ;;  %907 = vmatprep.mubr.bf16.mxu1 %v1739_v13 }
  0x9a   :  { %748 = vmatmul.mubr.bf16.gmra.mrb[44].mxu0 %v1705_v14  ;;  %908 = vmatmul.mubr.bf16.gmra.mrb[44].mxu1 %v1741_v15 }
  0x9b   :  { %757 = vmatprep.mubr.bf16.mxu0 %v1709_v16  ;;  %917 = vmatprep.mubr.bf16.mxu1 %v1742_v17 }
  0xa2   :  { %758 = vmatmul.mubr.bf16.gmra.mrb[48].mxu0 %v1711_v18  ;;  %918 = vmatmul.mubr.bf16.gmra.mrb[48].mxu1 %v1744_v19 }
  0xa3   :  { %767 = vmatprep.mubr.bf16.mxu0 %v1715_v20  ;;  %927 = vmatprep.mubr.bf16.mxu1 %v1745_v21 }
  0xaa   :  { %768 = vmatmul.mubr.bf16.gmra.mrb[52].mxu0 %v1717_v22  ;;  %928 = vmatmul.mubr.bf16.gmra.mrb[52].mxu1 %v1747_v23 }
  0xab   :  { %777 = vmatprep.mubr.bf16.mxu0 %v1721_v24  ;;  %937 = vmatprep.mubr.bf16.mxu1 %v1748_v25 }
  0xb2   :  { %778 = vmatmul.mubr.bf16.gmra.mrb[56].mxu0 %v1723_v26  ;;  %938 = vmatmul.mubr.bf16.gmra.mrb[56].mxu1 %v1750_v27 }
  0xb3   :  { %787 = vmatprep.mubr.bf16.mxu0 %v1727_v28  ;;  %947 = vmatprep.mubr.bf16.mxu1 %v1751_v29 }
  0xba   :  { %788 = vmatmul.mubr.bf16.gmra.mrb[60].mxu0 %v1729_v30  ;;  %948 = vmatmul.mubr.bf16.gmra.mrb[60].mxu1 %v1753_v31 }
 0x115   :  { %v639_v39 = vpop.f32.mrb[0].mxu0  ;;  %v799_v40 = vpop.f32.mrb[0].mxu1 }
 0x116   :  { %v640_v41 = vadd.f32 %v639_v39, %v2084_v37  ;;  %v641_v42 = vpop.f32.mrb[1].mxu0  ;;  %v800_v43 = vadd.f32 %v799_v40, %v2084_v37  ;;  %v801_v44 = vpop.f32.mrb[1].mxu1 }
 0x117   :  { %v642_v45 = vadd.f32 %v641_v42, %v2086_v38  ;;  %v643_v46 = vpop.f32.mrb[2].mxu0  ;;  %v802_v47 = vadd.f32 %v801_v44, %v2086_v38  ;;  %v803_v48 = vpop.f32.mrb[2].mxu1 }
 0x118   :  { %958 = vst [vmem:[%s2977_s3] sm:$0xff] %v640_v41  ;;  %v644_v49 = vadd.f32 %v643_v46, %v2084_v37  ;;  %v645_v50 = vpop.f32.mrb[3].mxu0  ;;  %1022 = vst [vmem:[%s2977_s3 + $0x200] sm:$0xff] %v800_v43  ;;  %v804_v51 = vadd.f32 %v803_v48, %v2084_v37  ;;  %v805_v52 = vpop.f32.mrb[3].mxu1  ;;  %v1214_v55 = vmul.f32 %v640_v41, %v640_v41 }
 0x119   :  { %959 = vst [vmem:[%s2977_s3 + $0x8] sm:$0xff] %v642_v45  ;;  %v646_v53 = vadd.f32 %v645_v50, %v2086_v38  ;;  %1023 = vst [vmem:[%s2977_s3 + $0x208] sm:$0xff] %v802_v47  ;;  %v806_v54 = vadd.f32 %v805_v52, %v2086_v38  ;;  %v1215_v58 = vmul.f32 %v642_v45, %v642_v45 }
 0x11a   :  { %960 = vst [vmem:[%s2977_s3 + $0x10] sm:$0xff] %v644_v49  ;;  %v1086_v56 = vadd.f32 %v644_v49, %v640_v41  ;;  %v1216_v57 = vmul.f32 %v644_v49, %v644_v49  ;;  %1024 = vst [vmem:[%s2977_s3 + $0x210] sm:$0xff] %v804_v51 }
 0x11b   :  { %961 = vst [vmem:[%s2977_s3 + $0x18] sm:$0xff] %v646_v53  ;;  %v1087_v59 = vadd.f32 %v646_v53, %v642_v45  ;;  %v1217_v60 = vmul.f32 %v646_v53, %v646_v53  ;;  %1025 = vst [vmem:[%s2977_s3 + $0x218] sm:$0xff] %v806_v54 }
 0x11c   :  { %v1342_v61 = vadd.f32 %v1216_v57, %v1214_v55 }
 0x11d   :  { %v1343_v62 = vadd.f32 %v1217_v60, %v1215_v58  ;;  %v649_v63 = vpop.f32.mrb[4].mxu0  ;;  %v809_v0 = vpop.f32.mrb[4].mxu1 }
 0x11e   :  { %v650_v1 = vadd.f32 %v649_v63, %v2084_v37  ;;  %v651_v2 = vpop.f32.mrb[5].mxu0  ;;  %v810_v3 = vadd.f32 %v809_v0, %v2084_v37  ;;  %v811_v4 = vpop.f32.mrb[5].mxu1 }
 0x11f   :  { %v652_v5 = vadd.f32 %v651_v2, %v2086_v38  ;;  %v653_v6 = vpop.f32.mrb[6].mxu0  ;;  %v812_v7 = vadd.f32 %v811_v4, %v2086_v38  ;;  %v813_v8 = vpop.f32.mrb[6].mxu1 }
 0x120   :  { %962 = vst [vmem:[%s2977_s3 + $0x20] sm:$0xff] %v650_v1  ;;  %v1088_v9 = vadd.f32 %v1086_v56, %v650_v1  ;;  %v1218_v10 = vmul.f32 %v650_v1, %v650_v1  ;;  %v654_v11 = vadd.f32 %v653_v6, %v2084_v37  ;;  %v655_v12 = vpop.f32.mrb[7].mxu0  ;;  %1026 = vst [vmem:[%s2977_s3 + $0x220] sm:$0xff] %v810_v3  ;;  %v815_v13 = vpop.f32.mrb[7].mxu1 }
 0x121   :  { %963 = vst [vmem:[%s2977_s3 + $0x28] sm:$0xff] %v652_v5  ;;  %v1089_v14 = vadd.f32 %v1087_v59, %v652_v5  ;;  %v1219_v15 = vmul.f32 %v652_v5, %v652_v5  ;;  %v656_v16 = vadd.f32 %v655_v12, %v2086_v38  ;;  %1027 = vst [vmem:[%s2977_s3 + $0x228] sm:$0xff] %v812_v7 }
 0x122   :  { %v1344_v17 = vadd.f32 %v1342_v61, %v1218_v10  ;;  %964 = vst [vmem:[%s2977_s3 + $0x30] sm:$0xff] %v654_v11  ;;  %v1090_v18 = vadd.f32 %v1088_v9, %v654_v11  ;;  %v1220_v19 = vmul.f32 %v654_v11, %v654_v11  ;;  %v814_v20 = vadd.f32 %v813_v8, %v2084_v37 }
 0x123   :  { %v1345_v21 = vadd.f32 %v1343_v62, %v1219_v15  ;;  %965 = vst [vmem:[%s2977_s3 + $0x38] sm:$0xff] %v656_v16  ;;  %v1091_v22 = vadd.f32 %v1089_v14, %v656_v16  ;;  %v1221_v23 = vmul.f32 %v656_v16, %v656_v16  ;;  %v816_v24 = vadd.f32 %v815_v13, %v2086_v38 }
 0x124   :  { %v1346_v25 = vadd.f32 %v1344_v17, %v1220_v19  ;;  %1028 = vst [vmem:[%s2977_s3 + $0x230] sm:$0xff] %v814_v20 }
 0x125   :  { %v1347_v26 = vadd.f32 %v1345_v21, %v1221_v23  ;;  %v659_v27 = vpop.f32.mrb[8].mxu0  ;;  %1029 = vst [vmem:[%s2977_s3 + $0x238] sm:$0xff] %v816_v24  ;;  %v819_v28 = vpop.f32.mrb[8].mxu1 }
 0x126   :  { %v660_v29 = vadd.f32 %v659_v27, %v2084_v37  ;;  %v661_v30 = vpop.f32.mrb[9].mxu0  ;;  %v2154_v31 = vadd.f32 %v819_v28, %v2084_v37  ;;  %v821_v32 = vpop.f32.mrb[9].mxu1 }
 0x127   :  { %v662_v33 = vadd.f32 %v661_v30, %v2086_v38  ;;  %v663_v34 = vpop.f32.mrb[10].mxu0  ;;  %v2158_v35 = vadd.f32 %v821_v32, %v2086_v38  ;;  %v823_v36 = vpop.f32.mrb[10].mxu1 }
 0x128   :  { %966 = vst [vmem:[%s2977_s3 + $0x40] sm:$0xff] %v660_v29  ;;  %v1092_v39 = vadd.f32 %v1090_v18, %v660_v29  ;;  %v1222_v40 = vmul.f32 %v660_v29, %v660_v29  ;;  %v664_v41 = vadd.f32 %v663_v34, %v2084_v37  ;;  %v665_v42 = vpop.f32.mrb[11].mxu0  ;;  %1030 = vst [vmem:[%s2977_s3 + $0x240] sm:$0xff] %v2154_v31  ;;  %v825_v43 = vpop.f32.mrb[11].mxu1 }
 0x129   :  { %967 = vst [vmem:[%s2977_s3 + $0x48] sm:$0xff] %v662_v33  ;;  %v1093_v44 = vadd.f32 %v1091_v22, %v662_v33  ;;  %v1223_v45 = vmul.f32 %v662_v33, %v662_v33  ;;  %v666_v46 = vadd.f32 %v665_v42, %v2086_v38  ;;  %1031 = vst [vmem:[%s2977_s3 + $0x248] sm:$0xff] %v2158_v35 }
 0x12a   :  { %v1348_v47 = vadd.f32 %v1346_v25, %v1222_v40  ;;  %968 = vst [vmem:[%s2977_s3 + $0x50] sm:$0xff] %v664_v41  ;;  %v1094_v48 = vadd.f32 %v1092_v39, %v664_v41  ;;  %v1224_v49 = vmul.f32 %v664_v41, %v664_v41  ;;  %v2180_v50 = vadd.f32 %v823_v36, %v2084_v37 }
 0x12b   :  { %v1349_v51 = vadd.f32 %v1347_v26, %v1223_v45  ;;  %969 = vst [vmem:[%s2977_s3 + $0x58] sm:$0xff] %v666_v46  ;;  %v1095_v52 = vadd.f32 %v1093_v44, %v666_v46  ;;  %v1225_v53 = vmul.f32 %v666_v46, %v666_v46  ;;  %v2186_v54 = vadd.f32 %v825_v43, %v2086_v38 }
 0x12c   :  { %v1350_v55 = vadd.f32 %v1348_v47, %v1224_v49  ;;  %1032 = vst [vmem:[%s2977_s3 + $0x250] sm:$0xff] %v2180_v50 }
 0x12d   :  { %v1351_v56 = vadd.f32 %v1349_v51, %v1225_v53  ;;  %v669_v57 = vpop.f32.mrb[12].mxu0  ;;  %1033 = vst [vmem:[%s2977_s3 + $0x258] sm:$0xff] %v2186_v54  ;;  %v829_v58 = vpop.f32.mrb[12].mxu1 }
 0x12e   :  { %v670_v59 = vadd.f32 %v669_v57, %v2084_v37  ;;  %v671_v60 = vpop.f32.mrb[13].mxu0  ;;  %v2198_v61 = vadd.f32 %v829_v58, %v2084_v37  ;;  %v831_v62 = vpop.f32.mrb[13].mxu1 }
 0x12f   :  { %v672_v63 = vadd.f32 %v671_v60, %v2086_v38  ;;  %v673_v0 = vpop.f32.mrb[14].mxu0  ;;  %v2202_v1 = vadd.f32 %v831_v62, %v2086_v38  ;;  %v833_v2 = vpop.f32.mrb[14].mxu1 }
 0x130   :  { %970 = vst [vmem:[%s2977_s3 + $0x60] sm:$0xff] %v670_v59  ;;  %v1096_v3 = vadd.f32 %v1094_v48, %v670_v59  ;;  %v1226_v4 = vmul.f32 %v670_v59, %v670_v59  ;;  %v674_v5 = vadd.f32 %v673_v0, %v2084_v37  ;;  %v675_v6 = vpop.f32.mrb[15].mxu0  ;;  %1034 = vst [vmem:[%s2977_s3 + $0x260] sm:$0xff] %v2198_v61  ;;  %v835_v7 = vpop.f32.mrb[15].mxu1 }
 0x131   :  { %971 = vst [vmem:[%s2977_s3 + $0x68] sm:$0xff] %v672_v63  ;;  %v1097_v8 = vadd.f32 %v1095_v52, %v672_v63  ;;  %v1227_v9 = vmul.f32 %v672_v63, %v672_v63  ;;  %v676_v10 = vadd.f32 %v675_v6, %v2086_v38  ;;  %1035 = vst [vmem:[%s2977_s3 + $0x268] sm:$0xff] %v2202_v1 }
 0x132   :  { %v1352_v11 = vadd.f32 %v1350_v55, %v1226_v4  ;;  %972 = vst [vmem:[%s2977_s3 + $0x70] sm:$0xff] %v674_v5  ;;  %v1098_v12 = vadd.f32 %v1096_v3, %v674_v5  ;;  %v1228_v13 = vmul.f32 %v674_v5, %v674_v5  ;;  %v2224_v14 = vadd.f32 %v833_v2, %v2084_v37 }
 0x133   :  { %v1353_v15 = vadd.f32 %v1351_v56, %v1227_v9  ;;  %973 = vst [vmem:[%s2977_s3 + $0x78] sm:$0xff] %v676_v10  ;;  %v1099_v16 = vadd.f32 %v1097_v8, %v676_v10  ;;  %v1229_v17 = vmul.f32 %v676_v10, %v676_v10  ;;  %v2230_v18 = vadd.f32 %v835_v7, %v2086_v38 }
 0x134   :  { %v1354_v19 = vadd.f32 %v1352_v11, %v1228_v13  ;;  %1036 = vst [vmem:[%s2977_s3 + $0x270] sm:$0xff] %v2224_v14 }
 0x135   :  { %v1355_v20 = vadd.f32 %v1353_v15, %v1229_v17  ;;  %v679_v21 = vpop.f32.mrb[16].mxu0  ;;  %1037 = vst [vmem:[%s2977_s3 + $0x278] sm:$0xff] %v2230_v18  ;;  %v839_v22 = vpop.f32.mrb[16].mxu1 }
 0x136   :  { %v680_v23 = vadd.f32 %v679_v21, %v2084_v37  ;;  %v681_v24 = vpop.f32.mrb[17].mxu0  ;;  %v2242_v25 = vadd.f32 %v839_v22, %v2084_v37  ;;  %v841_v26 = vpop.f32.mrb[17].mxu1 }
 0x137   :  { %v682_v27 = vadd.f32 %v681_v24, %v2086_v38  ;;  %v683_v28 = vpop.f32.mrb[18].mxu0  ;;  %v2246_v29 = vadd.f32 %v841_v26, %v2086_v38  ;;  %v843_v30 = vpop.f32.mrb[18].mxu1 }
 0x138   :  { %974 = vst [vmem:[%s2977_s3 + $0x80] sm:$0xff] %v680_v23  ;;  %v1100_v32 = vadd.f32 %v1098_v12, %v680_v23  ;;  %v1230_v33 = vmul.f32 %v680_v23, %v680_v23  ;;  %v684_v34 = vadd.f32 %v683_v28, %v2084_v37  ;;  %v685_v36 = vpop.f32.mrb[19].mxu0  ;;  %1038 = vst [vmem:[%s2977_s3 + $0x280] sm:$0xff] %v2242_v25  ;;  %v845_v39 = vpop.f32.mrb[19].mxu1 }
 0x139   :  { %975 = vst [vmem:[%s2977_s3 + $0x88] sm:$0xff] %v682_v27  ;;  %v1101_v40 = vadd.f32 %v1099_v16, %v682_v27  ;;  %v1231_v41 = vmul.f32 %v682_v27, %v682_v27  ;;  %v686_v42 = vadd.f32 %v685_v36, %v2086_v38  ;;  %1039 = vst [vmem:[%s2977_s3 + $0x288] sm:$0xff] %v2246_v29 }
 0x13a   :  { %v1356_v43 = vadd.f32 %v1354_v19, %v1230_v33  ;;  %976 = vst [vmem:[%s2977_s3 + $0x90] sm:$0xff] %v684_v34  ;;  %v1102_v44 = vadd.f32 %v1100_v32, %v684_v34  ;;  %v1232_v45 = vmul.f32 %v684_v34, %v684_v34  ;;  %v2268_v46 = vadd.f32 %v843_v30, %v2084_v37 }
 0x13b   :  { %v1357_v47 = vadd.f32 %v1355_v20, %v1231_v41  ;;  %977 = vst [vmem:[%s2977_s3 + $0x98] sm:$0xff] %v686_v42  ;;  %v1103_v48 = vadd.f32 %v1101_v40, %v686_v42  ;;  %v1233_v49 = vmul.f32 %v686_v42, %v686_v42  ;;  %v2274_v51 = vadd.f32 %v845_v39, %v2086_v38 }
 0x13c   :  { %v1358_v52 = vadd.f32 %v1356_v43, %v1232_v45  ;;  %1040 = vst [vmem:[%s2977_s3 + $0x290] sm:$0xff] %v2268_v46 }
 0x13d   :  { %v1359_v53 = vadd.f32 %v1357_v47, %v1233_v49  ;;  %v689_v55 = vpop.f32.mrb[20].mxu0  ;;  %1041 = vst [vmem:[%s2977_s3 + $0x298] sm:$0xff] %v2274_v51  ;;  %v849_v56 = vpop.f32.mrb[20].mxu1 }
 0x13e   :  { %v690_v57 = vadd.f32 %v689_v55, %v2084_v37  ;;  %v691_v58 = vpop.f32.mrb[21].mxu0  ;;  %v2286_v59 = vadd.f32 %v849_v56, %v2084_v37  ;;  %v851_v60 = vpop.f32.mrb[21].mxu1 }
 0x13f   :  { %v692_v62 = vadd.f32 %v691_v58, %v2086_v38  ;;  %v693_v63 = vpop.f32.mrb[22].mxu0  ;;  %v2290_v0 = vadd.f32 %v851_v60, %v2086_v38  ;;  %v853_v2 = vpop.f32.mrb[22].mxu1 }
 0x140   :  { %978 = vst [vmem:[%s2977_s3 + $0xa0] sm:$0xff] %v690_v57  ;;  %v1104_v3 = vadd.f32 %v1102_v44, %v690_v57  ;;  %v1234_v4 = vmul.f32 %v690_v57, %v690_v57  ;;  %v694_v5 = vadd.f32 %v693_v63, %v2084_v37  ;;  %v695_v6 = vpop.f32.mrb[23].mxu0  ;;  %1042 = vst [vmem:[%s2977_s3 + $0x2a0] sm:$0xff] %v2286_v59  ;;  %v855_v7 = vpop.f32.mrb[23].mxu1 }
 0x141   :  { %979 = vst [vmem:[%s2977_s3 + $0xa8] sm:$0xff] %v692_v62  ;;  %v1105_v8 = vadd.f32 %v1103_v48, %v692_v62  ;;  %v1235_v9 = vmul.f32 %v692_v62, %v692_v62  ;;  %v696_v10 = vadd.f32 %v695_v6, %v2086_v38  ;;  %1043 = vst [vmem:[%s2977_s3 + $0x2a8] sm:$0xff] %v2290_v0 }
 0x142   :  { %v1360_v11 = vadd.f32 %v1358_v52, %v1234_v4  ;;  %980 = vst [vmem:[%s2977_s3 + $0xb0] sm:$0xff] %v694_v5  ;;  %v1106_v12 = vadd.f32 %v1104_v3, %v694_v5  ;;  %v1236_v13 = vmul.f32 %v694_v5, %v694_v5  ;;  %v2312_v15 = vadd.f32 %v853_v2, %v2084_v37 }
 0x143   :  { %v1361_v16 = vadd.f32 %v1359_v53, %v1235_v9  ;;  %981 = vst [vmem:[%s2977_s3 + $0xb8] sm:$0xff] %v696_v10  ;;  %v1107_v17 = vadd.f32 %v1105_v8, %v696_v10  ;;  %v1237_v19 = vmul.f32 %v696_v10, %v696_v10  ;;  %v2318_v20 = vadd.f32 %v855_v7, %v2086_v38 }
 0x144   :  { %v1362_v21 = vadd.f32 %v1360_v11, %v1236_v13  ;;  %1044 = vst [vmem:[%s2977_s3 + $0x2b0] sm:$0xff] %v2312_v15 }
 0x145   :  { %v1363_v22 = vadd.f32 %v1361_v16, %v1237_v19  ;;  %v699_v23 = vpop.f32.mrb[24].mxu0  ;;  %1045 = vst [vmem:[%s2977_s3 + $0x2b8] sm:$0xff] %v2318_v20  ;;  %v859_v24 = vpop.f32.mrb[24].mxu1 }
 0x146   :  { %v700_v26 = vadd.f32 %v699_v23, %v2084_v37  ;;  %v701_v27 = vpop.f32.mrb[25].mxu0  ;;  %v2330_v28 = vadd.f32 %v859_v24, %v2084_v37  ;;  %v861_v30 = vpop.f32.mrb[25].mxu1 }
 0x147   :  { %v702_v32 = vadd.f32 %v701_v27, %v2086_v38  ;;  %v703_v33 = vpop.f32.mrb[26].mxu0  ;;  %v2334_v34 = vadd.f32 %v861_v30, %v2086_v38  ;;  %v863_v36 = vpop.f32.mrb[26].mxu1 }
 0x148   :  { %982 = vst [vmem:[%s2977_s3 + $0xc0] sm:$0xff] %v700_v26  ;;  %v1108_v39 = vadd.f32 %v1106_v12, %v700_v26  ;;  %v1238_v40 = vmul.f32 %v700_v26, %v700_v26  ;;  %v704_v41 = vadd.f32 %v703_v33, %v2084_v37  ;;  %v705_v42 = vpop.f32.mrb[27].mxu0  ;;  %1046 = vst [vmem:[%s2977_s3 + $0x2c0] sm:$0xff] %v2330_v28  ;;  %v865_v43 = vpop.f32.mrb[27].mxu1 }
 0x149   :  { %983 = vst [vmem:[%s2977_s3 + $0xc8] sm:$0xff] %v702_v32  ;;  %v1109_v44 = vadd.f32 %v1107_v17, %v702_v32  ;;  %v1239_v45 = vmul.f32 %v702_v32, %v702_v32  ;;  %v706_v47 = vadd.f32 %v705_v42, %v2086_v38  ;;  %1047 = vst [vmem:[%s2977_s3 + $0x2c8] sm:$0xff] %v2334_v34 }
 0x14a   :  { %v1364_v48 = vadd.f32 %v1362_v21, %v1238_v40  ;;  %984 = vst [vmem:[%s2977_s3 + $0xd0] sm:$0xff] %v704_v41  ;;  %v1110_v49 = vadd.f32 %v1108_v39, %v704_v41  ;;  %v1240_v52 = vmul.f32 %v704_v41, %v704_v41  ;;  %v2356_v53 = vadd.f32 %v863_v36, %v2084_v37 }
 0x14b   :  { %v1365_v55 = vadd.f32 %v1363_v22, %v1239_v45  ;;  %985 = vst [vmem:[%s2977_s3 + $0xd8] sm:$0xff] %v706_v47  ;;  %v1111_v56 = vadd.f32 %v1109_v44, %v706_v47  ;;  %v1241_v57 = vmul.f32 %v706_v47, %v706_v47  ;;  %v2362_v58 = vadd.f32 %v865_v43, %v2086_v38 }
 0x14c   :  { %v1366_v60 = vadd.f32 %v1364_v48, %v1240_v52  ;;  %1048 = vst [vmem:[%s2977_s3 + $0x2d0] sm:$0xff] %v2356_v53 }
 0x14d   :  { %v1367_v62 = vadd.f32 %v1365_v55, %v1241_v57  ;;  %v709_v63 = vpop.f32.mrb[28].mxu0  ;;  %1049 = vst [vmem:[%s2977_s3 + $0x2d8] sm:$0xff] %v2362_v58  ;;  %v869_v2 = vpop.f32.mrb[28].mxu1 }
 0x14e   :  { %v710_v3 = vadd.f32 %v709_v63, %v2084_v37  ;;  %v711_v4 = vpop.f32.mrb[29].mxu0  ;;  %v2374_v5 = vadd.f32 %v869_v2, %v2084_v37  ;;  %v871_v6 = vpop.f32.mrb[29].mxu1 }
 0x14f   :  { %v712_v7 = vadd.f32 %v711_v4, %v2086_v38  ;;  %v713_v8 = vpop.f32.mrb[30].mxu0  ;;  %v2378_v9 = vadd.f32 %v871_v6, %v2086_v38  ;;  %v873_v10 = vpop.f32.mrb[30].mxu1 }
 0x150   :  { %986 = vst [vmem:[%s2977_s3 + $0xe0] sm:$0xff] %v710_v3  ;;  %v1112_v11 = vadd.f32 %v1110_v49, %v710_v3  ;;  %v1242_v12 = vmul.f32 %v710_v3, %v710_v3  ;;  %v714_v13 = vadd.f32 %v713_v8, %v2084_v37  ;;  %v715_v16 = vpop.f32.mrb[31].mxu0  ;;  %1050 = vst [vmem:[%s2977_s3 + $0x2e0] sm:$0xff] %v2374_v5  ;;  %v875_v17 = vpop.f32.mrb[31].mxu1 }
 0x151   :  { %987 = vst [vmem:[%s2977_s3 + $0xe8] sm:$0xff] %v712_v7  ;;  %v1113_v19 = vadd.f32 %v1111_v56, %v712_v7  ;;  %v1243_v21 = vmul.f32 %v712_v7, %v712_v7  ;;  %v716_v22 = vadd.f32 %v715_v16, %v2086_v38  ;;  %1051 = vst [vmem:[%s2977_s3 + $0x2e8] sm:$0xff] %v2378_v9 }
 0x152   :  { %v1368_v23 = vadd.f32 %v1366_v60, %v1242_v12  ;;  %988 = vst [vmem:[%s2977_s3 + $0xf0] sm:$0xff] %v714_v13  ;;  %v1114_v24 = vadd.f32 %v1112_v11, %v714_v13  ;;  %v1244_v26 = vmul.f32 %v714_v13, %v714_v13  ;;  %v2400_v27 = vadd.f32 %v873_v10, %v2084_v37 }
 0x153   :  { %v1369_v30 = vadd.f32 %v1367_v62, %v1243_v21  ;;  %989 = vst [vmem:[%s2977_s3 + $0xf8] sm:$0xff] %v716_v22  ;;  %v1115_v32 = vadd.f32 %v1113_v19, %v716_v22  ;;  %v1245_v33 = vmul.f32 %v716_v22, %v716_v22  ;;  %v2406_v36 = vadd.f32 %v875_v17, %v2086_v38 }
 0x154   :  { %v1370_v39 = vadd.f32 %v1368_v23, %v1244_v26  ;;  %1052 = vst [vmem:[%s2977_s3 + $0x2f0] sm:$0xff] %v2400_v27 }
 0x155   :  { %v1371_v40 = vadd.f32 %v1369_v30, %v1245_v33  ;;  %v719_v41 = vpop.f32.mrb[32].mxu0  ;;  %1053 = vst [vmem:[%s2977_s3 + $0x2f8] sm:$0xff] %v2406_v36  ;;  %v879_v42 = vpop.f32.mrb[32].mxu1 }
 0x156   :  { %v720_v43 = vadd.f32 %v719_v41, %v2084_v37  ;;  %v721_v44 = vpop.f32.mrb[33].mxu0  ;;  %v2418_v45 = vadd.f32 %v879_v42, %v2084_v37  ;;  %v881_v47 = vpop.f32.mrb[33].mxu1 }
 0x157   :  { %v722_v48 = vadd.f32 %v721_v44, %v2086_v38  ;;  %v723_v49 = vpop.f32.mrb[34].mxu0  ;;  %v2422_v52 = vadd.f32 %v881_v47, %v2086_v38  ;;  %v883_v55 = vpop.f32.mrb[34].mxu1 }
 0x158   :  { %990 = vst [vmem:[%s2977_s3 + $0x100] sm:$0xff] %v720_v43  ;;  %v1116_v56 = vadd.f32 %v1114_v24, %v720_v43  ;;  %v1246_v57 = vmul.f32 %v720_v43, %v720_v43  ;;  %v724_v60 = vadd.f32 %v723_v49, %v2084_v37  ;;  %v725_v62 = vpop.f32.mrb[35].mxu0  ;;  %1054 = vst [vmem:[%s2977_s3 + $0x300] sm:$0xff] %v2418_v45  ;;  %v885_v63 = vpop.f32.mrb[35].mxu1 }
 0x159   :  { %991 = vst [vmem:[%s2977_s3 + $0x108] sm:$0xff] %v722_v48  ;;  %v1117_v2 = vadd.f32 %v1115_v32, %v722_v48  ;;  %v1247_v3 = vmul.f32 %v722_v48, %v722_v48  ;;  %v726_v4 = vadd.f32 %v725_v62, %v2086_v38  ;;  %1055 = vst [vmem:[%s2977_s3 + $0x308] sm:$0xff] %v2422_v52 }
 0x15a   :  { %v1372_v6 = vadd.f32 %v1370_v39, %v1246_v57  ;;  %992 = vst [vmem:[%s2977_s3 + $0x110] sm:$0xff] %v724_v60  ;;  %v1118_v7 = vadd.f32 %v1116_v56, %v724_v60  ;;  %v1248_v8 = vmul.f32 %v724_v60, %v724_v60  ;;  %v2444_v10 = vadd.f32 %v883_v55, %v2084_v37 }
 0x15b   :  { %v1373_v11 = vadd.f32 %v1371_v40, %v1247_v3  ;;  %993 = vst [vmem:[%s2977_s3 + $0x118] sm:$0xff] %v726_v4  ;;  %v1119_v12 = vadd.f32 %v1117_v2, %v726_v4  ;;  %v1249_v13 = vmul.f32 %v726_v4, %v726_v4  ;;  %v2450_v16 = vadd.f32 %v885_v63, %v2086_v38 }
 0x15c   :  { %v1374_v17 = vadd.f32 %v1372_v6, %v1248_v8  ;;  %1056 = vst [vmem:[%s2977_s3 + $0x310] sm:$0xff] %v2444_v10 }
 0x15d   :  { %v1375_v19 = vadd.f32 %v1373_v11, %v1249_v13  ;;  %v729_v21 = vpop.f32.mrb[36].mxu0  ;;  %1057 = vst [vmem:[%s2977_s3 + $0x318] sm:$0xff] %v2450_v16  ;;  %v889_v22 = vpop.f32.mrb[36].mxu1 }
 0x15e   :  { %v730_v23 = vadd.f32 %v729_v21, %v2084_v37  ;;  %v731_v24 = vpop.f32.mrb[37].mxu0  ;;  %v2462_v26 = vadd.f32 %v889_v22, %v2084_v37  ;;  %v891_v30 = vpop.f32.mrb[37].mxu1 }
 0x15f   :  { %v732_v32 = vadd.f32 %v731_v24, %v2086_v38  ;;  %v733_v33 = vpop.f32.mrb[38].mxu0  ;;  %v2466_v39 = vadd.f32 %v891_v30, %v2086_v38  ;;  %v893_v40 = vpop.f32.mrb[38].mxu1 }
 0x160   :  { %994 = vst [vmem:[%s2977_s3 + $0x120] sm:$0xff] %v730_v23  ;;  %v1120_v41 = vadd.f32 %v1118_v7, %v730_v23  ;;  %v1250_v42 = vmul.f32 %v730_v23, %v730_v23  ;;  %v734_v43 = vadd.f32 %v733_v33, %v2084_v37  ;;  %v735_v44 = vpop.f32.mrb[39].mxu0  ;;  %1058 = vst [vmem:[%s2977_s3 + $0x320] sm:$0xff] %v2462_v26  ;;  %v895_v47 = vpop.f32.mrb[39].mxu1 }
 0x161   :  { %995 = vst [vmem:[%s2977_s3 + $0x128] sm:$0xff] %v732_v32  ;;  %v1121_v48 = vadd.f32 %v1119_v12, %v732_v32  ;;  %v1251_v49 = vmul.f32 %v732_v32, %v732_v32  ;;  %v736_v55 = vadd.f32 %v735_v44, %v2086_v38  ;;  %1059 = vst [vmem:[%s2977_s3 + $0x328] sm:$0xff] %v2466_v39 }
 0x162   :  { %v1376_v56 = vadd.f32 %v1374_v17, %v1250_v42  ;;  %996 = vst [vmem:[%s2977_s3 + $0x130] sm:$0xff] %v734_v43  ;;  %v1122_v57 = vadd.f32 %v1120_v41, %v734_v43  ;;  %v1252_v60 = vmul.f32 %v734_v43, %v734_v43  ;;  %v2488_v62 = vadd.f32 %v893_v40, %v2084_v37 }
 0x163   :  { %v1377_v63 = vadd.f32 %v1375_v19, %v1251_v49  ;;  %997 = vst [vmem:[%s2977_s3 + $0x138] sm:$0xff] %v736_v55  ;;  %v1123_v2 = vadd.f32 %v1121_v48, %v736_v55  ;;  %v1253_v3 = vmul.f32 %v736_v55, %v736_v55  ;;  %v2494_v4 = vadd.f32 %v895_v47, %v2086_v38 }
 0x164   :  { %v1378_v6 = vadd.f32 %v1376_v56, %v1252_v60  ;;  %1060 = vst [vmem:[%s2977_s3 + $0x330] sm:$0xff] %v2488_v62 }
 0x165   :  { %v1379_v7 = vadd.f32 %v1377_v63, %v1253_v3  ;;  %v739_v8 = vpop.f32.mrb[40].mxu0  ;;  %1061 = vst [vmem:[%s2977_s3 + $0x338] sm:$0xff] %v2494_v4  ;;  %v899_v11 = vpop.f32.mrb[40].mxu1 }
 0x166   :  { %v740_v12 = vadd.f32 %v739_v8, %v2084_v37  ;;  %v741_v13 = vpop.f32.mrb[41].mxu0  ;;  %v2506_v17 = vadd.f32 %v899_v11, %v2084_v37  ;;  %v901_v19 = vpop.f32.mrb[41].mxu1 }
 0x167   :  { %v742_v21 = vadd.f32 %v741_v13, %v2086_v38  ;;  %v743_v22 = vpop.f32.mrb[42].mxu0  ;;  %v2510_v23 = vadd.f32 %v901_v19, %v2086_v38  ;;  %v903_v24 = vpop.f32.mrb[42].mxu1 }
 0x168   :  { %998 = vst [vmem:[%s2977_s3 + $0x140] sm:$0xff] %v740_v12  ;;  %v1124_v30 = vadd.f32 %v1122_v57, %v740_v12  ;;  %v1254_v32 = vmul.f32 %v740_v12, %v740_v12  ;;  %v744_v33 = vadd.f32 %v743_v22, %v2084_v37  ;;  %v745_v40 = vpop.f32.mrb[43].mxu0  ;;  %1062 = vst [vmem:[%s2977_s3 + $0x340] sm:$0xff] %v2506_v17  ;;  %v905_v41 = vpop.f32.mrb[43].mxu1 }
 0x169   :  { %999 = vst [vmem:[%s2977_s3 + $0x148] sm:$0xff] %v742_v21  ;;  %v1125_v42 = vadd.f32 %v1123_v2, %v742_v21  ;;  %v1255_v43 = vmul.f32 %v742_v21, %v742_v21  ;;  %v746_v44 = vadd.f32 %v745_v40, %v2086_v38  ;;  %1063 = vst [vmem:[%s2977_s3 + $0x348] sm:$0xff] %v2510_v23 }
 0x16a   :  { %v1380_v47 = vadd.f32 %v1378_v6, %v1254_v32  ;;  %1000 = vst [vmem:[%s2977_s3 + $0x150] sm:$0xff] %v744_v33  ;;  %v1126_v48 = vadd.f32 %v1124_v30, %v744_v33  ;;  %v1256_v49 = vmul.f32 %v744_v33, %v744_v33  ;;  %v2532_v55 = vadd.f32 %v903_v24, %v2084_v37 }
 0x16b   :  { %v1381_v56 = vadd.f32 %v1379_v7, %v1255_v43  ;;  %1001 = vst [vmem:[%s2977_s3 + $0x158] sm:$0xff] %v746_v44  ;;  %v1127_v57 = vadd.f32 %v1125_v42, %v746_v44  ;;  %v1257_v60 = vmul.f32 %v746_v44, %v746_v44  ;;  %v2538_v63 = vadd.f32 %v905_v41, %v2086_v38 }
 0x16c   :  { %v1382_v2 = vadd.f32 %v1380_v47, %v1256_v49  ;;  %1064 = vst [vmem:[%s2977_s3 + $0x350] sm:$0xff] %v2532_v55 }
 0x16d   :  { %v1383_v3 = vadd.f32 %v1381_v56, %v1257_v60  ;;  %v749_v6 = vpop.f32.mrb[44].mxu0  ;;  %1065 = vst [vmem:[%s2977_s3 + $0x358] sm:$0xff] %v2538_v63  ;;  %v909_v7 = vpop.f32.mrb[44].mxu1 }
 0x16e   :  { %v750_v8 = vadd.f32 %v749_v6, %v2084_v37  ;;  %v751_v11 = vpop.f32.mrb[45].mxu0  ;;  %v2550_v12 = vadd.f32 %v909_v7, %v2084_v37  ;;  %v911_v13 = vpop.f32.mrb[45].mxu1 }
 0x16f   :  { %v752_v19 = vadd.f32 %v751_v11, %v2086_v38  ;;  %v753_v21 = vpop.f32.mrb[46].mxu0  ;;  %v2554_v22 = vadd.f32 %v911_v13, %v2086_v38  ;;  %v913_v24 = vpop.f32.mrb[46].mxu1 }
 0x170   :  { %1002 = vst [vmem:[%s2977_s3 + $0x160] sm:$0xff] %v750_v8  ;;  %v1128_v30 = vadd.f32 %v1126_v48, %v750_v8  ;;  %v1258_v32 = vmul.f32 %v750_v8, %v750_v8  ;;  %v754_v33 = vadd.f32 %v753_v21, %v2084_v37  ;;  %v755_v40 = vpop.f32.mrb[47].mxu0  ;;  %1066 = vst [vmem:[%s2977_s3 + $0x360] sm:$0xff] %v2550_v12  ;;  %v915_v41 = vpop.f32.mrb[47].mxu1 }
 0x171   :  { %1003 = vst [vmem:[%s2977_s3 + $0x168] sm:$0xff] %v752_v19  ;;  %v1129_v42 = vadd.f32 %v1127_v57, %v752_v19  ;;  %v1259_v43 = vmul.f32 %v752_v19, %v752_v19  ;;  %v756_v44 = vadd.f32 %v755_v40, %v2086_v38  ;;  %1067 = vst [vmem:[%s2977_s3 + $0x368] sm:$0xff] %v2554_v22 }
 0x172   :  { %v1384_v47 = vadd.f32 %v1382_v2, %v1258_v32  ;;  %1004 = vst [vmem:[%s2977_s3 + $0x170] sm:$0xff] %v754_v33  ;;  %v1130_v48 = vadd.f32 %v1128_v30, %v754_v33  ;;  %v1260_v49 = vmul.f32 %v754_v33, %v754_v33  ;;  %v2576_v56 = vadd.f32 %v913_v24, %v2084_v37 }
 0x173   :  { %v1385_v60 = vadd.f32 %v1383_v3, %v1259_v43  ;;  %1005 = vst [vmem:[%s2977_s3 + $0x178] sm:$0xff] %v756_v44  ;;  %v1131_v57 = vadd.f32 %v1129_v42, %v756_v44  ;;  %v1261_v6 = vmul.f32 %v756_v44, %v756_v44  ;;  %v2582_v7 = vadd.f32 %v915_v41, %v2086_v38 }
 0x174   :  { %v1386_v2 = vadd.f32 %v1384_v47, %v1260_v49  ;;  %1068 = vst [vmem:[%s2977_s3 + $0x370] sm:$0xff] %v2576_v56 }
 0x175   :  { %v1387_v8 = vadd.f32 %v1385_v60, %v1261_v6  ;;  %v759_v11 = vpop.f32.mrb[48].mxu0  ;;  %1069 = vst [vmem:[%s2977_s3 + $0x378] sm:$0xff] %v2582_v7  ;;  %v919_v3 = vpop.f32.mrb[48].mxu1 }
 0x176   :  { %v760_v13 = vadd.f32 %v759_v11, %v2084_v37  ;;  %v761_v19 = vpop.f32.mrb[49].mxu0  ;;  %v2594_v21 = vadd.f32 %v919_v3, %v2084_v37  ;;  %v921_v24 = vpop.f32.mrb[49].mxu1 }
 0x177   :  { %v762_v30 = vadd.f32 %v761_v19, %v2086_v38  ;;  %v763_v32 = vpop.f32.mrb[50].mxu0  ;;  %v2598_v33 = vadd.f32 %v921_v24, %v2086_v38  ;;  %v923_v40 = vpop.f32.mrb[50].mxu1 }
 0x178   :  { %1006 = vst [vmem:[%s2977_s3 + $0x180] sm:$0xff] %v760_v13  ;;  %v1132_v41 = vadd.f32 %v1130_v48, %v760_v13  ;;  %v1262_v42 = vmul.f32 %v760_v13, %v760_v13  ;;  %v764_v43 = vadd.f32 %v763_v32, %v2084_v37  ;;  %v765_v44 = vpop.f32.mrb[51].mxu0  ;;  %1070 = vst [vmem:[%s2977_s3 + $0x380] sm:$0xff] %v2594_v21  ;;  %v925_v47 = vpop.f32.mrb[51].mxu1 }
 0x179   :  { %1007 = vst [vmem:[%s2977_s3 + $0x188] sm:$0xff] %v762_v30  ;;  %v1133_v49 = vadd.f32 %v1131_v57, %v762_v30  ;;  %v1263_v60 = vmul.f32 %v762_v30, %v762_v30  ;;  %v766_v6 = vadd.f32 %v765_v44, %v2086_v38  ;;  %1071 = vst [vmem:[%s2977_s3 + $0x388] sm:$0xff] %v2598_v33 }
 0x17a   :  { %v1388_v48 = vadd.f32 %v1386_v2, %v1262_v42  ;;  %1008 = vst [vmem:[%s2977_s3 + $0x190] sm:$0xff] %v764_v43  ;;  %v1134_v11 = vadd.f32 %v1132_v41, %v764_v43  ;;  %v1264_v3 = vmul.f32 %v764_v43, %v764_v43  ;;  %v2620_v13 = vadd.f32 %v923_v40, %v2084_v37 }
 0x17b   :  { %v1389_v19 = vadd.f32 %v1387_v8, %v1263_v60  ;;  %1009 = vst [vmem:[%s2977_s3 + $0x198] sm:$0xff] %v766_v6  ;;  %v1135_v57 = vadd.f32 %v1133_v49, %v766_v6  ;;  %v1265_v24 = vmul.f32 %v766_v6, %v766_v6  ;;  %v2626_v30 = vadd.f32 %v925_v47, %v2086_v38 }
 0x17c   :  { %v1390_v2 = vadd.f32 %v1388_v48, %v1264_v3  ;;  %1072 = vst [vmem:[%s2977_s3 + $0x390] sm:$0xff] %v2620_v13 }
 0x17d   :  { %3002 = vst [vmem:[#allocation2_spill] sm:$0xff] %v2626_v30  ;;  %v1391_v32 = vadd.f32 %v1389_v19, %v1265_v24  ;;  %v769_v41 = vpop.f32.mrb[52].mxu0  ;;  %1073 = vst [vmem:[%s2977_s3 + $0x398] sm:$0xff] %v2626_v30  ;;  %v929_v8 = vpop.f32.mrb[52].mxu1 }
 0x17e   :  { %v770_v40 = vadd.f32 %v769_v41, %v2084_v37  ;;  %v771_v42 = vpop.f32.mrb[53].mxu0  ;;  %v2638_v43 = vadd.f32 %v929_v8, %v2084_v37  ;;  %v931_v44 = vpop.f32.mrb[53].mxu1 }
 0x17f   :  { %v772_v47 = vadd.f32 %v771_v42, %v2086_v38  ;;  %v773_v49 = vpop.f32.mrb[54].mxu0  ;;  %v2642_v60 = vadd.f32 %v931_v44, %v2086_v38  ;;  %v933_v6 = vpop.f32.mrb[54].mxu1 }
 0x180   :  { %3003 = vst [vmem:[#allocation3_spill] sm:$0xff] %v2638_v43  ;;  %1010 = vst [vmem:[%s2977_s3 + $0x1a0] sm:$0xff] %v770_v40  ;;  %v1136_v48 = vadd.f32 %v1134_v11, %v770_v40  ;;  %v1266_v3 = vmul.f32 %v770_v40, %v770_v40  ;;  %v774_v19 = vadd.f32 %v773_v49, %v2084_v37  ;;  %v775_v24 = vpop.f32.mrb[55].mxu0  ;;  %v935_v41 = vpop.f32.mrb[55].mxu1 }
 0x181   :  { %3004 = vst [vmem:[#allocation4_spill] sm:$0xff] %v2642_v60  ;;  %1074 = vst [vmem:[%s2977_s3 + $0x3a0] sm:$0xff] %v2638_v43  ;;  %v1137_v8 = vadd.f32 %v1135_v57, %v772_v47  ;;  %v1267_v42 = vmul.f32 %v772_v47, %v772_v47  ;;  %v776_v44 = vadd.f32 %v775_v24, %v2086_v38 }
 0x182   :  { %1011 = vst [vmem:[%s2977_s3 + $0x1a8] sm:$0xff] %v772_v47  ;;  %1075 = vst [vmem:[%s2977_s3 + $0x3a8] sm:$0xff] %v2642_v60  ;;  %v1392_v11 = vadd.f32 %v1390_v2, %v1266_v3  ;;  %v1138_v40 = vadd.f32 %v1136_v48, %v774_v19  ;;  %v1268_v49 = vmul.f32 %v774_v19, %v774_v19 }
 0x183   :  { %1012 = vst [vmem:[%s2977_s3 + $0x1b0] sm:$0xff] %v774_v19  ;;  %v2664_v43 = vadd.f32 %v933_v6, %v2084_v37  ;;  %v1393_v30 = vadd.f32 %v1391_v32, %v1267_v42  ;;  %1013 = vst [vmem:[%s2977_s3 + $0x1b8] sm:$0xff] %v776_v44  ;;  %v1139_v57 = vadd.f32 %v1137_v8, %v776_v44 }
 0x184   :  { %v1269_v47 = vmul.f32 %v776_v44, %v776_v44  ;;  %v2670_v24 = vadd.f32 %v935_v41, %v2086_v38  ;;  %v1394_v2 = vadd.f32 %v1392_v11, %v1268_v49 }
 0x185   :  { %3005 = vst [vmem:[#allocation5_spill] sm:$0xff] %v2664_v43  ;;  %1076 = vst [vmem:[%s2977_s3 + $0x3b0] sm:$0xff] %v2664_v43  ;;  %v779_v3 = vpop.f32.mrb[56].mxu0  ;;  %v939_v32 = vpop.f32.mrb[56].mxu1 }
 0x186   :  { %3006 = vst [vmem:[#allocation6_spill] sm:$0xff] %v2670_v24  ;;  %v1395_v48 = vadd.f32 %v1393_v30, %v1269_v47  ;;  %1077 = vst [vmem:[%s2977_s3 + $0x3b8] sm:$0xff] %v2670_v24  ;;  %v780_v6 = vadd.f32 %v779_v3, %v2084_v37  ;;  %v781_v19 = vpop.f32.mrb[57].mxu0  ;;  %v2682_v41 = vadd.f32 %v939_v32, %v2084_v37  ;;  %v941_v8 = vpop.f32.mrb[57].mxu1 }
 0x187   :  { %v782_v42 = vadd.f32 %v781_v19, %v2086_v38  ;;  %v783_v44 = vpop.f32.mrb[58].mxu0  ;;  %v2686_v11 = vadd.f32 %v941_v8, %v2086_v38  ;;  %v943_v30 = vpop.f32.mrb[58].mxu1 }
 0x188   :  { %3007 = vst [vmem:[#allocation7_spill] sm:$0xff] %v2682_v41  ;;  %1014 = vst [vmem:[%s2977_s3 + $0x1c0] sm:$0xff] %v780_v6  ;;  %v1140_v49 = vadd.f32 %v1138_v40, %v780_v6  ;;  %v1270_v47 = vmul.f32 %v780_v6, %v780_v6  ;;  %v784_v3 = vadd.f32 %v783_v44, %v2084_v37  ;;  %v785_v24 = vpop.f32.mrb[59].mxu0  ;;  %v945_v32 = vpop.f32.mrb[59].mxu1 }
 0x189   :  { %3008 = vst [vmem:[#allocation8_spill] sm:$0xff] %v2686_v11  ;;  %1078 = vst [vmem:[%s2977_s3 + $0x3c0] sm:$0xff] %v2682_v41  ;;  %v1141_v19 = vadd.f32 %v1139_v57, %v782_v42  ;;  %v1271_v8 = vmul.f32 %v782_v42, %v782_v42  ;;  %v786_v43 = vadd.f32 %v785_v24, %v2086_v38 }
 0x18a   :  { %1015 = vst [vmem:[%s2977_s3 + $0x1c8] sm:$0xff] %v782_v42  ;;  %1079 = vst [vmem:[%s2977_s3 + $0x3c8] sm:$0xff] %v2686_v11  ;;  %v1396_v40 = vadd.f32 %v1394_v2, %v1270_v47  ;;  %v1142_v6 = vadd.f32 %v1140_v49, %v784_v3  ;;  %v1272_v44 = vmul.f32 %v784_v3, %v784_v3 }
 0x18b   :  { %1016 = vst [vmem:[%s2977_s3 + $0x1d0] sm:$0xff] %v784_v3  ;;  %v2708_v41 = vadd.f32 %v943_v30, %v2084_v37  ;;  %v1397_v60 = vadd.f32 %v1395_v48, %v1271_v8  ;;  %1017 = vst [vmem:[%s2977_s3 + $0x1d8] sm:$0xff] %v786_v43  ;;  %v1143_v57 = vadd.f32 %v1141_v19, %v786_v43 }
 0x18c   :  { %v1273_v24 = vmul.f32 %v786_v43, %v786_v43  ;;  %v2714_v42 = vadd.f32 %v945_v32, %v2086_v38  ;;  %v1398_v2 = vadd.f32 %v1396_v40, %v1272_v44 }
 0x18d   :  { %3009 = vst [vmem:[#allocation9_spill] sm:$0xff] %v2708_v41  ;;  %1080 = vst [vmem:[%s2977_s3 + $0x3d0] sm:$0xff] %v2708_v41  ;;  %v789_v47 = vpop.f32.mrb[60].mxu0  ;;  %v949_v48 = vpop.f32.mrb[60].mxu1 }
 0x18e   :  { %3010 = vst [vmem:[#allocation10_spill] sm:$0xff] %v2714_v42  ;;  %v1399_v49 = vadd.f32 %v1397_v60, %v1273_v24  ;;  %1081 = vst [vmem:[%s2977_s3 + $0x3d8] sm:$0xff] %v2714_v42  ;;  %v790_v30 = vadd.f32 %v789_v47, %v2084_v37  ;;  %v791_v43 = vpop.f32.mrb[61].mxu0  ;;  %v2726_v3 = vadd.f32 %v949_v48, %v2084_v37  ;;  %v951_v32 = vpop.f32.mrb[61].mxu1 }
 0x18f   :  { %v792_v19 = vadd.f32 %v791_v43, %v2086_v38  ;;  %v793_v8 = vpop.f32.mrb[62].mxu0  ;;  %v2730_v40 = vadd.f32 %v951_v32, %v2086_v38  ;;  %v953_v60 = vpop.f32.mrb[62].mxu1 }
 0x190   :  { %3011 = vst [vmem:[#allocation11_spill] sm:$0xff] %v2726_v3  ;;  %1018 = vst [vmem:[%s2977_s3 + $0x1e0] sm:$0xff] %v790_v30  ;;  %v1144_v44 = vadd.f32 %v1142_v6, %v790_v30  ;;  %v1274_v24 = vmul.f32 %v790_v30, %v790_v30  ;;  %v794_v47 = vadd.f32 %v793_v8, %v2084_v37  ;;  %v795_v42 = vpop.f32.mrb[63].mxu0  ;;  %v955_v48 = vpop.f32.mrb[63].mxu1 }
 0x191   :  { %1082 = vst [vmem:[%s2977_s3 + $0x3e0] sm:$0xff] %v2726_v3  ;;  %1019 = vst [vmem:[%s2977_s3 + $0x1e8] sm:$0xff] %v792_v19  ;;  %v1145_v43 = vadd.f32 %v1143_v57, %v792_v19  ;;  %v1275_v32 = vmul.f32 %v792_v19, %v792_v19  ;;  %v796_v41 = vadd.f32 %v795_v42, %v2086_v38 }
 0x192   :  { %1083 = vst [vmem:[%s2977_s3 + $0x3e8] sm:$0xff] %v2730_v40  ;;  %v1400_v6 = vadd.f32 %v1398_v2, %v1274_v24  ;;  %1020 = vst [vmem:[%s2977_s3 + $0x1f0] sm:$0xff] %v794_v47  ;;  %v1146_v30 = vadd.f32 %v1144_v44, %v794_v47  ;;  %v1276_v8 = vmul.f32 %v794_v47, %v794_v47  ;;  %v1754_v2 = vld [vmem:[%s2977_s3 + $0x200] sm:$0xff] }
 0x193   :  { %v2752_v3 = vadd.f32 %v953_v60, %v2084_v37  ;;  %v1401_v11 = vadd.f32 %v1399_v49, %v1275_v32  ;;  %1021 = vst [vmem:[%s2977_s3 + $0x1f8] sm:$0xff] %v796_v41  ;;  %v1147_v57 = vadd.f32 %v1145_v43, %v796_v41  ;;  %v1277_v42 = vmul.f32 %v796_v41, %v796_v41  ;;  %v1755_v37 = vld [vmem:[%s2977_s3 + $0x208] sm:$0xff]  ;;  %v1756_v60 = vld [vmem:[%s2977_s3 + $0x210] sm:$0xff] }
 0x194   :  { %v2758_v19 = vadd.f32 %v955_v48, %v2086_v38  ;;  %v1278_v24 = vmul.f32 %v1754_v2, %v1754_v2  ;;  %v1148_v44 = vadd.f32 %v1754_v2, %v1146_v30  ;;  %v1402_v47 = vadd.f32 %v1400_v6, %v1276_v8  ;;  %v1757_v6 = vld [vmem:[%s2977_s3 + $0x218] sm:$0xff] }
 0x195   :  { %1084 = vst [vmem:[%s2977_s3 + $0x3f0] sm:$0xff] %v2752_v3  ;;  %v1279_v41 = vmul.f32 %v1755_v37, %v1755_v37  ;;  %v1149_v49 = vadd.f32 %v1755_v37, %v1147_v57  ;;  %v1403_v38 = vadd.f32 %v1401_v11, %v1277_v42  ;;  %v1280_v48 = vmul.f32 %v1756_v60, %v1756_v60  ;;  %v1758_v11 = vld [vmem:[%s2977_s3 + $0x220] sm:$0xff] }
 0x196   :  { %3012 = vst [vmem:[#allocation12_spill] sm:$0xff] %v2758_v19  ;;  %1085 = vst [vmem:[%s2977_s3 + $0x3f8] sm:$0xff] %v2758_v19  ;;  %v1150_v43 = vadd.f32 %v1756_v60, %v1148_v44  ;;  %v1404_v32 = vadd.f32 %v1402_v47, %v1278_v24  ;;  %v1281_v30 = vmul.f32 %v1757_v6, %v1757_v6  ;;  %v1759_v19 = vld [vmem:[%s2977_s3 + $0x228] sm:$0xff]  ;;  %v1760_v60 = vld [vmem:[%s2977_s3 + $0x230] sm:$0xff] }
 0x197   :  { %v1151_v8 = vadd.f32 %v1757_v6, %v1149_v49  ;;  %v1405_v57 = vadd.f32 %v1403_v38, %v1279_v41  ;;  %v1282_v42 = vmul.f32 %v1758_v11, %v1758_v11  ;;  %v1283_v44 = vmul.f32 %v1759_v19, %v1759_v19  ;;  %v1761_v6 = vld [vmem:[%s2977_s3 + $0x238] sm:$0xff] }
 0x198   :  { %v1152_v2 = vadd.f32 %v1758_v11, %v1150_v43  ;;  %v1406_v37 = vadd.f32 %v1404_v32, %v1280_v48  ;;  %v1284_v49 = vmul.f32 %v1760_v60, %v1760_v60  ;;  %v1285_v43 = vmul.f32 %v1761_v6, %v1761_v6 }
 0x199   :  { %v1153_v24 = vadd.f32 %v1759_v19, %v1151_v8  ;;  %v1407_v47 = vadd.f32 %v1405_v57, %v1281_v30  ;;  %v1286_v11 = vmul.f32 %v2154_v31, %v2154_v31  ;;  %v1762_v19 = vld [vmem:[%s2977_s3 + $0x240] sm:$0xff]  ;;  %v1287_v57 = vmul.f32 %v2158_v35, %v2158_v35 }
 0x19a   :  { %v1154_v41 = vadd.f32 %v1760_v60, %v1152_v2  ;;  %v1408_v38 = vadd.f32 %v1406_v37, %v1282_v42  ;;  %v1288_v37 = vmul.f32 %v2180_v50, %v2180_v50  ;;  %v1289_v31 = vmul.f32 %v2186_v54, %v2186_v54 }
 0x19b   :  { %v1155_v48 = vadd.f32 %v1761_v6, %v1153_v24  ;;  %v1409_v32 = vadd.f32 %v1407_v47, %v1283_v44 }
 0x19c   :  { %v1156_v30 = vadd.f32 %v1762_v19, %v1154_v41  ;;  %v1410_v8 = vadd.f32 %v1408_v38, %v1284_v49  ;;  %v1290_v49 = vmul.f32 %v2198_v61, %v2198_v61 }
 0x19d   :  { %v1157_v42 = vadd.f32 %v1155_v48, %v2158_v35  ;;  %v1411_v2 = vadd.f32 %v1409_v32, %v1285_v43  ;;  %v1291_v35 = vmul.f32 %v2202_v1, %v2202_v1 }
 0x19e   :  { %v1158_v44 = vadd.f32 %v1156_v30, %v2180_v50  ;;  %v1412_v24 = vadd.f32 %v1410_v8, %v1286_v11  ;;  %v1292_v50 = vmul.f32 %v2224_v14, %v2224_v14 }
 0x19f   :  { %v1159_v47 = vadd.f32 %v1157_v42, %v2186_v54  ;;  %v1413_v60 = vadd.f32 %v1411_v2, %v1287_v57  ;;  %v1293_v54 = vmul.f32 %v2230_v18, %v2230_v18 }
 0x1a0   :  { %v1160_v41 = vadd.f32 %v1158_v44, %v2198_v61  ;;  %v1414_v38 = vadd.f32 %v1412_v24, %v1288_v37  ;;  %v1294_v61 = vmul.f32 %v2242_v25, %v2242_v25 }
 0x1a1   :  { %v1161_v6 = vadd.f32 %v1159_v47, %v2202_v1  ;;  %v1415_v43 = vadd.f32 %v1413_v60, %v1289_v31  ;;  %v1295_v1 = vmul.f32 %v2246_v29, %v2246_v29 }
 0x1a2   :  { %v1162_v48 = vadd.f32 %v1160_v41, %v2224_v14  ;;  %v1416_v32 = vadd.f32 %v1414_v38, %v1290_v49  ;;  %v1296_v14 = vmul.f32 %v2268_v46, %v2268_v46 }
 0x1a3   :  { %v1163_v11 = vadd.f32 %v1161_v6, %v2230_v18  ;;  %v1417_v19 = vadd.f32 %v1415_v43, %v1291_v35  ;;  %v1297_v18 = vmul.f32 %v2274_v51, %v2274_v51 }
 0x1a4   :  { %v1418_v30 = vadd.f32 %v1416_v32, %v1292_v50  ;;  %v1164_v8 = vadd.f32 %v1162_v48, %v2242_v25  ;;  %v1298_v25 = vmul.f32 %v2286_v59, %v2286_v59 }
 0x1a5   :  { %v1419_v57 = vadd.f32 %v1417_v19, %v1293_v54  ;;  %v1165_v42 = vadd.f32 %v1163_v11, %v2246_v29  ;;  %v1299_v29 = vmul.f32 %v2290_v0, %v2290_v0 }
 0x1a6   :  { %v1166_v2 = vadd.f32 %v1164_v8, %v2268_v46  ;;  %v1420_v37 = vadd.f32 %v1418_v30, %v1294_v61  ;;  %v1300_v46 = vmul.f32 %v2312_v15, %v2312_v15 }
 0x1a7   :  { %v1167_v44 = vadd.f32 %v1165_v42, %v2274_v51  ;;  %v1421_v24 = vadd.f32 %v1419_v57, %v1295_v1  ;;  %v1301_v51 = vmul.f32 %v2318_v20, %v2318_v20 }
 0x1a8   :  { %v1168_v31 = vadd.f32 %v1166_v2, %v2286_v59  ;;  %v1422_v47 = vadd.f32 %v1420_v37, %v1296_v14  ;;  %v1302_v59 = vmul.f32 %v2330_v28, %v2330_v28 }
 0x1a9   :  { %v1169_v60 = vadd.f32 %v1167_v44, %v2290_v0  ;;  %v1423_v49 = vadd.f32 %v1421_v24, %v1297_v18  ;;  %v1303_v0 = vmul.f32 %v2334_v34, %v2334_v34  ;;  %v1310_v18 = vmul.f32 %v2418_v45, %v2418_v45 }
 0x1aa   :  { %v1170_v41 = vadd.f32 %v1168_v31, %v2312_v15  ;;  %v1424_v38 = vadd.f32 %v1422_v47, %v1298_v25  ;;  %v1304_v15 = vmul.f32 %v2356_v53, %v2356_v53  ;;  %v1311_v24 = vmul.f32 %v2422_v52, %v2422_v52 }
 0x1ab   :  { %v1171_v35 = vadd.f32 %v1169_v60, %v2318_v20  ;;  %v1425_v6 = vadd.f32 %v1423_v49, %v1299_v29  ;;  %v1305_v20 = vmul.f32 %v2362_v58, %v2362_v58  ;;  %v1312_v47 = vmul.f32 %v2444_v10, %v2444_v10 }
 0x1ac   :  { %v1172_v43 = vadd.f32 %v1170_v41, %v2330_v28  ;;  %v1426_v50 = vadd.f32 %v1424_v38, %v1300_v46  ;;  %v1306_v28 = vmul.f32 %v2374_v5, %v2374_v5  ;;  %v1313_v60 = vmul.f32 %v2450_v16, %v2450_v16 }
 0x1ad   :  { %v1173_v48 = vadd.f32 %v1171_v35, %v2334_v34  ;;  %v1427_v32 = vadd.f32 %v1425_v6, %v1301_v51  ;;  %v1307_v34 = vmul.f32 %v2378_v9, %v2378_v9  ;;  %v1314_v46 = vmul.f32 %v2462_v26, %v2462_v26 }
 0x1ae   :  { %v1174_v54 = vadd.f32 %v1172_v43, %v2356_v53  ;;  %v1428_v11 = vadd.f32 %v1426_v50, %v1302_v59  ;;  %v1308_v53 = vmul.f32 %v2400_v27, %v2400_v27  ;;  %v1315_v38 = vmul.f32 %v2466_v39, %v2466_v39 }
 0x1af   :  { %v1175_v19 = vadd.f32 %v1173_v48, %v2362_v58  ;;  %v1429_v61 = vadd.f32 %v1427_v32, %v1303_v0  ;;  %v1309_v58 = vmul.f32 %v2406_v36, %v2406_v36  ;;  %v1316_v35 = vmul.f32 %v2488_v62, %v2488_v62 }
 0x1b0   :  { %v1176_v30 = vadd.f32 %v1174_v54, %v2374_v5  ;;  %v1430_v8 = vadd.f32 %v1428_v11, %v1304_v15  ;;  %v1317_v59 = vmul.f32 %v2494_v4, %v2494_v4  ;;  %v1318_v50 = vmul.f32 %v2506_v17, %v2506_v17 }
 0x1b1   :  { %v1177_v1 = vadd.f32 %v1175_v19, %v2378_v9  ;;  %v1431_v57 = vadd.f32 %v1429_v61, %v1305_v20  ;;  %v1319_v48 = vmul.f32 %v2510_v23, %v2510_v23  ;;  %v1320_v15 = vmul.f32 %v2532_v55, %v2532_v55 }
 0x1b2   :  { %v1178_v42 = vadd.f32 %v1176_v30, %v2400_v27  ;;  %v1432_v14 = vadd.f32 %v1430_v8, %v1306_v28  ;;  %v1321_v11 = vmul.f32 %v2538_v63, %v2538_v63  ;;  %v1322_v19 = vmul.f32 %v2550_v12, %v2550_v12 }
 0x1b3   :  { %v1179_v2 = vadd.f32 %v1177_v1, %v2406_v36  ;;  %v1433_v37 = vadd.f32 %v1431_v57, %v1307_v34  ;;  %v1323_v28 = vmul.f32 %v2554_v22, %v2554_v22  ;;  %v1324_v8 = vmul.f32 %v2576_v56, %v2576_v56 }
 0x1b4   :  { %v1180_v5 = vadd.f32 %v1178_v42, %v2418_v45  ;;  %v1434_v44 = vadd.f32 %v1432_v14, %v1308_v53  ;;  %v1325_v1 = vmul.f32 %v2582_v7, %v2582_v7  ;;  %v1326_v53 = vmul.f32 %v2594_v21, %v2594_v21 }
 0x1b5   :  { %v1181_v9 = vadd.f32 %v1179_v2, %v2422_v52  ;;  %v1435_v25 = vadd.f32 %v1433_v37, %v1309_v58  ;;  %v1327_v14 = vmul.f32 %v2598_v33, %v2598_v33  ;;  %v1328_v2 = vmul.f32 %v2620_v13, %v2620_v13 }
 0x1b6   :  { %v1436_v27 = vadd.f32 %v1434_v44, %v1310_v18  ;;  %v1182_v31 = vadd.f32 %v1180_v5, %v2444_v10 }
 0x1b7   :  { %v1437_v36 = vadd.f32 %v1435_v25, %v1311_v24  ;;  %v1183_v29 = vadd.f32 %v1181_v9, %v2450_v16 }
 0x1b8   :  { %v1438_v45 = vadd.f32 %v1436_v27, %v1312_v47  ;;  %v1184_v49 = vadd.f32 %v1182_v31, %v2462_v26 }
 0x1b9   :  { %v1439_v52 = vadd.f32 %v1437_v36, %v1313_v60  ;;  %v1185_v41 = vadd.f32 %v1183_v29, %v2466_v39 }
 0x1ba   :  { %v1440_v51 = vadd.f32 %v1438_v45, %v1314_v46  ;;  %v1186_v10 = vadd.f32 %v1184_v49, %v2488_v62  ;;  %v3017_v45 = vld [vmem:[#allocation6_spill] sm:$0xff] }
 0x1bb   :  { %v1441_v6 = vadd.f32 %v1439_v52, %v1315_v38  ;;  %v1187_v16 = vadd.f32 %v1185_v41, %v2494_v4  ;;  %v1333_v46 = vmul.f32 %v3017_v45, %v3017_v45  ;;  %v3018_v41 = vld [vmem:[#allocation7_spill] sm:$0xff] }
 0x1bc   :  { %v1442_v43 = vadd.f32 %v1440_v51, %v1316_v35  ;;  %v1188_v26 = vadd.f32 %v1186_v10, %v2506_v17  ;;  %v1334_v51 = vmul.f32 %v3018_v41, %v3018_v41  ;;  %v3019_v35 = vld [vmem:[#allocation8_spill] sm:$0xff] }
 0x1bd   :  { %v1443_v0 = vadd.f32 %v1441_v6, %v1317_v59  ;;  %v1189_v39 = vadd.f32 %v1187_v16, %v2510_v23  ;;  %v1335_v16 = vmul.f32 %v3019_v35, %v3019_v35 }
 0x1be   :  { %v1444_v32 = vadd.f32 %v1442_v43, %v1318_v50  ;;  %v1190_v62 = vadd.f32 %v1188_v26, %v2532_v55  ;;  %v3020_v43 = vld [vmem:[#allocation9_spill] sm:$0xff] }
 0x1bf   :  { %v1445_v54 = vadd.f32 %v1443_v0, %v1319_v48  ;;  %v1191_v4 = vadd.f32 %v1189_v39, %v2538_v63  ;;  %v1336_v50 = vmul.f32 %v3020_v43, %v3020_v43  ;;  %v3021_v0 = vld [vmem:[#allocation11_spill] sm:$0xff] }
 0x1c0   :  { %v1446_v20 = vadd.f32 %v1444_v32, %v1320_v15  ;;  %v1192_v17 = vadd.f32 %v1190_v62, %v2550_v12  ;;  %v1338_v39 = vmul.f32 %v3021_v0, %v3021_v0  ;;  %v3022_v32 = vld [vmem:[#allocation10_spill] sm:$0xff] }
 0x1c1   :  { %v1447_v61 = vadd.f32 %v1445_v54, %v1321_v11  ;;  %v1193_v23 = vadd.f32 %v1191_v4, %v2554_v22  ;;  %v1337_v15 = vmul.f32 %v3022_v32, %v3022_v32  ;;  %v1339_v54 = vmul.f32 %v2730_v40, %v2730_v40 }
 0x1c2   :  { %v1448_v30 = vadd.f32 %v1446_v20, %v1322_v19  ;;  %v1194_v55 = vadd.f32 %v1192_v17, %v2576_v56 }
 0x1c3   :  { %v1449_v34 = vadd.f32 %v1447_v61, %v1323_v28  ;;  %v1195_v63 = vadd.f32 %v1193_v23, %v2582_v7  ;;  %v3013_v7 = vld [vmem:[#allocation2_spill] sm:$0xff]  ;;  %v1340_v23 = vmul.f32 %v2752_v3, %v2752_v3 }
 0x1c4   :  { %v1450_v57 = vadd.f32 %v1448_v30, %v1324_v8  ;;  %v1196_v12 = vadd.f32 %v1194_v55, %v2594_v21  ;;  %v1329_v18 = vmul.f32 %v3013_v7, %v3013_v7  ;;  %v3014_v21 = vld [vmem:[#allocation3_spill] sm:$0xff]  ;;  %v3023_v30 = vld [vmem:[#allocation12_spill] sm:$0xff] }
 0x1c5   :  { %v1451_v42 = vadd.f32 %v1449_v34, %v1325_v1  ;;  %v1197_v22 = vadd.f32 %v1195_v63, %v2598_v33  ;;  %v1330_v24 = vmul.f32 %v3014_v21, %v3014_v21  ;;  %v3015_v33 = vld [vmem:[#allocation4_spill] sm:$0xff]  ;;  %v1341_v8 = vmul.f32 %v3023_v30, %v3023_v30 }
 0x1c6   :  { %v1452_v58 = vadd.f32 %v1450_v57, %v1326_v53  ;;  %v1198_v56 = vadd.f32 %v1196_v12, %v2620_v13  ;;  %v1331_v31 = vmul.f32 %v3015_v33, %v3015_v33  ;;  %v3016_v13 = vld [vmem:[#allocation5_spill] sm:$0xff] }
 0x1c7   :  { %v1453_v37 = vadd.f32 %v1451_v42, %v1327_v14  ;;  %v1199_v5 = vadd.f32 %v1197_v22, %v3013_v7  ;;  %v1332_v29 = vmul.f32 %v3016_v13, %v3016_v13 }
 0x1c8   :  { %v1454_v44 = vadd.f32 %v1452_v58, %v1328_v2  ;;  %v1200_v9 = vadd.f32 %v1198_v56, %v3014_v21 }
 0x1c9   :  { %v1455_v25 = vadd.f32 %v1453_v37, %v1329_v18  ;;  %v1201_v27 = vadd.f32 %v1199_v5, %v3015_v33 }
 0x1ca   :  { %v1456_v47 = vadd.f32 %v1454_v44, %v1330_v24  ;;  %v1202_v36 = vadd.f32 %v1200_v9, %v3016_v13 }
 0x1cb   :  { %v1457_v60 = vadd.f32 %v1455_v25, %v1331_v31  ;;  %v1203_v49 = vadd.f32 %v1201_v27, %v3017_v45 }
 0x1cc   :  { %v1458_v52 = vadd.f32 %v1456_v47, %v1332_v29  ;;  %v1204_v38 = vadd.f32 %v1202_v36, %v3018_v41 }
 0x1cd   :  { %v1459_v10 = vadd.f32 %v1457_v60, %v1333_v46  ;;  %v1205_v6 = vadd.f32 %v1203_v49, %v3019_v35 }
 0x1ce   :  { %v1460_v59 = vadd.f32 %v1458_v52, %v1334_v51  ;;  %v1206_v26 = vadd.f32 %v1204_v38, %v3020_v43 }
 0x1cf   :  { %v1461_v48 = vadd.f32 %v1459_v10, %v1335_v16  ;;  %v1207_v62 = vadd.f32 %v1205_v6, %v3022_v32 }
 0x1d0   :  { %v1462_v4 = vadd.f32 %v1460_v59, %v1336_v50  ;;  %v1208_v11 = vadd.f32 %v1206_v26, %v3021_v0 }
 0x1d1   :  { %v1463_v20 = vadd.f32 %v1461_v48, %v1337_v15  ;;  %v1209_v17 = vadd.f32 %v1207_v62, %v2730_v40 }
 0x1d2   :  { %v1464_v19 = vadd.f32 %v1462_v4, %v1338_v39  ;;  %v1210_v61 = vadd.f32 %v1208_v11, %v2752_v3 }
 0x1d3   :  { %v1465_v28 = vadd.f32 %v1463_v20, %v1339_v54  ;;  %v1211_v55 = vadd.f32 %v1209_v17, %v3023_v30 }
 0x1d4   :  { %1212 = vst [vmem:[%s2978_s4] sm:$0xff] %v1210_v61  ;;  %v1466_v34 = vadd.f32 %v1464_v19, %v1340_v23 }
 0x1d5   :  { %1213 = vst [vmem:[%s2978_s4 + $0x8] sm:$0xff] %v1211_v55  ;;  %v1467_v40 = vadd.f32 %v1465_v28, %v1341_v8 }
 0x1d6   :  { %1468 = vst [vmem:[%s2979_s5] sm:$0xff] %v1466_v34 }
 0x1d7   :  { %1469 = vst [vmem:[%s2979_s5 + $0x8] sm:$0xff] %v1467_v40 }

// kernel: position_sensitive_segmentation_forward.5
= control target key start
LH: loop header
LB: loop body
LE: loop exit
PB: predicated region body
PF: predicated region fallthrough
CT: control target
= control target key end

     0   :  { %s1633_s18 = smov 0   ;;  %s1635_s19 = smov 0   ;;  %s2293_s0 = inlined_call_operand.vmem [shape: f32[2048,256], index: 0, kind: input, shape index: {}]   ;;  %s2294_s1 = inlined_call_operand.vmem [shape: bf16[256,128], index: 1, kind: input, shape index: {}]   ;;  %s2295_s2 = inlined_call_operand.vmem [shape: f32[1,128], index: 2, kind: input, shape index: {}]   ;;  %s2296_s3 = inlined_call_operand.vmem [shape: f32[1,256], index: 3, kind: input, shape index: {}]   ;;  %s2297_s4 = inlined_call_operand.vmem [shape: f32[1,256], index: 4, kind: input, shape index: {}]   ;;  %s2298_s5 = inlined_call_operand.vmem [shape: f32[2048,128], index: 5, kind: output, shape index: {}]  }
   0x1   :  { %s1637_s20 = smov 0  }
   0x2 LB: > { %s27_s21 = sadd.s32 1, %s1596_s19  ;;  %p1479_p0 = scmp.ge.s32.totalorder %s1600_s20, 1  ;;  %s1600_s20 = sphi %s1637_s20, %s15_s20   ;;  %s1596_s19 = sphi %s1635_s19, %s2300_s19   ;;  %s1592_s18 = sphi %s1633_s18, %s2299_s18  }
   0x3   : > { %p29_p1 = scmp.ge.s32.totalorder %s27_s21, 4  ;;  %p220_p2 = scmp.lt.s32.totalorder %s1600_s20, 5 }
   0x5   : > { %s2302_s21 = smov (%p29_p1, %s27_s21), 0  ;;  %p221_p3 = pnand %p1479_p0, %p220_p2 }
   0x6   : > { %v1562_v0 = vld [vmem:[%s2294_s1] sm:$0xff] (!%p221_p3)   ;;  %v1602_v1 = vmov (!%p221_p3), 0   ;;  %s1480_s24 = sshll.u32 (!%p221_p3), %s1592_s18, 6  ;;  %v1563_v2 = vld [vmem:[%s2294_s1 + $0x8] sm:$0xff] (!%p221_p3)   ;;  %v413_v3 = vlaneseq (!%p221_p3)  ;;  %v1564_v4 = vld [vmem:[%s2294_s1 + $0x10] sm:$0xff] (!%p221_p3)  }
   0x7   : > { %224 = sbr.rel (%p221_p3) target bundleno = 408 (0x198), region = 40  ;;  %1018 = vmatprep.subr.bf16.mxu0 (!%p221_p3), %v1602_v1  ;;  %1505 = vmatprep.subr.bf16.mxu1 (!%p221_p3), %v1602_v1  ;;  %p260_p4 = scmp.lt.s32.totalorder (!%p221_p3), %s1480_s24, 255  ;;  %v1565_v6 = vld [vmem:[%s2294_s1 + $0x18] sm:$0xff] (!%p221_p3)   ;;  %v1566_v8 = vld [vmem:[%s2294_s1 + $0x20] sm:$0xff] (!%p221_p3)   ;;  %v1567_v16 = vld [vmem:[%s2294_s1 + $0x28] sm:$0xff] (!%p221_p3)  }
   0x8   : > { %1019 = vmatpush1.bf16.msra.mxu0 (!%p221_p3), %v1562_v0  ;;  %1521 = vmatpush1.bf16.msra.mxu1 (!%p221_p3), %v1562_v0  ;;  %v1668_v5 = vshrl.u32 (!%p221_p3), %v413_v3, 7  ;;  %v411_v11 = vld [vmem:[%s2296_s3] sm:$0x3] (!%p221_p3)  ;;  %v1568_v25 = vld [vmem:[%s2294_s1 + $0x30] sm:$0xff] (!%p221_p3)   ;;  %v1569_v32 = vld [vmem:[%s2294_s1 + $0x38] sm:$0xff] (!%p221_p3)  }
   0x9   : > { %1020 = vmatprep.subr.bf16.mxu0 (!%p221_p3), %v1602_v1  ;;  %1506 = vmatprep.subr.bf16.mxu1 (!%p221_p3), %v1602_v1  ;;  %v1697_v13 = vld [vmem:[%s2297_s4] sm:$0x3] (!%p221_p3)  ;;  %v1571_v35 = vld [vmem:[%s2294_s1 + $0x48] sm:$0xff] (!%p221_p3)   ;;  %v1572_v36 = vld [vmem:[%s2294_s1 + $0x50] sm:$0xff] (!%p221_p3)  }
   0xa   : > { %v419_v7 = vsub.s32 (!%p221_p3), 1, %v1668_v5  ;;  %v1570_v34 = vld [vmem:[%s2294_s1 + $0x40] sm:$0xff] (!%p221_p3)   ;;  %v415_v37 = vsub.s32 (!%p221_p3), 0, %v1668_v5  ;;  %v1573_v38 = vld [vmem:[%s2294_s1 + $0x58] sm:$0xff] (!%p221_p3)   ;;  %v1575_v56 = vld [vmem:[%s2294_s1 + $0x68] sm:$0xff] (!%p221_p3)  }
   0xb   : > { %v1574_v44 = vld [vmem:[%s2294_s1 + $0x60] sm:$0xff] (!%p221_p3)  }
   0xc   : > { %1021 = vmatpush1.bf16.msra.mxu0 (!%p221_p3), %v1563_v2  ;;  %1522 = vmatpush1.bf16.msra.mxu1 (!%p221_p3), %v1563_v2  ;;  %v1692_v12 = vrot.slane (!%p221_p3), %v411_v11, %v419_v7  ;;  %v1705_v17 = vrot.slane (!%p221_p3), %v1697_v13, %v419_v7  ;;  %v1748_v39 = vrot.slane (!%p221_p3), %v411_v11, %v415_v37 }
   0xd   : > { %1022 = vmatprep.subr.bf16.mxu0 (!%p221_p3), %v1602_v1  ;;  %1507 = vmatprep.subr.bf16.mxu1 (!%p221_p3), %v1602_v1  ;;  %v1762_v47 = vrot.slane (!%p221_p3), %v1697_v13, %v415_v37 }
   0xe   : > { %s2304_s24 = smov (!%p260_p4, %s1480_s24), 255 }
   0xf   : > { %s1504_s6 = sshll.u32 %s2304_s24, 4 }
  0x10   : > { %1023 = vmatpush1.bf16.msra.mxu0 %v1564_v4  ;;  %1523 = vmatpush1.bf16.msra.mxu1 %v1564_v4  ;;  %s1679_s9 = scalar_lea.vmem %s2293_s0, %s1504_s6  ;;  %v1576_v4 = vld [vmem:[%s2294_s1 + $0x70] sm:$0xff]  }
  0x11   : > { %1024 = vmatprep.subr.bf16.mxu0 %v1602_v1  ;;  %1508 = vmatprep.subr.bf16.mxu1 %v1602_v1  ;;  %v284_v9 = vld [vmem:[%s1679_s9 + $0x8] sm:$0xff]  ;;  %v286_v10 = vld [vmem:[%s1679_s9 + $0x18] sm:$0xff]  ;;  %v283_v40 = vld [vmem:[%s1679_s9] sm:$0xff] }
  0x12   : > { %v348_v14 = vld [vmem:[%s1679_s9 + $0x208] sm:$0xff]  ;;  %v350_v15 = vld [vmem:[%s1679_s9 + $0x218] sm:$0xff]  ;;  %v424_v18 = vmul.f32 %v1692_v12, %v284_v9  ;;  %v426_v19 = vmul.f32 %v1692_v12, %v286_v10  ;;  %v285_v41 = vld [vmem:[%s1679_s9 + $0x10] sm:$0xff]  ;;  %v423_v48 = vmul.f32 %v1748_v39, %v283_v40 }
  0x13   : > { %v488_v20 = vmul.f32 %v1692_v12, %v348_v14  ;;  %v490_v21 = vmul.f32 %v1692_v12, %v350_v15  ;;  %v347_v42 = vld [vmem:[%s1679_s9 + $0x200] sm:$0xff]  ;;  %v349_v43 = vld [vmem:[%s1679_s9 + $0x210] sm:$0xff]  ;;  %v288_v45 = vld [vmem:[%s1679_s9 + $0x28] sm:$0xff]  ;;  %v425_v51 = vmul.f32 %v1748_v39, %v285_v41 }
  0x14   : > { %1025 = vmatpush1.bf16.msra.mxu0 %v1565_v6  ;;  %1524 = vmatpush1.bf16.msra.mxu1 %v1565_v6  ;;  %v564_v22 = vadd.f32 %v1705_v17, %v424_v18  ;;  %v566_v23 = vadd.f32 %v1705_v17, %v426_v19  ;;  %v290_v46 = vld [vmem:[%s1679_s9 + $0x38] sm:$0xff]  ;;  %v352_v49 = vld [vmem:[%s1679_s9 + $0x228] sm:$0xff]  ;;  %v487_v52 = vmul.f32 %v1748_v39, %v347_v42  ;;  %v287_v60 = vld [vmem:[%s1679_s9 + $0x20] sm:$0xff] }
  0x15   : > { %1026 = vmatprep.subr.bf16.mxu0 %v1602_v1  ;;  %1509 = vmatprep.subr.bf16.mxu1 %v1602_v1  ;;  %v628_v24 = vadd.f32 %v1705_v17, %v488_v20  ;;  %v630_v26 = vadd.f32 %v1705_v17, %v490_v21  ;;  %v354_v50 = vld [vmem:[%s1679_s9 + $0x238] sm:$0xff]  ;;  %v489_v53 = vmul.f32 %v1748_v39, %v349_v43  ;;  %v289_v0 = vld [vmem:[%s1679_s9 + $0x30] sm:$0xff]  ;;  %v351_v2 = vld [vmem:[%s1679_s9 + $0x220] sm:$0xff] }
  0x16   : > { %v692_v27 = vmax.f32 %v564_v22, 0.0  ;;  %v694_v28 = vmax.f32 %v566_v23, 0.0  ;;  %v428_v54 = vmul.f32 %v1692_v12, %v288_v45  ;;  %v430_v55 = vmul.f32 %v1692_v12, %v290_v46  ;;  %v353_v3 = vld [vmem:[%s1679_s9 + $0x230] sm:$0xff]  ;;  %v292_v7 = vld [vmem:[%s1679_s9 + $0x48] sm:$0xff]  ;;  %v294_v11 = vld [vmem:[%s1679_s9 + $0x58] sm:$0xff] }
  0x17   : > { %v756_v29 = vmax.f32 %v628_v24, 0.0  ;;  %v758_v30 = vmax.f32 %v630_v26, 0.0  ;;  %v492_v57 = vmul.f32 %v1692_v12, %v352_v49  ;;  %v494_v58 = vmul.f32 %v1692_v12, %v354_v50  ;;  %v356_v13 = vld [vmem:[%s1679_s9 + $0x248] sm:$0xff]  ;;  %v358_v14 = vld [vmem:[%s1679_s9 + $0x258] sm:$0xff]  ;;  %v293_v43 = vld [vmem:[%s1679_s9 + $0x50] sm:$0xff] }
  0x18   : > { %1027 = vmatpush1.bf16.msra.mxu0 %v1566_v8  ;;  %1525 = vmatpush1.bf16.msra.mxu1 %v1566_v8  ;;  %v820_v31 = vpack.c.bf16 %v694_v28, %v692_v27  ;;  %v563_v59 = vadd.f32 %v1762_v47, %v423_v48  ;;  %v565_v61 = vadd.f32 %v1762_v47, %v425_v51  ;;  %v1577_v28 = vld [vmem:[%s2294_s1 + $0x78] sm:$0xff]   ;;  %v357_v45 = vld [vmem:[%s1679_s9 + $0x250] sm:$0xff]  ;;  %v296_v50 = vld [vmem:[%s1679_s9 + $0x68] sm:$0xff] }
  0x19   : > { %1028 = vmatprep.subr.bf16.mxu0 %v1602_v1  ;;  %1510 = vmatprep.subr.bf16.mxu1 %v1602_v1  ;;  %v852_v33 = vpack.c.bf16 %v758_v30, %v756_v29  ;;  %v627_v62 = vadd.f32 %v1762_v47, %v487_v52  ;;  %v629_v63 = vadd.f32 %v1762_v47, %v489_v53 }
  0x1a   : > { %1050 = vmatprep.mubr.bf16.mxu0 %v820_v31  ;;  %v568_v5 = vadd.f32 %v1705_v17, %v428_v54  ;;  %v570_v6 = vadd.f32 %v1705_v17, %v430_v55  ;;  %v632_v8 = vadd.f32 %v1705_v17, %v492_v57  ;;  %v634_v9 = vadd.f32 %v1705_v17, %v494_v58  ;;  %v298_v55 = vld [vmem:[%s1679_s9 + $0x78] sm:$0xff] }
  0x1b   : > { %1178 = vmatprep.mubr.bf16.mxu1 %v852_v33  ;;  %v427_v10 = vmul.f32 %v1748_v39, %v287_v60  ;;  %v691_v15 = vmax.f32 %v563_v59, 0.0  ;;  %v491_v18 = vmul.f32 %v1748_v39, %v351_v2  ;;  %v493_v19 = vmul.f32 %v1748_v39, %v353_v3  ;;  %v362_v57 = vld [vmem:[%s1679_s9 + $0x278] sm:$0xff] }
  0x1c   : > { %1029 = vmatpush1.bf16.msra.mxu0 %v1567_v16  ;;  %1526 = vmatpush1.bf16.msra.mxu1 %v1567_v16  ;;  %v429_v16 = vmul.f32 %v1748_v39, %v289_v0  ;;  %v693_v20 = vmax.f32 %v565_v61, 0.0  ;;  %v755_v21 = vmax.f32 %v627_v62, 0.0  ;;  %v757_v22 = vmax.f32 %v629_v63, 0.0 }
  0x1d   : > { %1030 = vmatprep.subr.bf16.mxu0 %v1602_v1  ;;  %1511 = vmatprep.subr.bf16.mxu1 %v1602_v1  ;;  %v432_v23 = vmul.f32 %v1692_v12, %v292_v7  ;;  %v696_v24 = vmax.f32 %v568_v5, 0.0  ;;  %v496_v26 = vmul.f32 %v1692_v12, %v356_v13  ;;  %v498_v27 = vmul.f32 %v1692_v12, %v358_v14  ;;  %v295_v7 = vld [vmem:[%s1679_s9 + $0x60] sm:$0xff]  ;;  %v297_v13 = vld [vmem:[%s1679_s9 + $0x70] sm:$0xff] }
  0x1e   : > { %v698_v29 = vmax.f32 %v570_v6, 0.0  ;;  %v760_v30 = vmax.f32 %v632_v8, 0.0  ;;  %v762_v31 = vmax.f32 %v634_v9, 0.0  ;;  %v569_v33 = vadd.f32 %v1762_v47, %v429_v16  ;;  %v359_v14 = vld [vmem:[%s1679_s9 + $0x260] sm:$0xff] }
  0x1f   : > { %v572_v37 = vadd.f32 %v1705_v17, %v432_v23  ;;  %v851_v40 = vpack.c.bf16 %v757_v22, %v755_v21  ;;  %v636_v42 = vadd.f32 %v1705_v17, %v496_v26  ;;  %v433_v59 = vmul.f32 %v1748_v39, %v293_v43  ;;  %v300_v21 = vld [vmem:[%s1679_s9 + $0x88] sm:$0xff]  ;;  %v302_v26 = vld [vmem:[%s1679_s9 + $0x98] sm:$0xff] }
  0x20   : > { %1031 = vmatpush1.bf16.msra.mxu0 %v1568_v25  ;;  %1527 = vmatpush1.bf16.msra.mxu1 %v1568_v25  ;;  %v434_v25 = vmul.f32 %v1692_v12, %v294_v11  ;;  %v822_v46 = vpack.c.bf16 %v698_v29, %v696_v24  ;;  %v854_v48 = vpack.c.bf16 %v762_v31, %v760_v30  ;;  %v697_v51 = vmax.f32 %v569_v33, 0.0 }
  0x21   : > { %1032 = vmatprep.subr.bf16.mxu0 %v1602_v1  ;;  %1512 = vmatprep.subr.bf16.mxu1 %v1602_v1  ;;  %v700_v58 = vmax.f32 %v572_v37, 0.0  ;;  %v497_v61 = vmul.f32 %v1748_v39, %v357_v45  ;;  %v764_v63 = vmax.f32 %v636_v42, 0.0  ;;  %v436_v2 = vmul.f32 %v1692_v12, %v296_v50 }
  0x22   : > { %v574_v41 = vadd.f32 %v1705_v17, %v434_v25  ;;  %v438_v3 = vmul.f32 %v1692_v12, %v298_v55  ;;  %v502_v5 = vmul.f32 %v1692_v12, %v362_v57  ;;  %v573_v9 = vadd.f32 %v1762_v47, %v433_v59  ;;  %v363_v57 = vld [vmem:[%s1679_s9 + $0x280] sm:$0xff] }
  0x23   : > { %v637_v11 = vadd.f32 %v1762_v47, %v497_v61  ;;  %v435_v25 = vmul.f32 %v1748_v39, %v295_v7  ;;  %v437_v30 = vmul.f32 %v1748_v39, %v297_v13  ;;  %v499_v31 = vmul.f32 %v1748_v39, %v359_v14 }
  0x24   : > { %1033 = vmatpush1.bf16.msra.mxu0 %v1569_v32  ;;  %1528 = vmatpush1.bf16.msra.mxu1 %v1569_v32  ;;  %v567_v32 = vadd.f32 %v1762_v47, %v427_v10  ;;  %v702_v62 = vmax.f32 %v574_v41, 0.0  ;;  %v578_v22 = vadd.f32 %v1705_v17, %v438_v3  ;;  %v642_v24 = vadd.f32 %v1705_v17, %v502_v5  ;;  %v368_v5 = vld [vmem:[%s1679_s9 + $0x2a8] sm:$0xff] }
  0x25   : > { %1034 = vmatprep.subr.bf16.mxu0 %v1602_v1  ;;  %1513 = vmatprep.subr.bf16.mxu1 %v1602_v1  ;;  %v701_v33 = vmax.f32 %v573_v9, 0.0  ;;  %v577_v45 = vadd.f32 %v1762_v47, %v437_v30  ;;  %v503_v9 = vmul.f32 %v1748_v39, %v363_v57 }
  0x26   : > { %v695_v49 = vmax.f32 %v567_v32, 0.0  ;;  %v706_v42 = vmax.f32 %v578_v22, 0.0  ;;  %v770_v43 = vmax.f32 %v642_v24, 0.0 }
  0x27   : > { %v643_v24 = vadd.f32 %v1762_v47, %v503_v9 }
  0x28   : > { %1035 = vmatpush1.bf16.msra.mxu0 %v1570_v34  ;;  %1529 = vmatpush1.bf16.msra.mxu1 %v1570_v34  ;;  %v631_v34 = vadd.f32 %v1762_v47, %v491_v18  ;;  %v821_v8 = vpack.c.bf16 %v697_v51, %v695_v49  ;;  %v824_v18 = vpack.c.bf16 %v702_v62, %v700_v58  ;;  %v299_v51 = vld [vmem:[%s1679_s9 + $0x80] sm:$0xff]  ;;  %v365_v58 = vld [vmem:[%s1679_s9 + $0x290] sm:$0xff]  ;;  %v304_v62 = vld [vmem:[%s1679_s9 + $0xa8] sm:$0xff] }
  0x29   : > { %1036 = vmatprep.subr.bf16.mxu0 %v1602_v1  ;;  %1514 = vmatprep.subr.bf16.mxu1 %v1602_v1  ;;  %v439_v3 = vmul.f32 %v1748_v39, %v299_v51 }
  0x2a   : > { %v759_v52 = vmax.f32 %v631_v34, 0.0 }
  0x2c   : > { %1037 = vmatpush1.bf16.msra.mxu0 %v1571_v35  ;;  %1530 = vmatpush1.bf16.msra.mxu1 %v1571_v35  ;;  %v633_v35 = vadd.f32 %v1762_v47, %v493_v19 }
  0x2d   : > { %1038 = vmatprep.subr.bf16.mxu0 %v1602_v1  ;;  %1515 = vmatprep.subr.bf16.mxu1 %v1602_v1 }
  0x2e   : > { %v761_v53 = vmax.f32 %v633_v35, 0.0  ;;  %v765_v35 = vmax.f32 %v637_v11, 0.0 }
  0x30   : > { %1039 = vmatpush1.bf16.msra.mxu0 %v1572_v36  ;;  %1531 = vmatpush1.bf16.msra.mxu1 %v1572_v36  ;;  %v819_v36 = vpack.c.bf16 %v693_v20, %v691_v15  ;;  %v361_v15 = vld [vmem:[%s1679_s9 + $0x270] sm:$0xff]  ;;  %v853_v16 = vpack.c.bf16 %v761_v53, %v759_v52  ;;  %v576_v20 = vadd.f32 %v1705_v17, %v436_v2 }
  0x31   : > { %1040 = vmatprep.subr.bf16.mxu0 %v1602_v1  ;;  %1516 = vmatprep.subr.bf16.mxu1 %v1602_v1  ;;  %v501_v32 = vmul.f32 %v1748_v39, %v361_v15  ;;  %v444_v15 = vmul.f32 %v1692_v12, %v304_v62 }
  0x32   : > { %v704_v37 = vmax.f32 %v576_v20, 0.0  ;;  %v579_v20 = vadd.f32 %v1762_v47, %v439_v3 }
  0x34   : > { %1041 = vmatpush1.bf16.msra.mxu0 %v1573_v38  ;;  %1532 = vmatpush1.bf16.msra.mxu1 %v1573_v38  ;;  %v291_v38 = vld [vmem:[%s1679_s9 + $0x40] sm:$0xff]  ;;  %v826_v59 = vpack.c.bf16 %v706_v42, %v704_v37  ;;  %v707_v42 = vmax.f32 %v579_v20, 0.0  ;;  %v378_v20 = vld [vmem:[%s1679_s9 + $0x2f8] sm:$0xff] }
  0x35   : > { %1042 = vmatprep.subr.bf16.mxu0 %v1602_v1  ;;  %1517 = vmatprep.subr.bf16.mxu1 %v1602_v1  ;;  %v431_v54 = vmul.f32 %v1748_v39, %v291_v38  ;;  %v442_v38 = vmul.f32 %v1692_v12, %v302_v26  ;;  %v305_v26 = vld [vmem:[%s1679_s9 + $0xb0] sm:$0xff] }
  0x37   : > { %v571_v6 = vadd.f32 %v1762_v47, %v431_v54  ;;  %v582_v53 = vadd.f32 %v1705_v17, %v442_v38  ;;  %v310_v38 = vld [vmem:[%s1679_s9 + $0xd8] sm:$0xff] }
  0x38   : > { %1043 = vmatpush1.bf16.msra.mxu0 %v1574_v44  ;;  %1533 = vmatpush1.bf16.msra.mxu1 %v1574_v44  ;;  %v355_v44 = vld [vmem:[%s1679_s9 + $0x240] sm:$0xff]  ;;  %v450_v51 = vmul.f32 %v1692_v12, %v310_v38  ;;  %v313_v38 = vld [vmem:[%s1679_s9 + $0xf0] sm:$0xff] }
  0x39   : > { %1044 = vmatprep.subr.bf16.mxu0 %v1602_v1  ;;  %1518 = vmatprep.subr.bf16.mxu1 %v1602_v1  ;;  %v495_v60 = vmul.f32 %v1748_v39, %v355_v44  ;;  %v699_v29 = vmax.f32 %v571_v6, 0.0  ;;  %v575_v44 = vadd.f32 %v1762_v47, %v435_v25  ;;  %v370_v6 = vld [vmem:[%s1679_s9 + $0x2b8] sm:$0xff]  ;;  %v710_v11 = vmax.f32 %v582_v53, 0.0 }
  0x3b   : > { %v635_v10 = vadd.f32 %v1762_v47, %v495_v60  ;;  %v823_v49 = vpack.c.bf16 %v701_v33, %v699_v29  ;;  %v703_v61 = vmax.f32 %v575_v44, 0.0  ;;  %v308_v33 = vld [vmem:[%s1679_s9 + $0xc8] sm:$0xff] }
  0x3c   : > { %1045 = vmatpush1.bf16.msra.mxu0 %v1575_v56  ;;  %1534 = vmatpush1.bf16.msra.mxu1 %v1575_v56  ;;  %v360_v56 = vld [vmem:[%s1679_s9 + $0x268] sm:$0xff] }
  0x3d   : > { %1046 = vmatprep.subr.bf16.mxu0 %v1602_v1  ;;  %1519 = vmatprep.subr.bf16.mxu1 %v1602_v1  ;;  %v763_v34 = vmax.f32 %v635_v10, 0.0  ;;  %v505_v10 = vmul.f32 %v1748_v39, %v365_v58 }
  0x3f   : > { %v855_v52 = vpack.c.bf16 %v765_v35, %v763_v34  ;;  %v645_v25 = vadd.f32 %v1762_v47, %v505_v10 }
  0x40   : > { %1047 = vmatpush1.bf16.msra.mxu0 %v1576_v4  ;;  %1535 = vmatpush1.bf16.msra.mxu1 %v1576_v4  ;;  %v500_v4 = vmul.f32 %v1692_v12, %v360_v56  ;;  %v301_v56 = vld [vmem:[%s1679_s9 + $0x90] sm:$0xff] }
  0x41   : > { %1048 = vmatprep.subr.bf16.mxu0 %v1602_v1  ;;  %1520 = vmatprep.subr.bf16.mxu1 %v1602_v1  ;;  %v638_v1 = vadd.f32 %v1705_v17, %v498_v27  ;;  %v364_v27 = vld [vmem:[%s1679_s9 + $0x288] sm:$0xff] }
  0x42   : > { %v640_v23 = vadd.f32 %v1705_v17, %v500_v4  ;;  %v306_v4 = vld [vmem:[%s1679_s9 + $0xb8] sm:$0xff] }
  0x43   : > { %v766_v0 = vmax.f32 %v638_v1, 0.0 }
  0x44   : > { %1049 = vmatpush1.bf16.msra.mxu0 %v1577_v28  ;;  %1536 = vmatpush1.bf16.msra.mxu1 %v1577_v28  ;;  %v366_v28 = vld [vmem:[%s1679_s9 + $0x298] sm:$0xff]  ;;  %v768_v1 = vmax.f32 %v640_v23, 0.0 }
  0x45   : > { %v856_v19 = vpack.c.bf16 %v766_v0, %v764_v63  ;;  %v506_v41 = vmul.f32 %v1692_v12, %v366_v28  ;;  %v705_v63 = vmax.f32 %v577_v45, 0.0  ;;  %v369_v28 = vld [vmem:[%s1679_s9 + $0x2b0] sm:$0xff] }
  0x46   : > { %v858_v60 = vpack.c.bf16 %v770_v43, %v768_v1  ;;  %v445_v1 = vmul.f32 %v1748_v39, %v305_v26  ;;  %v509_v44 = vmul.f32 %v1748_v39, %v369_v28 }
  0x47   : > { %1051 = vmatmul.mubr.bf16.vlgmr.msra.gmra.mrb[0].mxu0 %v819_v36  ;;  %1179 = vmatmul.mubr.bf16.vlgmr.msra.gmra.mrb[0].mxu1 %v851_v40  ;;  %v440_v36 = vmul.f32 %v1692_v12, %v300_v21  ;;  %v504_v40 = vmul.f32 %v1692_v12, %v364_v27  ;;  %v646_v55 = vadd.f32 %v1705_v17, %v506_v41  ;;  %v303_v21 = vld [vmem:[%s1679_s9 + $0xa0] sm:$0xff]  ;;  %v374_v41 = vld [vmem:[%s1679_s9 + $0x2d8] sm:$0xff] }
  0x48   : > { %1058 = vmatprep.mubr.bf16.mxu0 %v822_v46  ;;  %1186 = vmatprep.mubr.bf16.mxu1 %v854_v48  ;;  %v639_v46 = vadd.f32 %v1762_v47, %v499_v31  ;;  %v641_v48 = vadd.f32 %v1762_v47, %v501_v32  ;;  %v825_v22 = vpack.c.bf16 %v705_v63, %v703_v61  ;;  %v367_v27 = vld [vmem:[%s1679_s9 + $0x2a0] sm:$0xff] }
  0x49   : > { %v580_v50 = vadd.f32 %v1705_v17, %v440_v36  ;;  %v644_v54 = vadd.f32 %v1705_v17, %v504_v40  ;;  %v774_v14 = vmax.f32 %v646_v55, 0.0  ;;  %v584_v32 = vadd.f32 %v1705_v17, %v444_v15  ;;  %v372_v40 = vld [vmem:[%s1679_s9 + $0x2c8] sm:$0xff]  ;;  %v307_v63 = vld [vmem:[%s1679_s9 + $0xc0] sm:$0xff] }
  0x4a   : > { %v767_v0 = vmax.f32 %v639_v46, 0.0  ;;  %v769_v2 = vmax.f32 %v641_v48, 0.0  ;;  %v443_v37 = vmul.f32 %v1748_v39, %v303_v21  ;;  %v507_v43 = vmul.f32 %v1748_v39, %v367_v27 }
  0x4b   : > { %v708_v7 = vmax.f32 %v580_v50, 0.0  ;;  %v772_v13 = vmax.f32 %v644_v54, 0.0  ;;  %v771_v46 = vmax.f32 %v643_v24, 0.0  ;;  %v773_v48 = vmax.f32 %v645_v25, 0.0 }
  0x4c   : > { %v857_v29 = vpack.c.bf16 %v769_v2, %v767_v0  ;;  %v712_v50 = vmax.f32 %v584_v32, 0.0  ;;  %v514_v53 = vmul.f32 %v1692_v12, %v374_v41  ;;  %v583_v57 = vadd.f32 %v1762_v47, %v443_v37  ;;  %v377_v41 = vld [vmem:[%s1679_s9 + $0x2f0] sm:$0xff] }
  0x4d   : > { %v828_v30 = vpack.c.bf16 %v710_v11, %v708_v7  ;;  %v860_v31 = vpack.c.bf16 %v774_v14, %v772_v13  ;;  %v585_v58 = vadd.f32 %v1762_v47, %v445_v1  ;;  %v859_v0 = vpack.c.bf16 %v773_v48, %v771_v46  ;;  %v373_v7 = vld [vmem:[%s1679_s9 + $0x2d0] sm:$0xff]  ;;  %v312_v11 = vld [vmem:[%s1679_s9 + $0xe8] sm:$0xff] }
  0x4e   : > { %v590_v2 = vadd.f32 %v1705_v17, %v450_v51  ;;  %v711_v10 = vmax.f32 %v583_v57, 0.0  ;;  %v513_v24 = vmul.f32 %v1748_v39, %v373_v7  ;;  %v452_v28 = vmul.f32 %v1692_v12, %v312_v11  ;;  %v318_v51 = vld [vmem:[%s1679_s9 + $0x118] sm:$0xff] }
  0x4f   : > { %1059 = vmatmul.mubr.bf16.gmra.mrb[4].mxu0 %v821_v8  ;;  %1187 = vmatmul.mubr.bf16.gmra.mrb[4].mxu1 %v853_v16  ;;  %v441_v8 = vmul.f32 %v1748_v39, %v301_v56  ;;  %v446_v16 = vmul.f32 %v1692_v12, %v306_v4  ;;  %v654_v4 = vadd.f32 %v1705_v17, %v514_v53  ;;  %v713_v13 = vmax.f32 %v585_v58, 0.0  ;;  %v382_v53 = vld [vmem:[%s1679_s9 + $0x318] sm:$0xff] }
  0x50   : > { %1066 = vmatprep.mubr.bf16.mxu0 %v824_v18  ;;  %1194 = vmatprep.mubr.bf16.mxu1 %v856_v19  ;;  %v508_v18 = vmul.f32 %v1692_v12, %v368_v5  ;;  %v510_v19 = vmul.f32 %v1692_v12, %v370_v6  ;;  %v309_v5 = vld [vmem:[%s1679_s9 + $0xd0] sm:$0xff]  ;;  %v371_v6 = vld [vmem:[%s1679_s9 + $0x2c0] sm:$0xff]  ;;  %v718_v25 = vmax.f32 %v590_v2, 0.0  ;;  %v653_v37 = vadd.f32 %v1762_v47, %v513_v24 }
  0x51   : > { %v581_v23 = vadd.f32 %v1762_v47, %v441_v8  ;;  %v586_v34 = vadd.f32 %v1705_v17, %v446_v16  ;;  %v447_v16 = vmul.f32 %v1748_v39, %v307_v63  ;;  %v782_v27 = vmax.f32 %v654_v4, 0.0 }
  0x52   : > { %v648_v35 = vadd.f32 %v1705_v17, %v508_v18  ;;  %v650_v36 = vadd.f32 %v1705_v17, %v510_v19  ;;  %v314_v18 = vld [vmem:[%s1679_s9 + $0xf8] sm:$0xff]  ;;  %v376_v19 = vld [vmem:[%s1679_s9 + $0x2e8] sm:$0xff]  ;;  %v517_v57 = vmul.f32 %v1748_v39, %v377_v41  ;;  %v458_v63 = vmul.f32 %v1692_v12, %v318_v51  ;;  %v321_v51 = vld [vmem:[%s1679_s9 + $0x130] sm:$0xff] }
  0x53   : > { %v709_v45 = vmax.f32 %v581_v23, 0.0  ;;  %v714_v54 = vmax.f32 %v586_v34, 0.0  ;;  %v511_v23 = vmul.f32 %v1748_v39, %v371_v6  ;;  %v587_v32 = vadd.f32 %v1762_v47, %v447_v16 }
  0x54   : > { %v776_v55 = vmax.f32 %v648_v35, 0.0  ;;  %v778_v56 = vmax.f32 %v650_v36, 0.0  ;;  %v829_v34 = vpack.c.bf16 %v713_v13, %v711_v10  ;;  %v522_v2 = vmul.f32 %v1692_v12, %v382_v53  ;;  %v315_v13 = vld [vmem:[%s1679_s9 + $0x100] sm:$0xff]  ;;  %v385_v53 = vld [vmem:[%s1679_s9 + $0x330] sm:$0xff] }
  0x55   : > { %v827_v61 = vpack.c.bf16 %v709_v45, %v707_v42  ;;  %v830_v8 = vpack.c.bf16 %v714_v54, %v712_v50  ;;  %v651_v36 = vadd.f32 %v1762_v47, %v511_v23  ;;  %v316_v45 = vld [vmem:[%s1679_s9 + $0x108] sm:$0xff]  ;;  %v715_v54 = vmax.f32 %v587_v32, 0.0  ;;  %v386_v32 = vld [vmem:[%s1679_s9 + $0x338] sm:$0xff] }
  0x56   : > { %v862_v9 = vpack.c.bf16 %v778_v56, %v776_v55  ;;  %v453_v55 = vmul.f32 %v1748_v39, %v313_v38 }
  0x57   : > { %1067 = vmatmul.mubr.bf16.gmra.mrb[8].mxu0 %v823_v49  ;;  %1195 = vmatmul.mubr.bf16.gmra.mrb[8].mxu1 %v855_v52  ;;  %v448_v49 = vmul.f32 %v1692_v12, %v308_v33  ;;  %v512_v52 = vmul.f32 %v1692_v12, %v372_v40  ;;  %v311_v33 = vld [vmem:[%s1679_s9 + $0xe0] sm:$0xff] }
  0x58   : > { %1074 = vmatprep.mubr.bf16.mxu0 %v826_v59  ;;  %1202 = vmatprep.mubr.bf16.mxu1 %v858_v60  ;;  %v647_v59 = vadd.f32 %v1762_v47, %v507_v43  ;;  %v649_v60 = vadd.f32 %v1762_v47, %v509_v44  ;;  %v375_v40 = vld [vmem:[%s1679_s9 + $0x2e0] sm:$0xff]  ;;  %v592_v44 = vadd.f32 %v1705_v17, %v452_v28 }
  0x59   : > { %v588_v62 = vadd.f32 %v1705_v17, %v448_v49  ;;  %v652_v3 = vadd.f32 %v1705_v17, %v512_v52  ;;  %v451_v50 = vmul.f32 %v1748_v39, %v311_v33  ;;  %v380_v52 = vld [vmem:[%s1679_s9 + $0x308] sm:$0xff]  ;;  %v515_v56 = vmul.f32 %v1748_v39, %v375_v40 }
  0x5a   : > { %v775_v14 = vmax.f32 %v647_v59, 0.0  ;;  %v777_v15 = vmax.f32 %v649_v60, 0.0  ;;  %v779_v59 = vmax.f32 %v651_v36, 0.0  ;;  %v781_v60 = vmax.f32 %v653_v37, 0.0 }
  0x5b   : > { %v716_v21 = vmax.f32 %v588_v62, 0.0  ;;  %v780_v26 = vmax.f32 %v652_v3, 0.0  ;;  %v720_v62 = vmax.f32 %v592_v44, 0.0  ;;  %v591_v6 = vadd.f32 %v1762_v47, %v451_v50 }
  0x5c   : > { %v861_v42 = vpack.c.bf16 %v777_v15, %v775_v14  ;;  %v593_v7 = vadd.f32 %v1762_v47, %v453_v55  ;;  %v863_v14 = vpack.c.bf16 %v781_v60, %v779_v59  ;;  %v598_v15 = vadd.f32 %v1705_v17, %v458_v63  ;;  %v326_v63 = vld [vmem:[%s1679_s9 + $0x158] sm:$0xff] }
  0x5d   : > { %v832_v1 = vpack.c.bf16 %v718_v25, %v716_v21  ;;  %v864_v43 = vpack.c.bf16 %v782_v27, %v780_v26  ;;  %v381_v21 = vld [vmem:[%s1679_s9 + $0x310] sm:$0xff]  ;;  %v719_v24 = vmax.f32 %v591_v6, 0.0  ;;  %v320_v25 = vld [vmem:[%s1679_s9 + $0x128] sm:$0xff]  ;;  %v525_v6 = vmul.f32 %v1748_v39, %v385_v53 }
  0x5e   : > { %v721_v26 = vmax.f32 %v593_v7, 0.0  ;;  %v521_v36 = vmul.f32 %v1748_v39, %v381_v21  ;;  %v726_v37 = vmax.f32 %v598_v15, 0.0  ;;  %v460_v41 = vmul.f32 %v1692_v12, %v320_v25 }
  0x5f   : > { %1075 = vmatmul.mubr.bf16.gmra.mrb[12].mxu0 %v825_v22  ;;  %1203 = vmatmul.mubr.bf16.gmra.mrb[12].mxu1 %v857_v29  ;;  %v449_v22 = vmul.f32 %v1748_v39, %v309_v5  ;;  %v454_v29 = vmul.f32 %v1692_v12, %v314_v18  ;;  %v662_v18 = vadd.f32 %v1705_v17, %v522_v2  ;;  %v390_v2 = vld [vmem:[%s1679_s9 + $0x358] sm:$0xff] }
  0x60   : > { %1082 = vmatprep.mubr.bf16.mxu0 %v828_v30  ;;  %1210 = vmatprep.mubr.bf16.mxu1 %v860_v31  ;;  %v516_v30 = vmul.f32 %v1692_v12, %v376_v19  ;;  %v518_v31 = vmul.f32 %v1692_v12, %v378_v20  ;;  %v317_v19 = vld [vmem:[%s1679_s9 + $0x110] sm:$0xff]  ;;  %v379_v20 = vld [vmem:[%s1679_s9 + $0x300] sm:$0xff]  ;;  %v661_v50 = vadd.f32 %v1762_v47, %v521_v36 }
  0x61   : > { %v589_v35 = vadd.f32 %v1762_v47, %v449_v22  ;;  %v594_v46 = vadd.f32 %v1705_v17, %v454_v29  ;;  %v455_v29 = vmul.f32 %v1748_v39, %v315_v13  ;;  %v790_v40 = vmax.f32 %v662_v18, 0.0 }
  0x62   : > { %v656_v48 = vadd.f32 %v1705_v17, %v516_v30  ;;  %v658_v49 = vadd.f32 %v1705_v17, %v518_v31  ;;  %v322_v30 = vld [vmem:[%s1679_s9 + $0x138] sm:$0xff]  ;;  %v384_v31 = vld [vmem:[%s1679_s9 + $0x328] sm:$0xff]  ;;  %v466_v13 = vmul.f32 %v1692_v12, %v326_v63  ;;  %v530_v15 = vmul.f32 %v1692_v12, %v390_v2  ;;  %v329_v63 = vld [vmem:[%s1679_s9 + $0x170] sm:$0xff] }
  0x63   : > { %v717_v58 = vmax.f32 %v589_v35, 0.0  ;;  %v722_v3 = vmax.f32 %v594_v46, 0.0  ;;  %v519_v35 = vmul.f32 %v1748_v39, %v379_v20  ;;  %v595_v44 = vadd.f32 %v1762_v47, %v455_v29  ;;  %v393_v2 = vld [vmem:[%s1679_s9 + $0x370] sm:$0xff] }
  0x64   : > { %v784_v4 = vmax.f32 %v656_v48, 0.0  ;;  %v786_v5 = vmax.f32 %v658_v49, 0.0  ;;  %v833_v46 = vpack.c.bf16 %v721_v26, %v719_v24  ;;  %v323_v26 = vld [vmem:[%s1679_s9 + $0x140] sm:$0xff] }
  0x65   : > { %v831_v10 = vpack.c.bf16 %v717_v58, %v715_v54  ;;  %v834_v22 = vpack.c.bf16 %v722_v3, %v720_v62  ;;  %v659_v49 = vadd.f32 %v1762_v47, %v519_v35  ;;  %v324_v58 = vld [vmem:[%s1679_s9 + $0x148] sm:$0xff]  ;;  %v723_v3 = vmax.f32 %v595_v44, 0.0  ;;  %v394_v44 = vld [vmem:[%s1679_s9 + $0x378] sm:$0xff] }
  0x66   : > { %v866_v23 = vpack.c.bf16 %v786_v5, %v784_v4  ;;  %v461_v4 = vmul.f32 %v1748_v39, %v321_v51 }
  0x67   : > { %1083 = vmatmul.mubr.bf16.gmra.mrb[16].mxu0 %v827_v61  ;;  %1211 = vmatmul.mubr.bf16.gmra.mrb[16].mxu1 %v859_v0  ;;  %v456_v61 = vmul.f32 %v1692_v12, %v316_v45  ;;  %v520_v0 = vmul.f32 %v1692_v12, %v380_v52  ;;  %v319_v45 = vld [vmem:[%s1679_s9 + $0x120] sm:$0xff] }
  0x68   : > { %1090 = vmatprep.mubr.bf16.mxu0 %v830_v8  ;;  %1218 = vmatprep.mubr.bf16.mxu1 %v862_v9  ;;  %v655_v8 = vadd.f32 %v1762_v47, %v515_v56  ;;  %v657_v9 = vadd.f32 %v1762_v47, %v517_v57  ;;  %v383_v52 = vld [vmem:[%s1679_s9 + $0x320] sm:$0xff]  ;;  %v600_v57 = vadd.f32 %v1705_v17, %v460_v41 }
  0x69   : > { %v596_v11 = vadd.f32 %v1705_v17, %v456_v61  ;;  %v660_v16 = vadd.f32 %v1705_v17, %v520_v0  ;;  %v459_v62 = vmul.f32 %v1748_v39, %v319_v45  ;;  %v388_v0 = vld [vmem:[%s1679_s9 + $0x348] sm:$0xff]  ;;  %v523_v5 = vmul.f32 %v1748_v39, %v383_v52 }
  0x6a   : > { %v783_v27 = vmax.f32 %v655_v8, 0.0  ;;  %v785_v28 = vmax.f32 %v657_v9, 0.0  ;;  %v787_v8 = vmax.f32 %v659_v49, 0.0  ;;  %v789_v9 = vmax.f32 %v661_v50, 0.0 }
  0x6b   : > { %v724_v33 = vmax.f32 %v596_v11, 0.0  ;;  %v788_v38 = vmax.f32 %v660_v16, 0.0  ;;  %v728_v11 = vmax.f32 %v600_v57, 0.0  ;;  %v599_v20 = vadd.f32 %v1762_v47, %v459_v62 }
  0x6c   : > { %v865_v54 = vpack.c.bf16 %v785_v28, %v783_v27  ;;  %v601_v21 = vadd.f32 %v1762_v47, %v461_v4  ;;  %v867_v27 = vpack.c.bf16 %v789_v9, %v787_v8  ;;  %v606_v28 = vadd.f32 %v1705_v17, %v466_v13  ;;  %v334_v13 = vld [vmem:[%s1679_s9 + $0x198] sm:$0xff] }
  0x6d   : > { %v836_v55 = vpack.c.bf16 %v726_v37, %v724_v33  ;;  %v868_v56 = vpack.c.bf16 %v790_v40, %v788_v38  ;;  %v389_v33 = vld [vmem:[%s1679_s9 + $0x350] sm:$0xff]  ;;  %v727_v36 = vmax.f32 %v599_v20, 0.0  ;;  %v328_v37 = vld [vmem:[%s1679_s9 + $0x168] sm:$0xff]  ;;  %v533_v20 = vmul.f32 %v1748_v39, %v393_v2 }
  0x6e   : > { %v729_v38 = vmax.f32 %v601_v21, 0.0  ;;  %v529_v49 = vmul.f32 %v1748_v39, %v389_v33  ;;  %v734_v50 = vmax.f32 %v606_v28, 0.0  ;;  %v468_v53 = vmul.f32 %v1692_v12, %v328_v37 }
  0x6f   : > { %1091 = vmatmul.mubr.bf16.gmra.mrb[20].mxu0 %v829_v34  ;;  %1219 = vmatmul.mubr.bf16.gmra.mrb[20].mxu1 %v861_v42  ;;  %v457_v34 = vmul.f32 %v1748_v39, %v317_v19  ;;  %v462_v42 = vmul.f32 %v1692_v12, %v322_v30  ;;  %v670_v30 = vadd.f32 %v1705_v17, %v530_v15  ;;  %v398_v15 = vld [vmem:[%s1679_s9 + $0x398] sm:$0xff] }
  0x70   : > { %1098 = vmatprep.mubr.bf16.mxu0 %v832_v1  ;;  %1226 = vmatprep.mubr.bf16.mxu1 %v864_v43  ;;  %v524_v1 = vmul.f32 %v1692_v12, %v384_v31  ;;  %v526_v43 = vmul.f32 %v1692_v12, %v386_v32  ;;  %v325_v31 = vld [vmem:[%s1679_s9 + $0x150] sm:$0xff]  ;;  %v387_v32 = vld [vmem:[%s1679_s9 + $0x340] sm:$0xff]  ;;  %v669_v62 = vadd.f32 %v1762_v47, %v529_v49 }
  0x71   : > { %v597_v48 = vadd.f32 %v1762_v47, %v457_v34  ;;  %v602_v59 = vadd.f32 %v1705_v17, %v462_v42  ;;  %v463_v42 = vmul.f32 %v1748_v39, %v323_v26  ;;  %v798_v52 = vmax.f32 %v670_v30, 0.0 }
  0x72   : > { %v664_v60 = vadd.f32 %v1705_v17, %v524_v1  ;;  %v666_v61 = vadd.f32 %v1705_v17, %v526_v43  ;;  %v330_v1 = vld [vmem:[%s1679_s9 + $0x178] sm:$0xff]  ;;  %v392_v43 = vld [vmem:[%s1679_s9 + $0x368] sm:$0xff]  ;;  %v474_v26 = vmul.f32 %v1692_v12, %v334_v13  ;;  %v538_v28 = vmul.f32 %v1692_v12, %v398_v15  ;;  %v337_v13 = vld [vmem:[%s1679_s9 + $0x1b0] sm:$0xff] }
  0x73   : > { %v725_v7 = vmax.f32 %v597_v48, 0.0  ;;  %v730_v16 = vmax.f32 %v602_v59, 0.0  ;;  %v527_v48 = vmul.f32 %v1748_v39, %v387_v32  ;;  %v603_v57 = vadd.f32 %v1762_v47, %v463_v42  ;;  %v401_v15 = vld [vmem:[%s1679_s9 + $0x3b0] sm:$0xff] }
  0x74   : > { %v792_v18 = vmax.f32 %v664_v60, 0.0  ;;  %v794_v19 = vmax.f32 %v666_v61, 0.0  ;;  %v837_v59 = vpack.c.bf16 %v729_v38, %v727_v36  ;;  %v331_v38 = vld [vmem:[%s1679_s9 + $0x180] sm:$0xff] }
  0x75   : > { %v835_v24 = vpack.c.bf16 %v725_v7, %v723_v3  ;;  %v838_v34 = vpack.c.bf16 %v730_v16, %v728_v11  ;;  %v667_v61 = vadd.f32 %v1762_v47, %v527_v48  ;;  %v332_v7 = vld [vmem:[%s1679_s9 + $0x188] sm:$0xff]  ;;  %v731_v16 = vmax.f32 %v603_v57, 0.0  ;;  %v402_v57 = vld [vmem:[%s1679_s9 + $0x3b8] sm:$0xff] }
  0x76   : > { %v870_v35 = vpack.c.bf16 %v794_v19, %v792_v18  ;;  %v469_v18 = vmul.f32 %v1748_v39, %v329_v63 }
  0x77   : > { %1099 = vmatmul.mubr.bf16.gmra.mrb[24].mxu0 %v831_v10  ;;  %1227 = vmatmul.mubr.bf16.gmra.mrb[24].mxu1 %v863_v14  ;;  %v464_v10 = vmul.f32 %v1692_v12, %v324_v58  ;;  %v528_v14 = vmul.f32 %v1692_v12, %v388_v0  ;;  %v327_v58 = vld [vmem:[%s1679_s9 + $0x160] sm:$0xff] }
  0x78   : > { %1106 = vmatprep.mubr.bf16.mxu0 %v834_v22  ;;  %1234 = vmatprep.mubr.bf16.mxu1 %v866_v23  ;;  %v663_v22 = vadd.f32 %v1762_v47, %v523_v5  ;;  %v665_v23 = vadd.f32 %v1762_v47, %v525_v6  ;;  %v391_v0 = vld [vmem:[%s1679_s9 + $0x360] sm:$0xff]  ;;  %v608_v6 = vadd.f32 %v1705_v17, %v468_v53 }
  0x79   : > { %v604_v25 = vadd.f32 %v1705_v17, %v464_v10  ;;  %v668_v29 = vadd.f32 %v1705_v17, %v528_v14  ;;  %v467_v11 = vmul.f32 %v1748_v39, %v327_v58  ;;  %v396_v14 = vld [vmem:[%s1679_s9 + $0x388] sm:$0xff]  ;;  %v531_v19 = vmul.f32 %v1748_v39, %v391_v0 }
  0x7a   : > { %v791_v40 = vmax.f32 %v663_v22, 0.0  ;;  %v793_v41 = vmax.f32 %v665_v23, 0.0  ;;  %v795_v22 = vmax.f32 %v667_v61, 0.0  ;;  %v797_v23 = vmax.f32 %v669_v62, 0.0 }
  0x7b   : > { %v732_v45 = vmax.f32 %v604_v25, 0.0  ;;  %v796_v51 = vmax.f32 %v668_v29, 0.0  ;;  %v736_v25 = vmax.f32 %v608_v6, 0.0  ;;  %v607_v32 = vadd.f32 %v1762_v47, %v467_v11 }
  0x7c   : > { %v869_v3 = vpack.c.bf16 %v793_v41, %v791_v40  ;;  %v609_v33 = vadd.f32 %v1762_v47, %v469_v18  ;;  %v871_v40 = vpack.c.bf16 %v797_v23, %v795_v22  ;;  %v614_v41 = vadd.f32 %v1705_v17, %v474_v26  ;;  %v342_v26 = vld [vmem:[%s1679_s9 + $0x1d8] sm:$0xff] }
  0x7d   : > { %v840_v4 = vpack.c.bf16 %v734_v50, %v732_v45  ;;  %v872_v5 = vpack.c.bf16 %v798_v52, %v796_v51  ;;  %v397_v45 = vld [vmem:[%s1679_s9 + $0x390] sm:$0xff]  ;;  %v735_v49 = vmax.f32 %v607_v32, 0.0  ;;  %v336_v50 = vld [vmem:[%s1679_s9 + $0x1a8] sm:$0xff]  ;;  %v541_v32 = vmul.f32 %v1748_v39, %v401_v15 }
  0x7e   : > { %v737_v51 = vmax.f32 %v609_v33, 0.0  ;;  %v537_v61 = vmul.f32 %v1748_v39, %v397_v45  ;;  %v742_v62 = vmax.f32 %v614_v41, 0.0  ;;  %v476_v2 = vmul.f32 %v1692_v12, %v336_v50 }
  0x7f   : > { %1107 = vmatmul.mubr.bf16.gmra.mrb[28].mxu0 %v833_v46  ;;  %1235 = vmatmul.mubr.bf16.gmra.mrb[28].mxu1 %v865_v54  ;;  %v465_v46 = vmul.f32 %v1748_v39, %v325_v31  ;;  %v470_v54 = vmul.f32 %v1692_v12, %v330_v1  ;;  %v678_v1 = vadd.f32 %v1705_v17, %v538_v28  ;;  %v406_v28 = vld [vmem:[%s1679_s9 + $0x3d8] sm:$0xff] }
  0x80   : > { %1114 = vmatprep.mubr.bf16.mxu0 %v836_v55  ;;  %1242 = vmatprep.mubr.bf16.mxu1 %v868_v56  ;;  %v532_v55 = vmul.f32 %v1692_v12, %v392_v43  ;;  %v534_v56 = vmul.f32 %v1692_v12, %v394_v44  ;;  %v333_v43 = vld [vmem:[%s1679_s9 + $0x190] sm:$0xff]  ;;  %v395_v44 = vld [vmem:[%s1679_s9 + $0x380] sm:$0xff]  ;;  %v677_v11 = vadd.f32 %v1762_v47, %v537_v61 }
  0x81   : > { %v605_v60 = vadd.f32 %v1762_v47, %v465_v46  ;;  %v610_v8 = vadd.f32 %v1705_v17, %v470_v54  ;;  %v471_v54 = vmul.f32 %v1748_v39, %v331_v38  ;;  %v806_v0 = vmax.f32 %v678_v1, 0.0 }
  0x82   : > { %v672_v9 = vadd.f32 %v1705_v17, %v532_v55  ;;  %v674_v10 = vadd.f32 %v1705_v17, %v534_v56  ;;  %v338_v55 = vld [vmem:[%s1679_s9 + $0x1b8] sm:$0xff]  ;;  %v400_v56 = vld [vmem:[%s1679_s9 + $0x3a8] sm:$0xff]  ;;  %v482_v38 = vmul.f32 %v1692_v12, %v342_v26  ;;  %v546_v41 = vmul.f32 %v1692_v12, %v406_v28  ;;  %v343_v28 = vld [vmem:[%s1679_s9 + $0x1e0] sm:$0xff] }
  0x83   : > { %v733_v21 = vmax.f32 %v605_v60, 0.0  ;;  %v738_v29 = vmax.f32 %v610_v8, 0.0  ;;  %v535_v60 = vmul.f32 %v1748_v39, %v395_v44  ;;  %v611_v6 = vadd.f32 %v1762_v47, %v471_v54 }
  0x84   : > { %v800_v30 = vmax.f32 %v672_v9, 0.0  ;;  %v802_v31 = vmax.f32 %v674_v10, 0.0  ;;  %v841_v8 = vpack.c.bf16 %v737_v51, %v735_v49  ;;  %v339_v51 = vld [vmem:[%s1679_s9 + $0x1c0] sm:$0xff] }
  0x85   : > { %v839_v36 = vpack.c.bf16 %v733_v21, %v731_v16  ;;  %v842_v46 = vpack.c.bf16 %v738_v29, %v736_v25  ;;  %v675_v10 = vadd.f32 %v1762_v47, %v535_v60  ;;  %v340_v21 = vld [vmem:[%s1679_s9 + $0x1c8] sm:$0xff]  ;;  %v739_v29 = vmax.f32 %v611_v6, 0.0  ;;  %v410_v6 = vld [vmem:[%s1679_s9 + $0x3f8] sm:$0xff] }
  0x86   : > { %v874_v48 = vpack.c.bf16 %v802_v31, %v800_v30  ;;  %v477_v30 = vmul.f32 %v1748_v39, %v337_v13 }
  0x87   : > { %1115 = vmatmul.mubr.bf16.gmra.mrb[32].mxu0 %v835_v24  ;;  %1243 = vmatmul.mubr.bf16.gmra.mrb[32].mxu1 %v867_v27  ;;  %v472_v24 = vmul.f32 %v1692_v12, %v332_v7  ;;  %v536_v27 = vmul.f32 %v1692_v12, %v396_v14  ;;  %v335_v7 = vld [vmem:[%s1679_s9 + $0x1a0] sm:$0xff] }
  0x88   : > { %1122 = vmatprep.mubr.bf16.mxu0 %v838_v34  ;;  %1250 = vmatprep.mubr.bf16.mxu1 %v870_v35  ;;  %v671_v34 = vadd.f32 %v1762_v47, %v531_v19  ;;  %v673_v35 = vadd.f32 %v1762_v47, %v533_v20  ;;  %v399_v14 = vld [vmem:[%s1679_s9 + $0x3a0] sm:$0xff]  ;;  %v616_v20 = vadd.f32 %v1705_v17, %v476_v2 }
  0x89   : > { %v612_v37 = vadd.f32 %v1705_v17, %v472_v24  ;;  %v676_v42 = vadd.f32 %v1705_v17, %v536_v27  ;;  %v475_v25 = vmul.f32 %v1748_v39, %v335_v7  ;;  %v404_v27 = vld [vmem:[%s1679_s9 + $0x3c8] sm:$0xff]  ;;  %v539_v31 = vmul.f32 %v1748_v39, %v399_v14 }
  0x8a   : > { %v799_v52 = vmax.f32 %v671_v34, 0.0  ;;  %v801_v53 = vmax.f32 %v673_v35, 0.0  ;;  %v803_v34 = vmax.f32 %v675_v10, 0.0  ;;  %v805_v35 = vmax.f32 %v677_v11, 0.0 }
  0x8b   : > { %v740_v58 = vmax.f32 %v612_v37, 0.0  ;;  %v804_v63 = vmax.f32 %v676_v42, 0.0  ;;  %v744_v37 = vmax.f32 %v616_v20, 0.0  ;;  %v615_v44 = vadd.f32 %v1762_v47, %v475_v25 }
  0x8c   : > { %v873_v16 = vpack.c.bf16 %v801_v53, %v799_v52  ;;  %v617_v45 = vadd.f32 %v1762_v47, %v477_v30  ;;  %v875_v52 = vpack.c.bf16 %v805_v35, %v803_v34  ;;  %v622_v53 = vadd.f32 %v1705_v17, %v482_v38  ;;  %v409_v34 = vld [vmem:[%s1679_s9 + $0x3f0] sm:$0xff] }
  0x8d   : > { %v844_v18 = vpack.c.bf16 %v742_v62, %v740_v58  ;;  %v876_v19 = vpack.c.bf16 %v806_v0, %v804_v63  ;;  %v405_v58 = vld [vmem:[%s1679_s9 + $0x3d0] sm:$0xff]  ;;  %v743_v61 = vmax.f32 %v615_v44, 0.0  ;;  %v344_v62 = vld [vmem:[%s1679_s9 + $0x1e8] sm:$0xff] }
  0x8e   : > { %v745_v63 = vmax.f32 %v617_v45, 0.0  ;;  %v545_v10 = vmul.f32 %v1748_v39, %v405_v58  ;;  %v750_v11 = vmax.f32 %v622_v53, 0.0  ;;  %v484_v15 = vmul.f32 %v1692_v12, %v344_v62 }
  0x8f   : > { %1123 = vmatmul.mubr.bf16.gmra.mrb[36].mxu0 %v837_v59  ;;  %1251 = vmatmul.mubr.bf16.gmra.mrb[36].mxu1 %v869_v3  ;;  %v473_v59 = vmul.f32 %v1748_v39, %v333_v43  ;;  %v478_v3 = vmul.f32 %v1692_v12, %v338_v55  ;;  %v686_v55 = vadd.f32 %v1705_v17, %v546_v41 }
  0x90   : > { %1130 = vmatprep.mubr.bf16.mxu0 %v840_v4  ;;  %1258 = vmatprep.mubr.bf16.mxu1 %v872_v5  ;;  %v540_v4 = vmul.f32 %v1692_v12, %v400_v56  ;;  %v542_v5 = vmul.f32 %v1692_v12, %v402_v57  ;;  %v341_v56 = vld [vmem:[%s1679_s9 + $0x1d0] sm:$0xff]  ;;  %v403_v57 = vld [vmem:[%s1679_s9 + $0x3c0] sm:$0xff] }
  0x91   : > { %v613_v9 = vadd.f32 %v1762_v47, %v473_v59  ;;  %v618_v22 = vadd.f32 %v1705_v17, %v478_v3  ;;  %v479_v3 = vmul.f32 %v1748_v39, %v339_v51  ;;  %v814_v14 = vmax.f32 %v686_v55, 0.0 }
  0x92   : > { %v680_v23 = vadd.f32 %v1705_v17, %v540_v4  ;;  %v682_v24 = vadd.f32 %v1705_v17, %v542_v5  ;;  %v346_v4 = vld [vmem:[%s1679_s9 + $0x1f8] sm:$0xff]  ;;  %v408_v5 = vld [vmem:[%s1679_s9 + $0x3e8] sm:$0xff] }
  0x93   : > { %v741_v33 = vmax.f32 %v613_v9, 0.0  ;;  %v746_v42 = vmax.f32 %v618_v22, 0.0  ;;  %v543_v9 = vmul.f32 %v1748_v39, %v403_v57  ;;  %v619_v20 = vadd.f32 %v1762_v47, %v479_v3 }
  0x94   : > { %v808_v1 = vmax.f32 %v680_v23, 0.0  ;;  %v810_v43 = vmax.f32 %v682_v24, 0.0  ;;  %v685_v23 = vadd.f32 %v1762_v47, %v545_v10  ;;  %v845_v24 = vpack.c.bf16 %v745_v63, %v743_v61 }
  0x95   : > { %v843_v49 = vpack.c.bf16 %v741_v33, %v739_v29  ;;  %v846_v59 = vpack.c.bf16 %v746_v42, %v744_v37  ;;  %v683_v22 = vadd.f32 %v1762_v47, %v543_v9  ;;  %v624_v29 = vadd.f32 %v1705_v17, %v484_v15  ;;  %v407_v33 = vld [vmem:[%s1679_s9 + $0x3e0] sm:$0xff] }
  0x96   : > { %v878_v60 = vpack.c.bf16 %v810_v43, %v808_v1  ;;  %v747_v35 = vmax.f32 %v619_v20, 0.0  ;;  %v813_v38 = vmax.f32 %v685_v23, 0.0  ;;  %v547_v42 = vmul.f32 %v1748_v39, %v407_v33 }
  0x97   : > { %1131 = vmatmul.mubr.bf16.gmra.mrb[40].mxu0 %v839_v36  ;;  %1259 = vmatmul.mubr.bf16.gmra.mrb[40].mxu1 %v871_v40  ;;  %v480_v36 = vmul.f32 %v1692_v12, %v340_v21  ;;  %v544_v40 = vmul.f32 %v1692_v12, %v404_v27  ;;  %v811_v37 = vmax.f32 %v683_v22, 0.0  ;;  %v549_v1 = vmul.f32 %v1748_v39, %v409_v34 }
  0x98   : > { %1138 = vmatprep.mubr.bf16.mxu0 %v842_v46  ;;  %1266 = vmatprep.mubr.bf16.mxu1 %v874_v48  ;;  %v679_v46 = vadd.f32 %v1762_v47, %v539_v31  ;;  %v681_v48 = vadd.f32 %v1762_v47, %v541_v32  ;;  %v345_v32 = vld [vmem:[%s1679_s9 + $0x1f0] sm:$0xff]  ;;  %v687_v51 = vadd.f32 %v1762_v47, %v547_v42  ;;  %s1484_s9 = sshll.u32 %s2304_s24, 3 }
  0x99   : > { %v620_v50 = vadd.f32 %v1705_v17, %v480_v36  ;;  %v684_v54 = vadd.f32 %v1705_v17, %v544_v40  ;;  %v483_v40 = vmul.f32 %v1748_v39, %v343_v28  ;;  %v485_v41 = vmul.f32 %v1748_v39, %v345_v32  ;;  %s2154_s26 = scalar_lea.vmem %s2298_s5, %s1484_s9 }
  0x9a   : > { %v807_v0 = vmax.f32 %v679_v46, 0.0  ;;  %v809_v2 = vmax.f32 %v681_v48, 0.0  ;;  %v879_v48 = vpack.c.bf16 %v813_v38, %v811_v37 }
  0x9b   : > { %v748_v7 = vmax.f32 %v620_v50, 0.0  ;;  %v812_v13 = vmax.f32 %v684_v54, 0.0  ;;  %v625_v50 = vadd.f32 %v1762_v47, %v485_v41 }
  0x9c   : > { %v877_v25 = vpack.c.bf16 %v809_v2, %v807_v0 }
  0x9d   : > { %v848_v26 = vpack.c.bf16 %v750_v11, %v748_v7  ;;  %v880_v27 = vpack.c.bf16 %v814_v14, %v812_v13  ;;  %v753_v55 = vmax.f32 %v625_v50, 0.0 }
  0x9f   : > { %1139 = vmatmul.mubr.bf16.gmra.mrb[44].mxu0 %v841_v8  ;;  %1267 = vmatmul.mubr.bf16.gmra.mrb[44].mxu1 %v873_v16  ;;  %v481_v8 = vmul.f32 %v1748_v39, %v341_v56  ;;  %v486_v16 = vmul.f32 %v1692_v12, %v346_v4  ;;  %v815_v56 = vmax.f32 %v687_v51, 0.0 }
  0xa0   : > { %1146 = vmatprep.mubr.bf16.mxu0 %v844_v18  ;;  %1274 = vmatprep.mubr.bf16.mxu1 %v876_v19  ;;  %v548_v18 = vmul.f32 %v1692_v12, %v408_v5  ;;  %v550_v19 = vmul.f32 %v1692_v12, %v410_v6 }
  0xa1   : > { %v621_v21 = vadd.f32 %v1762_v47, %v481_v8  ;;  %v626_v30 = vadd.f32 %v1705_v17, %v486_v16 }
  0xa2   : > { %v688_v12 = vadd.f32 %v1705_v17, %v548_v18  ;;  %v690_v31 = vadd.f32 %v1705_v17, %v550_v19  ;;  %v752_v17 = vmax.f32 %v624_v29, 0.0 }
  0xa3   : > { %v749_v36 = vmax.f32 %v621_v21, 0.0  ;;  %v754_v43 = vmax.f32 %v626_v30, 0.0 }
  0xa4   : > { %v816_v44 = vmax.f32 %v688_v12, 0.0  ;;  %v818_v45 = vmax.f32 %v690_v31, 0.0 }
  0xa5   : > { %v847_v46 = vpack.c.bf16 %v749_v36, %v747_v35  ;;  %v850_v53 = vpack.c.bf16 %v754_v43, %v752_v17 }
  0xa6   : > { %v882_v54 = vpack.c.bf16 %v818_v45, %v816_v44 }
  0xa7   : > { %1147 = vmatmul.mubr.bf16.gmra.mrb[48].mxu0 %v843_v49  ;;  %1275 = vmatmul.mubr.bf16.gmra.mrb[48].mxu1 %v875_v52  ;;  %v623_v49 = vadd.f32 %v1762_v47, %v483_v40  ;;  %v689_v52 = vadd.f32 %v1762_v47, %v549_v1 }
  0xa8   : > { %1154 = vmatprep.mubr.bf16.mxu0 %v846_v59  ;;  %1282 = vmatprep.mubr.bf16.mxu1 %v878_v60  ;;  %v2149_v60 = vld [vmem:[%s2295_s2] ss:$0 sm:$0xff] }
  0xa9   : > { %v751_v39 = vmax.f32 %v623_v49, 0.0  ;;  %v817_v57 = vmax.f32 %v689_v52, 0.0 }
  0xab   : > { %v849_v58 = vpack.c.bf16 %v753_v55, %v751_v39  ;;  %v881_v59 = vpack.c.bf16 %v817_v57, %v815_v56 }
  0xaf   : > { %1155 = vmatmul.mubr.bf16.gmra.mrb[52].mxu0 %v845_v24  ;;  %1283 = vmatmul.mubr.bf16.gmra.mrb[52].mxu1 %v877_v25 }
  0xb0   : > { %1162 = vmatprep.mubr.bf16.mxu0 %v848_v26  ;;  %1290 = vmatprep.mubr.bf16.mxu1 %v880_v27 }
  0xb7   : > { %1163 = vmatmul.mubr.bf16.gmra.mrb[56].mxu0 %v847_v46  ;;  %1291 = vmatmul.mubr.bf16.gmra.mrb[56].mxu1 %v879_v48 }
  0xb8   : > { %1170 = vmatprep.mubr.bf16.mxu0 %v850_v53  ;;  %1298 = vmatprep.mubr.bf16.mxu1 %v882_v54 }
  0xbf   : > { %1171 = vmatmul.mubr.bf16.gmra.mrb[60].mxu0 %v849_v58  ;;  %1299 = vmatmul.mubr.bf16.gmra.mrb[60].mxu1 %v881_v59 }
 0x11a   : > { %v1052_v47 = vpop.f32.mrb[0].mxu0  ;;  %v1180_v61 = vpop.f32.mrb[0].mxu1 }
 0x11b   : > { %v1053_v62 = vadd.f32 %v2149_v60, %v1052_v47  ;;  %v1181_v63 = vadd.f32 %v2149_v60, %v1180_v61  ;;  %v1054_v0 = vpop.f32.mrb[1].mxu0  ;;  %v1182_v2 = vpop.f32.mrb[1].mxu1 }
 0x11c   : > { %v1055_v3 = vpop.f32.mrb[2].mxu0  ;;  %v1183_v4 = vpop.f32.mrb[2].mxu1 }
 0x11d   : > { %1307 = vst [vmem:[%s2154_s26] sm:$0xff] %v1053_v62  ;;  %1339 = vst [vmem:[%s2154_s26 + $0x100] sm:$0xff] %v1181_v63  ;;  %v1056_v5 = vadd.f32 %v2149_v60, %v1055_v3  ;;  %v1184_v6 = vadd.f32 %v2149_v60, %v1183_v4  ;;  %v1057_v7 = vpop.f32.mrb[3].mxu0  ;;  %v1185_v8 = vpop.f32.mrb[3].mxu1 }
 0x11f   : > { %1308 = vst [vmem:[%s2154_s26 + $0x8] sm:$0xff] %v1056_v5  ;;  %1340 = vst [vmem:[%s2154_s26 + $0x108] sm:$0xff] %v1184_v6 }
 0x122   : > { %v1060_v9 = vpop.f32.mrb[4].mxu0  ;;  %v1188_v10 = vpop.f32.mrb[4].mxu1 }
 0x123   : > { %v1061_v11 = vadd.f32 %v2149_v60, %v1060_v9  ;;  %v1189_v13 = vadd.f32 %v2149_v60, %v1188_v10  ;;  %v1062_v14 = vpop.f32.mrb[5].mxu0  ;;  %v1190_v15 = vpop.f32.mrb[5].mxu1 }
 0x124   : > { %v1063_v16 = vpop.f32.mrb[6].mxu0  ;;  %v1191_v18 = vpop.f32.mrb[6].mxu1 }
 0x125   : > { %1309 = vst [vmem:[%s2154_s26 + $0x10] sm:$0xff] %v1061_v11  ;;  %1341 = vst [vmem:[%s2154_s26 + $0x110] sm:$0xff] %v1189_v13  ;;  %v1064_v19 = vadd.f32 %v2149_v60, %v1063_v16  ;;  %v1192_v20 = vadd.f32 %v2149_v60, %v1191_v18  ;;  %v1065_v21 = vpop.f32.mrb[7].mxu0  ;;  %v1193_v22 = vpop.f32.mrb[7].mxu1 }
 0x127   : > { %1310 = vst [vmem:[%s2154_s26 + $0x18] sm:$0xff] %v1064_v19  ;;  %1342 = vst [vmem:[%s2154_s26 + $0x118] sm:$0xff] %v1192_v20 }
 0x12a   : > { %v1068_v23 = vpop.f32.mrb[8].mxu0  ;;  %v1196_v24 = vpop.f32.mrb[8].mxu1 }
 0x12b   : > { %v1069_v25 = vadd.f32 %v2149_v60, %v1068_v23  ;;  %v1197_v26 = vadd.f32 %v2149_v60, %v1196_v24  ;;  %v1070_v27 = vpop.f32.mrb[9].mxu0  ;;  %v1198_v28 = vpop.f32.mrb[9].mxu1 }
 0x12c   : > { %v1071_v29 = vpop.f32.mrb[10].mxu0  ;;  %v1199_v30 = vpop.f32.mrb[10].mxu1 }
 0x12d   : > { %1311 = vst [vmem:[%s2154_s26 + $0x20] sm:$0xff] %v1069_v25  ;;  %1343 = vst [vmem:[%s2154_s26 + $0x120] sm:$0xff] %v1197_v26  ;;  %v1072_v12 = vadd.f32 %v2149_v60, %v1071_v29  ;;  %v1200_v31 = vadd.f32 %v2149_v60, %v1199_v30  ;;  %v1073_v32 = vpop.f32.mrb[11].mxu0  ;;  %v1201_v33 = vpop.f32.mrb[11].mxu1 }
 0x12f   : > { %1312 = vst [vmem:[%s2154_s26 + $0x28] sm:$0xff] %v1072_v12  ;;  %1344 = vst [vmem:[%s2154_s26 + $0x128] sm:$0xff] %v1200_v31 }
 0x132   : > { %v1076_v34 = vpop.f32.mrb[12].mxu0  ;;  %v1204_v35 = vpop.f32.mrb[12].mxu1 }
 0x133   : > { %v1077_v36 = vadd.f32 %v2149_v60, %v1076_v34  ;;  %v1205_v37 = vadd.f32 %v2149_v60, %v1204_v35  ;;  %v1078_v38 = vpop.f32.mrb[13].mxu0  ;;  %v1206_v40 = vpop.f32.mrb[13].mxu1 }
 0x134   : > { %v1079_v41 = vpop.f32.mrb[14].mxu0  ;;  %v1207_v42 = vpop.f32.mrb[14].mxu1 }
 0x135   : > { %1313 = vst [vmem:[%s2154_s26 + $0x30] sm:$0xff] %v1077_v36  ;;  %1345 = vst [vmem:[%s2154_s26 + $0x130] sm:$0xff] %v1205_v37  ;;  %v1080_v1 = vadd.f32 %v2149_v60, %v1079_v41  ;;  %v1208_v17 = vadd.f32 %v2149_v60, %v1207_v42  ;;  %v1081_v43 = vpop.f32.mrb[15].mxu0  ;;  %v1209_v44 = vpop.f32.mrb[15].mxu1 }
 0x137   : > { %1314 = vst [vmem:[%s2154_s26 + $0x38] sm:$0xff] %v1080_v1  ;;  %1346 = vst [vmem:[%s2154_s26 + $0x138] sm:$0xff] %v1208_v17 }
 0x13a   : > { %v1084_v45 = vpop.f32.mrb[16].mxu0  ;;  %v1212_v46 = vpop.f32.mrb[16].mxu1 }
 0x13b   : > { %v1085_v48 = vadd.f32 %v2149_v60, %v1084_v45  ;;  %v1213_v49 = vadd.f32 %v2149_v60, %v1212_v46  ;;  %v1086_v50 = vpop.f32.mrb[17].mxu0  ;;  %v1214_v51 = vpop.f32.mrb[17].mxu1 }
 0x13c   : > { %v1087_v52 = vpop.f32.mrb[18].mxu0  ;;  %v1215_v53 = vpop.f32.mrb[18].mxu1 }
 0x13d   : > { %1315 = vst [vmem:[%s2154_s26 + $0x40] sm:$0xff] %v1085_v48  ;;  %1347 = vst [vmem:[%s2154_s26 + $0x140] sm:$0xff] %v1213_v49  ;;  %v1088_v54 = vadd.f32 %v2149_v60, %v1087_v52  ;;  %v1216_v39 = vadd.f32 %v2149_v60, %v1215_v53  ;;  %v1089_v55 = vpop.f32.mrb[19].mxu0  ;;  %v1217_v56 = vpop.f32.mrb[19].mxu1 }
 0x13f   : > { %1316 = vst [vmem:[%s2154_s26 + $0x48] sm:$0xff] %v1088_v54  ;;  %1348 = vst [vmem:[%s2154_s26 + $0x148] sm:$0xff] %v1216_v39 }
 0x142   : > { %v1092_v57 = vpop.f32.mrb[20].mxu0  ;;  %v1220_v58 = vpop.f32.mrb[20].mxu1 }
 0x143   : > { %v1093_v59 = vadd.f32 %v2149_v60, %v1092_v57  ;;  %v1221_v47 = vadd.f32 %v2149_v60, %v1220_v58  ;;  %v1094_v61 = vpop.f32.mrb[21].mxu0  ;;  %v1222_v62 = vpop.f32.mrb[21].mxu1 }
 0x144   : > { %v1095_v63 = vpop.f32.mrb[22].mxu0  ;;  %v1223_v0 = vpop.f32.mrb[22].mxu1 }
 0x145   : > { %1317 = vst [vmem:[%s2154_s26 + $0x50] sm:$0xff] %v1093_v59  ;;  %1349 = vst [vmem:[%s2154_s26 + $0x150] sm:$0xff] %v1221_v47  ;;  %v1096_v2 = vadd.f32 %v2149_v60, %v1095_v63  ;;  %v1224_v3 = vadd.f32 %v2149_v60, %v1223_v0  ;;  %v1097_v4 = vpop.f32.mrb[23].mxu0  ;;  %v1225_v5 = vpop.f32.mrb[23].mxu1 }
 0x147   : > { %1318 = vst [vmem:[%s2154_s26 + $0x58] sm:$0xff] %v1096_v2  ;;  %1350 = vst [vmem:[%s2154_s26 + $0x158] sm:$0xff] %v1224_v3 }
 0x14a   : > { %v1100_v6 = vpop.f32.mrb[24].mxu0  ;;  %v1228_v7 = vpop.f32.mrb[24].mxu1 }
 0x14b   : > { %v1101_v8 = vadd.f32 %v2149_v60, %v1100_v6  ;;  %v1229_v9 = vadd.f32 %v2149_v60, %v1228_v7  ;;  %v1102_v10 = vpop.f32.mrb[25].mxu0  ;;  %v1230_v11 = vpop.f32.mrb[25].mxu1 }
 0x14c   : > { %v1103_v13 = vpop.f32.mrb[26].mxu0  ;;  %v1231_v14 = vpop.f32.mrb[26].mxu1 }
 0x14d   : > { %1319 = vst [vmem:[%s2154_s26 + $0x60] sm:$0xff] %v1101_v8  ;;  %1351 = vst [vmem:[%s2154_s26 + $0x160] sm:$0xff] %v1229_v9  ;;  %v1104_v15 = vadd.f32 %v2149_v60, %v1103_v13  ;;  %v1232_v16 = vadd.f32 %v2149_v60, %v1231_v14  ;;  %v1105_v18 = vpop.f32.mrb[27].mxu0  ;;  %v1233_v19 = vpop.f32.mrb[27].mxu1 }
 0x14f   : > { %1320 = vst [vmem:[%s2154_s26 + $0x68] sm:$0xff] %v1104_v15  ;;  %1352 = vst [vmem:[%s2154_s26 + $0x168] sm:$0xff] %v1232_v16 }
 0x152   : > { %v1108_v20 = vpop.f32.mrb[28].mxu0  ;;  %v1236_v21 = vpop.f32.mrb[28].mxu1 }
 0x153   : > { %v1109_v22 = vadd.f32 %v2149_v60, %v1108_v20  ;;  %v1237_v23 = vadd.f32 %v2149_v60, %v1236_v21  ;;  %v1110_v24 = vpop.f32.mrb[29].mxu0  ;;  %v1238_v25 = vpop.f32.mrb[29].mxu1 }
 0x154   : > { %v1111_v26 = vpop.f32.mrb[30].mxu0  ;;  %v1239_v27 = vpop.f32.mrb[30].mxu1 }
 0x155   : > { %1321 = vst [vmem:[%s2154_s26 + $0x70] sm:$0xff] %v1109_v22  ;;  %1353 = vst [vmem:[%s2154_s26 + $0x170] sm:$0xff] %v1237_v23  ;;  %v1112_v28 = vadd.f32 %v2149_v60, %v1111_v26  ;;  %v1240_v29 = vadd.f32 %v2149_v60, %v1239_v27  ;;  %v1113_v30 = vpop.f32.mrb[31].mxu0  ;;  %v1241_v12 = vpop.f32.mrb[31].mxu1 }
 0x157   : > { %1322 = vst [vmem:[%s2154_s26 + $0x78] sm:$0xff] %v1112_v28  ;;  %1354 = vst [vmem:[%s2154_s26 + $0x178] sm:$0xff] %v1240_v29 }
 0x15a   : > { %v1116_v31 = vpop.f32.mrb[32].mxu0  ;;  %v1244_v32 = vpop.f32.mrb[32].mxu1 }
 0x15b   : > { %v1117_v33 = vadd.f32 %v2149_v60, %v1116_v31  ;;  %v1245_v34 = vadd.f32 %v2149_v60, %v1244_v32  ;;  %v1118_v35 = vpop.f32.mrb[33].mxu0  ;;  %v1246_v36 = vpop.f32.mrb[33].mxu1 }
 0x15c   : > { %v1119_v37 = vpop.f32.mrb[34].mxu0  ;;  %v1247_v38 = vpop.f32.mrb[34].mxu1 }
 0x15d   : > { %1323 = vst [vmem:[%s2154_s26 + $0x80] sm:$0xff] %v1117_v33  ;;  %1355 = vst [vmem:[%s2154_s26 + $0x180] sm:$0xff] %v1245_v34  ;;  %v1120_v40 = vadd.f32 %v2149_v60, %v1119_v37  ;;  %v1248_v41 = vadd.f32 %v2149_v60, %v1247_v38  ;;  %v1121_v42 = vpop.f32.mrb[35].mxu0  ;;  %v1249_v1 = vpop.f32.mrb[35].mxu1 }
 0x15f   : > { %1324 = vst [vmem:[%s2154_s26 + $0x88] sm:$0xff] %v1120_v40  ;;  %1356 = vst [vmem:[%s2154_s26 + $0x188] sm:$0xff] %v1248_v41 }
 0x162   : > { %v1124_v17 = vpop.f32.mrb[36].mxu0  ;;  %v1252_v43 = vpop.f32.mrb[36].mxu1 }
 0x163   : > { %v1125_v44 = vadd.f32 %v2149_v60, %v1124_v17  ;;  %v1253_v45 = vadd.f32 %v2149_v60, %v1252_v43  ;;  %v1126_v46 = vpop.f32.mrb[37].mxu0  ;;  %v1254_v48 = vpop.f32.mrb[37].mxu1 }
 0x164   : > { %v1127_v49 = vpop.f32.mrb[38].mxu0  ;;  %v1255_v50 = vpop.f32.mrb[38].mxu1 }
 0x165   : > { %1325 = vst [vmem:[%s2154_s26 + $0x90] sm:$0xff] %v1125_v44  ;;  %1357 = vst [vmem:[%s2154_s26 + $0x190] sm:$0xff] %v1253_v45  ;;  %v1128_v51 = vadd.f32 %v2149_v60, %v1127_v49  ;;  %v1256_v52 = vadd.f32 %v2149_v60, %v1255_v50  ;;  %v1129_v53 = vpop.f32.mrb[39].mxu0  ;;  %v1257_v54 = vpop.f32.mrb[39].mxu1 }
 0x167   : > { %1326 = vst [vmem:[%s2154_s26 + $0x98] sm:$0xff] %v1128_v51  ;;  %1358 = vst [vmem:[%s2154_s26 + $0x198] sm:$0xff] %v1256_v52 }
 0x16a   : > { %v1132_v39 = vpop.f32.mrb[40].mxu0  ;;  %v1260_v55 = vpop.f32.mrb[40].mxu1 }
 0x16b   : > { %v1133_v56 = vadd.f32 %v2149_v60, %v1132_v39  ;;  %v1261_v57 = vadd.f32 %v2149_v60, %v1260_v55  ;;  %v1134_v58 = vpop.f32.mrb[41].mxu0  ;;  %v1262_v59 = vpop.f32.mrb[41].mxu1 }
 0x16c   : > { %v1135_v47 = vpop.f32.mrb[42].mxu0  ;;  %v1263_v61 = vpop.f32.mrb[42].mxu1 }
 0x16d   : > { %1327 = vst [vmem:[%s2154_s26 + $0xa0] sm:$0xff] %v1133_v56  ;;  %1359 = vst [vmem:[%s2154_s26 + $0x1a0] sm:$0xff] %v1261_v57  ;;  %v1136_v62 = vadd.f32 %v2149_v60, %v1135_v47  ;;  %v1264_v63 = vadd.f32 %v2149_v60, %v1263_v61  ;;  %v1137_v0 = vpop.f32.mrb[43].mxu0  ;;  %v1265_v2 = vpop.f32.mrb[43].mxu1 }
 0x16f   : > { %1328 = vst [vmem:[%s2154_s26 + $0xa8] sm:$0xff] %v1136_v62  ;;  %1360 = vst [vmem:[%s2154_s26 + $0x1a8] sm:$0xff] %v1264_v63 }
 0x172   : > { %v1140_v3 = vpop.f32.mrb[44].mxu0  ;;  %v1268_v4 = vpop.f32.mrb[44].mxu1 }
 0x173   : > { %v1141_v5 = vadd.f32 %v2149_v60, %v1140_v3  ;;  %v1269_v6 = vadd.f32 %v2149_v60, %v1268_v4  ;;  %v1142_v7 = vpop.f32.mrb[45].mxu0  ;;  %v1270_v8 = vpop.f32.mrb[45].mxu1 }
 0x174   : > { %v1143_v9 = vpop.f32.mrb[46].mxu0  ;;  %v1271_v10 = vpop.f32.mrb[46].mxu1 }
 0x175   : > { %1329 = vst [vmem:[%s2154_s26 + $0xb0] sm:$0xff] %v1141_v5  ;;  %1361 = vst [vmem:[%s2154_s26 + $0x1b0] sm:$0xff] %v1269_v6  ;;  %v1144_v11 = vadd.f32 %v2149_v60, %v1143_v9  ;;  %v1272_v13 = vadd.f32 %v2149_v60, %v1271_v10  ;;  %v1145_v14 = vpop.f32.mrb[47].mxu0  ;;  %v1273_v15 = vpop.f32.mrb[47].mxu1 }
 0x177   : > { %1330 = vst [vmem:[%s2154_s26 + $0xb8] sm:$0xff] %v1144_v11  ;;  %1362 = vst [vmem:[%s2154_s26 + $0x1b8] sm:$0xff] %v1272_v13 }
 0x17a   : > { %v1148_v16 = vpop.f32.mrb[48].mxu0  ;;  %v1276_v18 = vpop.f32.mrb[48].mxu1 }
 0x17b   : > { %v1149_v19 = vadd.f32 %v2149_v60, %v1148_v16  ;;  %v1277_v20 = vadd.f32 %v2149_v60, %v1276_v18  ;;  %v1150_v21 = vpop.f32.mrb[49].mxu0  ;;  %v1278_v22 = vpop.f32.mrb[49].mxu1 }
 0x17c   : > { %v1151_v23 = vpop.f32.mrb[50].mxu0  ;;  %v1279_v24 = vpop.f32.mrb[50].mxu1 }
 0x17d   : > { %1331 = vst [vmem:[%s2154_s26 + $0xc0] sm:$0xff] %v1149_v19  ;;  %1363 = vst [vmem:[%s2154_s26 + $0x1c0] sm:$0xff] %v1277_v20  ;;  %v1152_v25 = vadd.f32 %v2149_v60, %v1151_v23  ;;  %v1280_v26 = vadd.f32 %v2149_v60, %v1279_v24  ;;  %v1153_v27 = vpop.f32.mrb[51].mxu0  ;;  %v1281_v28 = vpop.f32.mrb[51].mxu1 }
 0x17f   : > { %1332 = vst [vmem:[%s2154_s26 + $0xc8] sm:$0xff] %v1152_v25  ;;  %1364 = vst [vmem:[%s2154_s26 + $0x1c8] sm:$0xff] %v1280_v26 }
 0x182   : > { %v1156_v29 = vpop.f32.mrb[52].mxu0  ;;  %v1284_v30 = vpop.f32.mrb[52].mxu1 }
 0x183   : > { %v1157_v12 = vadd.f32 %v2149_v60, %v1156_v29  ;;  %v1285_v31 = vadd.f32 %v2149_v60, %v1284_v30  ;;  %v1158_v32 = vpop.f32.mrb[53].mxu0  ;;  %v1286_v33 = vpop.f32.mrb[53].mxu1 }
 0x184   : > { %v1159_v34 = vpop.f32.mrb[54].mxu0  ;;  %v1287_v35 = vpop.f32.mrb[54].mxu1 }
 0x185   : > { %1333 = vst [vmem:[%s2154_s26 + $0xd0] sm:$0xff] %v1157_v12  ;;  %1365 = vst [vmem:[%s2154_s26 + $0x1d0] sm:$0xff] %v1285_v31  ;;  %v1160_v36 = vadd.f32 %v2149_v60, %v1159_v34  ;;  %v1288_v37 = vadd.f32 %v2149_v60, %v1287_v35  ;;  %v1161_v38 = vpop.f32.mrb[55].mxu0  ;;  %v1289_v40 = vpop.f32.mrb[55].mxu1 }
 0x187   : > { %1334 = vst [vmem:[%s2154_s26 + $0xd8] sm:$0xff] %v1160_v36  ;;  %1366 = vst [vmem:[%s2154_s26 + $0x1d8] sm:$0xff] %v1288_v37 }
 0x18a   : > { %v1164_v41 = vpop.f32.mrb[56].mxu0  ;;  %v1292_v42 = vpop.f32.mrb[56].mxu1 }
 0x18b   : > { %v1165_v1 = vadd.f32 %v2149_v60, %v1164_v41  ;;  %v1293_v17 = vadd.f32 %v2149_v60, %v1292_v42  ;;  %v1166_v43 = vpop.f32.mrb[57].mxu0  ;;  %v1294_v44 = vpop.f32.mrb[57].mxu1 }
 0x18c   : > { %v1167_v45 = vpop.f32.mrb[58].mxu0  ;;  %v1295_v46 = vpop.f32.mrb[58].mxu1 }
 0x18d   : > { %1335 = vst [vmem:[%s2154_s26 + $0xe0] sm:$0xff] %v1165_v1  ;;  %1367 = vst [vmem:[%s2154_s26 + $0x1e0] sm:$0xff] %v1293_v17  ;;  %v1168_v48 = vadd.f32 %v2149_v60, %v1167_v45  ;;  %v1296_v49 = vadd.f32 %v2149_v60, %v1295_v46  ;;  %v1169_v50 = vpop.f32.mrb[59].mxu0  ;;  %v1297_v51 = vpop.f32.mrb[59].mxu1 }
 0x18f   : > { %1336 = vst [vmem:[%s2154_s26 + $0xe8] sm:$0xff] %v1168_v48  ;;  %1368 = vst [vmem:[%s2154_s26 + $0x1e8] sm:$0xff] %v1296_v49 }
 0x192   : > { %v1172_v52 = vpop.f32.mrb[60].mxu0  ;;  %v1300_v53 = vpop.f32.mrb[60].mxu1 }
 0x193   : > { %v1173_v54 = vadd.f32 %v2149_v60, %v1172_v52  ;;  %v1301_v39 = vadd.f32 %v2149_v60, %v1300_v53  ;;  %v1174_v55 = vpop.f32.mrb[61].mxu0  ;;  %v1302_v56 = vpop.f32.mrb[61].mxu1 }
 0x194   : > { %v1175_v57 = vpop.f32.mrb[62].mxu0  ;;  %v1303_v58 = vpop.f32.mrb[62].mxu1 }
 0x195   : > { %1337 = vst [vmem:[%s2154_s26 + $0xf0] sm:$0xff] %v1173_v54  ;;  %1369 = vst [vmem:[%s2154_s26 + $0x1f0] sm:$0xff] %v1301_v39  ;;  %v1176_v59 = vadd.f32 %v2149_v60, %v1175_v57  ;;  %v1304_v47 = vadd.f32 %v2149_v60, %v1303_v58  ;;  %v1177_v61 = vpop.f32.mrb[63].mxu0  ;;  %v1305_v62 = vpop.f32.mrb[63].mxu1 }
 0x197   : > { %1338 = vst [vmem:[%s2154_s26 + $0xf8] sm:$0xff] %v1176_v59  ;;  %1370 = vst [vmem:[%s2154_s26 + $0x1f8] sm:$0xff] %v1304_v47 }
 0x198 PF: > { %s15_s20 = sadd.s32 1, %s1600_s20   ;;  %s2299_s18 = smov %s1596_s19 }
 0x199   : > { %p12_p5 = scmp.ge.s32.totalorder %s15_s20, 6   ;;  %s2300_s19 = smov %s2302_s21 }
 0x19b   :  { %14 = sbr.rel (!%p12_p5) target bundleno = 2 (0x2), region = 76 }

// kernel: position_sensitive_segmentation_forward.4
= control target key start
LH: loop header
LB: loop body
LE: loop exit
PB: predicated region body
PF: predicated region fallthrough
CT: control target
= control target key end

     0   :  { %v153_v34 = vlaneseq  ;;  %s8670_s1 = inlined_call_operand.vmem [shape: bf16[256,1024], index: 1, kind: input, shape index: {}]   ;;  %s8671_s0 = inlined_call_operand.vmem [shape: f32[512,256], index: 0, kind: input, shape index: {}]   ;;  %s8672_s3 = inlined_call_operand.vmem [shape: f32[1,256], index: 3, kind: input, shape index: {}]   ;;  %s8673_s4 = inlined_call_operand.vmem [shape: f32[1,256], index: 4, kind: input, shape index: {}]   ;;  %s8674_s2 = inlined_call_operand.vmem [shape: f32[1,1024], index: 2, kind: input, shape index: {}]   ;;  %s8675_s5 = inlined_call_operand.vmem [shape: f32[512,1024], index: 5, kind: output, shape index: {0}]   ;;  %s8676_s6 = inlined_call_operand.vmem [shape: f32[8,1024], index: 6, kind: output, shape index: {1}]   ;;  %s8677_s7 = inlined_call_operand.vmem [shape: f32[8,1024], index: 7, kind: output, shape index: {2}]  }
   0x1   :  { %v623_v0 = vld [vmem:[%s8670_s1] sm:$0xff]  ;;  %v624_v2 = vld [vmem:[%s8670_s1 + $0x8] sm:$0xff]  ;;  %v26_v60 = vld [vmem:[%s8671_s0 + $0x18] sm:$0xff] }
   0x2   :  { %v627_v1 = vld [vmem:[%s8670_s1 + $0x20] sm:$0xff]  ;;  %v628_v4 = vld [vmem:[%s8670_s1 + $0x28] sm:$0xff]  ;;  %v5146_v43 = vshrl.u32 %v153_v34, 7 }
   0x3   :  { %v4906_v3 = vcombine.high %v623_v0, %v627_v1  ;;  %v4905_v5 = vcombine.low %v623_v0, %v627_v1  ;;  %v631_v6 = vld [vmem:[%s8670_s1 + $0x40] sm:$0xff]  ;;  %v4908_v8 = vcombine.high %v624_v2, %v628_v4  ;;  %v4907_v9 = vcombine.low %v624_v2, %v628_v4  ;;  %v632_v11 = vld [vmem:[%s8670_s1 + $0x48] sm:$0xff] }
   0x4   :  { %v635_v7 = vld [vmem:[%s8670_s1 + $0x60] sm:$0xff]  ;;  %v636_v12 = vld [vmem:[%s8670_s1 + $0x68] sm:$0xff]  ;;  %8746 = vst [vmem:[#allocation2_spill] sm:$0xff] %v5146_v43  ;;  %v5161_v52 = vsub.s32 1, %v5146_v43 }
   0x5   :  { %v4914_v10 = vcombine.high %v631_v6, %v635_v7  ;;  %v639_v13 = vld [vmem:[%s8670_s1 + $0x80] sm:$0xff]  ;;  %1433 = vmatprep.subr.bf16.mxu0 %v4906_v3  ;;  %v4916_v14 = vcombine.high %v632_v11, %v636_v12  ;;  %v640_v16 = vld [vmem:[%s8670_s1 + $0x88] sm:$0xff]  ;;  %1786 = vmatprep.subr.bf16.mxu1 %v4908_v8  ;;  %v4913_v18 = vcombine.low %v631_v6, %v635_v7 }
   0x6   :  { %v643_v15 = vld [vmem:[%s8670_s1 + $0xa0] sm:$0xff]  ;;  %v644_v17 = vld [vmem:[%s8670_s1 + $0xa8] sm:$0xff]  ;;  %1434 = vmatpush1.bf16.msra.mxu0 %v4905_v5  ;;  %1787 = vmatpush1.bf16.msra.mxu1 %v4907_v9  ;;  %v4915_v19 = vcombine.low %v632_v11, %v636_v12 }
   0x7   :  { %1435 = vmatprep.subr.bf16.mxu0 %v4914_v10  ;;  %v4922_v20 = vcombine.high %v639_v13, %v643_v15  ;;  %1788 = vmatprep.subr.bf16.mxu1 %v4916_v14  ;;  %v4924_v21 = vcombine.high %v640_v16, %v644_v17  ;;  %v647_v22 = vld [vmem:[%s8670_s1 + $0xc0] sm:$0xff]  ;;  %v648_v24 = vld [vmem:[%s8670_s1 + $0xc8] sm:$0xff]  ;;  %v4921_v26 = vcombine.low %v639_v13, %v643_v15 }
   0x8   :  { %v651_v23 = vld [vmem:[%s8670_s1 + $0xe0] sm:$0xff]  ;;  %v652_v25 = vld [vmem:[%s8670_s1 + $0xe8] sm:$0xff]  ;;  %v4923_v27 = vcombine.low %v640_v16, %v644_v17 }
   0x9   :  { %v4930_v28 = vcombine.high %v647_v22, %v651_v23  ;;  %v4932_v29 = vcombine.high %v648_v24, %v652_v25  ;;  %v655_v30 = vld [vmem:[%s8670_s1 + $0x100] sm:$0xff]  ;;  %v656_v32 = vld [vmem:[%s8670_s1 + $0x108] sm:$0xff]  ;;  %v4929_v35 = vcombine.low %v647_v22, %v651_v23  ;;  %v4931_v36 = vcombine.low %v648_v24, %v652_v25 }
   0xa   :  { %1436 = vmatpush1.bf16.msra.mxu0 %v4913_v18  ;;  %1789 = vmatpush1.bf16.msra.mxu1 %v4915_v19  ;;  %v659_v31 = vld [vmem:[%s8670_s1 + $0x120] sm:$0xff]  ;;  %v660_v33 = vld [vmem:[%s8670_s1 + $0x128] sm:$0xff] }
   0xb   :  { %1437 = vmatprep.subr.bf16.mxu0 %v4922_v20  ;;  %1790 = vmatprep.subr.bf16.mxu1 %v4924_v21  ;;  %v4938_v37 = vcombine.high %v655_v30, %v659_v31  ;;  %v4940_v38 = vcombine.high %v656_v32, %v660_v33  ;;  %v663_v39 = vld [vmem:[%s8670_s1 + $0x140] sm:$0xff]  ;;  %v664_v41 = vld [vmem:[%s8670_s1 + $0x148] sm:$0xff]  ;;  %v4937_v44 = vcombine.low %v655_v30, %v659_v31 }
   0xc   :  { %v667_v40 = vld [vmem:[%s8670_s1 + $0x160] sm:$0xff]  ;;  %v668_v42 = vld [vmem:[%s8670_s1 + $0x168] sm:$0xff]  ;;  %v4939_v45 = vcombine.low %v656_v32, %v660_v33 }
   0xd   :  { %v4946_v46 = vcombine.high %v663_v39, %v667_v40  ;;  %v4948_v47 = vcombine.high %v664_v41, %v668_v42  ;;  %v671_v48 = vld [vmem:[%s8670_s1 + $0x180] sm:$0xff]  ;;  %v672_v50 = vld [vmem:[%s8670_s1 + $0x188] sm:$0xff]  ;;  %v4945_v53 = vcombine.low %v663_v39, %v667_v40  ;;  %v4947_v54 = vcombine.low %v664_v41, %v668_v42 }
   0xe   :  { %1438 = vmatpush1.bf16.msra.mxu0 %v4921_v26  ;;  %1791 = vmatpush1.bf16.msra.mxu1 %v4923_v27  ;;  %v675_v49 = vld [vmem:[%s8670_s1 + $0x1a0] sm:$0xff]  ;;  %v676_v51 = vld [vmem:[%s8670_s1 + $0x1a8] sm:$0xff] }
   0xf   :  { %1439 = vmatprep.subr.bf16.mxu0 %v4930_v28  ;;  %1792 = vmatprep.subr.bf16.mxu1 %v4932_v29  ;;  %v4954_v55 = vcombine.high %v671_v48, %v675_v49  ;;  %v679_v56 = vld [vmem:[%s8670_s1 + $0x1c0] sm:$0xff]  ;;  %v24_v58 = vld [vmem:[%s8671_s0 + $0x8] sm:$0xff]  ;;  %v4956_v59 = vcombine.high %v672_v50, %v676_v51  ;;  %v4953_v3 = vcombine.low %v671_v48, %v675_v49 }
  0x10   :  { %v683_v57 = vld [vmem:[%s8670_s1 + $0x1e0] sm:$0xff]  ;;  %v680_v63 = vld [vmem:[%s8670_s1 + $0x1c8] sm:$0xff]  ;;  %v4955_v4 = vcombine.low %v672_v50, %v676_v51  ;;  %v5268_v51 = vsub.s32 0, %v5146_v43 }
  0x11   :  { %v5178_v61 = vld [vmem:[%s8672_s3] sm:$0x3]  ;;  %v684_v0 = vld [vmem:[%s8670_s1 + $0x1e8] sm:$0xff]  ;;  %v4962_v5 = vcombine.high %v679_v56, %v683_v57  ;;  %v4961_v15 = vcombine.low %v679_v56, %v683_v57 }
  0x12   :  { %1440 = vmatpush1.bf16.msra.mxu0 %v4929_v35  ;;  %1793 = vmatpush1.bf16.msra.mxu1 %v4931_v36  ;;  %v5183_v62 = vld [vmem:[%s8673_s4] sm:$0x3]  ;;  %v5193_v1 = vrot.slane %v5178_v61, %v5161_v52  ;;  %v4964_v8 = vcombine.high %v680_v63, %v684_v0  ;;  %v688_v11 = vld [vmem:[%s8670_s1 + $0x208] sm:$0xff]  ;;  %v4963_v16 = vcombine.low %v680_v63, %v684_v0 }
  0x13   :  { %1441 = vmatprep.subr.bf16.mxu0 %v4938_v37  ;;  %1794 = vmatprep.subr.bf16.mxu1 %v4940_v38  ;;  %v5197_v2 = vrot.slane %v5183_v62, %v5161_v52  ;;  %v687_v9 = vld [vmem:[%s8670_s1 + $0x200] sm:$0xff]  ;;  %v692_v12 = vld [vmem:[%s8670_s1 + $0x228] sm:$0xff]  ;;  %v5284_v63 = vrot.slane %v5178_v61, %v5268_v51 }
  0x14   :  { %v164_v6 = vmul.f32 %v5193_v1, %v24_v58  ;;  %v166_v7 = vmul.f32 %v5193_v1, %v26_v60  ;;  %v691_v10 = vld [vmem:[%s8670_s1 + $0x220] sm:$0xff]  ;;  %v4972_v20 = vcombine.high %v688_v11, %v692_v12  ;;  %v696_v23 = vld [vmem:[%s8670_s1 + $0x248] sm:$0xff]  ;;  %v4971_v27 = vcombine.low %v688_v11, %v692_v12 }
  0x15   :  { %v4970_v17 = vcombine.high %v687_v9, %v691_v10  ;;  %v695_v21 = vld [vmem:[%s8670_s1 + $0x240] sm:$0xff]  ;;  %v700_v24 = vld [vmem:[%s8670_s1 + $0x268] sm:$0xff]  ;;  %v4969_v26 = vcombine.low %v687_v9, %v691_v10  ;;  %v30_v10 = vld [vmem:[%s8671_s0 + $0x38] sm:$0xff] }
  0x16   :  { %1442 = vmatpush1.bf16.msra.mxu0 %v4937_v44  ;;  %1795 = vmatpush1.bf16.msra.mxu1 %v4939_v45  ;;  %v304_v13 = vadd.f32 %v5197_v2, %v164_v6  ;;  %v306_v14 = vadd.f32 %v5197_v2, %v166_v7  ;;  %v699_v22 = vld [vmem:[%s8670_s1 + $0x260] sm:$0xff]  ;;  %v4980_v29 = vcombine.high %v696_v23, %v700_v24  ;;  %v704_v32 = vld [vmem:[%s8670_s1 + $0x288] sm:$0xff] }
  0x17   :  { %1443 = vmatprep.subr.bf16.mxu0 %v4946_v46  ;;  %1796 = vmatprep.subr.bf16.mxu1 %v4948_v47  ;;  %v4978_v28 = vcombine.high %v695_v21, %v699_v22  ;;  %v703_v30 = vld [vmem:[%s8670_s1 + $0x280] sm:$0xff]  ;;  %v708_v33 = vld [vmem:[%s8670_s1 + $0x2a8] sm:$0xff]  ;;  %v4977_v34 = vcombine.low %v695_v21, %v699_v22  ;;  %v4979_v35 = vcombine.low %v696_v23, %v700_v24 }
  0x18   :  { %v432_v18 = vmax.f32 %v304_v13, 0.0  ;;  %v434_v19 = vmax.f32 %v306_v14, 0.0  ;;  %v707_v31 = vld [vmem:[%s8670_s1 + $0x2a0] sm:$0xff]  ;;  %v4988_v37 = vcombine.high %v704_v32, %v708_v33  ;;  %v712_v40 = vld [vmem:[%s8670_s1 + $0x2c8] sm:$0xff]  ;;  %v4987_v44 = vcombine.low %v704_v32, %v708_v33 }
  0x19   :  { %v4986_v36 = vcombine.high %v703_v30, %v707_v31  ;;  %v711_v38 = vld [vmem:[%s8670_s1 + $0x2c0] sm:$0xff]  ;;  %v716_v41 = vld [vmem:[%s8670_s1 + $0x2e8] sm:$0xff]  ;;  %v4985_v42 = vcombine.low %v703_v30, %v707_v31  ;;  %v29_v31 = vld [vmem:[%s8671_s0 + $0x30] sm:$0xff] }
  0x1a   :  { %1444 = vmatpush1.bf16.msra.mxu0 %v4945_v53  ;;  %1797 = vmatpush1.bf16.msra.mxu1 %v4947_v54  ;;  %v5227_v25 = vpack.c.bf16 %v434_v19, %v432_v18  ;;  %v715_v39 = vld [vmem:[%s8670_s1 + $0x2e0] sm:$0xff]  ;;  %v4996_v46 = vcombine.high %v712_v40, %v716_v41  ;;  %v720_v49 = vld [vmem:[%s8670_s1 + $0x308] sm:$0xff]  ;;  %v4995_v54 = vcombine.low %v712_v40, %v716_v41 }
  0x1b   :  { %1445 = vmatprep.subr.bf16.mxu0 %v4954_v55  ;;  %1798 = vmatprep.subr.bf16.mxu1 %v4956_v59  ;;  %v4994_v45 = vcombine.high %v711_v38, %v715_v39  ;;  %v719_v47 = vld [vmem:[%s8670_s1 + $0x300] sm:$0xff]  ;;  %v724_v50 = vld [vmem:[%s8670_s1 + $0x328] sm:$0xff]  ;;  %v4993_v53 = vcombine.low %v711_v38, %v715_v39  ;;  %v625_v38 = vld [vmem:[%s8670_s1 + $0x10] sm:$0xff] }
  0x1c   :  { %1465 = vmatprep.mubr.bf16.mxu0 %v5227_v25  ;;  %1818 = vmatprep.mubr.bf16.mxu1 %v5227_v25  ;;  %v723_v48 = vld [vmem:[%s8670_s1 + $0x320] sm:$0xff]  ;;  %v5004_v56 = vcombine.high %v720_v49, %v724_v50  ;;  %v728_v59 = vld [vmem:[%s8670_s1 + $0x348] sm:$0xff]  ;;  %v629_v39 = vld [vmem:[%s8670_s1 + $0x30] sm:$0xff] }
  0x1d   :  { %v5002_v55 = vcombine.high %v719_v47, %v723_v48  ;;  %v727_v57 = vld [vmem:[%s8670_s1 + $0x340] sm:$0xff]  ;;  %v732_v60 = vld [vmem:[%s8670_s1 + $0x368] sm:$0xff]  ;;  %v5001_v0 = vcombine.low %v719_v47, %v723_v48 }
  0x1e   :  { %1446 = vmatpush1.bf16.msra.mxu0 %v4953_v3  ;;  %1799 = vmatpush1.bf16.msra.mxu1 %v4955_v4  ;;  %v731_v58 = vld [vmem:[%s8670_s1 + $0x360] sm:$0xff]  ;;  %v25_v4 = vld [vmem:[%s8671_s0 + $0x10] sm:$0xff]  ;;  %v5012_v61 = vcombine.high %v728_v59, %v732_v60  ;;  %v28_v9 = vld [vmem:[%s8671_s0 + $0x28] sm:$0xff] }
  0x1f   :  { %1447 = vmatprep.subr.bf16.mxu0 %v4962_v5  ;;  %1800 = vmatprep.subr.bf16.mxu1 %v4964_v8  ;;  %v23_v3 = vld [vmem:[%s8671_s0] sm:$0xff]  ;;  %v5003_v5 = vcombine.low %v720_v49, %v724_v50  ;;  %v5010_v6 = vcombine.high %v727_v57, %v731_v58  ;;  %v736_v11 = vld [vmem:[%s8670_s1 + $0x388] sm:$0xff]  ;;  %v165_v14 = vmul.f32 %v5284_v63, %v25_v4  ;;  %v637_v4 = vld [vmem:[%s8670_s1 + $0x70] sm:$0xff] }
  0x20   :  { %v735_v7 = vld [vmem:[%s8670_s1 + $0x380] sm:$0xff]  ;;  %v740_v12 = vld [vmem:[%s8670_s1 + $0x3a8] sm:$0xff]  ;;  %v163_v13 = vmul.f32 %v5284_v63, %v23_v3  ;;  %v168_v19 = vmul.f32 %v5193_v1, %v28_v9  ;;  %v633_v3 = vld [vmem:[%s8670_s1 + $0x50] sm:$0xff] }
  0x21   :  { %v739_v8 = vld [vmem:[%s8670_s1 + $0x3a0] sm:$0xff]  ;;  %v5020_v21 = vcombine.high %v736_v11, %v740_v12  ;;  %v744_v23 = vld [vmem:[%s8670_s1 + $0x3c8] sm:$0xff]  ;;  %v5019_v30 = vcombine.low %v736_v11, %v740_v12  ;;  %v38_v12 = vld [vmem:[%s8671_s0 + $0x78] sm:$0xff] }
  0x22   :  { %1448 = vmatpush1.bf16.msra.mxu0 %v4961_v15  ;;  %1801 = vmatpush1.bf16.msra.mxu1 %v4963_v16  ;;  %v5314_v15 = vrot.slane %v5183_v62, %v5268_v51  ;;  %v5009_v16 = vcombine.low %v727_v57, %v731_v58  ;;  %v5018_v18 = vcombine.high %v735_v7, %v739_v8  ;;  %v743_v22 = vld [vmem:[%s8670_s1 + $0x3c0] sm:$0xff]  ;;  %v748_v24 = vld [vmem:[%s8670_s1 + $0x3e8] sm:$0xff] }
  0x23   :  { %1449 = vmatprep.subr.bf16.mxu0 %v4970_v17  ;;  %1802 = vmatprep.subr.bf16.mxu1 %v4972_v20  ;;  %v5011_v17 = vcombine.low %v728_v59, %v732_v60  ;;  %v170_v20 = vmul.f32 %v5193_v1, %v30_v10  ;;  %v747_v62 = vld [vmem:[%s8670_s1 + $0x3e0] sm:$0xff]  ;;  %v32_v32 = vld [vmem:[%s8671_s0 + $0x48] sm:$0xff]  ;;  %v5027_v50 = vcombine.low %v744_v23, %v748_v24 }
  0x24   :  { %v5026_v33 = vcombine.high %v743_v22, %v747_v62  ;;  %v172_v47 = vmul.f32 %v5193_v1, %v32_v32  ;;  %v5025_v48 = vcombine.low %v743_v22, %v747_v62  ;;  %v36_v11 = vld [vmem:[%s8671_s0 + $0x68] sm:$0xff]  ;;  %v642_v62 = vld [vmem:[%s8670_s1 + $0x98] sm:$0xff] }
  0x26   :  { %1450 = vmatpush1.bf16.msra.mxu0 %v4969_v26  ;;  %1803 = vmatpush1.bf16.msra.mxu1 %v4971_v27  ;;  %v303_v26 = vadd.f32 %v5314_v15, %v163_v13  ;;  %v305_v27 = vadd.f32 %v5314_v15, %v165_v14  ;;  %v312_v60 = vadd.f32 %v5197_v2, %v172_v47 }
  0x27   :  { %1451 = vmatprep.subr.bf16.mxu0 %v4978_v28  ;;  %1804 = vmatprep.subr.bf16.mxu1 %v4980_v29  ;;  %v27_v28 = vld [vmem:[%s8671_s0 + $0x20] sm:$0xff]  ;;  %v5017_v29 = vcombine.low %v735_v7, %v739_v8  ;;  %v33_v7 = vld [vmem:[%s8671_s0 + $0x50] sm:$0xff]  ;;  %v638_v8 = vld [vmem:[%s8670_s1 + $0x78] sm:$0xff] }
  0x28   :  { %v167_v40 = vmul.f32 %v5284_v63, %v27_v28  ;;  %v431_v41 = vmax.f32 %v303_v26, 0.0  ;;  %v4917_v26 = vcombine.low %v633_v3, %v637_v4  ;;  %v178_v28 = vmul.f32 %v5193_v1, %v38_v12 }
  0x2a   :  { %1452 = vmatpush1.bf16.msra.mxu0 %v4977_v34  ;;  %1805 = vmatpush1.bf16.msra.mxu1 %v4979_v35  ;;  %v308_v34 = vadd.f32 %v5197_v2, %v168_v19  ;;  %v310_v35 = vadd.f32 %v5197_v2, %v170_v20  ;;  %v307_v57 = vadd.f32 %v5314_v15, %v167_v40  ;;  %v440_v20 = vmax.f32 %v312_v60, 0.0 }
  0x2b   :  { %1453 = vmatprep.subr.bf16.mxu0 %v4986_v36  ;;  %1806 = vmatprep.subr.bf16.mxu1 %v4988_v37  ;;  %v34_v36 = vld [vmem:[%s8671_s0 + $0x58] sm:$0xff]  ;;  %v5028_v37 = vcombine.high %v744_v23, %v748_v24  ;;  %v318_v40 = vadd.f32 %v5197_v2, %v178_v28 }
  0x2c   :  { %v174_v49 = vmul.f32 %v5193_v1, %v34_v36  ;;  %v435_v13 = vmax.f32 %v307_v57, 0.0  ;;  %v646_v23 = vld [vmem:[%s8670_s1 + $0xb8] sm:$0xff]  ;;  %v649_v36 = vld [vmem:[%s8670_s1 + $0xd0] sm:$0xff] }
  0x2d   :  { %v4928_v32 = vcombine.high %v642_v62, %v646_v23  ;;  %v657_v57 = vld [vmem:[%s8670_s1 + $0x110] sm:$0xff] }
  0x2e   :  { %1454 = vmatpush1.bf16.msra.mxu0 %v4985_v42  ;;  %1807 = vmatpush1.bf16.msra.mxu1 %v4987_v44  ;;  %v433_v42 = vmax.f32 %v305_v27, 0.0  ;;  %v626_v44 = vld [vmem:[%s8670_s1 + $0x18] sm:$0xff]  ;;  %v176_v27 = vmul.f32 %v5193_v1, %v36_v11 }
  0x2f   :  { %1455 = vmatprep.subr.bf16.mxu0 %v4994_v45  ;;  %1808 = vmatprep.subr.bf16.mxu1 %v4996_v46  ;;  %v630_v45 = vld [vmem:[%s8670_s1 + $0x38] sm:$0xff]  ;;  %v169_v46 = vmul.f32 %v5284_v63, %v29_v31 }
  0x30   :  { %v5363_v58 = vpack.c.bf16 %v433_v42, %v431_v41  ;;  %v4911_v9 = vcombine.low %v626_v44, %v630_v45  ;;  %v37_v41 = vld [vmem:[%s8671_s0 + $0x70] sm:$0xff]  ;;  %v650_v42 = vld [vmem:[%s8670_s1 + $0xd8] sm:$0xff] }
  0x31   :  { %v309_v59 = vadd.f32 %v5314_v15, %v169_v46  ;;  %v42_v46 = vld [vmem:[%s8671_s0 + $0x98] sm:$0xff] }
  0x32   :  { %1456 = vmatpush1.bf16.msra.mxu0 %v4993_v53  ;;  %1809 = vmatpush1.bf16.msra.mxu1 %v4995_v54  ;;  %v4910_v53 = vcombine.high %v625_v38, %v629_v39  ;;  %v436_v54 = vmax.f32 %v308_v34, 0.0 }
  0x33   :  { %1457 = vmatprep.subr.bf16.mxu0 %v5002_v55  ;;  %1810 = vmatprep.subr.bf16.mxu1 %v5004_v56  ;;  %v438_v55 = vmax.f32 %v310_v35, 0.0  ;;  %v4912_v56 = vcombine.high %v626_v44, %v630_v45  ;;  %v437_v19 = vmax.f32 %v309_v59, 0.0  ;;  %v35_v35 = vld [vmem:[%s8671_s0 + $0x60] sm:$0xff]  ;;  %v654_v44 = vld [vmem:[%s8670_s1 + $0xf8] sm:$0xff]  ;;  %v40_v45 = vld [vmem:[%s8671_s0 + $0x88] sm:$0xff] }
  0x34   :  { %v661_v59 = vld [vmem:[%s8670_s1 + $0x130] sm:$0xff] }
  0x35   :  { %v5386_v10 = vpack.c.bf16 %v438_v55, %v436_v54  ;;  %v175_v54 = vmul.f32 %v5284_v63, %v35_v35  ;;  %v177_v55 = vmul.f32 %v5284_v63, %v37_v41  ;;  %v673_v35 = vld [vmem:[%s8670_s1 + $0x190] sm:$0xff] }
  0x36   :  { %1458 = vmatpush1.bf16.msra.mxu0 %v5001_v0  ;;  %1811 = vmatpush1.bf16.msra.mxu1 %v5003_v5  ;;  %v31_v0 = vld [vmem:[%s8671_s0 + $0x40] sm:$0xff]  ;;  %v4909_v5 = vcombine.low %v625_v38, %v629_v39  ;;  %v316_v39 = vadd.f32 %v5197_v2, %v176_v27 }
  0x37   :  { %1459 = vmatprep.subr.bf16.mxu0 %v5010_v6  ;;  %1812 = vmatprep.subr.bf16.mxu1 %v5012_v61  ;;  %v314_v6 = vadd.f32 %v5197_v2, %v174_v49  ;;  %v634_v61 = vld [vmem:[%s8670_s1 + $0x58] sm:$0xff]  ;;  %v171_v14 = vmul.f32 %v5284_v63, %v31_v0  ;;  %v4927_v49 = vcombine.low %v642_v62, %v646_v23  ;;  %v446_v0 = vmax.f32 %v318_v40, 0.0  ;;  %v44_v23 = vld [vmem:[%s8671_s0 + $0xa8] sm:$0xff] }
  0x38   :  { %v4920_v22 = vcombine.high %v634_v61, %v638_v8  ;;  %v444_v60 = vmax.f32 %v316_v39, 0.0  ;;  %v315_v11 = vadd.f32 %v5314_v15, %v175_v54  ;;  %v317_v12 = vadd.f32 %v5314_v15, %v177_v55  ;;  %v670_v62 = vld [vmem:[%s8670_s1 + $0x178] sm:$0xff]  ;;  %v681_v55 = vld [vmem:[%s8670_s1 + $0x1d0] sm:$0xff] }
  0x39   :  { %v442_v24 = vmax.f32 %v314_v6, 0.0  ;;  %v311_v31 = vadd.f32 %v5314_v15, %v171_v14  ;;  %v662_v6 = vld [vmem:[%s8670_s1 + $0x138] sm:$0xff]  ;;  %v184_v40 = vmul.f32 %v5193_v1, %v44_v23 }
  0x3a   :  { %1460 = vmatpush1.bf16.msra.mxu0 %v5009_v16  ;;  %1813 = vmatpush1.bf16.msra.mxu1 %v5011_v17  ;;  %v4918_v16 = vcombine.high %v633_v3, %v637_v4  ;;  %v641_v17 = vld [vmem:[%s8670_s1 + $0x90] sm:$0xff]  ;;  %v180_v3 = vmul.f32 %v5193_v1, %v40_v45  ;;  %v182_v4 = vmul.f32 %v5193_v1, %v42_v46  ;;  %v690_v23 = vld [vmem:[%s8670_s1 + $0x218] sm:$0xff] }
  0x3b   :  { %1461 = vmatprep.subr.bf16.mxu0 %v5018_v18  ;;  %1814 = vmatprep.subr.bf16.mxu1 %v5020_v21  ;;  %v645_v18 = vld [vmem:[%s8670_s1 + $0xb0] sm:$0xff]  ;;  %v173_v21 = vmul.f32 %v5284_v63, %v33_v7  ;;  %v5427_v38 = vpack.c.bf16 %v442_v24, %v440_v20  ;;  %v46_v24 = vld [vmem:[%s8671_s0 + $0xb8] sm:$0xff] }
  0x3c   :  { %v4925_v47 = vcombine.low %v641_v17, %v645_v18  ;;  %v322_v20 = vadd.f32 %v5197_v2, %v182_v4  ;;  %v186_v41 = vmul.f32 %v5193_v1, %v46_v24  ;;  %v686_v4 = vld [vmem:[%s8670_s1 + $0x1f8] sm:$0xff] }
  0x3d   :  { %v313_v34 = vadd.f32 %v5314_v15, %v173_v21  ;;  %v41_v21 = vld [vmem:[%s8671_s0 + $0x90] sm:$0xff]  ;;  %v694_v24 = vld [vmem:[%s8670_s1 + $0x238] sm:$0xff] }
  0x3e   :  { %1462 = vmatpush1.bf16.msra.mxu0 %v5017_v29  ;;  %1815 = vmatpush1.bf16.msra.mxu1 %v5019_v30  ;;  %v4919_v29 = vcombine.low %v634_v61, %v638_v8  ;;  %v4926_v30 = vcombine.high %v641_v17, %v645_v18  ;;  %v4935_v61 = vcombine.low %v650_v42, %v654_v44  ;;  %v669_v17 = vld [vmem:[%s8670_s1 + $0x170] sm:$0xff]  ;;  %v450_v39 = vmax.f32 %v322_v20, 0.0 }
  0x3f   :  { %1463 = vmatprep.subr.bf16.mxu0 %v5026_v33  ;;  %1816 = vmatprep.subr.bf16.mxu1 %v5028_v37  ;;  %v5415_v33 = vpack.c.bf16 %v437_v19, %v435_v13  ;;  %v653_v37 = vld [vmem:[%s8670_s1 + $0xf0] sm:$0xff]  ;;  %v4942_v8 = vcombine.high %v657_v57, %v661_v59  ;;  %v39_v13 = vld [vmem:[%s8671_s0 + $0x80] sm:$0xff]  ;;  %v5479_v18 = vpack.c.bf16 %v446_v0, %v444_v60 }
  0x40   :  { %v4933_v7 = vcombine.low %v649_v36, %v653_v37  ;;  %v320_v19 = vadd.f32 %v5197_v2, %v180_v3  ;;  %v179_v27 = vmul.f32 %v5284_v63, %v39_v13  ;;  %v326_v60 = vadd.f32 %v5197_v2, %v186_v41  ;;  %v45_v0 = vld [vmem:[%s8671_s0 + $0xb0] sm:$0xff]  ;;  %v682_v3 = vld [vmem:[%s8670_s1 + $0x1d8] sm:$0xff] }
  0x41   :  { %v54_v41 = vld [vmem:[%s8671_s0 + $0xf8] sm:$0xff] }
  0x42   :  { %1464 = vmatpush1.bf16.msra.mxu0 %v5025_v48  ;;  %1817 = vmatpush1.bf16.msra.mxu1 %v5027_v50  ;;  %v439_v48 = vmax.f32 %v311_v31, 0.0  ;;  %v4934_v50 = vcombine.high %v649_v36, %v653_v37  ;;  %v445_v31 = vmax.f32 %v317_v12, 0.0  ;;  %v677_v36 = vld [vmem:[%s8670_s1 + $0x1b0] sm:$0xff]  ;;  %v448_v37 = vmax.f32 %v320_v19, 0.0 }
  0x43   :  { %2139 = vmatprep.subr.bf16.mxu0 %v4910_v53  ;;  %2492 = vmatprep.subr.bf16.mxu1 %v4912_v56  ;;  %v441_v53 = vmax.f32 %v313_v34, 0.0  ;;  %v4936_v56 = vcombine.high %v650_v42, %v654_v44  ;;  %v674_v42 = vld [vmem:[%s8670_s1 + $0x198] sm:$0xff]  ;;  %v319_v46 = vadd.f32 %v5314_v15, %v179_v27  ;;  %v693_v19 = vld [vmem:[%s8670_s1 + $0x230] sm:$0xff]  ;;  %v4967_v27 = vcombine.low %v682_v3, %v686_v4 }
  0x44   :  { %v678_v44 = vld [vmem:[%s8670_s1 + $0x1b8] sm:$0xff] }
  0x45   :  { %1466 = vmatmul.mubr.bf16.vlgmr.msra.gmra.mrb[0].mxu0 %v5363_v58  ;;  %1819 = vmatmul.mubr.bf16.vlgmr.msra.gmra.mrb[0].mxu1 %v5363_v58  ;;  %v4960_v54 = vcombine.high %v674_v42, %v678_v44 }
  0x46   :  { %2140 = vmatpush1.bf16.msra.mxu0 %v4909_v5  ;;  %2493 = vmatpush1.bf16.msra.mxu1 %v4911_v9  ;;  %v658_v5 = vld [vmem:[%s8670_s1 + $0x118] sm:$0xff]  ;;  %v5466_v9 = vpack.c.bf16 %v441_v53, %v439_v48  ;;  %v4958_v48 = vcombine.high %v673_v35, %v677_v36  ;;  %v43_v53 = vld [vmem:[%s8671_s0 + $0xa0] sm:$0xff] }
  0x47   :  { %1475 = vmatprep.mubr.bf16.mxu0 %v5386_v10  ;;  %1828 = vmatprep.mubr.bf16.mxu1 %v5386_v10  ;;  %v4944_v14 = vcombine.high %v658_v5, %v662_v6  ;;  %v4943_v28 = vcombine.low %v658_v5, %v662_v6  ;;  %v48_v5 = vld [vmem:[%s8671_s0 + $0xc8] sm:$0xff]  ;;  %v50_v6 = vld [vmem:[%s8671_s0 + $0xd8] sm:$0xff]  ;;  %v183_v13 = vmul.f32 %v5284_v63, %v43_v53 }
  0x48   :  { %2141 = vmatprep.subr.bf16.mxu0 %v4918_v16  ;;  %2494 = vmatprep.subr.bf16.mxu1 %v4920_v22  ;;  %v665_v16 = vld [vmem:[%s8670_s1 + $0x150] sm:$0xff]  ;;  %v666_v22 = vld [vmem:[%s8670_s1 + $0x158] sm:$0xff] }
  0x49   :  { %v4952_v34 = vcombine.high %v666_v22, %v670_v62  ;;  %v4949_v45 = vcombine.low %v665_v16, %v669_v17 }
  0x4a   :  { %2142 = vmatpush1.bf16.msra.mxu0 %v4917_v26  ;;  %2495 = vmatpush1.bf16.msra.mxu1 %v4919_v29  ;;  %v4941_v26 = vcombine.low %v657_v57, %v661_v59  ;;  %v4950_v29 = vcombine.high %v665_v16, %v669_v17  ;;  %v5531_v57 = vpack.c.bf16 %v450_v39, %v448_v37  ;;  %v689_v17 = vld [vmem:[%s8670_s1 + $0x210] sm:$0xff]  ;;  %v47_v37 = vld [vmem:[%s8671_s0 + $0xc0] sm:$0xff] }
  0x4b   :  { %2143 = vmatprep.subr.bf16.mxu0 %v4926_v30  ;;  %2496 = vmatprep.subr.bf16.mxu1 %v4928_v32  ;;  %v443_v30 = vmax.f32 %v315_v11, 0.0  ;;  %v181_v32 = vmul.f32 %v5284_v63, %v41_v21  ;;  %v324_v59 = vadd.f32 %v5197_v2, %v184_v40  ;;  %v4968_v16 = vcombine.high %v682_v3, %v686_v4  ;;  %v49_v39 = vld [vmem:[%s8671_s0 + $0xd0] sm:$0xff]  ;;  %v52_v40 = vld [vmem:[%s8671_s0 + $0xe8] sm:$0xff] }
  0x4c   :  { %v454_v21 = vmax.f32 %v326_v60, 0.0  ;;  %v189_v53 = vmul.f32 %v5284_v63, %v49_v39  ;;  %v192_v60 = vmul.f32 %v5193_v1, %v52_v40 }
  0x4d   :  { %1476 = vmatmul.mubr.bf16.gmra.mrb[4].mxu0 %v5415_v33  ;;  %1829 = vmatmul.mubr.bf16.gmra.mrb[4].mxu1 %v5415_v33  ;;  %v452_v20 = vmax.f32 %v324_v59, 0.0 }
  0x4e   :  { %1485 = vmatprep.mubr.bf16.mxu0 %v5427_v38  ;;  %1838 = vmatprep.mubr.bf16.mxu1 %v5427_v38 }
  0x4f   :  { %2144 = vmatpush1.bf16.msra.mxu0 %v4925_v47  ;;  %2497 = vmatpush1.bf16.msra.mxu1 %v4927_v49  ;;  %v4951_v47 = vcombine.low %v666_v22, %v670_v62  ;;  %v5519_v49 = vpack.c.bf16 %v445_v31, %v443_v30  ;;  %v188_v22 = vmul.f32 %v5193_v1, %v48_v5 }
  0x50   :  { %2145 = vmatprep.subr.bf16.mxu0 %v4934_v50  ;;  %2498 = vmatprep.subr.bf16.mxu1 %v4936_v56  ;;  %v321_v50 = vadd.f32 %v5314_v15, %v181_v32  ;;  %v685_v56 = vld [vmem:[%s8670_s1 + $0x1f0] sm:$0xff]  ;;  %v190_v62 = vmul.f32 %v5193_v1, %v50_v6  ;;  %v323_v30 = vadd.f32 %v5314_v15, %v183_v13 }
  0x51   :  { %v4966_v11 = vcombine.high %v681_v55, %v685_v56  ;;  %v4976_v32 = vcombine.high %v690_v23, %v694_v24 }
  0x52   :  { %v449_v12 = vmax.f32 %v321_v50, 0.0  ;;  %v187_v50 = vmul.f32 %v5284_v63, %v47_v37 }
  0x53   :  { %2146 = vmatpush1.bf16.msra.mxu0 %v4933_v7  ;;  %2499 = vmatpush1.bf16.msra.mxu1 %v4935_v61  ;;  %v4957_v7 = vcombine.low %v673_v35, %v677_v36  ;;  %v447_v61 = vmax.f32 %v319_v46, 0.0  ;;  %v328_v35 = vadd.f32 %v5197_v2, %v188_v22  ;;  %v330_v36 = vadd.f32 %v5197_v2, %v190_v62  ;;  %v701_v46 = vld [vmem:[%s8670_s1 + $0x270] sm:$0xff] }
  0x54   :  { %2147 = vmatprep.subr.bf16.mxu0 %v4942_v8  ;;  %2500 = vmatprep.subr.bf16.mxu1 %v4944_v14  ;;  %v4959_v8 = vcombine.low %v674_v42, %v678_v44  ;;  %v185_v14 = vmul.f32 %v5284_v63, %v45_v0  ;;  %v4973_v42 = vcombine.low %v689_v17, %v693_v19 }
  0x55   :  { %1486 = vmatmul.mubr.bf16.gmra.mrb[8].mxu0 %v5466_v9  ;;  %1839 = vmatmul.mubr.bf16.gmra.mrb[8].mxu1 %v5466_v9  ;;  %v4975_v44 = vcombine.low %v690_v23, %v694_v24  ;;  %v458_v59 = vmax.f32 %v330_v36, 0.0  ;;  %v194_v0 = vmul.f32 %v5193_v1, %v54_v41 }
  0x56   :  { %1495 = vmatprep.mubr.bf16.mxu0 %v5479_v18  ;;  %1848 = vmatprep.mubr.bf16.mxu1 %v5479_v18  ;;  %v325_v31 = vadd.f32 %v5314_v15, %v185_v14  ;;  %v51_v14 = vld [vmem:[%s8671_s0 + $0xe0] sm:$0xff] }
  0x57   :  { %2148 = vmatpush1.bf16.msra.mxu0 %v4941_v26  ;;  %2501 = vmatpush1.bf16.msra.mxu1 %v4943_v28  ;;  %v4965_v26 = vcombine.low %v681_v55, %v685_v56  ;;  %v4974_v28 = vcombine.high %v689_v17, %v693_v19  ;;  %v702_v55 = vld [vmem:[%s8670_s1 + $0x278] sm:$0xff]  ;;  %v456_v56 = vmax.f32 %v328_v35, 0.0  ;;  %v334_v13 = vadd.f32 %v5197_v2, %v194_v0  ;;  %v56_v17 = vld [vmem:[%s8671_s0 + $0x108] sm:$0xff] }
  0x58   :  { %2149 = vmatprep.subr.bf16.mxu0 %v4950_v29  ;;  %2502 = vmatprep.subr.bf16.mxu1 %v4952_v34  ;;  %v5570_v29 = vpack.c.bf16 %v449_v12, %v447_v61  ;;  %v5574_v34 = vpack.c.bf16 %v454_v21, %v452_v20  ;;  %v329_v61 = vadd.f32 %v5314_v15, %v189_v53  ;;  %v58_v19 = vld [vmem:[%s8671_s0 + $0x118] sm:$0xff]  ;;  %v705_v20 = vld [vmem:[%s8670_s1 + $0x290] sm:$0xff] }
  0x59   :  { %v332_v12 = vadd.f32 %v5197_v2, %v192_v60  ;;  %v709_v21 = vld [vmem:[%s8670_s1 + $0x2b0] sm:$0xff]  ;;  %v191_v23 = vmul.f32 %v5284_v63, %v51_v14  ;;  %v62_v53 = vld [vmem:[%s8671_s0 + $0x138] sm:$0xff] }
  0x5a   :  { %v457_v62 = vmax.f32 %v329_v61, 0.0  ;;  %v4989_v35 = vcombine.low %v705_v20, %v709_v21  ;;  %v4990_v36 = vcombine.high %v705_v20, %v709_v21  ;;  %v714_v61 = vld [vmem:[%s8670_s1 + $0x2d8] sm:$0xff] }
  0x5b   :  { %2150 = vmatpush1.bf16.msra.mxu0 %v4949_v45  ;;  %2503 = vmatpush1.bf16.msra.mxu1 %v4951_v47  ;;  %v697_v45 = vld [vmem:[%s8670_s1 + $0x250] sm:$0xff]  ;;  %v451_v47 = vmax.f32 %v323_v30, 0.0  ;;  %v462_v30 = vmax.f32 %v334_v13, 0.0  ;;  %v331_v40 = vadd.f32 %v5314_v15, %v191_v23 }
  0x5c   :  { %2151 = vmatprep.subr.bf16.mxu0 %v4958_v48  ;;  %2504 = vmatprep.subr.bf16.mxu1 %v4960_v54  ;;  %v453_v48 = vmax.f32 %v325_v31, 0.0  ;;  %v698_v54 = vld [vmem:[%s8670_s1 + $0x258] sm:$0xff]  ;;  %v4981_v3 = vcombine.low %v697_v45, %v701_v46  ;;  %v4982_v4 = vcombine.high %v697_v45, %v701_v46  ;;  %v196_v31 = vmul.f32 %v5193_v1, %v56_v17  ;;  %v61_v23 = vld [vmem:[%s8671_s0 + $0x130] sm:$0xff] }
  0x5d   :  { %1496 = vmatmul.mubr.bf16.gmra.mrb[12].mxu0 %v5519_v49  ;;  %1849 = vmatmul.mubr.bf16.gmra.mrb[12].mxu1 %v5519_v49  ;;  %v4983_v5 = vcombine.low %v698_v54, %v702_v55 }
  0x5e   :  { %1505 = vmatprep.mubr.bf16.mxu0 %v5531_v57  ;;  %1858 = vmatprep.mubr.bf16.mxu1 %v5531_v57  ;;  %v5610_v6 = vpack.c.bf16 %v453_v48, %v451_v47  ;;  %v336_v45 = vadd.f32 %v5197_v2, %v196_v31  ;;  %v55_v47 = vld [vmem:[%s8671_s0 + $0x100] sm:$0xff]  ;;  %v57_v48 = vld [vmem:[%s8671_s0 + $0x110] sm:$0xff] }
  0x5f   :  { %2152 = vmatpush1.bf16.msra.mxu0 %v4957_v7  ;;  %2505 = vmatpush1.bf16.msra.mxu1 %v4959_v8  ;;  %v327_v7 = vadd.f32 %v5314_v15, %v187_v50  ;;  %v4984_v8 = vcombine.high %v698_v54, %v702_v55  ;;  %v60_v50 = vld [vmem:[%s8671_s0 + $0x128] sm:$0xff]  ;;  %v459_v54 = vmax.f32 %v331_v40, 0.0 }
  0x60   :  { %2153 = vmatprep.subr.bf16.mxu0 %v4966_v11  ;;  %2506 = vmatprep.subr.bf16.mxu1 %v4968_v16  ;;  %v5614_v11 = vpack.c.bf16 %v458_v59, %v456_v56  ;;  %v53_v16 = vld [vmem:[%s8671_s0 + $0xf0] sm:$0xff]  ;;  %v195_v56 = vmul.f32 %v5284_v63, %v55_v47  ;;  %v197_v59 = vmul.f32 %v5284_v63, %v57_v48  ;;  %v464_v60 = vmax.f32 %v336_v45, 0.0 }
  0x61   :  { %v455_v22 = vmax.f32 %v327_v7, 0.0  ;;  %v193_v24 = vmul.f32 %v5284_v63, %v53_v16  ;;  %v717_v7 = vld [vmem:[%s8670_s1 + $0x2f0] sm:$0xff] }
  0x62   :  { %v335_v16 = vadd.f32 %v5314_v15, %v195_v56  ;;  %v337_v17 = vadd.f32 %v5314_v15, %v197_v59 }
  0x63   :  { %2154 = vmatpush1.bf16.msra.mxu0 %v4965_v26  ;;  %2507 = vmatpush1.bf16.msra.mxu1 %v4967_v27  ;;  %v706_v26 = vld [vmem:[%s8670_s1 + $0x298] sm:$0xff]  ;;  %v5650_v39 = vpack.c.bf16 %v457_v62, %v455_v22  ;;  %v333_v41 = vadd.f32 %v5314_v15, %v193_v24  ;;  %v59_v62 = vld [vmem:[%s8671_s0 + $0x120] sm:$0xff] }
  0x64   :  { %2155 = vmatprep.subr.bf16.mxu0 %v4974_v28  ;;  %2508 = vmatprep.subr.bf16.mxu1 %v4976_v32  ;;  %v710_v27 = vld [vmem:[%s8670_s1 + $0x2b8] sm:$0xff]  ;;  %v460_v28 = vmax.f32 %v332_v12, 0.0  ;;  %v198_v32 = vmul.f32 %v5193_v1, %v58_v19  ;;  %v199_v31 = vmul.f32 %v5284_v63, %v59_v62 }
  0x65   :  { %1506 = vmatmul.mubr.bf16.gmra.mrb[16].mxu0 %v5570_v29  ;;  %1859 = vmatmul.mubr.bf16.gmra.mrb[16].mxu1 %v5570_v29  ;;  %v4991_v37 = vcombine.low %v706_v26, %v710_v27  ;;  %v461_v55 = vmax.f32 %v333_v41, 0.0 }
  0x66   :  { %1515 = vmatprep.mubr.bf16.mxu0 %v5574_v34  ;;  %1868 = vmatprep.mubr.bf16.mxu1 %v5574_v34  ;;  %v338_v46 = vadd.f32 %v5197_v2, %v198_v32  ;;  %v201_v32 = vmul.f32 %v5284_v63, %v61_v23 }
  0x67   :  { %2156 = vmatpush1.bf16.msra.mxu0 %v4973_v42  ;;  %2509 = vmatpush1.bf16.msra.mxu1 %v4975_v44  ;;  %v4992_v42 = vcombine.high %v706_v26, %v710_v27  ;;  %v5654_v44 = vpack.c.bf16 %v462_v30, %v460_v28  ;;  %v5690_v14 = vpack.c.bf16 %v461_v55, %v459_v54  ;;  %v64_v26 = vld [vmem:[%s8671_s0 + $0x148] sm:$0xff]  ;;  %v66_v27 = vld [vmem:[%s8671_s0 + $0x158] sm:$0xff]  ;;  %v463_v28 = vmax.f32 %v335_v16, 0.0 }
  0x68   :  { %2157 = vmatprep.subr.bf16.mxu0 %v4982_v4  ;;  %2510 = vmatprep.subr.bf16.mxu1 %v4984_v8  ;;  %v466_v0 = vmax.f32 %v338_v46, 0.0  ;;  %v202_v4 = vmul.f32 %v5193_v1, %v62_v53  ;;  %v718_v8 = vld [vmem:[%s8670_s1 + $0x2f8] sm:$0xff]  ;;  %v465_v30 = vmax.f32 %v337_v17, 0.0  ;;  %v206_v40 = vmul.f32 %v5193_v1, %v66_v27  ;;  %v65_v53 = vld [vmem:[%s8671_s0 + $0x150] sm:$0xff]  ;;  %v68_v54 = vld [vmem:[%s8671_s0 + $0x168] sm:$0xff] }
  0x69   :  { %v4999_v19 = vcombine.low %v714_v61, %v718_v8  ;;  %v5000_v24 = vcombine.high %v714_v61, %v718_v8  ;;  %v341_v45 = vadd.f32 %v5314_v15, %v201_v32  ;;  %v70_v55 = vld [vmem:[%s8671_s0 + $0x178] sm:$0xff]  ;;  %v721_v61 = vld [vmem:[%s8670_s1 + $0x310] sm:$0xff] }
  0x6a   :  { %v5694_v20 = vpack.c.bf16 %v466_v0, %v464_v60  ;;  %v342_v22 = vadd.f32 %v5197_v2, %v202_v4  ;;  %v5718_v41 = vpack.c.bf16 %v465_v30, %v463_v28  ;;  %v346_v48 = vadd.f32 %v5197_v2, %v206_v40  ;;  %v725_v8 = vld [vmem:[%s8670_s1 + $0x330] sm:$0xff]  ;;  %v726_v17 = vld [vmem:[%s8670_s1 + $0x338] sm:$0xff]  ;;  %v67_v28 = vld [vmem:[%s8671_s0 + $0x160] sm:$0xff] }
  0x6b   :  { %2158 = vmatpush1.bf16.msra.mxu0 %v4981_v3  ;;  %2511 = vmatpush1.bf16.msra.mxu1 %v4983_v5  ;;  %v200_v3 = vmul.f32 %v5193_v1, %v60_v50  ;;  %v713_v5 = vld [vmem:[%s8670_s1 + $0x2d0] sm:$0xff]  ;;  %v63_v50 = vld [vmem:[%s8671_s0 + $0x140] sm:$0xff]  ;;  %v469_v59 = vmax.f32 %v341_v45, 0.0  ;;  %v205_v0 = vmul.f32 %v5284_v63, %v65_v53  ;;  %v5006_v16 = vcombine.high %v721_v61, %v725_v8  ;;  %v74_v32 = vld [vmem:[%s8671_s0 + $0x198] sm:$0xff] }
  0x6c   :  { %2159 = vmatprep.subr.bf16.mxu0 %v4990_v36  ;;  %2512 = vmatprep.subr.bf16.mxu1 %v4992_v42  ;;  %v4997_v12 = vcombine.low %v713_v5, %v717_v7  ;;  %v4998_v13 = vcombine.high %v713_v5, %v717_v7  ;;  %v470_v36 = vmax.f32 %v342_v22, 0.0  ;;  %v339_v42 = vadd.f32 %v5314_v15, %v199_v31  ;;  %v69_v30 = vld [vmem:[%s8671_s0 + $0x170] sm:$0xff]  ;;  %v72_v31 = vld [vmem:[%s8671_s0 + $0x188] sm:$0xff] }
  0x6d   :  { %1516 = vmatmul.mubr.bf16.gmra.mrb[20].mxu0 %v5610_v6  ;;  %1869 = vmatmul.mubr.bf16.gmra.mrb[20].mxu1 %v5610_v6  ;;  %v340_v21 = vadd.f32 %v5197_v2, %v200_v3  ;;  %v203_v60 = vmul.f32 %v5284_v63, %v63_v50  ;;  %v474_v4 = vmax.f32 %v346_v48, 0.0  ;;  %v208_v5 = vmul.f32 %v5193_v1, %v68_v54 }
  0x6e   :  { %1525 = vmatprep.mubr.bf16.mxu0 %v5614_v11  ;;  %1878 = vmatprep.mubr.bf16.mxu1 %v5614_v11  ;;  %v467_v56 = vmax.f32 %v339_v42, 0.0  ;;  %v210_v7 = vmul.f32 %v5193_v1, %v70_v55  ;;  %v345_v23 = vadd.f32 %v5314_v15, %v205_v0  ;;  %v209_v40 = vmul.f32 %v5284_v63, %v69_v30  ;;  %v73_v0 = vld [vmem:[%s8671_s0 + $0x190] sm:$0xff] }
  0x6f   :  { %2160 = vmatpush1.bf16.msra.mxu0 %v4989_v35  ;;  %2513 = vmatpush1.bf16.msra.mxu1 %v4991_v37  ;;  %v468_v35 = vmax.f32 %v340_v21, 0.0  ;;  %v204_v37 = vmul.f32 %v5193_v1, %v64_v26  ;;  %v343_v62 = vadd.f32 %v5314_v15, %v203_v60  ;;  %v348_v26 = vadd.f32 %v5197_v2, %v208_v5  ;;  %v71_v60 = vld [vmem:[%s8671_s0 + $0x180] sm:$0xff] }
  0x70   :  { %2161 = vmatprep.subr.bf16.mxu0 %v4998_v13  ;;  %2514 = vmatprep.subr.bf16.mxu1 %v5000_v24  ;;  %v5005_v13 = vcombine.low %v721_v61, %v725_v8  ;;  %v5758_v22 = vpack.c.bf16 %v469_v59, %v467_v56  ;;  %v350_v27 = vadd.f32 %v5197_v2, %v210_v7 }
  0x71   :  { %v5722_v46 = vpack.c.bf16 %v470_v36, %v468_v35  ;;  %v344_v47 = vadd.f32 %v5197_v2, %v204_v37  ;;  %v471_v35 = vmax.f32 %v343_v62, 0.0  ;;  %v473_v36 = vmax.f32 %v345_v23, 0.0  ;;  %v730_v62 = vld [vmem:[%s8670_s1 + $0x358] sm:$0xff] }
  0x72   :  { %v207_v37 = vmul.f32 %v5284_v63, %v67_v28  ;;  %v476_v42 = vmax.f32 %v348_v26, 0.0  ;;  %v478_v45 = vmax.f32 %v350_v27, 0.0  ;;  %v214_v48 = vmul.f32 %v5193_v1, %v74_v32  ;;  %v734_v27 = vld [vmem:[%s8670_s1 + $0x378] sm:$0xff] }
  0x73   :  { %2162 = vmatpush1.bf16.msra.mxu0 %v4997_v12  ;;  %2515 = vmatpush1.bf16.msra.mxu1 %v4999_v19  ;;  %v472_v3 = vmax.f32 %v344_v47, 0.0  ;;  %v722_v12 = vld [vmem:[%s8670_s1 + $0x318] sm:$0xff]  ;;  %v212_v47 = vmul.f32 %v5193_v1, %v72_v31  ;;  %v5786_v50 = vpack.c.bf16 %v473_v36, %v471_v35  ;;  %v349_v54 = vadd.f32 %v5314_v15, %v209_v40 }
  0x74   :  { %v5007_v19 = vcombine.low %v722_v12, %v726_v17  ;;  %v5008_v21 = vcombine.high %v722_v12, %v726_v17  ;;  %2163 = vmatprep.subr.bf16.mxu0 %v5006_v16  ;;  %v347_v53 = vadd.f32 %v5314_v15, %v207_v37  ;;  %v5790_v55 = vpack.c.bf16 %v478_v45, %v476_v42  ;;  %v75_v42 = vld [vmem:[%s8671_s0 + $0x1a0] sm:$0xff]  ;;  %v77_v45 = vld [vmem:[%s8671_s0 + $0x1b0] sm:$0xff] }
  0x75   :  { %1526 = vmatmul.mubr.bf16.gmra.mrb[24].mxu0 %v5650_v39  ;;  %1879 = vmatmul.mubr.bf16.gmra.mrb[24].mxu1 %v5650_v39  ;;  %v5762_v24 = vpack.c.bf16 %v474_v4, %v472_v3  ;;  %v352_v56 = vadd.f32 %v5197_v2, %v212_v47  ;;  %v354_v59 = vadd.f32 %v5197_v2, %v214_v48  ;;  %v76_v3 = vld [vmem:[%s8671_s0 + $0x1a8] sm:$0xff]  ;;  %v78_v4 = vld [vmem:[%s8671_s0 + $0x1b8] sm:$0xff]  ;;  %v477_v7 = vmax.f32 %v349_v54, 0.0 }
  0x76   :  { %1535 = vmatprep.mubr.bf16.mxu0 %v5654_v44  ;;  %1888 = vmatprep.mubr.bf16.mxu1 %v5654_v44  ;;  %v475_v5 = vmax.f32 %v347_v53, 0.0  ;;  %v211_v61 = vmul.f32 %v5284_v63, %v71_v60  ;;  %v213_v8 = vmul.f32 %v5284_v63, %v73_v0  ;;  %v216_v16 = vmul.f32 %v5193_v1, %v76_v3  ;;  %v80_v47 = vld [vmem:[%s8671_s0 + $0x1c8] sm:$0xff]  ;;  %v82_v48 = vld [vmem:[%s8671_s0 + $0x1d8] sm:$0xff] }
  0x77   :  { %2516 = vmatprep.subr.bf16.mxu1 %v5008_v21  ;;  %2164 = vmatpush1.bf16.msra.mxu0 %v5005_v13  ;;  %v480_v12 = vmax.f32 %v352_v56, 0.0  ;;  %v482_v13 = vmax.f32 %v354_v59, 0.0  ;;  %v218_v17 = vmul.f32 %v5193_v1, %v78_v4  ;;  %v733_v21 = vld [vmem:[%s8670_s1 + $0x370] sm:$0xff]  ;;  %v5015_v28 = vcombine.low %v730_v62, %v734_v27 }
  0x78   :  { %2517 = vmatpush1.bf16.msra.mxu1 %v5007_v19  ;;  %v729_v19 = vld [vmem:[%s8670_s1 + $0x350] sm:$0xff]  ;;  %v5016_v30 = vcombine.high %v730_v62, %v734_v27  ;;  %v5826_v31 = vpack.c.bf16 %v477_v7, %v475_v5  ;;  %v351_v32 = vadd.f32 %v5314_v15, %v211_v61  ;;  %v353_v35 = vadd.f32 %v5314_v15, %v213_v8  ;;  %v79_v8 = vld [vmem:[%s8671_s0 + $0x1c0] sm:$0xff] }
  0x79   :  { %v5013_v23 = vcombine.low %v729_v19, %v733_v21  ;;  %v5014_v26 = vcombine.high %v729_v19, %v733_v21  ;;  %v5830_v36 = vpack.c.bf16 %v482_v13, %v480_v12  ;;  %v356_v37 = vadd.f32 %v5197_v2, %v216_v16  ;;  %v81_v12 = vld [vmem:[%s8671_s0 + $0x1d0] sm:$0xff]  ;;  %v84_v19 = vld [vmem:[%s8671_s0 + $0x1e8] sm:$0xff]  ;;  %v86_v21 = vld [vmem:[%s8671_s0 + $0x1f8] sm:$0xff] }
  0x7a   :  { %v358_v40 = vadd.f32 %v5197_v2, %v218_v17  ;;  %2518 = vmatprep.subr.bf16.mxu1 %v5016_v30  ;;  %v479_v53 = vmax.f32 %v351_v32, 0.0  ;;  %v481_v54 = vmax.f32 %v353_v35, 0.0  ;;  %v215_v56 = vmul.f32 %v5284_v63, %v75_v42 }
  0x7b   :  { %2165 = vmatprep.subr.bf16.mxu0 %v5014_v26  ;;  %8747 = vst [vmem:[#allocation3_spill] sm:$0xff] %v5830_v36  ;;  %v217_v59 = vmul.f32 %v5284_v63, %v77_v45  ;;  %v484_v60 = vmax.f32 %v356_v37, 0.0  ;;  %v220_v3 = vmul.f32 %v5193_v1, %v80_v47  ;;  %v222_v4 = vmul.f32 %v5193_v1, %v82_v48  ;;  %v83_v45 = vld [vmem:[%s8671_s0 + $0x1e0] sm:$0xff] }
  0x7c   :  { %2166 = vmatpush1.bf16.msra.mxu0 %v5013_v23  ;;  %2519 = vmatpush1.bf16.msra.mxu1 %v5015_v28  ;;  %v486_v0 = vmax.f32 %v358_v40, 0.0  ;;  %v5854_v5 = vpack.c.bf16 %v481_v54, %v479_v53  ;;  %v355_v7 = vadd.f32 %v5314_v15, %v215_v56  ;;  %v219_v62 = vmul.f32 %v5284_v63, %v79_v8  ;;  %v85_v54 = vld [vmem:[%s8671_s0 + $0x1f0] sm:$0xff]  ;;  %v88_v56 = vld [vmem:[%s8671_s0 + $0x208] sm:$0xff] }
  0x7d   :  { %1536 = vmatmul.mubr.bf16.gmra.mrb[28].mxu0 %v5690_v14  ;;  %1889 = vmatmul.mubr.bf16.gmra.mrb[28].mxu1 %v5690_v14  ;;  %v357_v61 = vadd.f32 %v5314_v15, %v217_v59  ;;  %v360_v16 = vadd.f32 %v5197_v2, %v220_v3  ;;  %v362_v17 = vadd.f32 %v5197_v2, %v222_v4  ;;  %v90_v59 = vld [vmem:[%s8671_s0 + $0x218] sm:$0xff] }
  0x7e   :  { %1545 = vmatprep.mubr.bf16.mxu0 %v5694_v20  ;;  %1898 = vmatprep.mubr.bf16.mxu1 %v5694_v20  ;;  %8748 = vst [vmem:[#allocation4_spill] sm:$0xff] %v5854_v5  ;;  %v5864_v13 = vpack.c.bf16 %v486_v0, %v484_v60  ;;  %v221_v23 = vmul.f32 %v5284_v63, %v81_v12  ;;  %v483_v26 = vmax.f32 %v355_v7, 0.0  ;;  %v737_v60 = vld [vmem:[%s8670_s1 + $0x390] sm:$0xff]  ;;  %v738_v3 = vld [vmem:[%s8670_s1 + $0x398] sm:$0xff] }
  0x7f   :  { %v485_v27 = vmax.f32 %v357_v61, 0.0  ;;  %v488_v28 = vmax.f32 %v360_v16, 0.0  ;;  %v490_v30 = vmax.f32 %v362_v17, 0.0  ;;  %v224_v32 = vmul.f32 %v5193_v1, %v84_v19  ;;  %v741_v0 = vld [vmem:[%s8670_s1 + $0x3b0] sm:$0xff]  ;;  %v742_v12 = vld [vmem:[%s8670_s1 + $0x3b8] sm:$0xff] }
  0x80   :  { %8749 = vst [vmem:[#allocation5_spill] sm:$0xff] %v5864_v13  ;;  %v226_v35 = vmul.f32 %v5193_v1, %v86_v21  ;;  %v359_v37 = vadd.f32 %v5314_v15, %v219_v62  ;;  %v361_v40 = vadd.f32 %v5314_v15, %v221_v23  ;;  %v5021_v61 = vcombine.low %v737_v60, %v741_v0 }
  0x81   :  { %v5884_v42 = vpack.c.bf16 %v485_v27, %v483_v26  ;;  %v5889_v47 = vpack.c.bf16 %v490_v30, %v488_v28  ;;  %v364_v48 = vadd.f32 %v5197_v2, %v224_v32  ;;  %v5022_v8 = vcombine.high %v737_v60, %v741_v0 }
  0x82   :  { %v366_v53 = vadd.f32 %v5197_v2, %v226_v35  ;;  %v487_v4 = vmax.f32 %v359_v37, 0.0  ;;  %v489_v7 = vmax.f32 %v361_v40, 0.0  ;;  %v223_v16 = vmul.f32 %v5284_v63, %v83_v45  ;;  %v87_v35 = vld [vmem:[%s8671_s0 + $0x200] sm:$0xff]  ;;  %v89_v37 = vld [vmem:[%s8671_s0 + $0x210] sm:$0xff] }
  0x83   :  { %8750 = vst [vmem:[#allocation6_spill] sm:$0xff] %v5884_v42  ;;  %8751 = vst [vmem:[#allocation7_spill] sm:$0xff] %v5889_v47  ;;  %v225_v17 = vmul.f32 %v5284_v63, %v85_v54  ;;  %v5023_v19 = vcombine.low %v738_v3, %v742_v12  ;;  %v5024_v21 = vcombine.high %v738_v3, %v742_v12  ;;  %v492_v62 = vmax.f32 %v364_v48, 0.0  ;;  %v94_v54 = vld [vmem:[%s8671_s0 + $0x238] sm:$0xff] }
  0x84   :  { %v494_v23 = vmax.f32 %v366_v53, 0.0  ;;  %v228_v26 = vmul.f32 %v5193_v1, %v88_v56  ;;  %v230_v27 = vmul.f32 %v5193_v1, %v90_v59  ;;  %2167 = vmatprep.subr.bf16.mxu0 %v5022_v8  ;;  %v5922_v28 = vpack.c.bf16 %v489_v7, %v487_v4  ;;  %v92_v53 = vld [vmem:[%s8671_s0 + $0x228] sm:$0xff] }
  0x85   :  { %1546 = vmatmul.mubr.bf16.gmra.mrb[32].mxu0 %v5718_v41  ;;  %1899 = vmatmul.mubr.bf16.gmra.mrb[32].mxu1 %v5718_v41  ;;  %v363_v30 = vadd.f32 %v5314_v15, %v223_v16  ;;  %v365_v32 = vadd.f32 %v5314_v15, %v225_v17  ;;  %v227_v56 = vmul.f32 %v5284_v63, %v87_v35  ;;  %v91_v17 = vld [vmem:[%s8671_s0 + $0x220] sm:$0xff] }
  0x86   :  { %1555 = vmatprep.mubr.bf16.mxu0 %v5722_v46  ;;  %1908 = vmatprep.mubr.bf16.mxu1 %v5722_v46  ;;  %8752 = vst [vmem:[#allocation8_spill] sm:$0xff] %v5922_v28  ;;  %v5932_v40 = vpack.c.bf16 %v494_v23, %v492_v62  ;;  %v368_v45 = vadd.f32 %v5197_v2, %v228_v26  ;;  %v96_v26 = vld [vmem:[%s8671_s0 + $0x248] sm:$0xff] }
  0x87   :  { %2520 = vmatprep.subr.bf16.mxu1 %v5024_v21  ;;  %2168 = vmatpush1.bf16.msra.mxu0 %v5021_v61  ;;  %v370_v48 = vadd.f32 %v5197_v2, %v230_v27  ;;  %v229_v59 = vmul.f32 %v5284_v63, %v89_v37  ;;  %v491_v60 = vmax.f32 %v363_v30, 0.0  ;;  %v493_v0 = vmax.f32 %v365_v32, 0.0  ;;  %v98_v27 = vld [vmem:[%s8671_s0 + $0x258] sm:$0xff] }
  0x88   :  { %2521 = vmatpush1.bf16.msra.mxu1 %v5023_v19  ;;  %8753 = vst [vmem:[#allocation9_spill] sm:$0xff] %v5932_v40  ;;  %v496_v3 = vmax.f32 %v368_v45, 0.0  ;;  %v232_v7 = vmul.f32 %v5193_v1, %v92_v53  ;;  %v234_v61 = vmul.f32 %v5193_v1, %v94_v54  ;;  %v367_v8 = vadd.f32 %v5314_v15, %v227_v56  ;;  %v93_v19 = vld [vmem:[%s8671_s0 + $0x230] sm:$0xff]  ;;  %v746_v53 = vld [vmem:[%s8670_s1 + $0x3d8] sm:$0xff] }
  0x89   :  { %v498_v4 = vmax.f32 %v370_v48, 0.0  ;;  %v369_v12 = vadd.f32 %v5314_v15, %v229_v59  ;;  %v5952_v16 = vpack.c.bf16 %v493_v0, %v491_v60  ;;  %v231_v35 = vmul.f32 %v5284_v63, %v91_v17  ;;  %v745_v45 = vld [vmem:[%s8670_s1 + $0x3d0] sm:$0xff]  ;;  %v750_v0 = vld [vmem:[%s8670_s1 + $0x3f8] sm:$0xff] }
  0x8a   :  { %v372_v62 = vadd.f32 %v5197_v2, %v232_v7  ;;  %v374_v23 = vadd.f32 %v5197_v2, %v234_v61  ;;  %v495_v30 = vmax.f32 %v367_v8, 0.0  ;;  %v233_v37 = vmul.f32 %v5284_v63, %v93_v19  ;;  %v749_v48 = vld [vmem:[%s8670_s1 + $0x3f0] sm:$0xff] }
  0x8b   :  { %8754 = vst [vmem:[#allocation10_spill] sm:$0xff] %v5952_v16  ;;  %v5960_v21 = vpack.c.bf16 %v498_v4, %v496_v3  ;;  %v497_v32 = vmax.f32 %v369_v12, 0.0  ;;  %v236_v54 = vmul.f32 %v5193_v1, %v96_v26  ;;  %v238_v56 = vmul.f32 %v5193_v1, %v98_v27  ;;  %v97_v27 = vld [vmem:[%s8671_s0 + $0x250] sm:$0xff] }
  0x8c   :  { %v5029_v59 = vcombine.low %v745_v45, %v749_v48  ;;  %v5030_v60 = vcombine.high %v745_v45, %v749_v48  ;;  %v500_v3 = vmax.f32 %v372_v62, 0.0  ;;  %v502_v4 = vmax.f32 %v374_v23, 0.0  ;;  %v95_v23 = vld [vmem:[%s8671_s0 + $0x240] sm:$0xff] }
  0x8d   :  { %1556 = vmatmul.mubr.bf16.gmra.mrb[36].mxu0 %v5758_v22  ;;  %1909 = vmatmul.mubr.bf16.gmra.mrb[36].mxu1 %v5758_v22  ;;  %8755 = vst [vmem:[#allocation11_spill] sm:$0xff] %v5960_v21  ;;  %v5031_v7 = vcombine.low %v746_v53, %v750_v0  ;;  %v5032_v61 = vcombine.high %v746_v53, %v750_v0 }
  0x8e   :  { %1565 = vmatprep.mubr.bf16.mxu0 %v5762_v24  ;;  %1918 = vmatprep.mubr.bf16.mxu1 %v5762_v24  ;;  %v5990_v8 = vpack.c.bf16 %v497_v32, %v495_v30  ;;  %v371_v12 = vadd.f32 %v5314_v15, %v231_v35  ;;  %v373_v17 = vadd.f32 %v5314_v15, %v233_v37  ;;  %v100_v30 = vld [vmem:[%s8671_s0 + $0x268] sm:$0xff]  ;;  %v102_v32 = vld [vmem:[%s8671_s0 + $0x278] sm:$0xff] }
  0x8f   :  { %2169 = vmatprep.subr.bf16.mxu0 %v5030_v60  ;;  %2522 = vmatprep.subr.bf16.mxu1 %v5032_v61  ;;  %v5994_v19 = vpack.c.bf16 %v502_v4, %v500_v3  ;;  %v376_v26 = vadd.f32 %v5197_v2, %v236_v54  ;;  %v378_v62 = vadd.f32 %v5197_v2, %v238_v56 }
  0x90   :  { %2170 = vmatpush1.bf16.msra.mxu0 %v5029_v59  ;;  %8756 = vst [vmem:[#allocation12_spill] sm:$0xff] %v5990_v8  ;;  %2523 = vmatpush1.bf16.msra.mxu1 %v5031_v7  ;;  %v499_v35 = vmax.f32 %v371_v12, 0.0  ;;  %v501_v37 = vmax.f32 %v373_v17, 0.0  ;;  %v235_v45 = vmul.f32 %v5284_v63, %v95_v23  ;;  %v237_v48 = vmul.f32 %v5284_v63, %v97_v27  ;;  %v99_v12 = vld [vmem:[%s8671_s0 + $0x260] sm:$0xff]  ;;  %v101_v17 = vld [vmem:[%s8671_s0 + $0x270] sm:$0xff] }
  0x91   :  { %8757 = vst [vmem:[#allocation13_spill] sm:$0xff] %v5994_v19  ;;  %v504_v53 = vmax.f32 %v376_v26, 0.0  ;;  %v506_v54 = vmax.f32 %v378_v62, 0.0  ;;  %v240_v56 = vmul.f32 %v5193_v1, %v100_v30  ;;  %v242_v59 = vmul.f32 %v5193_v1, %v102_v32  ;;  %v104_v26 = vld [vmem:[%s8671_s0 + $0x288] sm:$0xff]  ;;  %v106_v62 = vld [vmem:[%s8671_s0 + $0x298] sm:$0xff] }
  0x92   :  { %v6018_v60 = vpack.c.bf16 %v501_v37, %v499_v35  ;;  %v375_v0 = vadd.f32 %v5314_v15, %v235_v45  ;;  %v377_v3 = vadd.f32 %v5314_v15, %v237_v48  ;;  %v239_v30 = vmul.f32 %v5284_v63, %v99_v12  ;;  %v108_v12 = vld [vmem:[%s8671_s0 + $0x2a8] sm:$0xff] }
  0x93   :  { %v6022_v4 = vpack.c.bf16 %v506_v54, %v504_v53  ;;  %v380_v7 = vadd.f32 %v5197_v2, %v240_v56  ;;  %v382_v61 = vadd.f32 %v5197_v2, %v242_v59  ;;  %v241_v32 = vmul.f32 %v5284_v63, %v101_v17  ;;  %v110_v17 = vld [vmem:[%s8671_s0 + $0x2b8] sm:$0xff] }
  0x94   :  { %8758 = vst [vmem:[#allocation14_spill] sm:$0xff] %v6018_v60  ;;  %v503_v23 = vmax.f32 %v375_v0, 0.0  ;;  %v505_v27 = vmax.f32 %v377_v3, 0.0  ;;  %v244_v45 = vmul.f32 %v5193_v1, %v104_v26  ;;  %v246_v48 = vmul.f32 %v5193_v1, %v106_v62 }
  0x95   :  { %1566 = vmatmul.mubr.bf16.gmra.mrb[40].mxu0 %v5786_v50  ;;  %1919 = vmatmul.mubr.bf16.gmra.mrb[40].mxu1 %v5786_v50  ;;  %8759 = vst [vmem:[#allocation15_spill] sm:$0xff] %v6022_v4  ;;  %v508_v35 = vmax.f32 %v380_v7, 0.0  ;;  %v510_v37 = vmax.f32 %v382_v61, 0.0  ;;  %v379_v54 = vadd.f32 %v5314_v15, %v239_v30  ;;  %v381_v56 = vadd.f32 %v5314_v15, %v241_v32  ;;  %v103_v7 = vld [vmem:[%s8671_s0 + $0x280] sm:$0xff]  ;;  %v105_v61 = vld [vmem:[%s8671_s0 + $0x290] sm:$0xff] }
  0x96   :  { %1575 = vmatprep.mubr.bf16.mxu0 %v5790_v55  ;;  %1928 = vmatprep.mubr.bf16.mxu1 %v5790_v55  ;;  %v6046_v53 = vpack.c.bf16 %v505_v27, %v503_v23  ;;  %v384_v0 = vadd.f32 %v5197_v2, %v244_v45  ;;  %v386_v3 = vadd.f32 %v5197_v2, %v246_v48 }
  0x97   :  { %v6050_v59 = vpack.c.bf16 %v510_v37, %v508_v35  ;;  %v507_v26 = vmax.f32 %v379_v54, 0.0  ;;  %v509_v62 = vmax.f32 %v381_v56, 0.0  ;;  %v243_v23 = vmul.f32 %v5284_v63, %v103_v7 }
  0x98   :  { %8760 = vst [vmem:[#allocation16_spill] sm:$0xff] %v6046_v53  ;;  %v245_v27 = vmul.f32 %v5284_v63, %v105_v61  ;;  %v512_v30 = vmax.f32 %v384_v0, 0.0  ;;  %v514_v32 = vmax.f32 %v386_v3, 0.0  ;;  %v248_v35 = vmul.f32 %v5193_v1, %v108_v12  ;;  %v107_v0 = vld [vmem:[%s8671_s0 + $0x2a0] sm:$0xff]  ;;  %v109_v3 = vld [vmem:[%s8671_s0 + $0x2b0] sm:$0xff]  ;;  %v112_v12 = vld [vmem:[%s8671_s0 + $0x2c8] sm:$0xff] }
  0x99   :  { %8761 = vst [vmem:[#allocation17_spill] sm:$0xff] %v6050_v59  ;;  %v250_v37 = vmul.f32 %v5193_v1, %v110_v17  ;;  %v6074_v45 = vpack.c.bf16 %v509_v62, %v507_v26  ;;  %v383_v48 = vadd.f32 %v5314_v15, %v243_v23  ;;  %v114_v17 = vld [vmem:[%s8671_s0 + $0x2d8] sm:$0xff]  ;;  %v247_v23 = vmul.f32 %v5284_v63, %v107_v0 }
  0x9a   :  { %v385_v54 = vadd.f32 %v5314_v15, %v245_v27  ;;  %v6078_v56 = vpack.c.bf16 %v514_v32, %v512_v30  ;;  %v388_v7 = vadd.f32 %v5197_v2, %v248_v35  ;;  %v249_v27 = vmul.f32 %v5284_v63, %v109_v3 }
  0x9b   :  { %8762 = vst [vmem:[#allocation18_spill] sm:$0xff] %v6074_v45  ;;  %v390_v61 = vadd.f32 %v5197_v2, %v250_v37  ;;  %v511_v26 = vmax.f32 %v383_v48, 0.0  ;;  %v252_v35 = vmul.f32 %v5193_v1, %v112_v12  ;;  %v254_v37 = vmul.f32 %v5193_v1, %v114_v17  ;;  %v116_v12 = vld [vmem:[%s8671_s0 + $0x2e8] sm:$0xff]  ;;  %v118_v17 = vld [vmem:[%s8671_s0 + $0x2f8] sm:$0xff] }
  0x9c   :  { %8763 = vst [vmem:[#allocation19_spill] sm:$0xff] %v6078_v56  ;;  %v513_v62 = vmax.f32 %v385_v54, 0.0  ;;  %v516_v30 = vmax.f32 %v388_v7, 0.0  ;;  %v387_v48 = vadd.f32 %v5314_v15, %v247_v23  ;;  %v389_v54 = vadd.f32 %v5314_v15, %v249_v27  ;;  %v111_v7 = vld [vmem:[%s8671_s0 + $0x2c0] sm:$0xff] }
  0x9d   :  { %1576 = vmatmul.mubr.bf16.gmra.mrb[44].mxu0 %v5826_v31  ;;  %1929 = vmatmul.mubr.bf16.gmra.mrb[44].mxu1 %v5826_v31  ;;  %v518_v32 = vmax.f32 %v390_v61, 0.0  ;;  %v392_v3 = vadd.f32 %v5197_v2, %v252_v35  ;;  %v113_v61 = vld [vmem:[%s8671_s0 + $0x2d0] sm:$0xff]  ;;  %v251_v23 = vmul.f32 %v5284_v63, %v111_v7  ;;  %v256_v35 = vmul.f32 %v5193_v1, %v116_v12  ;;  %v120_v12 = vld [vmem:[%s8671_s0 + $0x308] sm:$0xff] }
  0x9e   :  { %1585 = vmatprep.mubr.bf16.mxu0 %v5830_v36  ;;  %1938 = vmatprep.mubr.bf16.mxu1 %v5830_v36  ;;  %v253_v27 = vmul.f32 %v5284_v63, %v113_v61 }
  0x9f   :  { %v6106_v0 = vpack.c.bf16 %v518_v32, %v516_v30  ;;  %v520_v30 = vmax.f32 %v392_v3, 0.0  ;;  %v396_v61 = vadd.f32 %v5197_v2, %v256_v35  ;;  %v117_v3 = vld [vmem:[%s8671_s0 + $0x2f0] sm:$0xff]  ;;  %v260_v35 = vmul.f32 %v5193_v1, %v120_v12  ;;  %v124_v12 = vld [vmem:[%s8671_s0 + $0x328] sm:$0xff] }
  0xa1   :  { %8765 = vst [vmem:[#allocation21_spill] sm:$0xff] %v6106_v0 }
  0xa5   :  { %1586 = vmatmul.mubr.bf16.gmra.mrb[48].mxu0 %v5854_v5  ;;  %1939 = vmatmul.mubr.bf16.gmra.mrb[48].mxu1 %v5854_v5 }
  0xa6   :  { %1595 = vmatprep.mubr.bf16.mxu0 %v5864_v13  ;;  %1948 = vmatprep.mubr.bf16.mxu1 %v5864_v13 }
  0xad   :  { %1596 = vmatmul.mubr.bf16.gmra.mrb[52].mxu0 %v5884_v42  ;;  %1949 = vmatmul.mubr.bf16.gmra.mrb[52].mxu1 %v5884_v42 }
  0xae   :  { %1605 = vmatprep.mubr.bf16.mxu0 %v5889_v47  ;;  %1958 = vmatprep.mubr.bf16.mxu1 %v5889_v47 }
  0xb5   :  { %1606 = vmatmul.mubr.bf16.gmra.mrb[56].mxu0 %v5922_v28  ;;  %1959 = vmatmul.mubr.bf16.gmra.mrb[56].mxu1 %v5922_v28  ;;  %v767_v28 = vsub.s32 3, %v5146_v43 }
  0xb6   :  { %1615 = vmatprep.mubr.bf16.mxu0 %v5932_v40  ;;  %1968 = vmatprep.mubr.bf16.mxu1 %v5932_v40 }
  0xbd   :  { %1616 = vmatmul.mubr.bf16.gmra.mrb[60].mxu0 %v5952_v16  ;;  %1969 = vmatmul.mubr.bf16.gmra.mrb[60].mxu1 %v5952_v16 }
  0xbe   :  { %1625 = vmatprep.mubr.bf16.mxu0 %v5960_v21  ;;  %1978 = vmatprep.mubr.bf16.mxu1 %v5960_v21 }
  0xc5   :  { %1626 = vmatmul.mubr.bf16.gmra.mrb[64].mxu0 %v5990_v8  ;;  %1979 = vmatmul.mubr.bf16.gmra.mrb[64].mxu1 %v5990_v8 }
  0xc6   :  { %1635 = vmatprep.mubr.bf16.mxu0 %v5994_v19  ;;  %1988 = vmatprep.mubr.bf16.mxu1 %v5994_v19 }
  0xcd   :  { %1636 = vmatmul.mubr.bf16.gmra.mrb[68].mxu0 %v6018_v60  ;;  %1989 = vmatmul.mubr.bf16.gmra.mrb[68].mxu1 %v6018_v60 }
  0xce   :  { %1645 = vmatprep.mubr.bf16.mxu0 %v6022_v4  ;;  %1998 = vmatprep.mubr.bf16.mxu1 %v6022_v4 }
  0xd5   :  { %1646 = vmatmul.mubr.bf16.gmra.mrb[72].mxu0 %v6046_v53  ;;  %1999 = vmatmul.mubr.bf16.gmra.mrb[72].mxu1 %v6046_v53 }
  0xd6   :  { %1655 = vmatprep.mubr.bf16.mxu0 %v6050_v59  ;;  %2008 = vmatprep.mubr.bf16.mxu1 %v6050_v59  ;;  %v6102_v59 = vpack.c.bf16 %v513_v62, %v511_v26  ;;  %v515_v26 = vmax.f32 %v387_v48, 0.0  ;;  %v517_v62 = vmax.f32 %v389_v54, 0.0  ;;  %v391_v48 = vadd.f32 %v5314_v15, %v251_v23 }
  0xd7   :  { %v393_v54 = vadd.f32 %v5314_v15, %v253_v27  ;;  %v257_v27 = vmul.f32 %v5284_v63, %v117_v3  ;;  %v400_v3 = vadd.f32 %v5197_v2, %v260_v35  ;;  %v264_v35 = vmul.f32 %v5193_v1, %v124_v12 }
  0xd8   :  { %8764 = vst [vmem:[#allocation20_spill] sm:$0xff] %v6102_v59 }
  0xdd   :  { %1656 = vmatmul.mubr.bf16.gmra.mrb[76].mxu0 %v6074_v45  ;;  %2009 = vmatmul.mubr.bf16.gmra.mrb[76].mxu1 %v6074_v45  ;;  %v394_v45 = vadd.f32 %v5197_v2, %v254_v37  ;;  %v258_v37 = vmul.f32 %v5193_v1, %v118_v17  ;;  %v122_v17 = vld [vmem:[%s8671_s0 + $0x318] sm:$0xff] }
  0xde   :  { %1665 = vmatprep.mubr.bf16.mxu0 %v6078_v56  ;;  %2018 = vmatprep.mubr.bf16.mxu1 %v6078_v56  ;;  %v6130_v56 = vpack.c.bf16 %v517_v62, %v515_v26  ;;  %v519_v26 = vmax.f32 %v391_v48, 0.0  ;;  %v521_v62 = vmax.f32 %v393_v54, 0.0  ;;  %v397_v54 = vadd.f32 %v5314_v15, %v257_v27 }
  0xdf   :  { %v522_v32 = vmax.f32 %v394_v45, 0.0  ;;  %v115_v45 = vld [vmem:[%s8671_s0 + $0x2e0] sm:$0xff] }
  0xe0   :  { %8766 = vst [vmem:[#allocation22_spill] sm:$0xff] %v6130_v56  ;;  %v255_v23 = vmul.f32 %v5284_v63, %v115_v45 }
  0xe1   :  { %v6134_v7 = vpack.c.bf16 %v522_v32, %v520_v30  ;;  %v524_v30 = vmax.f32 %v396_v61, 0.0  ;;  %v121_v61 = vld [vmem:[%s8671_s0 + $0x310] sm:$0xff] }
  0xe2   :  { %v395_v48 = vadd.f32 %v5314_v15, %v255_v23  ;;  %v261_v27 = vmul.f32 %v5284_v63, %v121_v61  ;;  %v404_v61 = vadd.f32 %v5197_v2, %v264_v35 }
  0xe3   :  { %8767 = vst [vmem:[#allocation23_spill] sm:$0xff] %v6134_v7 }
  0xe5   :  { %1666 = vmatmul.mubr.bf16.gmra.mrb[80].mxu0 %v6102_v59  ;;  %2019 = vmatmul.mubr.bf16.gmra.mrb[80].mxu1 %v6102_v59  ;;  %v398_v59 = vadd.f32 %v5197_v2, %v258_v37  ;;  %v262_v37 = vmul.f32 %v5193_v1, %v122_v17  ;;  %v126_v17 = vld [vmem:[%s8671_s0 + $0x338] sm:$0xff] }
  0xe6   :  { %1675 = vmatprep.mubr.bf16.mxu0 %v6106_v0  ;;  %2028 = vmatprep.mubr.bf16.mxu1 %v6106_v0  ;;  %v6158_v0 = vpack.c.bf16 %v521_v62, %v519_v26  ;;  %v523_v26 = vmax.f32 %v395_v48, 0.0  ;;  %v525_v62 = vmax.f32 %v397_v54, 0.0  ;;  %v401_v54 = vadd.f32 %v5314_v15, %v261_v27 }
  0xe7   :  { %v526_v32 = vmax.f32 %v398_v59, 0.0  ;;  %v119_v59 = vld [vmem:[%s8671_s0 + $0x300] sm:$0xff] }
  0xe8   :  { %8768 = vst [vmem:[#allocation24_spill] sm:$0xff] %v6158_v0  ;;  %v259_v23 = vmul.f32 %v5284_v63, %v119_v59  ;;  %v123_v59 = vld [vmem:[%s8671_s0 + $0x320] sm:$0xff] }
  0xe9   :  { %v6162_v45 = vpack.c.bf16 %v526_v32, %v524_v30  ;;  %v528_v30 = vmax.f32 %v400_v3, 0.0 }
  0xea   :  { %v399_v48 = vadd.f32 %v5314_v15, %v259_v23 }
  0xeb   :  { %8769 = vst [vmem:[#allocation25_spill] sm:$0xff] %v6162_v45 }
  0xec   :  { %v527_v27 = vmax.f32 %v399_v48, 0.0 }
  0xed   :  { %1676 = vmatmul.mubr.bf16.gmra.mrb[84].mxu0 %v6130_v56  ;;  %2029 = vmatmul.mubr.bf16.gmra.mrb[84].mxu1 %v6130_v56  ;;  %v402_v56 = vadd.f32 %v5197_v2, %v262_v37  ;;  %v266_v37 = vmul.f32 %v5193_v1, %v126_v17  ;;  %v128_v17 = vld [vmem:[%s8671_s0 + $0x348] sm:$0xff] }
  0xee   :  { %1685 = vmatprep.mubr.bf16.mxu0 %v6134_v7  ;;  %2038 = vmatprep.mubr.bf16.mxu1 %v6134_v7  ;;  %v6186_v7 = vpack.c.bf16 %v525_v62, %v523_v26  ;;  %v130_v26 = vld [vmem:[%s8671_s0 + $0x358] sm:$0xff]  ;;  %v263_v62 = vmul.f32 %v5284_v63, %v123_v59 }
  0xef   :  { %v530_v32 = vmax.f32 %v402_v56, 0.0  ;;  %v125_v56 = vld [vmem:[%s8671_s0 + $0x330] sm:$0xff]  ;;  %v406_v12 = vadd.f32 %v5197_v2, %v266_v37  ;;  %v270_v35 = vmul.f32 %v5193_v1, %v130_v26  ;;  %v127_v37 = vld [vmem:[%s8671_s0 + $0x340] sm:$0xff] }
  0xf0   :  { %8770 = vst [vmem:[#allocation26_spill] sm:$0xff] %v6186_v7  ;;  %v265_v23 = vmul.f32 %v5284_v63, %v125_v56  ;;  %v129_v56 = vld [vmem:[%s8671_s0 + $0x350] sm:$0xff]  ;;  %v403_v48 = vadd.f32 %v5314_v15, %v263_v62  ;;  %v134_v62 = vld [vmem:[%s8671_s0 + $0x378] sm:$0xff] }
  0xf1   :  { %v6196_v3 = vpack.c.bf16 %v530_v32, %v528_v30  ;;  %v529_v30 = vmax.f32 %v401_v54, 0.0  ;;  %v268_v32 = vmul.f32 %v5193_v1, %v128_v17  ;;  %v534_v59 = vmax.f32 %v406_v12, 0.0 }
  0xf2   :  { %v405_v54 = vadd.f32 %v5314_v15, %v265_v23  ;;  %v267_v17 = vmul.f32 %v5284_v63, %v127_v37  ;;  %v531_v23 = vmax.f32 %v403_v48, 0.0  ;;  %v133_v48 = vld [vmem:[%s8671_s0 + $0x370] sm:$0xff] }
  0xf3   :  { %8771 = vst [vmem:[#allocation27_spill] sm:$0xff] %v6196_v3  ;;  %v6223_v26 = vpack.c.bf16 %v529_v30, %v527_v27  ;;  %v273_v19 = vmul.f32 %v5284_v63, %v133_v48  ;;  %v763_v48 = vsub.s32 2, %v5146_v43 }
  0xf4   :  { %v533_v37 = vmax.f32 %v405_v54, 0.0  ;;  %v407_v27 = vadd.f32 %v5314_v15, %v267_v17 }
  0xf5   :  { %1686 = vmatmul.mubr.bf16.gmra.mrb[88].mxu0 %v6158_v0  ;;  %2039 = vmatmul.mubr.bf16.gmra.mrb[88].mxu1 %v6158_v0  ;;  %8772 = vst [vmem:[#allocation28_spill] sm:$0xff] %v6223_v26  ;;  %v410_v0 = vadd.f32 %v5197_v2, %v270_v35 }
  0xf6   :  { %1695 = vmatprep.mubr.bf16.mxu0 %v6162_v45  ;;  %2048 = vmatprep.mubr.bf16.mxu1 %v6162_v45  ;;  %v532_v45 = vmax.f32 %v404_v61, 0.0  ;;  %v269_v61 = vmul.f32 %v5284_v63, %v129_v56  ;;  %v131_v56 = vld [vmem:[%s8671_s0 + $0x360] sm:$0xff]  ;;  %v6259_v54 = vpack.c.bf16 %v533_v37, %v531_v23  ;;  %v535_v17 = vmax.f32 %v407_v27, 0.0  ;;  %v141_v27 = vld [vmem:[%s8671_s0 + $0x3b0] sm:$0xff] }
  0xf7   :  { %v271_v23 = vmul.f32 %v5284_v63, %v131_v56  ;;  %v139_v37 = vld [vmem:[%s8671_s0 + $0x3a0] sm:$0xff]  ;;  %v281_v16 = vmul.f32 %v5284_v63, %v141_v27 }
  0xf8   :  { %v6228_v12 = vpack.c.bf16 %v534_v59, %v532_v45  ;;  %v409_v35 = vadd.f32 %v5314_v15, %v269_v61  ;;  %v274_v59 = vmul.f32 %v5193_v1, %v134_v62  ;;  %8774 = vst [vmem:[#allocation30_spill] sm:$0xff] %v6259_v54  ;;  %v137_v61 = vld [vmem:[%s8671_s0 + $0x390] sm:$0xff]  ;;  %v140_v62 = vld [vmem:[%s8671_s0 + $0x3a8] sm:$0xff]  ;;  %v279_v21 = vmul.f32 %v5284_v63, %v139_v37 }
  0xf9   :  { %v280_v56 = vmul.f32 %v5193_v1, %v140_v62  ;;  %v143_v62 = vld [vmem:[%s8671_s0 + $0x3c0] sm:$0xff] }
  0xfa   :  { %8773 = vst [vmem:[#allocation29_spill] sm:$0xff] %v6228_v12  ;;  %v537_v53 = vmax.f32 %v409_v35, 0.0  ;;  %v414_v60 = vadd.f32 %v5197_v2, %v274_v59 }
  0xfc   :  { %v6291_v59 = vpack.c.bf16 %v537_v53, %v535_v17  ;;  %v413_v53 = vadd.f32 %v5314_v15, %v273_v19  ;;  %v420_v19 = vadd.f32 %v5197_v2, %v280_v56 }
  0xfd   :  { %1696 = vmatmul.mubr.bf16.gmra.mrb[92].mxu0 %v6186_v7  ;;  %2049 = vmatmul.mubr.bf16.gmra.mrb[92].mxu1 %v6186_v7  ;;  %v408_v7 = vadd.f32 %v5197_v2, %v268_v32  ;;  %v538_v32 = vmax.f32 %v410_v0, 0.0  ;;  %v136_v0 = vld [vmem:[%s8671_s0 + $0x388] sm:$0xff] }
  0xfe   :  { %1705 = vmatprep.mubr.bf16.mxu0 %v6196_v3  ;;  %2058 = vmatprep.mubr.bf16.mxu1 %v6196_v3  ;;  %v132_v3 = vld [vmem:[%s8671_s0 + $0x368] sm:$0xff]  ;;  %8776 = vst [vmem:[#allocation32_spill] sm:$0xff] %v6291_v59  ;;  %v548_v13 = vmax.f32 %v420_v19, 0.0 }
  0xff   :  { %v536_v30 = vmax.f32 %v408_v7, 0.0  ;;  %v272_v45 = vmul.f32 %v5193_v1, %v132_v3  ;;  %v138_v7 = vld [vmem:[%s8671_s0 + $0x398] sm:$0xff]  ;;  %v135_v3 = vld [vmem:[%s8671_s0 + $0x380] sm:$0xff] }
 0x100   :  { %v275_v35 = vmul.f32 %v5284_v63, %v135_v3  ;;  %v144_v3 = vld [vmem:[%s8671_s0 + $0x3c8] sm:$0xff] }
 0x101   :  { %v412_v4 = vadd.f32 %v5197_v2, %v272_v45  ;;  %v277_v45 = vmul.f32 %v5284_v63, %v137_v61  ;;  %v542_v61 = vmax.f32 %v414_v60, 0.0 }
 0x102   :  { %v415_v37 = vadd.f32 %v5314_v15, %v275_v35 }
 0x103   :  { %v417_v60 = vadd.f32 %v5314_v15, %v277_v45  ;;  %v751_v45 = vld [vmem:[%s8674_s2] sm:$0xff] }
 0x104   :  { %v543_v42 = vmax.f32 %v415_v37, 0.0 }
 0x105   :  { %1706 = vmatmul.mubr.bf16.gmra.mrb[96].mxu0 %v6223_v26  ;;  %2059 = vmatmul.mubr.bf16.gmra.mrb[96].mxu1 %v6223_v26  ;;  %v6270_v26 = vpack.c.bf16 %v538_v32, %v536_v30  ;;  %v276_v30 = vmul.f32 %v5193_v1, %v136_v0  ;;  %v278_v32 = vmul.f32 %v5193_v1, %v138_v7  ;;  %v540_v0 = vmax.f32 %v412_v4, 0.0 }
 0x106   :  { %1715 = vmatprep.mubr.bf16.mxu0 %v6228_v12  ;;  %2068 = vmatprep.mubr.bf16.mxu1 %v6228_v12  ;;  %v142_v12 = vld [vmem:[%s8671_s0 + $0x3b8] sm:$0xff]  ;;  %v411_v7 = vadd.f32 %v5314_v15, %v271_v23  ;;  %v145_v23 = vld [vmem:[%s8671_s0 + $0x3d0] sm:$0xff] }
 0x107   :  { %8775 = vst [vmem:[#allocation31_spill] sm:$0xff] %v6270_v26  ;;  %v282_v8 = vmul.f32 %v5193_v1, %v142_v12  ;;  %v146_v12 = vld [vmem:[%s8671_s0 + $0x3d8] sm:$0xff]  ;;  %v416_v17 = vadd.f32 %v5197_v2, %v276_v30  ;;  %v418_v4 = vadd.f32 %v5197_v2, %v278_v32  ;;  %v419_v30 = vadd.f32 %v5314_v15, %v279_v21 }
 0x108   :  { %v421_v32 = vadd.f32 %v5314_v15, %v281_v16  ;;  %v286_v40 = vmul.f32 %v5193_v1, %v146_v12  ;;  %v539_v47 = vmax.f32 %v411_v7, 0.0  ;;  %v285_v35 = vmul.f32 %v5284_v63, %v145_v23  ;;  %v148_v7 = vld [vmem:[%s8671_s0 + $0x3e8] sm:$0xff] }
 0x109   :  { %v422_v27 = vadd.f32 %v5197_v2, %v282_v8  ;;  %v6327_v8 = vpack.c.bf16 %v542_v61, %v540_v0  ;;  %v541_v21 = vmax.f32 %v413_v53, 0.0  ;;  %v544_v56 = vmax.f32 %v416_v17, 0.0  ;;  %v150_v0 = vld [vmem:[%s8671_s0 + $0x3f8] sm:$0xff] }
 0x10a   :  { %v546_v16 = vmax.f32 %v418_v4, 0.0  ;;  %v549_v43 = vmax.f32 %v421_v32, 0.0  ;;  %v6336_v5 = vadd.f32 %v5197_v2, %v286_v40  ;;  %v6343_v61 = vrot.slane %v751_v45, %v5268_v51 }
 0x10b   :  { %8777 = vst [vmem:[#allocation33_spill] sm:$0xff] %v6327_v8  ;;  %v550_v12 = vmax.f32 %v422_v27, 0.0  ;;  %v6345_v53 = vrot.slane %v751_v45, %v763_v48  ;;  %v6355_v40 = vrot.slane %v751_v45, %v5161_v52  ;;  %v6357_v4 = vrot.slane %v751_v45, %v767_v28  ;;  %v147_v48 = vld [vmem:[%s8671_s0 + $0x3e0] sm:$0xff]  ;;  %v149_v28 = vld [vmem:[%s8671_s0 + $0x3f0] sm:$0xff] }
 0x10c   :  { %v288_v51 = vmul.f32 %v5193_v1, %v148_v7  ;;  %v6367_v37 = vpack.c.bf16 %v546_v16, %v544_v56  ;;  %v290_v52 = vmul.f32 %v5193_v1, %v150_v0  ;;  %v287_v56 = vmul.f32 %v5284_v63, %v147_v48 }
 0x10d   :  { %1716 = vmatmul.mubr.bf16.gmra.mrb[100].mxu0 %v6259_v54  ;;  %2069 = vmatmul.mubr.bf16.gmra.mrb[100].mxu1 %v6259_v54  ;;  %v284_v54 = vmul.f32 %v5193_v1, %v144_v3  ;;  %v545_v3 = vmax.f32 %v417_v60, 0.0  ;;  %v6375_v27 = vpack.c.bf16 %v550_v12, %v548_v13 }
 0x10e   :  { %1725 = vmatprep.mubr.bf16.mxu0 %v6270_v26  ;;  %2078 = vmatprep.mubr.bf16.mxu1 %v6270_v26  ;;  %v283_v26 = vmul.f32 %v5284_v63, %v143_v62  ;;  %v547_v62 = vmax.f32 %v419_v30, 0.0  ;;  %v6388_v12 = vadd.f32 %v5197_v2, %v288_v51  ;;  %v6433_v36 = vadd.f32 %v5314_v15, %v287_v56 }
 0x10f   :  { %v6333_v23 = vadd.f32 %v5197_v2, %v284_v54  ;;  %v6351_v54 = vadd.f32 %v5314_v15, %v285_v35  ;;  %v6369_v60 = vpack.c.bf16 %v545_v3, %v543_v42  ;;  %8779 = vst [vmem:[#allocation35_spill] sm:$0xff] %v6375_v27 }
 0x110   :  { %v6348_v17 = vadd.f32 %v5314_v15, %v283_v26  ;;  %v6365_v26 = vpack.c.bf16 %v541_v21, %v539_v47  ;;  %v6377_v30 = vpack.c.bf16 %v549_v43, %v547_v62  ;;  %v554_v47 = vmax.f32 %v6336_v5, 0.0 }
 0x111   :  { %v552_v32 = vmax.f32 %v6333_v23, 0.0  ;;  %v553_v1 = vmax.f32 %v6351_v54, 0.0  ;;  %v289_v5 = vmul.f32 %v5284_v63, %v149_v28  ;;  %v6397_v54 = vadd.f32 %v5197_v2, %v290_v52 }
 0x112   :  { %8778 = vst [vmem:[#allocation34_spill] sm:$0xff] %v6365_v26  ;;  %v551_v21 = vmax.f32 %v6348_v17, 0.0 }
 0x115   :  { %1726 = vmatmul.mubr.bf16.gmra.mrb[104].mxu0 %v6291_v59  ;;  %2079 = vmatmul.mubr.bf16.gmra.mrb[104].mxu1 %v6291_v59  ;;  %v6427_v59 = vpack.c.bf16 %v554_v47, %v552_v32 }
 0x116   :  { %1735 = vmatprep.mubr.bf16.mxu0 %v6327_v8  ;;  %2088 = vmatprep.mubr.bf16.mxu1 %v6327_v8 }
 0x118   :  { %v1467_v19 = vpop.f32.mrb[0].mxu0  ;;  %v1820_v45 = vpop.f32.mrb[0].mxu1 }
 0x119   :  { %v1468_v35 = vadd.f32 %v1467_v19, %v6343_v61  ;;  %v1469_v42 = vpop.f32.mrb[1].mxu0  ;;  %v1821_v16 = vadd.f32 %v1820_v45, %v6345_v53  ;;  %v1822_v43 = vpop.f32.mrb[1].mxu1 }
 0x11a   :  { %v1470_v13 = vadd.f32 %v1469_v42, %v6355_v40  ;;  %v1471_v3 = vpop.f32.mrb[2].mxu0  ;;  %v1823_v62 = vadd.f32 %v1822_v43, %v6357_v4  ;;  %v1824_v0 = vpop.f32.mrb[2].mxu1 }
 0x11b   :  { %2845 = vst [vmem:[%s8675_s5] sm:$0xff] %v1468_v35  ;;  %v3869_v7 = vmul.f32 %v1468_v35, %v1468_v35  ;;  %v1472_v23 = vadd.f32 %v1471_v3, %v6343_v61  ;;  %v1473_v17 = vpop.f32.mrb[3].mxu0  ;;  %2847 = vst [vmem:[%s8675_s5 + $0x10] sm:$0xff] %v1821_v16  ;;  %v3871_v51 = vmul.f32 %v1821_v16, %v1821_v16  ;;  %v1826_v19 = vpop.f32.mrb[3].mxu1 }
 0x11c   :  { %2846 = vst [vmem:[%s8675_s5 + $0x8] sm:$0xff] %v1470_v13  ;;  %v3870_v63 = vmul.f32 %v1470_v13, %v1470_v13  ;;  %v1825_v48 = vadd.f32 %v1824_v0, %v6345_v53  ;;  %v1474_v28 = vadd.f32 %v1473_v17, %v6355_v40  ;;  %2848 = vst [vmem:[%s8675_s5 + $0x18] sm:$0xff] %v1823_v62 }
 0x11d   :  { %v3872_v2 = vmul.f32 %v1823_v62, %v1823_v62  ;;  %2853 = vst [vmem:[%s8675_s5 + $0x40] sm:$0xff] %v1472_v23  ;;  %v3357_v52 = vadd.f32 %v1472_v23, %v1468_v35  ;;  %v3877_v45 = vmul.f32 %v1472_v23, %v1472_v23  ;;  %v1827_v42 = vadd.f32 %v1826_v19, %v6357_v4 }
 0x11e   :  { %1736 = vmatmul.mubr.bf16.gmra.mrb[108].mxu0 %v6365_v26  ;;  %2855 = vst [vmem:[%s8675_s5 + $0x50] sm:$0xff] %v1825_v48  ;;  %v3359_v43 = vadd.f32 %v1825_v48, %v1821_v16  ;;  %v3879_v3 = vmul.f32 %v1825_v48, %v1825_v48  ;;  %2854 = vst [vmem:[%s8675_s5 + $0x48] sm:$0xff] %v1474_v28  ;;  %v3358_v0 = vadd.f32 %v1474_v28, %v1470_v13 }
 0x11f   :  { %v3878_v17 = vmul.f32 %v1474_v28, %v1474_v28  ;;  %2089 = vmatmul.mubr.bf16.gmra.mrb[108].mxu1 %v6365_v26  ;;  %v4381_v35 = vadd.f32 %v3877_v45, %v3869_v7  ;;  %2856 = vst [vmem:[%s8675_s5 + $0x58] sm:$0xff] %v1827_v42  ;;  %v3360_v23 = vadd.f32 %v1827_v42, %v1823_v62 }
 0x120   :  { %v3880_v19 = vmul.f32 %v1827_v42, %v1827_v42  ;;  %1745 = vmatprep.mubr.bf16.mxu0 %v6367_v37  ;;  %2098 = vmatprep.mubr.bf16.mxu1 %v6367_v37  ;;  %v4383_v16 = vadd.f32 %v3879_v3, %v3871_v51  ;;  %v1477_v8 = vpop.f32.mrb[4].mxu0  ;;  %v6429_v13 = vpack.c.bf16 %v553_v1, %v551_v21  ;;  %v1830_v45 = vpop.f32.mrb[4].mxu1 }
 0x121   :  { %v4382_v48 = vadd.f32 %v3878_v17, %v3870_v63  ;;  %v1478_v7 = vadd.f32 %v1477_v8, %v6343_v61  ;;  %v1479_v26 = vpop.f32.mrb[5].mxu0  ;;  %v6436_v62 = vadd.f32 %v5314_v15, %v289_v5  ;;  %v1831_v42 = vadd.f32 %v1830_v45, %v6345_v53  ;;  %v1832_v63 = vpop.f32.mrb[5].mxu1 }
 0x122   :  { %v4384_v28 = vadd.f32 %v3880_v19, %v3872_v2  ;;  %v1480_v51 = vadd.f32 %v1479_v26, %v6355_v40  ;;  %v1481_v32 = vpop.f32.mrb[6].mxu0  ;;  %v1833_v56 = vadd.f32 %v1832_v63, %v6357_v4  ;;  %v1834_v5 = vpop.f32.mrb[6].mxu1 }
 0x123   :  { %2861 = vst [vmem:[%s8675_s5 + $0x80] sm:$0xff] %v1478_v7  ;;  %v3365_v8 = vadd.f32 %v3357_v52, %v1478_v7  ;;  %v3885_v1 = vmul.f32 %v1478_v7, %v1478_v7  ;;  %v1482_v15 = vadd.f32 %v1481_v32, %v6343_v61  ;;  %v1483_v2 = vpop.f32.mrb[7].mxu0  ;;  %2863 = vst [vmem:[%s8675_s5 + $0x90] sm:$0xff] %v1831_v42  ;;  %v1836_v52 = vpop.f32.mrb[7].mxu1 }
 0x124   :  { %v3367_v26 = vadd.f32 %v3359_v43, %v1831_v42  ;;  %v3887_v3 = vmul.f32 %v1831_v42, %v1831_v42  ;;  %2862 = vst [vmem:[%s8675_s5 + $0x88] sm:$0xff] %v1480_v51  ;;  %v3366_v17 = vadd.f32 %v3358_v0, %v1480_v51  ;;  %v3886_v19 = vmul.f32 %v1480_v51, %v1480_v51 }
 0x125   :  { %v4389_v7 = vadd.f32 %v4381_v35, %v3885_v1  ;;  %2864 = vst [vmem:[%s8675_s5 + $0x98] sm:$0xff] %v1833_v56  ;;  %v3368_v45 = vadd.f32 %v3360_v23, %v1833_v56  ;;  %v3888_v63 = vmul.f32 %v1833_v56, %v1833_v56  ;;  %2869 = vst [vmem:[%s8675_s5 + $0xc0] sm:$0xff] %v1482_v15 }
 0x126   :  { %v3373_v43 = vadd.f32 %v3365_v8, %v1482_v15  ;;  %1746 = vmatmul.mubr.bf16.gmra.mrb[112].mxu0 %v6369_v60  ;;  %v4391_v42 = vadd.f32 %v4383_v16, %v3887_v3  ;;  %v4390_v32 = vadd.f32 %v4382_v48, %v3886_v19  ;;  %v3893_v21 = vmul.f32 %v1482_v15, %v1482_v15 }
 0x127   :  { %v1835_v0 = vadd.f32 %v1834_v5, %v6345_v53  ;;  %2099 = vmatmul.mubr.bf16.gmra.mrb[112].mxu1 %v6369_v60  ;;  %v4392_v35 = vadd.f32 %v4384_v28, %v3888_v63  ;;  %v1484_v51 = vadd.f32 %v1483_v2, %v6355_v40  ;;  %v1837_v23 = vadd.f32 %v1836_v52, %v6357_v4 }
 0x128   :  { %1755 = vmatprep.mubr.bf16.mxu0 %v6375_v27  ;;  %2108 = vmatprep.mubr.bf16.mxu1 %v6375_v27  ;;  %v555_v8 = vmax.f32 %v6433_v36, 0.0  ;;  %v4397_v1 = vadd.f32 %v4389_v7, %v3893_v21  ;;  %v1487_v56 = vpop.f32.mrb[8].mxu0  ;;  %v557_v28 = vmax.f32 %v6436_v62, 0.0  ;;  %v1840_v2 = vpop.f32.mrb[8].mxu1 }
 0x129   :  { %2871 = vst [vmem:[%s8675_s5 + $0xd0] sm:$0xff] %v1835_v0  ;;  %v3375_v16 = vadd.f32 %v3367_v26, %v1835_v0  ;;  %v3895_v48 = vmul.f32 %v1835_v0, %v1835_v0  ;;  %2870 = vst [vmem:[%s8675_s5 + $0xc8] sm:$0xff] %v1484_v51  ;;  %v3374_v15 = vadd.f32 %v3366_v17, %v1484_v51  ;;  %v1489_v3 = vpop.f32.mrb[9].mxu0  ;;  %v1842_v7 = vpop.f32.mrb[9].mxu1 }
 0x12a   :  { %v3894_v5 = vmul.f32 %v1484_v51, %v1484_v51  ;;  %2872 = vst [vmem:[%s8675_s5 + $0xd8] sm:$0xff] %v1837_v23  ;;  %v3376_v36 = vadd.f32 %v3368_v45, %v1837_v23  ;;  %v3896_v21 = vmul.f32 %v1837_v23, %v1837_v23  ;;  %v1488_v26 = vadd.f32 %v1487_v56, %v6343_v61  ;;  %v1491_v63 = vpop.f32.mrb[10].mxu0  ;;  %v1844_v27 = vpop.f32.mrb[10].mxu1 }
 0x12b   :  { %v4399_v19 = vadd.f32 %v4391_v42, %v3895_v48  ;;  %v1841_v52 = vadd.f32 %v1840_v2, %v6345_v53  ;;  %v1490_v62 = vadd.f32 %v1489_v3, %v6355_v40  ;;  %v1843_v51 = vadd.f32 %v1842_v7, %v6357_v4  ;;  %v1493_v45 = vpop.f32.mrb[11].mxu0 }
 0x12c   :  { %v4398_v0 = vadd.f32 %v4390_v32, %v3894_v5  ;;  %v4400_v17 = vadd.f32 %v4392_v35, %v3896_v21  ;;  %v1492_v47 = vadd.f32 %v1491_v63, %v6343_v61  ;;  %2877 = vst [vmem:[%s8675_s5 + $0x100] sm:$0xff] %v1488_v26  ;;  %v3381_v42 = vadd.f32 %v3373_v43, %v1488_v26  ;;  %v1846_v32 = vpop.f32.mrb[11].mxu1 }
 0x12d   :  { %v3901_v23 = vmul.f32 %v1488_v26, %v1488_v26  ;;  %2879 = vst [vmem:[%s8675_s5 + $0x110] sm:$0xff] %v1841_v52  ;;  %v3383_v48 = vadd.f32 %v3375_v16, %v1841_v52  ;;  %v3903_v56 = vmul.f32 %v1841_v52, %v1841_v52  ;;  %2878 = vst [vmem:[%s8675_s5 + $0x108] sm:$0xff] %v1490_v62 }
 0x12e   :  { %v3382_v35 = vadd.f32 %v3374_v15, %v1490_v62  ;;  %v3902_v5 = vmul.f32 %v1490_v62, %v1490_v62  ;;  %2880 = vst [vmem:[%s8675_s5 + $0x118] sm:$0xff] %v1843_v51  ;;  %v3384_v21 = vadd.f32 %v3376_v36, %v1843_v51  ;;  %v3904_v43 = vmul.f32 %v1843_v51, %v1843_v51 }
 0x12f   :  { %2885 = vst [vmem:[%s8675_s5 + $0x140] sm:$0xff] %v1492_v47  ;;  %1756 = vmatmul.mubr.bf16.gmra.mrb[116].mxu0 %v6377_v30  ;;  %v4405_v16 = vadd.f32 %v4397_v1, %v3901_v23  ;;  %v4407_v2 = vadd.f32 %v4399_v19, %v3903_v56  ;;  %v3389_v3 = vadd.f32 %v3381_v42, %v1492_v47  ;;  %v8780_v1 = vmax.f32 %v6388_v12, 0.0 }
 0x130   :  { %v3909_v26 = vmul.f32 %v1492_v47, %v1492_v47  ;;  %2109 = vmatmul.mubr.bf16.gmra.mrb[116].mxu1 %v6377_v30  ;;  %v4406_v15 = vadd.f32 %v4398_v0, %v3902_v5  ;;  %v4408_v52 = vadd.f32 %v4400_v17, %v3904_v43  ;;  %v1845_v62 = vadd.f32 %v1844_v27, %v6345_v53  ;;  %v1497_v51 = vpop.f32.mrb[12].mxu0  ;;  %v1850_v23 = vpop.f32.mrb[12].mxu1 }
 0x131   :  { %v1494_v7 = vadd.f32 %v1493_v45, %v6355_v40  ;;  %1765 = vmatprep.mubr.bf16.mxu0 %v6427_v59  ;;  %v1847_v63 = vadd.f32 %v1846_v32, %v6357_v4  ;;  %2118 = vmatprep.mubr.bf16.mxu1 %v6427_v59  ;;  %v8781_v47 = vmax.f32 %v6397_v54, 0.0  ;;  %v6510_v0 = vpack.c.bf16 %v557_v28, %v555_v8  ;;  %v1499_v12 = vpop.f32.mrb[13].mxu0 }
 0x132   :  { %v4413_v36 = vadd.f32 %v4405_v16, %v3909_v26  ;;  %2887 = vst [vmem:[%s8675_s5 + $0x150] sm:$0xff] %v1845_v62  ;;  %v3391_v27 = vadd.f32 %v3383_v48, %v1845_v62  ;;  %v3911_v17 = vmul.f32 %v1845_v62, %v1845_v62  ;;  %v1498_v28 = vadd.f32 %v1497_v51, %v6343_v61  ;;  %v1852_v48 = vpop.f32.mrb[13].mxu1  ;;  %v1501_v32 = vpop.f32.mrb[14].mxu0 }
 0x133   :  { %v6508_v19 = vpack.c.bf16 %v8781_v47, %v8780_v1  ;;  %2886 = vst [vmem:[%s8675_s5 + $0x148] sm:$0xff] %v1494_v7  ;;  %v3390_v45 = vadd.f32 %v3382_v35, %v1494_v7  ;;  %v3910_v42 = vmul.f32 %v1494_v7, %v1494_v7  ;;  %2888 = vst [vmem:[%s8675_s5 + $0x158] sm:$0xff] %v1847_v63  ;;  %v1854_v26 = vpop.f32.mrb[14].mxu1  ;;  %v1503_v62 = vpop.f32.mrb[15].mxu0 }
 0x134   :  { %v3392_v54 = vadd.f32 %v3384_v21, %v1847_v63  ;;  %v3912_v8 = vmul.f32 %v1847_v63, %v1847_v63  ;;  %v1851_v56 = vadd.f32 %v1850_v23, %v6345_v53  ;;  %v4415_v5 = vadd.f32 %v4407_v2, %v3911_v17  ;;  %2893 = vst [vmem:[%s8675_s5 + $0x180] sm:$0xff] %v1498_v28  ;;  %v1856_v2 = vpop.f32.mrb[15].mxu1 }
 0x135   :  { %v4414_v43 = vadd.f32 %v4406_v15, %v3910_v42  ;;  %v1500_v16 = vadd.f32 %v1499_v12, %v6355_v40  ;;  %v1853_v35 = vadd.f32 %v1852_v48, %v6357_v4  ;;  %v3397_v21 = vadd.f32 %v3389_v3, %v1498_v28 }
 0x136   :  { %v4416_v7 = vadd.f32 %v4408_v52, %v3912_v8  ;;  %v3917_v63 = vmul.f32 %v1498_v28, %v1498_v28  ;;  %2895 = vst [vmem:[%s8675_s5 + $0x190] sm:$0xff] %v1851_v56  ;;  %v3399_v51 = vadd.f32 %v3391_v27, %v1851_v56  ;;  %v3919_v15 = vmul.f32 %v1851_v56, %v1851_v56 }
 0x137   :  { %2894 = vst [vmem:[%s8675_s5 + $0x188] sm:$0xff] %v1500_v16  ;;  %v3398_v1 = vadd.f32 %v3390_v45, %v1500_v16  ;;  %v3918_v47 = vmul.f32 %v1500_v16, %v1500_v16  ;;  %2896 = vst [vmem:[%s8675_s5 + $0x198] sm:$0xff] %v1853_v35  ;;  %v3400_v52 = vadd.f32 %v3392_v54, %v1853_v35  ;;  %1766 = vmatmul.mubr.bf16.gmra.mrb[120].mxu0 %v6429_v13 }
 0x138   :  { %v4421_v3 = vadd.f32 %v4413_v36, %v3917_v63  ;;  %v3920_v17 = vmul.f32 %v1853_v35, %v1853_v35  ;;  %v1502_v42 = vadd.f32 %v1501_v32, %v6343_v61  ;;  %v1855_v27 = vadd.f32 %v1854_v26, %v6345_v53  ;;  %2119 = vmatmul.mubr.bf16.gmra.mrb[120].mxu1 %v6429_v13  ;;  %v1507_v48 = vpop.f32.mrb[16].mxu0  ;;  %v1860_v35 = vpop.f32.mrb[16].mxu1 }
 0x139   :  { %v4423_v23 = vadd.f32 %v4415_v5, %v3919_v15  ;;  %v4422_v12 = vadd.f32 %v4414_v43, %v3918_v47  ;;  %v1504_v45 = vadd.f32 %v1503_v62, %v6355_v40  ;;  %v1857_v8 = vadd.f32 %v1856_v2, %v6357_v4  ;;  %1775 = vmatprep.mubr.bf16.mxu0 %v6508_v19  ;;  %v1509_v26 = vpop.f32.mrb[17].mxu0 }
 0x13a   :  { %v4424_v28 = vadd.f32 %v4416_v7, %v3920_v17  ;;  %2901 = vst [vmem:[%s8675_s5 + $0x1c0] sm:$0xff] %v1502_v42  ;;  %v3405_v36 = vadd.f32 %v3397_v21, %v1502_v42  ;;  %v3925_v54 = vmul.f32 %v1502_v42, %v1502_v42  ;;  %2903 = vst [vmem:[%s8675_s5 + $0x1d0] sm:$0xff] %v1855_v27  ;;  %2128 = vmatprep.mubr.bf16.mxu1 %v6508_v19  ;;  %v1511_v2 = vpop.f32.mrb[18].mxu0 }
 0x13b   :  { %v3407_v56 = vadd.f32 %v3399_v51, %v1855_v27  ;;  %v3927_v32 = vmul.f32 %v1855_v27, %v1855_v27  ;;  %2902 = vst [vmem:[%s8675_s5 + $0x1c8] sm:$0xff] %v1504_v45  ;;  %v3406_v5 = vadd.f32 %v3398_v1, %v1504_v45  ;;  %v3926_v43 = vmul.f32 %v1504_v45, %v1504_v45  ;;  %v1862_v51 = vpop.f32.mrb[17].mxu1  ;;  %v1513_v27 = vpop.f32.mrb[19].mxu0 }
 0x13c   :  { %2904 = vst [vmem:[%s8675_s5 + $0x1d8] sm:$0xff] %v1857_v8  ;;  %v3408_v16 = vadd.f32 %v3400_v52, %v1857_v8  ;;  %v4429_v62 = vadd.f32 %v4421_v3, %v3925_v54  ;;  %v3928_v7 = vmul.f32 %v1857_v8, %v1857_v8  ;;  %v1508_v21 = vadd.f32 %v1507_v48, %v6343_v61  ;;  %v1864_v42 = vpop.f32.mrb[18].mxu1 }
 0x13d   :  { %v1861_v63 = vadd.f32 %v1860_v35, %v6345_v53  ;;  %v4431_v15 = vadd.f32 %v4423_v23, %v3927_v32  ;;  %v4430_v47 = vadd.f32 %v4422_v12, %v3926_v43  ;;  %v1510_v1 = vadd.f32 %v1509_v26, %v6355_v40  ;;  %v1866_v23 = vpop.f32.mrb[19].mxu1 }
 0x13e   :  { %v1863_v17 = vadd.f32 %v1862_v51, %v6357_v4  ;;  %v4432_v45 = vadd.f32 %v4424_v28, %v3928_v7  ;;  %2909 = vst [vmem:[%s8675_s5 + $0x200] sm:$0xff] %v1508_v21  ;;  %v3413_v52 = vadd.f32 %v3405_v36, %v1508_v21  ;;  %v3933_v3 = vmul.f32 %v1508_v21, %v1508_v21 }
 0x13f   :  { %2911 = vst [vmem:[%s8675_s5 + $0x210] sm:$0xff] %v1861_v63  ;;  %v3415_v8 = vadd.f32 %v3407_v56, %v1861_v63  ;;  %v3935_v12 = vmul.f32 %v1861_v63, %v1861_v63  ;;  %2910 = vst [vmem:[%s8675_s5 + $0x208] sm:$0xff] %v1510_v1  ;;  %v3414_v54 = vadd.f32 %v3406_v5, %v1510_v1  ;;  %1776 = vmatmul.mubr.bf16.gmra.mrb[124].mxu0 %v6510_v0 }
 0x140   :  { %v3934_v48 = vmul.f32 %v1510_v1, %v1510_v1  ;;  %2912 = vst [vmem:[%s8675_s5 + $0x218] sm:$0xff] %v1863_v17  ;;  %v3416_v28 = vadd.f32 %v3408_v16, %v1863_v17  ;;  %v4437_v36 = vadd.f32 %v4429_v62, %v3933_v3  ;;  %v3936_v32 = vmul.f32 %v1863_v17, %v1863_v17  ;;  %v1517_v51 = vpop.f32.mrb[20].mxu0  ;;  %v1870_v17 = vpop.f32.mrb[20].mxu1 }
 0x141   :  { %v1512_v43 = vadd.f32 %v1511_v2, %v6343_v61  ;;  %v1865_v56 = vadd.f32 %v1864_v42, %v6345_v53  ;;  %2129 = vmatmul.mubr.bf16.gmra.mrb[124].mxu1 %v6510_v0  ;;  %v4439_v35 = vadd.f32 %v4431_v15, %v3935_v12  ;;  %v1514_v5 = vadd.f32 %v1513_v27, %v6355_v40  ;;  %v1519_v42 = vpop.f32.mrb[21].mxu0  ;;  %v1872_v3 = vpop.f32.mrb[21].mxu1 }
 0x142   :  { %v4438_v26 = vadd.f32 %v4430_v47, %v3934_v48  ;;  %v1867_v7 = vadd.f32 %v1866_v23, %v6357_v4  ;;  %2171 = vmatprep.mubr.bf16.mxu0 %v5227_v25  ;;  %v4440_v21 = vadd.f32 %v4432_v45, %v3936_v32  ;;  %2524 = vmatprep.mubr.bf16.mxu1 %v5227_v25  ;;  %v1874_v32 = vpop.f32.mrb[22].mxu1 }
 0x143   :  { %2917 = vst [vmem:[%s8675_s5 + $0x240] sm:$0xff] %v1512_v43  ;;  %v3421_v16 = vadd.f32 %v3413_v52, %v1512_v43  ;;  %v3941_v62 = vmul.f32 %v1512_v43, %v1512_v43  ;;  %2919 = vst [vmem:[%s8675_s5 + $0x250] sm:$0xff] %v1865_v56  ;;  %v3423_v63 = vadd.f32 %v3415_v8, %v1865_v56  ;;  %v1521_v8 = vpop.f32.mrb[22].mxu0 }
 0x144   :  { %v3943_v2 = vmul.f32 %v1865_v56, %v1865_v56  ;;  %2918 = vst [vmem:[%s8675_s5 + $0x248] sm:$0xff] %v1514_v5  ;;  %v3422_v15 = vadd.f32 %v3414_v54, %v1514_v5  ;;  %v3942_v47 = vmul.f32 %v1514_v5, %v1514_v5  ;;  %2920 = vst [vmem:[%s8675_s5 + $0x258] sm:$0xff] %v1867_v7  ;;  %v1523_v43 = vpop.f32.mrb[23].mxu0 }
 0x145   :  { %v3424_v1 = vadd.f32 %v3416_v28, %v1867_v7  ;;  %v4445_v27 = vadd.f32 %v4437_v36, %v3941_v62  ;;  %v3944_v45 = vmul.f32 %v1867_v7, %v1867_v7  ;;  %v1518_v52 = vadd.f32 %v1517_v51, %v6343_v61 }
 0x146   :  { %v1871_v25 = vadd.f32 %v1870_v17, %v6345_v53  ;;  %v4447_v23 = vadd.f32 %v4439_v35, %v3943_v2  ;;  %v4446_v12 = vadd.f32 %v4438_v26, %v3942_v47  ;;  %v1520_v54 = vadd.f32 %v1519_v42, %v6355_v40  ;;  %v1876_v35 = vpop.f32.mrb[23].mxu1 }
 0x147   :  { %v1873_v48 = vadd.f32 %v1872_v3, %v6357_v4  ;;  %v4448_v56 = vadd.f32 %v4440_v21, %v3944_v45  ;;  %2925 = vst [vmem:[%s8675_s5 + $0x280] sm:$0xff] %v1518_v52  ;;  %v3429_v28 = vadd.f32 %v3421_v16, %v1518_v52  ;;  %v3949_v36 = vmul.f32 %v1518_v52, %v1518_v52 }
 0x148   :  { %2927 = vst [vmem:[%s8675_s5 + $0x290] sm:$0xff] %v1871_v25  ;;  %v3431_v5 = vadd.f32 %v3423_v63, %v1871_v25  ;;  %v3951_v26 = vmul.f32 %v1871_v25, %v1871_v25  ;;  %2926 = vst [vmem:[%s8675_s5 + $0x288] sm:$0xff] %v1520_v54  ;;  %v3430_v7 = vadd.f32 %v3422_v15, %v1520_v54  ;;  %2172 = vmatmul.mubr.bf16.vlgmr.msra.gmra.mrb[128].mxu0 %v5363_v58  ;;  %v1527_v52 = vpop.f32.mrb[24].mxu0 }
 0x149   :  { %v3950_v62 = vmul.f32 %v1520_v54, %v1520_v54  ;;  %2928 = vst [vmem:[%s8675_s5 + $0x298] sm:$0xff] %v1873_v48  ;;  %v3432_v21 = vadd.f32 %v3424_v1, %v1873_v48  ;;  %v4453_v16 = vadd.f32 %v4445_v27, %v3949_v36  ;;  %v3952_v51 = vmul.f32 %v1873_v48, %v1873_v48  ;;  %v1529_v54 = vpop.f32.mrb[25].mxu0 }
 0x14a   :  { %v1522_v2 = vadd.f32 %v1521_v8, %v6343_v61  ;;  %v1875_v63 = vadd.f32 %v1874_v32, %v6345_v53  ;;  %2525 = vmatmul.mubr.bf16.vlgmr.msra.gmra.mrb[128].mxu1 %v5363_v58  ;;  %v4455_v47 = vadd.f32 %v4447_v23, %v3951_v26  ;;  %v1524_v15 = vadd.f32 %v1523_v43, %v6355_v40 }
 0x14b   :  { %v4454_v17 = vadd.f32 %v4446_v12, %v3950_v62  ;;  %v1877_v42 = vadd.f32 %v1876_v35, %v6357_v4  ;;  %2181 = vmatprep.mubr.bf16.mxu0 %v5386_v10  ;;  %v4456_v45 = vadd.f32 %v4448_v56, %v3952_v51  ;;  %2534 = vmatprep.mubr.bf16.mxu1 %v5386_v10  ;;  %v1880_v12 = vpop.f32.mrb[24].mxu1 }
 0x14c   :  { %2933 = vst [vmem:[%s8675_s5 + $0x2c0] sm:$0xff] %v1522_v2  ;;  %v3437_v1 = vadd.f32 %v3429_v28, %v1522_v2  ;;  %v3957_v27 = vmul.f32 %v1522_v2, %v1522_v2  ;;  %2935 = vst [vmem:[%s8675_s5 + $0x2d0] sm:$0xff] %v1875_v63  ;;  %v3439_v58 = vadd.f32 %v3431_v5, %v1875_v63  ;;  %v1882_v56 = vpop.f32.mrb[25].mxu1  ;;  %v1531_v28 = vpop.f32.mrb[26].mxu0 }
 0x14d   :  { %v3959_v25 = vmul.f32 %v1875_v63, %v1875_v63  ;;  %2934 = vst [vmem:[%s8675_s5 + $0x2c8] sm:$0xff] %v1524_v15  ;;  %v3438_v3 = vadd.f32 %v3430_v7, %v1524_v15  ;;  %v3958_v8 = vmul.f32 %v1524_v15, %v1524_v15  ;;  %2936 = vst [vmem:[%s8675_s5 + $0x2d8] sm:$0xff] %v1877_v42  ;;  %v1884_v7 = vpop.f32.mrb[26].mxu1  ;;  %v1533_v62 = vpop.f32.mrb[27].mxu0 }
 0x14e   :  { %v3440_v23 = vadd.f32 %v3432_v21, %v1877_v42  ;;  %v4461_v48 = vadd.f32 %v4453_v16, %v3957_v27  ;;  %v3960_v32 = vmul.f32 %v1877_v42, %v1877_v42  ;;  %v1528_v43 = vadd.f32 %v1527_v52, %v6343_v61  ;;  %v1886_v63 = vpop.f32.mrb[27].mxu1 }
 0x14f   :  { %v1881_v10 = vadd.f32 %v1880_v12, %v6345_v53  ;;  %v4463_v36 = vadd.f32 %v4455_v47, %v3959_v25  ;;  %v4462_v5 = vadd.f32 %v4454_v17, %v3958_v8  ;;  %v1530_v35 = vadd.f32 %v1529_v54, %v6355_v40 }
 0x150   :  { %v1883_v26 = vadd.f32 %v1882_v56, %v6357_v4  ;;  %v4464_v51 = vadd.f32 %v4456_v45, %v3960_v32  ;;  %2941 = vst [vmem:[%s8675_s5 + $0x300] sm:$0xff] %v1528_v43  ;;  %v3445_v21 = vadd.f32 %v3437_v1, %v1528_v43  ;;  %v3965_v16 = vmul.f32 %v1528_v43, %v1528_v43 }
 0x151   :  { %2943 = vst [vmem:[%s8675_s5 + $0x310] sm:$0xff] %v1881_v10  ;;  %v3447_v2 = vadd.f32 %v3439_v58, %v1881_v10  ;;  %v3967_v47 = vmul.f32 %v1881_v10, %v1881_v10  ;;  %2942 = vst [vmem:[%s8675_s5 + $0x308] sm:$0xff] %v1530_v35  ;;  %v3446_v17 = vadd.f32 %v3438_v3, %v1530_v35  ;;  %2182 = vmatmul.mubr.bf16.gmra.mrb[132].mxu0 %v5415_v33 }
 0x152   :  { %v3966_v15 = vmul.f32 %v1530_v35, %v1530_v35  ;;  %2944 = vst [vmem:[%s8675_s5 + $0x318] sm:$0xff] %v1883_v26  ;;  %v3448_v42 = vadd.f32 %v3440_v23, %v1883_v26  ;;  %v4469_v45 = vadd.f32 %v4461_v48, %v3965_v16  ;;  %v3968_v1 = vmul.f32 %v1883_v26, %v1883_v26  ;;  %v1537_v48 = vpop.f32.mrb[28].mxu0 }
 0x153   :  { %v1532_v27 = vadd.f32 %v1531_v28, %v6343_v61  ;;  %v1885_v58 = vadd.f32 %v1884_v7, %v6345_v53  ;;  %2535 = vmatmul.mubr.bf16.gmra.mrb[132].mxu1 %v5415_v33  ;;  %v4471_v52 = vadd.f32 %v4463_v36, %v3967_v47  ;;  %v1534_v3 = vadd.f32 %v1533_v62, %v6355_v40  ;;  %v1890_v28 = vpop.f32.mrb[28].mxu1  ;;  %v1539_v36 = vpop.f32.mrb[29].mxu0 }
 0x154   :  { %v4470_v25 = vadd.f32 %v4462_v5, %v3966_v15  ;;  %v1887_v8 = vadd.f32 %v1886_v63, %v6357_v4  ;;  %2191 = vmatprep.mubr.bf16.mxu0 %v5427_v38  ;;  %v4472_v12 = vadd.f32 %v4464_v51, %v3968_v1  ;;  %2544 = vmatprep.mubr.bf16.mxu1 %v5427_v38  ;;  %v1892_v7 = vpop.f32.mrb[29].mxu1  ;;  %v1541_v62 = vpop.f32.mrb[30].mxu0 }
 0x155   :  { %2949 = vst [vmem:[%s8675_s5 + $0x340] sm:$0xff] %v1532_v27  ;;  %v3453_v23 = vadd.f32 %v3445_v21, %v1532_v27  ;;  %v3973_v54 = vmul.f32 %v1532_v27, %v1532_v27  ;;  %2951 = vst [vmem:[%s8675_s5 + $0x350] sm:$0xff] %v1885_v58  ;;  %v3455_v33 = vadd.f32 %v3447_v2, %v1885_v58  ;;  %v1894_v63 = vpop.f32.mrb[30].mxu1  ;;  %v1543_v47 = vpop.f32.mrb[31].mxu0 }
 0x156   :  { %v3975_v32 = vmul.f32 %v1885_v58, %v1885_v58  ;;  %2950 = vst [vmem:[%s8675_s5 + $0x348] sm:$0xff] %v1534_v3  ;;  %v3454_v43 = vadd.f32 %v3446_v17, %v1534_v3  ;;  %v3974_v10 = vmul.f32 %v1534_v3, %v1534_v3  ;;  %2952 = vst [vmem:[%s8675_s5 + $0x358] sm:$0xff] %v1887_v8  ;;  %v1896_v1 = vpop.f32.mrb[31].mxu1 }
 0x157   :  { %v3456_v56 = vadd.f32 %v3448_v42, %v1887_v8  ;;  %v4477_v5 = vadd.f32 %v4469_v45, %v3973_v54  ;;  %v3976_v35 = vmul.f32 %v1887_v8, %v1887_v8  ;;  %v1538_v26 = vadd.f32 %v1537_v48, %v6343_v61 }
 0x158   :  { %v1891_v38 = vadd.f32 %v1890_v28, %v6345_v53  ;;  %v4479_v51 = vadd.f32 %v4471_v52, %v3975_v32  ;;  %v4478_v21 = vadd.f32 %v4470_v25, %v3974_v10  ;;  %v1540_v16 = vadd.f32 %v1539_v36, %v6355_v40  ;;  %v1547_v28 = vpop.f32.mrb[32].mxu0 }
 0x159   :  { %v1893_v2 = vadd.f32 %v1892_v7, %v6357_v4  ;;  %v4480_v17 = vadd.f32 %v4472_v12, %v3976_v35  ;;  %2957 = vst [vmem:[%s8675_s5 + $0x380] sm:$0xff] %v1538_v26  ;;  %v3461_v15 = vadd.f32 %v3453_v23, %v1538_v26  ;;  %v3981_v42 = vmul.f32 %v1538_v26, %v1538_v26  ;;  %v1549_v7 = vpop.f32.mrb[33].mxu0 }
 0x15a   :  { %2959 = vst [vmem:[%s8675_s5 + $0x390] sm:$0xff] %v1891_v38  ;;  %v3463_v45 = vadd.f32 %v3455_v33, %v1891_v38  ;;  %v3983_v27 = vmul.f32 %v1891_v38, %v1891_v38  ;;  %2958 = vst [vmem:[%s8675_s5 + $0x388] sm:$0xff] %v1540_v16  ;;  %v3462_v58 = vadd.f32 %v3454_v43, %v1540_v16  ;;  %2192 = vmatmul.mubr.bf16.gmra.mrb[136].mxu0 %v5466_v9  ;;  %v1900_v38 = vpop.f32.mrb[32].mxu1 }
 0x15b   :  { %v3982_v52 = vmul.f32 %v1540_v16, %v1540_v16  ;;  %2960 = vst [vmem:[%s8675_s5 + $0x398] sm:$0xff] %v1893_v2  ;;  %v3464_v25 = vadd.f32 %v3456_v56, %v1893_v2  ;;  %v4485_v3 = vadd.f32 %v4477_v5, %v3981_v42  ;;  %v3984_v8 = vmul.f32 %v1893_v2, %v1893_v2  ;;  %v1902_v16 = vpop.f32.mrb[33].mxu1  ;;  %v1551_v2 = vpop.f32.mrb[34].mxu0 }
 0x15c   :  { %v1542_v12 = vadd.f32 %v1541_v62, %v6343_v61  ;;  %v1895_v23 = vadd.f32 %v1894_v63, %v6345_v53  ;;  %2545 = vmatmul.mubr.bf16.gmra.mrb[136].mxu1 %v5466_v9  ;;  %v4487_v54 = vadd.f32 %v4479_v51, %v3983_v27  ;;  %v1544_v48 = vadd.f32 %v1543_v47, %v6355_v40  ;;  %v1904_v42 = vpop.f32.mrb[34].mxu1 }
 0x15d   :  { %v4486_v33 = vadd.f32 %v4478_v21, %v3982_v52  ;;  %v1897_v32 = vadd.f32 %v1896_v1, %v6357_v4  ;;  %2201 = vmatprep.mubr.bf16.mxu0 %v5479_v18  ;;  %v4488_v43 = vadd.f32 %v4480_v17, %v3984_v8  ;;  %2554 = vmatprep.mubr.bf16.mxu1 %v5479_v18 }
 0x15e   :  { %2965 = vst [vmem:[%s8675_s5 + $0x3c0] sm:$0xff] %v1542_v12  ;;  %v3469_v10 = vadd.f32 %v3461_v15, %v1542_v12  ;;  %v3989_v56 = vmul.f32 %v1542_v12, %v1542_v12  ;;  %2967 = vst [vmem:[%s8675_s5 + $0x3d0] sm:$0xff] %v1895_v23  ;;  %v3471_v9 = vadd.f32 %v3463_v45, %v1895_v23  ;;  %v1553_v45 = vpop.f32.mrb[35].mxu0 }
 0x15f   :  { %v3991_v36 = vmul.f32 %v1895_v23, %v1895_v23  ;;  %2966 = vst [vmem:[%s8675_s5 + $0x3c8] sm:$0xff] %v1544_v48  ;;  %v3470_v5 = vadd.f32 %v3462_v58, %v1544_v48  ;;  %v3990_v35 = vmul.f32 %v1544_v48, %v1544_v48  ;;  %2968 = vst [vmem:[%s8675_s5 + $0x3d8] sm:$0xff] %v1897_v32 }
 0x160   :  { %v3472_v26 = vadd.f32 %v3464_v25, %v1897_v32  ;;  %v4493_v62 = vadd.f32 %v4485_v3, %v3989_v56  ;;  %v3992_v51 = vmul.f32 %v1897_v32, %v1897_v32  ;;  %v1548_v21 = vadd.f32 %v1547_v28, %v6343_v61  ;;  %v1906_v25 = vpop.f32.mrb[35].mxu1 }
 0x161   :  { %v1901_v18 = vadd.f32 %v1900_v38, %v6345_v53  ;;  %v4495_v63 = vadd.f32 %v4487_v54, %v3991_v36  ;;  %v4494_v47 = vadd.f32 %v4486_v33, %v3990_v35  ;;  %v1550_v17 = vadd.f32 %v1549_v7, %v6355_v40  ;;  %v1557_v35 = vpop.f32.mrb[36].mxu0 }
 0x162   :  { %v1903_v15 = vadd.f32 %v1902_v16, %v6357_v4  ;;  %v4496_v1 = vadd.f32 %v4488_v43, %v3992_v51  ;;  %2973 = vst [vmem:[%s8675_s5 + $0x400] sm:$0xff] %v1548_v21  ;;  %v3477_v27 = vadd.f32 %v3469_v10, %v1548_v21  ;;  %v3997_v58 = vmul.f32 %v1548_v21, %v1548_v21  ;;  %v1910_v51 = vpop.f32.mrb[36].mxu1  ;;  %v1559_v21 = vpop.f32.mrb[37].mxu0 }
 0x163   :  { %2975 = vst [vmem:[%s8675_s5 + $0x410] sm:$0xff] %v1901_v18  ;;  %v3479_v52 = vadd.f32 %v3471_v9, %v1901_v18  ;;  %v3999_v3 = vmul.f32 %v1901_v18, %v1901_v18  ;;  %2974 = vst [vmem:[%s8675_s5 + $0x408] sm:$0xff] %v1550_v17  ;;  %v3478_v8 = vadd.f32 %v3470_v5, %v1550_v17  ;;  %2202 = vmatmul.mubr.bf16.gmra.mrb[140].mxu0 %v5519_v49 }
 0x164   :  { %v3998_v12 = vmul.f32 %v1550_v17, %v1550_v17  ;;  %2976 = vst [vmem:[%s8675_s5 + $0x418] sm:$0xff] %v1903_v15  ;;  %v3480_v23 = vadd.f32 %v3472_v26, %v1903_v15  ;;  %v4501_v54 = vadd.f32 %v4493_v62, %v3997_v58  ;;  %v4000_v33 = vmul.f32 %v1903_v15, %v1903_v15 }
 0x165   :  { %v1552_v48 = vadd.f32 %v1551_v2, %v6343_v61  ;;  %v1905_v32 = vadd.f32 %v1904_v42, %v6345_v53  ;;  %2555 = vmatmul.mubr.bf16.gmra.mrb[140].mxu1 %v5519_v49  ;;  %v4503_v43 = vadd.f32 %v4495_v63, %v3999_v3  ;;  %v1554_v56 = vadd.f32 %v1553_v45, %v6355_v40  ;;  %v1912_v63 = vpop.f32.mrb[37].mxu1 }
 0x166   :  { %v4502_v10 = vadd.f32 %v4494_v47, %v3998_v12  ;;  %v1907_v9 = vadd.f32 %v1906_v25, %v6357_v4  ;;  %2211 = vmatprep.mubr.bf16.mxu0 %v5531_v57  ;;  %v4504_v28 = vadd.f32 %v4496_v1, %v4000_v33  ;;  %2564 = vmatprep.mubr.bf16.mxu1 %v5531_v57  ;;  %v1561_v47 = vpop.f32.mrb[38].mxu0  ;;  %v1914_v1 = vpop.f32.mrb[38].mxu1 }
 0x167   :  { %2981 = vst [vmem:[%s8675_s5 + $0x440] sm:$0xff] %v1552_v48  ;;  %v3485_v36 = vadd.f32 %v3477_v27, %v1552_v48  ;;  %v4005_v5 = vmul.f32 %v1552_v48, %v1552_v48  ;;  %2983 = vst [vmem:[%s8675_s5 + $0x450] sm:$0xff] %v1905_v32  ;;  %v3487_v49 = vadd.f32 %v3479_v52, %v1905_v32  ;;  %v1563_v27 = vpop.f32.mrb[39].mxu0 }
 0x168   :  { %v4007_v26 = vmul.f32 %v1905_v32, %v1905_v32  ;;  %2982 = vst [vmem:[%s8675_s5 + $0x448] sm:$0xff] %v1554_v56  ;;  %v3486_v38 = vadd.f32 %v3478_v8, %v1554_v56  ;;  %v4006_v7 = vmul.f32 %v1554_v56, %v1554_v56  ;;  %2984 = vst [vmem:[%s8675_s5 + $0x458] sm:$0xff] %v1907_v9  ;;  %v1916_v8 = vpop.f32.mrb[39].mxu1 }
 0x169   :  { %v3488_v62 = vadd.f32 %v3480_v23, %v1907_v9  ;;  %v4509_v18 = vadd.f32 %v4501_v54, %v4005_v5  ;;  %v4008_v16 = vmul.f32 %v1907_v9, %v1907_v9  ;;  %v1558_v2 = vadd.f32 %v1557_v35, %v6343_v61 }
 0x16a   :  { %v1911_v57 = vadd.f32 %v1910_v51, %v6345_v53  ;;  %v4511_v17 = vadd.f32 %v4503_v43, %v4007_v26  ;;  %v4510_v15 = vadd.f32 %v4502_v10, %v4006_v7  ;;  %v1560_v42 = vadd.f32 %v1559_v21, %v6355_v40  ;;  %v1567_v26 = vpop.f32.mrb[40].mxu0  ;;  %v1920_v21 = vpop.f32.mrb[40].mxu1 }
 0x16b   :  { %v1913_v45 = vadd.f32 %v1912_v63, %v6357_v4  ;;  %v4512_v58 = vadd.f32 %v4504_v28, %v4008_v16  ;;  %2989 = vst [vmem:[%s8675_s5 + $0x480] sm:$0xff] %v1558_v2  ;;  %v3493_v52 = vadd.f32 %v3485_v36, %v1558_v2  ;;  %v4013_v25 = vmul.f32 %v1558_v2, %v1558_v2  ;;  %v1922_v63 = vpop.f32.mrb[41].mxu1 }
 0x16c   :  { %2991 = vst [vmem:[%s8675_s5 + $0x490] sm:$0xff] %v1911_v57  ;;  %v3495_v3 = vadd.f32 %v3487_v49, %v1911_v57  ;;  %v4015_v12 = vmul.f32 %v1911_v57, %v1911_v57  ;;  %2990 = vst [vmem:[%s8675_s5 + $0x488] sm:$0xff] %v1560_v42  ;;  %v3494_v23 = vadd.f32 %v3486_v38, %v1560_v42  ;;  %2212 = vmatmul.mubr.bf16.gmra.mrb[144].mxu0 %v5570_v29 }
 0x16d   :  { %v4014_v54 = vmul.f32 %v1560_v42, %v1560_v42  ;;  %2992 = vst [vmem:[%s8675_s5 + $0x498] sm:$0xff] %v1913_v45  ;;  %v3496_v33 = vadd.f32 %v3488_v62, %v1913_v45  ;;  %v4517_v48 = vadd.f32 %v4509_v18, %v4013_v25  ;;  %v4016_v32 = vmul.f32 %v1913_v45, %v1913_v45  ;;  %v1569_v18 = vpop.f32.mrb[41].mxu0 }
 0x16e   :  { %v1562_v43 = vadd.f32 %v1561_v47, %v6343_v61  ;;  %v1915_v10 = vadd.f32 %v1914_v1, %v6345_v53  ;;  %2565 = vmatmul.mubr.bf16.gmra.mrb[144].mxu1 %v5570_v29  ;;  %v4519_v56 = vadd.f32 %v4511_v17, %v4015_v12  ;;  %v1564_v28 = vadd.f32 %v1563_v27, %v6355_v40  ;;  %v1571_v47 = vpop.f32.mrb[42].mxu0  ;;  %v1924_v1 = vpop.f32.mrb[42].mxu1 }
 0x16f   :  { %v4518_v9 = vadd.f32 %v4510_v15, %v4014_v54  ;;  %v1917_v36 = vadd.f32 %v1916_v8, %v6357_v4  ;;  %2221 = vmatprep.mubr.bf16.mxu0 %v5574_v34  ;;  %v4520_v5 = vadd.f32 %v4512_v58, %v4016_v32  ;;  %2574 = vmatprep.mubr.bf16.mxu1 %v5574_v34  ;;  %v1573_v27 = vpop.f32.mrb[43].mxu0  ;;  %v1926_v8 = vpop.f32.mrb[43].mxu1 }
 0x170   :  { %2997 = vst [vmem:[%s8675_s5 + $0x4c0] sm:$0xff] %v1562_v43  ;;  %v3501_v49 = vadd.f32 %v3493_v52, %v1562_v43  ;;  %v4021_v35 = vmul.f32 %v1562_v43, %v1562_v43  ;;  %2999 = vst [vmem:[%s8675_s5 + $0x4d0] sm:$0xff] %v1915_v10  ;;  %v3503_v29 = vadd.f32 %v3495_v3, %v1915_v10 }
 0x171   :  { %v4023_v38 = vmul.f32 %v1915_v10, %v1915_v10  ;;  %2998 = vst [vmem:[%s8675_s5 + $0x4c8] sm:$0xff] %v1564_v28  ;;  %v3502_v7 = vadd.f32 %v3494_v23, %v1564_v28  ;;  %v4022_v62 = vmul.f32 %v1564_v28, %v1564_v28  ;;  %3000 = vst [vmem:[%s8675_s5 + $0x4d8] sm:$0xff] %v1917_v36 }
 0x172   :  { %v3504_v51 = vadd.f32 %v3496_v33, %v1917_v36  ;;  %v4525_v16 = vadd.f32 %v4517_v48, %v4021_v35  ;;  %v4024_v2 = vmul.f32 %v1917_v36, %v1917_v36  ;;  %v1568_v57 = vadd.f32 %v1567_v26, %v6343_v61 }
 0x173   :  { %v1921_v34 = vadd.f32 %v1920_v21, %v6345_v53  ;;  %v4527_v17 = vadd.f32 %v4519_v56, %v4023_v38  ;;  %v4526_v15 = vadd.f32 %v4518_v9, %v4022_v62  ;;  %v1570_v42 = vadd.f32 %v1569_v18, %v6355_v40 }
 0x174   :  { %v1923_v45 = vadd.f32 %v1922_v63, %v6357_v4  ;;  %v4528_v58 = vadd.f32 %v4520_v5, %v4024_v2  ;;  %3005 = vst [vmem:[%s8675_s5 + $0x500] sm:$0xff] %v1568_v57  ;;  %v3509_v52 = vadd.f32 %v3501_v49, %v1568_v57  ;;  %v4029_v25 = vmul.f32 %v1568_v57, %v1568_v57 }
 0x175   :  { %3007 = vst [vmem:[%s8675_s5 + $0x510] sm:$0xff] %v1921_v34  ;;  %v3511_v3 = vadd.f32 %v3503_v29, %v1921_v34  ;;  %v4031_v12 = vmul.f32 %v1921_v34, %v1921_v34  ;;  %3006 = vst [vmem:[%s8675_s5 + $0x508] sm:$0xff] %v1570_v42  ;;  %v3510_v23 = vadd.f32 %v3502_v7, %v1570_v42  ;;  %2222 = vmatmul.mubr.bf16.gmra.mrb[148].mxu0 %v5610_v6  ;;  %v1577_v29 = vpop.f32.mrb[44].mxu0 }
 0x176   :  { %v4030_v54 = vmul.f32 %v1570_v42, %v1570_v42  ;;  %3008 = vst [vmem:[%s8675_s5 + $0x518] sm:$0xff] %v1923_v45  ;;  %v3512_v33 = vadd.f32 %v3504_v51, %v1923_v45  ;;  %v4533_v48 = vadd.f32 %v4525_v16, %v4029_v25  ;;  %v4032_v32 = vmul.f32 %v1923_v45, %v1923_v45  ;;  %v1930_v51 = vpop.f32.mrb[44].mxu1  ;;  %v1579_v21 = vpop.f32.mrb[45].mxu0 }
 0x177   :  { %v1572_v43 = vadd.f32 %v1571_v47, %v6343_v61  ;;  %v1925_v10 = vadd.f32 %v1924_v1, %v6345_v53  ;;  %2575 = vmatmul.mubr.bf16.gmra.mrb[148].mxu1 %v5610_v6  ;;  %v4535_v56 = vadd.f32 %v4527_v17, %v4031_v12  ;;  %v1574_v28 = vadd.f32 %v1573_v27, %v6355_v40  ;;  %v1932_v57 = vpop.f32.mrb[45].mxu1  ;;  %v1581_v34 = vpop.f32.mrb[46].mxu0 }
 0x178   :  { %v4534_v9 = vadd.f32 %v4526_v15, %v4030_v54  ;;  %v1927_v36 = vadd.f32 %v1926_v8, %v6357_v4  ;;  %2231 = vmatprep.mubr.bf16.mxu0 %v5614_v11  ;;  %v4536_v5 = vadd.f32 %v4528_v58, %v4032_v32  ;;  %2584 = vmatprep.mubr.bf16.mxu1 %v5614_v11  ;;  %v1934_v42 = vpop.f32.mrb[46].mxu1  ;;  %v1583_v45 = vpop.f32.mrb[47].mxu0 }
 0x179   :  { %3013 = vst [vmem:[%s8675_s5 + $0x540] sm:$0xff] %v1572_v43  ;;  %v3517_v49 = vadd.f32 %v3509_v52, %v1572_v43  ;;  %v4037_v35 = vmul.f32 %v1572_v43, %v1572_v43  ;;  %3015 = vst [vmem:[%s8675_s5 + $0x550] sm:$0xff] %v1925_v10  ;;  %v3519_v6 = vadd.f32 %v3511_v3, %v1925_v10  ;;  %v1936_v25 = vpop.f32.mrb[47].mxu1 }
 0x17a   :  { %v4039_v26 = vmul.f32 %v1925_v10, %v1925_v10  ;;  %3014 = vst [vmem:[%s8675_s5 + $0x548] sm:$0xff] %v1574_v28  ;;  %v3518_v38 = vadd.f32 %v3510_v23, %v1574_v28  ;;  %v4038_v7 = vmul.f32 %v1574_v28, %v1574_v28  ;;  %3016 = vst [vmem:[%s8675_s5 + $0x558] sm:$0xff] %v1927_v36 }
 0x17b   :  { %v3520_v62 = vadd.f32 %v3512_v33, %v1927_v36  ;;  %v4541_v18 = vadd.f32 %v4533_v48, %v4037_v35  ;;  %v4040_v16 = vmul.f32 %v1927_v36, %v1927_v36  ;;  %v1578_v2 = vadd.f32 %v1577_v29, %v6343_v61 }
 0x17c   :  { %v1931_v11 = vadd.f32 %v1930_v51, %v6345_v53  ;;  %v4543_v63 = vadd.f32 %v4535_v56, %v4039_v26  ;;  %v4542_v47 = vadd.f32 %v4534_v9, %v4038_v7  ;;  %v1580_v17 = vadd.f32 %v1579_v21, %v6355_v40 }
 0x17d   :  { %v1933_v15 = vadd.f32 %v1932_v57, %v6357_v4  ;;  %v4544_v1 = vadd.f32 %v4536_v5, %v4040_v16  ;;  %3021 = vst [vmem:[%s8675_s5 + $0x580] sm:$0xff] %v1578_v2  ;;  %v3525_v27 = vadd.f32 %v3517_v49, %v1578_v2  ;;  %v4045_v58 = vmul.f32 %v1578_v2, %v1578_v2  ;;  %v1587_v49 = vpop.f32.mrb[48].mxu0 }
 0x17e   :  { %3023 = vst [vmem:[%s8675_s5 + $0x590] sm:$0xff] %v1931_v11  ;;  %v3527_v52 = vadd.f32 %v3519_v6, %v1931_v11  ;;  %v4047_v3 = vmul.f32 %v1931_v11, %v1931_v11  ;;  %3022 = vst [vmem:[%s8675_s5 + $0x588] sm:$0xff] %v1580_v17  ;;  %v3526_v8 = vadd.f32 %v3518_v38, %v1580_v17  ;;  %2232 = vmatmul.mubr.bf16.gmra.mrb[152].mxu0 %v5650_v39  ;;  %v1940_v38 = vpop.f32.mrb[48].mxu1  ;;  %v1589_v7 = vpop.f32.mrb[49].mxu0 }
 0x17f   :  { %v4046_v12 = vmul.f32 %v1580_v17, %v1580_v17  ;;  %3024 = vst [vmem:[%s8675_s5 + $0x598] sm:$0xff] %v1933_v15  ;;  %v3528_v23 = vadd.f32 %v3520_v62, %v1933_v15  ;;  %v4549_v54 = vadd.f32 %v4541_v18, %v4045_v58  ;;  %v4048_v33 = vmul.f32 %v1933_v15, %v1933_v15  ;;  %v1942_v18 = vpop.f32.mrb[49].mxu1  ;;  %v1591_v16 = vpop.f32.mrb[50].mxu0 }
 0x180   :  { %v1582_v48 = vadd.f32 %v1581_v34, %v6343_v61  ;;  %v1935_v32 = vadd.f32 %v1934_v42, %v6345_v53  ;;  %2585 = vmatmul.mubr.bf16.gmra.mrb[152].mxu1 %v5650_v39  ;;  %v4551_v43 = vadd.f32 %v4543_v63, %v4047_v3  ;;  %v1584_v56 = vadd.f32 %v1583_v45, %v6355_v40  ;;  %v1944_v63 = vpop.f32.mrb[50].mxu1 }
 0x181   :  { %v4550_v10 = vadd.f32 %v4542_v47, %v4046_v12  ;;  %v1937_v9 = vadd.f32 %v1936_v25, %v6357_v4  ;;  %2241 = vmatprep.mubr.bf16.mxu0 %v5654_v44  ;;  %v4552_v28 = vadd.f32 %v4544_v1, %v4048_v33  ;;  %2594 = vmatprep.mubr.bf16.mxu1 %v5654_v44  ;;  %v1593_v47 = vpop.f32.mrb[51].mxu0  ;;  %v1946_v1 = vpop.f32.mrb[51].mxu1 }
 0x182   :  { %3029 = vst [vmem:[%s8675_s5 + $0x5c0] sm:$0xff] %v1582_v48  ;;  %v3533_v36 = vadd.f32 %v3525_v27, %v1582_v48  ;;  %v4053_v5 = vmul.f32 %v1582_v48, %v1582_v48  ;;  %3031 = vst [vmem:[%s8675_s5 + $0x5d0] sm:$0xff] %v1935_v32  ;;  %v3535_v39 = vadd.f32 %v3527_v52, %v1935_v32 }
 0x183   :  { %v4055_v35 = vmul.f32 %v1935_v32, %v1935_v32  ;;  %3030 = vst [vmem:[%s8675_s5 + $0x5c8] sm:$0xff] %v1584_v56  ;;  %v3534_v6 = vadd.f32 %v3526_v8, %v1584_v56  ;;  %v4054_v29 = vmul.f32 %v1584_v56, %v1584_v56  ;;  %3032 = vst [vmem:[%s8675_s5 + $0x5d8] sm:$0xff] %v1937_v9 }
 0x184   :  { %v3536_v26 = vadd.f32 %v3528_v23, %v1937_v9  ;;  %v4557_v62 = vadd.f32 %v4549_v54, %v4053_v5  ;;  %v4056_v51 = vmul.f32 %v1937_v9, %v1937_v9  ;;  %v1588_v21 = vadd.f32 %v1587_v49, %v6343_v61  ;;  %v1597_v9 = vpop.f32.mrb[52].mxu0  ;;  %v1950_v49 = vpop.f32.mrb[52].mxu1 }
 0x185   :  { %v1941_v44 = vadd.f32 %v1940_v38, %v6345_v53  ;;  %v4559_v2 = vadd.f32 %v4551_v43, %v4055_v35  ;;  %v4558_v11 = vadd.f32 %v4550_v10, %v4054_v29  ;;  %v1590_v57 = vadd.f32 %v1589_v7, %v6355_v40  ;;  %v1599_v35 = vpop.f32.mrb[53].mxu0  ;;  %v1952_v38 = vpop.f32.mrb[53].mxu1 }
 0x186   :  { %v1943_v34 = vadd.f32 %v1942_v18, %v6357_v4  ;;  %v4560_v17 = vadd.f32 %v4552_v28, %v4056_v51  ;;  %3037 = vst [vmem:[%s8675_s5 + $0x600] sm:$0xff] %v1588_v21  ;;  %v3541_v15 = vadd.f32 %v3533_v36, %v1588_v21  ;;  %v4061_v42 = vmul.f32 %v1588_v21, %v1588_v21  ;;  %v1601_v7 = vpop.f32.mrb[54].mxu0  ;;  %v1954_v18 = vpop.f32.mrb[54].mxu1 }
 0x187   :  { %3039 = vst [vmem:[%s8675_s5 + $0x610] sm:$0xff] %v1941_v44  ;;  %v3543_v45 = vadd.f32 %v3535_v39, %v1941_v44  ;;  %v4063_v27 = vmul.f32 %v1941_v44, %v1941_v44  ;;  %3038 = vst [vmem:[%s8675_s5 + $0x608] sm:$0xff] %v1590_v57  ;;  %v3542_v58 = vadd.f32 %v3534_v6, %v1590_v57  ;;  %2242 = vmatmul.mubr.bf16.gmra.mrb[156].mxu0 %v5690_v14 }
 0x188   :  { %v4062_v52 = vmul.f32 %v1590_v57, %v1590_v57  ;;  %3040 = vst [vmem:[%s8675_s5 + $0x618] sm:$0xff] %v1943_v34  ;;  %v3544_v25 = vadd.f32 %v3536_v26, %v1943_v34  ;;  %v4565_v3 = vadd.f32 %v4557_v62, %v4061_v42  ;;  %v4064_v8 = vmul.f32 %v1943_v34, %v1943_v34 }
 0x189   :  { %v1592_v12 = vadd.f32 %v1591_v16, %v6343_v61  ;;  %v1945_v23 = vadd.f32 %v1944_v63, %v6345_v53  ;;  %2595 = vmatmul.mubr.bf16.gmra.mrb[156].mxu1 %v5690_v14  ;;  %v4567_v54 = vadd.f32 %v4559_v2, %v4063_v27  ;;  %v1594_v48 = vadd.f32 %v1593_v47, %v6355_v40  ;;  %v1603_v16 = vpop.f32.mrb[55].mxu0  ;;  %v1956_v63 = vpop.f32.mrb[55].mxu1 }
 0x18a   :  { %v4566_v33 = vadd.f32 %v4558_v11, %v4062_v52  ;;  %v1947_v32 = vadd.f32 %v1946_v1, %v6357_v4  ;;  %2251 = vmatprep.mubr.bf16.mxu0 %v5694_v20  ;;  %v4568_v43 = vadd.f32 %v4560_v17, %v4064_v8  ;;  %2604 = vmatprep.mubr.bf16.mxu1 %v5694_v20 }
 0x18b   :  { %3045 = vst [vmem:[%s8675_s5 + $0x640] sm:$0xff] %v1592_v12  ;;  %v3549_v10 = vadd.f32 %v3541_v15, %v1592_v12  ;;  %v4069_v56 = vmul.f32 %v1592_v12, %v1592_v12  ;;  %3047 = vst [vmem:[%s8675_s5 + $0x650] sm:$0xff] %v1945_v23  ;;  %v3551_v14 = vadd.f32 %v3543_v45, %v1945_v23 }
 0x18c   :  { %v4071_v28 = vmul.f32 %v1945_v23, %v1945_v23  ;;  %3046 = vst [vmem:[%s8675_s5 + $0x648] sm:$0xff] %v1594_v48  ;;  %v3550_v36 = vadd.f32 %v3542_v58, %v1594_v48  ;;  %v4070_v5 = vmul.f32 %v1594_v48, %v1594_v48  ;;  %3048 = vst [vmem:[%s8675_s5 + $0x658] sm:$0xff] %v1947_v32 }
 0x18d   :  { %v3552_v39 = vadd.f32 %v3544_v25, %v1947_v32  ;;  %v4573_v6 = vadd.f32 %v4565_v3, %v4069_v56  ;;  %v4072_v29 = vmul.f32 %v1947_v32, %v1947_v32  ;;  %v1598_v26 = vadd.f32 %v1597_v9, %v6343_v61  ;;  %v1960_v56 = vpop.f32.mrb[56].mxu1 }
 0x18e   :  { %v1951_v20 = vadd.f32 %v1950_v49, %v6345_v53  ;;  %v4575_v62 = vadd.f32 %v4567_v54, %v4071_v28  ;;  %v4574_v51 = vadd.f32 %v4566_v33, %v4070_v5  ;;  %v1600_v21 = vadd.f32 %v1599_v35, %v6355_v40  ;;  %v1607_v33 = vpop.f32.mrb[56].mxu0  ;;  %v1962_v5 = vpop.f32.mrb[57].mxu1 }
 0x18f   :  { %v1953_v44 = vadd.f32 %v1952_v38, %v6357_v4  ;;  %v4576_v2 = vadd.f32 %v4568_v43, %v4072_v29  ;;  %3053 = vst [vmem:[%s8675_s5 + $0x680] sm:$0xff] %v1598_v26  ;;  %v3557_v11 = vadd.f32 %v3549_v10, %v1598_v26  ;;  %v4077_v57 = vmul.f32 %v1598_v26, %v1598_v26  ;;  %v1964_v26 = vpop.f32.mrb[58].mxu1 }
 0x190   :  { %3055 = vst [vmem:[%s8675_s5 + $0x690] sm:$0xff] %v1951_v20  ;;  %v3559_v34 = vadd.f32 %v3551_v14, %v1951_v20  ;;  %v4079_v47 = vmul.f32 %v1951_v20, %v1951_v20  ;;  %3054 = vst [vmem:[%s8675_s5 + $0x688] sm:$0xff] %v1600_v21  ;;  %v3558_v17 = vadd.f32 %v3550_v36, %v1600_v21  ;;  %2252 = vmatmul.mubr.bf16.gmra.mrb[160].mxu0 %v5718_v41  ;;  %v1609_v14 = vpop.f32.mrb[57].mxu0 }
 0x191   :  { %v4078_v15 = vmul.f32 %v1600_v21, %v1600_v21  ;;  %3056 = vst [vmem:[%s8675_s5 + $0x698] sm:$0xff] %v1953_v44  ;;  %v3560_v42 = vadd.f32 %v3552_v39, %v1953_v44  ;;  %v4581_v45 = vadd.f32 %v4573_v6, %v4077_v57  ;;  %v4080_v1 = vmul.f32 %v1953_v44, %v1953_v44  ;;  %v1611_v39 = vpop.f32.mrb[58].mxu0  ;;  %v1966_v21 = vpop.f32.mrb[59].mxu1 }
 0x192   :  { %v1602_v27 = vadd.f32 %v1601_v7, %v6343_v61  ;;  %v1955_v58 = vadd.f32 %v1954_v18, %v6345_v53  ;;  %2605 = vmatmul.mubr.bf16.gmra.mrb[160].mxu1 %v5718_v41  ;;  %v4583_v52 = vadd.f32 %v4575_v62, %v4079_v47  ;;  %v1604_v3 = vadd.f32 %v1603_v16, %v6355_v40  ;;  %v1613_v20 = vpop.f32.mrb[59].mxu0 }
 0x193   :  { %v4582_v25 = vadd.f32 %v4574_v51, %v4078_v15  ;;  %v1957_v8 = vadd.f32 %v1956_v63, %v6357_v4  ;;  %2261 = vmatprep.mubr.bf16.mxu0 %v5722_v46  ;;  %v4584_v12 = vadd.f32 %v4576_v2, %v4080_v1  ;;  %2614 = vmatprep.mubr.bf16.mxu1 %v5722_v46 }
 0x194   :  { %3061 = vst [vmem:[%s8675_s5 + $0x6c0] sm:$0xff] %v1602_v27  ;;  %v3565_v23 = vadd.f32 %v3557_v11, %v1602_v27  ;;  %v4085_v54 = vmul.f32 %v1602_v27, %v1602_v27  ;;  %3063 = vst [vmem:[%s8675_s5 + $0x6d0] sm:$0xff] %v1955_v58  ;;  %v3567_v41 = vadd.f32 %v3559_v34, %v1955_v58 }
 0x195   :  { %v4087_v48 = vmul.f32 %v1955_v58, %v1955_v58  ;;  %3062 = vst [vmem:[%s8675_s5 + $0x6c8] sm:$0xff] %v1604_v3  ;;  %v3566_v32 = vadd.f32 %v3558_v17, %v1604_v3  ;;  %v4086_v43 = vmul.f32 %v1604_v3, %v1604_v3  ;;  %3064 = vst [vmem:[%s8675_s5 + $0x6d8] sm:$0xff] %v1957_v8  ;;  %v1617_v58 = vpop.f32.mrb[60].mxu0 }
 0x196   :  { %v3568_v10 = vadd.f32 %v3560_v42, %v1957_v8  ;;  %v4589_v9 = vadd.f32 %v4581_v45, %v4085_v54  ;;  %v4088_v28 = vmul.f32 %v1957_v8, %v1957_v8  ;;  %v1608_v36 = vadd.f32 %v1607_v33, %v6343_v61 }
 0x197   :  { %v1961_v46 = vadd.f32 %v1960_v56, %v6345_v53  ;;  %v4591_v49 = vadd.f32 %v4583_v52, %v4087_v48  ;;  %v4590_v35 = vadd.f32 %v4582_v25, %v4086_v43  ;;  %v1610_v6 = vadd.f32 %v1609_v14, %v6355_v40 }
 0x198   :  { %v1963_v29 = vadd.f32 %v1962_v5, %v6357_v4  ;;  %v4592_v38 = vadd.f32 %v4584_v12, %v4088_v28  ;;  %3069 = vst [vmem:[%s8675_s5 + $0x700] sm:$0xff] %v1608_v36  ;;  %v3573_v7 = vadd.f32 %v3565_v23, %v1608_v36  ;;  %v4093_v62 = vmul.f32 %v1608_v36, %v1608_v36  ;;  %v1970_v12 = vpop.f32.mrb[60].mxu1  ;;  %v1619_v23 = vpop.f32.mrb[61].mxu0 }
 0x199   :  { %3071 = vst [vmem:[%s8675_s5 + $0x710] sm:$0xff] %v1961_v46  ;;  %v3575_v51 = vadd.f32 %v3567_v41, %v1961_v46  ;;  %v4095_v44 = vmul.f32 %v1961_v46, %v1961_v46  ;;  %3070 = vst [vmem:[%s8675_s5 + $0x708] sm:$0xff] %v1610_v6  ;;  %v3574_v18 = vadd.f32 %v3566_v32, %v1610_v6  ;;  %2262 = vmatmul.mubr.bf16.gmra.mrb[164].mxu0 %v5758_v22  ;;  %v1972_v48 = vpop.f32.mrb[61].mxu1  ;;  %v1621_v32 = vpop.f32.mrb[62].mxu0 }
 0x19a   :  { %v4094_v16 = vmul.f32 %v1610_v6, %v1610_v6  ;;  %3072 = vst [vmem:[%s8675_s5 + $0x718] sm:$0xff] %v1963_v29  ;;  %v3576_v2 = vadd.f32 %v3568_v10, %v1963_v29  ;;  %v4597_v11 = vadd.f32 %v4589_v9, %v4093_v62  ;;  %v4096_v57 = vmul.f32 %v1963_v29, %v1963_v29  ;;  %v1974_v9 = vpop.f32.mrb[62].mxu1  ;;  %v1623_v28 = vpop.f32.mrb[63].mxu0 }
 0x19b   :  { %v1612_v34 = vadd.f32 %v1611_v39, %v6343_v61  ;;  %v1965_v63 = vadd.f32 %v1964_v26, %v6345_v53  ;;  %2615 = vmatmul.mubr.bf16.gmra.mrb[164].mxu1 %v5758_v22  ;;  %v4599_v47 = vadd.f32 %v4591_v49, %v4095_v44  ;;  %v1614_v15 = vadd.f32 %v1613_v20, %v6355_v40  ;;  %v1976_v49 = vpop.f32.mrb[63].mxu1 }
 0x19c   :  { %v4598_v17 = vadd.f32 %v4590_v35, %v4094_v16  ;;  %v1967_v42 = vadd.f32 %v1966_v21, %v6357_v4  ;;  %2271 = vmatprep.mubr.bf16.mxu0 %v5762_v24  ;;  %v4600_v45 = vadd.f32 %v4592_v38, %v4096_v57  ;;  %2624 = vmatprep.mubr.bf16.mxu1 %v5762_v24  ;;  %v1627_v57 = vpop.f32.mrb[64].mxu0 }
 0x19d   :  { %3077 = vst [vmem:[%s8675_s5 + $0x740] sm:$0xff] %v1612_v34  ;;  %v3581_v1 = vadd.f32 %v3573_v7, %v1612_v34  ;;  %v4101_v27 = vmul.f32 %v1612_v34, %v1612_v34  ;;  %3079 = vst [vmem:[%s8675_s5 + $0x750] sm:$0xff] %v1965_v63  ;;  %v3583_v22 = vadd.f32 %v3575_v51, %v1965_v63 }
 0x19e   :  { %v4103_v52 = vmul.f32 %v1965_v63, %v1965_v63  ;;  %3078 = vst [vmem:[%s8675_s5 + $0x748] sm:$0xff] %v1614_v15  ;;  %v3582_v25 = vadd.f32 %v3574_v18, %v1614_v15  ;;  %v4102_v3 = vmul.f32 %v1614_v15, %v1614_v15  ;;  %3080 = vst [vmem:[%s8675_s5 + $0x758] sm:$0xff] %v1967_v42  ;;  %v1980_v15 = vpop.f32.mrb[64].mxu1 }
 0x19f   :  { %v3584_v8 = vadd.f32 %v3576_v2, %v1967_v42  ;;  %v4605_v54 = vadd.f32 %v4597_v11, %v4101_v27  ;;  %v4104_v41 = vmul.f32 %v1967_v42, %v1967_v42  ;;  %v1618_v33 = vadd.f32 %v1617_v58, %v6343_v61  ;;  %v1629_v42 = vpop.f32.mrb[65].mxu0 }
 0x1a0   :  { %v1971_v24 = vadd.f32 %v1970_v12, %v6345_v53  ;;  %v4607_v43 = vadd.f32 %v4599_v47, %v4103_v52  ;;  %v4606_v10 = vadd.f32 %v4598_v17, %v4102_v3  ;;  %v1620_v56 = vadd.f32 %v1619_v23, %v6355_v40  ;;  %v1631_v58 = vpop.f32.mrb[66].mxu0 }
 0x1a1   :  { %v1973_v14 = vadd.f32 %v1972_v48, %v6357_v4  ;;  %v4608_v36 = vadd.f32 %v4600_v45, %v4104_v41  ;;  %3085 = vst [vmem:[%s8675_s5 + $0x780] sm:$0xff] %v1618_v33  ;;  %v3589_v46 = vadd.f32 %v3581_v1, %v1618_v33  ;;  %v4109_v5 = vmul.f32 %v1618_v33, %v1618_v33  ;;  %v1633_v23 = vpop.f32.mrb[67].mxu0 }
 0x1a2   :  { %3087 = vst [vmem:[%s8675_s5 + $0x790] sm:$0xff] %v1971_v24  ;;  %v3591_v39 = vadd.f32 %v3583_v22, %v1971_v24  ;;  %v4111_v35 = vmul.f32 %v1971_v24, %v1971_v24  ;;  %3086 = vst [vmem:[%s8675_s5 + $0x788] sm:$0xff] %v1620_v56  ;;  %v3590_v6 = vadd.f32 %v3582_v25, %v1620_v56  ;;  %2272 = vmatmul.mubr.bf16.gmra.mrb[168].mxu0 %v5786_v50  ;;  %v1982_v22 = vpop.f32.mrb[65].mxu1 }
 0x1a3   :  { %v4110_v29 = vmul.f32 %v1620_v56, %v1620_v56  ;;  %3088 = vst [vmem:[%s8675_s5 + $0x798] sm:$0xff] %v1973_v14  ;;  %v3592_v26 = vadd.f32 %v3584_v8, %v1973_v14  ;;  %v4613_v20 = vadd.f32 %v4605_v54, %v4109_v5  ;;  %v4112_v38 = vmul.f32 %v1973_v14, %v1973_v14  ;;  %v1984_v12 = vpop.f32.mrb[66].mxu1 }
 0x1a4   :  { %v1622_v7 = vadd.f32 %v1621_v32, %v6343_v61  ;;  %v1975_v62 = vadd.f32 %v1974_v9, %v6345_v53  ;;  %2625 = vmatmul.mubr.bf16.gmra.mrb[168].mxu1 %v5786_v50  ;;  %v4615_v51 = vadd.f32 %v4607_v43, %v4111_v35  ;;  %v1624_v44 = vadd.f32 %v1623_v28, %v6355_v40  ;;  %v1986_v48 = vpop.f32.mrb[67].mxu1  ;;  %v8782_v35 = vld [vmem:[#allocation3_spill] sm:$0xff] }
 0x1a5   :  { %v4614_v21 = vadd.f32 %v4606_v10, %v4110_v29  ;;  %v1977_v18 = vadd.f32 %v1976_v49, %v6357_v4  ;;  %2281 = vmatprep.mubr.bf16.mxu0 %v5790_v55  ;;  %v4616_v16 = vadd.f32 %v4608_v36, %v4112_v38  ;;  %2634 = vmatprep.mubr.bf16.mxu1 %v5790_v55 }
 0x1a6   :  { %3093 = vst [vmem:[%s8675_s5 + $0x7c0] sm:$0xff] %v1622_v7  ;;  %v3597_v2 = vadd.f32 %v3589_v46, %v1622_v7  ;;  %v4117_v11 = vmul.f32 %v1622_v7, %v1622_v7  ;;  %3095 = vst [vmem:[%s8675_s5 + $0x7d0] sm:$0xff] %v1975_v62  ;;  %v3599_v50 = vadd.f32 %v3591_v39, %v1975_v62 }
 0x1a7   :  { %v4119_v34 = vmul.f32 %v1975_v62, %v1975_v62  ;;  %3094 = vst [vmem:[%s8675_s5 + $0x7c8] sm:$0xff] %v1624_v44  ;;  %v3598_v63 = vadd.f32 %v3590_v6, %v1624_v44  ;;  %v4118_v47 = vmul.f32 %v1624_v44, %v1624_v44  ;;  %3096 = vst [vmem:[%s8675_s5 + $0x7d8] sm:$0xff] %v1977_v18 }
 0x1a8   :  { %v3600_v17 = vadd.f32 %v3592_v26, %v1977_v18  ;;  %v4621_v45 = vadd.f32 %v4613_v20, %v4117_v11  ;;  %v4120_v1 = vmul.f32 %v1977_v18, %v1977_v18  ;;  %v1628_v27 = vadd.f32 %v1627_v57, %v6343_v61  ;;  %v1637_v20 = vpop.f32.mrb[68].mxu0 }
 0x1a9   :  { %v1981_v55 = vadd.f32 %v1980_v15, %v6345_v53  ;;  %v4623_v52 = vadd.f32 %v4615_v51, %v4119_v34  ;;  %v4622_v25 = vadd.f32 %v4614_v21, %v4118_v47  ;;  %v1630_v3 = vadd.f32 %v1629_v42, %v6355_v40  ;;  %v1990_v21 = vpop.f32.mrb[68].mxu1  ;;  %v1639_v44 = vpop.f32.mrb[69].mxu0 }
 0x1aa   :  { %v1983_v8 = vadd.f32 %v1982_v22, %v6357_v4  ;;  %v4624_v54 = vadd.f32 %v4616_v16, %v4120_v1  ;;  %3101 = vst [vmem:[%s8675_s5 + $0x800] sm:$0xff] %v1628_v27  ;;  %v3605_v41 = vadd.f32 %v3597_v2, %v1628_v27  ;;  %v4125_v33 = vmul.f32 %v1628_v27, %v1628_v27  ;;  %v1641_v57 = vpop.f32.mrb[70].mxu0 }
 0x1ab   :  { %3103 = vst [vmem:[%s8675_s5 + $0x810] sm:$0xff] %v1981_v55  ;;  %v3607_v24 = vadd.f32 %v3599_v50, %v1981_v55  ;;  %v4127_v32 = vmul.f32 %v1981_v55, %v1981_v55  ;;  %3102 = vst [vmem:[%s8675_s5 + $0x808] sm:$0xff] %v1630_v3  ;;  %v3606_v43 = vadd.f32 %v3598_v63, %v1630_v3  ;;  %2282 = vmatmul.mubr.bf16.gmra.mrb[172].mxu0 %v5826_v31  ;;  %v1992_v50 = vpop.f32.mrb[69].mxu1  ;;  %v1643_v42 = vpop.f32.mrb[71].mxu0 }
 0x1ac   :  { %v4126_v10 = vmul.f32 %v1630_v3, %v1630_v3  ;;  %3104 = vst [vmem:[%s8675_s5 + $0x818] sm:$0xff] %v1983_v8  ;;  %v3608_v56 = vadd.f32 %v3600_v17, %v1983_v8  ;;  %v4629_v14 = vadd.f32 %v4621_v45, %v4125_v33  ;;  %v4128_v9 = vmul.f32 %v1983_v8, %v1983_v8  ;;  %v1994_v15 = vpop.f32.mrb[70].mxu1  ;;  %v8783_v8 = vld [vmem:[#allocation4_spill] sm:$0xff] }
 0x1ad   :  { %v1632_v28 = vadd.f32 %v1631_v58, %v6343_v61  ;;  %v1985_v36 = vadd.f32 %v1984_v12, %v6345_v53  ;;  %2635 = vmatmul.mubr.bf16.gmra.mrb[172].mxu1 %v5826_v31  ;;  %v4631_v46 = vadd.f32 %v4623_v52, %v4127_v32  ;;  %v1634_v39 = vadd.f32 %v1633_v23, %v6355_v40  ;;  %v1996_v22 = vpop.f32.mrb[71].mxu1 }
 0x1ae   :  { %v4630_v5 = vadd.f32 %v4622_v25, %v4126_v10  ;;  %v1987_v49 = vadd.f32 %v1986_v48, %v6357_v4  ;;  %2291 = vmatprep.mubr.bf16.mxu0 %v8782_v35  ;;  %v4632_v6 = vadd.f32 %v4624_v54, %v4128_v9  ;;  %2644 = vmatprep.mubr.bf16.mxu1 %v8782_v35 }
 0x1af   :  { %3109 = vst [vmem:[%s8675_s5 + $0x840] sm:$0xff] %v1632_v28  ;;  %v3613_v29 = vadd.f32 %v3605_v41, %v1632_v28  ;;  %v4133_v26 = vmul.f32 %v1632_v28, %v1632_v28  ;;  %3111 = vst [vmem:[%s8675_s5 + $0x850] sm:$0xff] %v1985_v36  ;;  %v3615_v31 = vadd.f32 %v3607_v24, %v1985_v36  ;;  %v1647_v28 = vpop.f32.mrb[72].mxu0 }
 0x1b0   :  { %v4135_v38 = vmul.f32 %v1985_v36, %v1985_v36  ;;  %3110 = vst [vmem:[%s8675_s5 + $0x848] sm:$0xff] %v1634_v39  ;;  %v3614_v7 = vadd.f32 %v3606_v43, %v1634_v39  ;;  %v4134_v62 = vmul.f32 %v1634_v39, %v1634_v39  ;;  %3112 = vst [vmem:[%s8675_s5 + $0x858] sm:$0xff] %v1987_v49  ;;  %v8784_v43 = vld [vmem:[#allocation5_spill] sm:$0xff]  ;;  %v1649_v35 = vpop.f32.mrb[73].mxu0 }
 0x1b1   :  { %v3616_v51 = vadd.f32 %v3608_v56, %v1987_v49  ;;  %v4637_v18 = vadd.f32 %v4629_v14, %v4133_v26  ;;  %v4136_v16 = vmul.f32 %v1987_v49, %v1987_v49  ;;  %v1638_v2 = vadd.f32 %v1637_v20, %v6343_v61  ;;  %v2000_v49 = vpop.f32.mrb[72].mxu1 }
 0x1b2   :  { %v1991_v11 = vadd.f32 %v1990_v21, %v6345_v53  ;;  %v4639_v34 = vadd.f32 %v4631_v46, %v4135_v38  ;;  %v4638_v63 = vadd.f32 %v4630_v5, %v4134_v62  ;;  %v1640_v47 = vadd.f32 %v1639_v44, %v6355_v40  ;;  %v2002_v20 = vpop.f32.mrb[73].mxu1  ;;  %v1651_v38 = vpop.f32.mrb[74].mxu0 }
 0x1b3   :  { %v1993_v17 = vadd.f32 %v1992_v50, %v6357_v4  ;;  %v4640_v45 = vadd.f32 %v4632_v6, %v4136_v16  ;;  %3117 = vst [vmem:[%s8675_s5 + $0x880] sm:$0xff] %v1638_v2  ;;  %v3621_v1 = vadd.f32 %v3613_v29, %v1638_v2  ;;  %v4141_v27 = vmul.f32 %v1638_v2, %v1638_v2  ;;  %v2004_v44 = vpop.f32.mrb[74].mxu1 }
 0x1b4   :  { %3119 = vst [vmem:[%s8675_s5 + $0x890] sm:$0xff] %v1991_v11  ;;  %v3623_v55 = vadd.f32 %v3615_v31, %v1991_v11  ;;  %v4143_v58 = vmul.f32 %v1991_v11, %v1991_v11  ;;  %3118 = vst [vmem:[%s8675_s5 + $0x888] sm:$0xff] %v1640_v47  ;;  %v3622_v52 = vadd.f32 %v3614_v7, %v1640_v47  ;;  %2292 = vmatmul.mubr.bf16.gmra.mrb[176].mxu0 %v8783_v8 }
 0x1b5   :  { %v4142_v25 = vmul.f32 %v1640_v47, %v1640_v47  ;;  %3120 = vst [vmem:[%s8675_s5 + $0x898] sm:$0xff] %v1993_v17  ;;  %v3624_v3 = vadd.f32 %v3616_v51, %v1993_v17  ;;  %v4645_v12 = vadd.f32 %v4637_v18, %v4141_v27  ;;  %v4144_v23 = vmul.f32 %v1993_v17, %v1993_v17  ;;  %v1653_v18 = vpop.f32.mrb[75].mxu0 }
 0x1b6   :  { %v1642_v54 = vadd.f32 %v1641_v57, %v6343_v61  ;;  %v1995_v41 = vadd.f32 %v1994_v15, %v6345_v53  ;;  %2645 = vmatmul.mubr.bf16.gmra.mrb[176].mxu1 %v8783_v8  ;;  %v4647_v33 = vadd.f32 %v4639_v34, %v4143_v58  ;;  %v1644_v48 = vadd.f32 %v1643_v42, %v6355_v40  ;;  %v2006_v57 = vpop.f32.mrb[75].mxu1  ;;  %v8785_v15 = vld [vmem:[#allocation6_spill] sm:$0xff] }
 0x1b7   :  { %v4646_v24 = vadd.f32 %v4638_v63, %v4142_v25  ;;  %v1997_v32 = vadd.f32 %v1996_v22, %v6357_v4  ;;  %2301 = vmatprep.mubr.bf16.mxu0 %v8784_v43  ;;  %v4648_v10 = vadd.f32 %v4640_v45, %v4144_v23  ;;  %2654 = vmatprep.mubr.bf16.mxu1 %v8784_v43  ;;  %v8786_v25 = vld [vmem:[#allocation7_spill] sm:$0xff] }
 0x1b8   :  { %3125 = vst [vmem:[%s8675_s5 + $0x8c0] sm:$0xff] %v1642_v54  ;;  %v3629_v56 = vadd.f32 %v3621_v1, %v1642_v54  ;;  %v4149_v14 = vmul.f32 %v1642_v54, %v1642_v54  ;;  %3127 = vst [vmem:[%s8675_s5 + $0x8d0] sm:$0xff] %v1995_v41  ;;  %v3631_v9 = vadd.f32 %v3623_v55, %v1995_v41  ;;  %v1657_v54 = vpop.f32.mrb[76].mxu0 }
 0x1b9   :  { %v4151_v36 = vmul.f32 %v1995_v41, %v1995_v41  ;;  %3126 = vst [vmem:[%s8675_s5 + $0x8c8] sm:$0xff] %v1644_v48  ;;  %v3630_v46 = vadd.f32 %v3622_v52, %v1644_v48  ;;  %v4150_v5 = vmul.f32 %v1644_v48, %v1644_v48  ;;  %3128 = vst [vmem:[%s8675_s5 + $0x8d8] sm:$0xff] %v1997_v32  ;;  %v1659_v43 = vpop.f32.mrb[77].mxu0 }
 0x1ba   :  { %v3632_v39 = vadd.f32 %v3624_v3, %v1997_v32  ;;  %v4653_v6 = vadd.f32 %v4645_v12, %v4149_v14  ;;  %v4152_v29 = vmul.f32 %v1997_v32, %v1997_v32  ;;  %v1648_v26 = vadd.f32 %v1647_v28, %v6343_v61  ;;  %v2010_v32 = vpop.f32.mrb[76].mxu1 }
 0x1bb   :  { %v2001_v31 = vadd.f32 %v2000_v49, %v6345_v53  ;;  %v4655_v7 = vadd.f32 %v4647_v33, %v4151_v36  ;;  %v4654_v62 = vadd.f32 %v4646_v24, %v4150_v5  ;;  %v1650_v51 = vadd.f32 %v1649_v35, %v6355_v40  ;;  %v2012_v28 = vpop.f32.mrb[77].mxu1  ;;  %v1661_v36 = vpop.f32.mrb[78].mxu0 }
 0x1bc   :  { %v2003_v21 = vadd.f32 %v2002_v20, %v6357_v4  ;;  %v4656_v16 = vadd.f32 %v4648_v10, %v4152_v29  ;;  %3133 = vst [vmem:[%s8675_s5 + $0x900] sm:$0xff] %v1648_v26  ;;  %v3637_v2 = vadd.f32 %v3629_v56, %v1648_v26  ;;  %v4157_v11 = vmul.f32 %v1648_v26, %v1648_v26  ;;  %v2014_v35 = vpop.f32.mrb[78].mxu1 }
 0x1bd   :  { %3135 = vst [vmem:[%s8675_s5 + $0x910] sm:$0xff] %v2001_v31  ;;  %v3639_v50 = vadd.f32 %v3631_v9, %v2001_v31  ;;  %v4159_v34 = vmul.f32 %v2001_v31, %v2001_v31  ;;  %3134 = vst [vmem:[%s8675_s5 + $0x908] sm:$0xff] %v1650_v51  ;;  %v3638_v63 = vadd.f32 %v3630_v46, %v1650_v51  ;;  %2302 = vmatmul.mubr.bf16.gmra.mrb[180].mxu0 %v8785_v15 }
 0x1be   :  { %v4158_v47 = vmul.f32 %v1650_v51, %v1650_v51  ;;  %3136 = vst [vmem:[%s8675_s5 + $0x918] sm:$0xff] %v2003_v21  ;;  %v3640_v17 = vadd.f32 %v3632_v39, %v2003_v21  ;;  %v4661_v42 = vadd.f32 %v4653_v6, %v4157_v11  ;;  %v4160_v45 = vmul.f32 %v2003_v21, %v2003_v21  ;;  %v1663_v6 = vpop.f32.mrb[79].mxu0 }
 0x1bf   :  { %v1652_v1 = vadd.f32 %v1651_v38, %v6343_v61  ;;  %v2005_v27 = vadd.f32 %v2004_v44, %v6345_v53  ;;  %2655 = vmatmul.mubr.bf16.gmra.mrb[180].mxu1 %v8785_v15  ;;  %v4663_v55 = vadd.f32 %v4655_v7, %v4159_v34  ;;  %v1654_v58 = vadd.f32 %v1653_v18, %v6355_v40  ;;  %v2016_v38 = vpop.f32.mrb[79].mxu1  ;;  %v8787_v44 = vld [vmem:[#allocation8_spill] sm:$0xff] }
 0x1c0   :  { %v4662_v22 = vadd.f32 %v4654_v62, %v4158_v47  ;;  %v2007_v52 = vadd.f32 %v2006_v57, %v6357_v4  ;;  %2311 = vmatprep.mubr.bf16.mxu0 %v8786_v25  ;;  %v4664_v3 = vadd.f32 %v4656_v16, %v4160_v45  ;;  %2664 = vmatprep.mubr.bf16.mxu1 %v8786_v25  ;;  %v8788_v47 = vld [vmem:[#allocation9_spill] sm:$0xff] }
 0x1c1   :  { %3141 = vst [vmem:[%s8675_s5 + $0x940] sm:$0xff] %v1652_v1  ;;  %v3645_v8 = vadd.f32 %v3637_v2, %v1652_v1  ;;  %v4165_v12 = vmul.f32 %v1652_v1, %v1652_v1  ;;  %3143 = vst [vmem:[%s8675_s5 + $0x950] sm:$0xff] %v2005_v27  ;;  %v3647_v23 = vadd.f32 %v3639_v50, %v2005_v27  ;;  %v1667_v1 = vpop.f32.mrb[80].mxu0 }
 0x1c2   :  { %v4167_v41 = vmul.f32 %v2005_v27, %v2005_v27  ;;  %3142 = vst [vmem:[%s8675_s5 + $0x948] sm:$0xff] %v1654_v58  ;;  %v3646_v33 = vadd.f32 %v3638_v63, %v1654_v58  ;;  %v4166_v24 = vmul.f32 %v1654_v58, %v1654_v58  ;;  %3144 = vst [vmem:[%s8675_s5 + $0x958] sm:$0xff] %v2007_v52  ;;  %v1669_v25 = vpop.f32.mrb[81].mxu0 }
 0x1c3   :  { %v3648_v48 = vadd.f32 %v3640_v17, %v2007_v52  ;;  %v4669_v10 = vadd.f32 %v4661_v42, %v4165_v12  ;;  %v4168_v56 = vmul.f32 %v2007_v52, %v2007_v52  ;;  %v1658_v14 = vadd.f32 %v1657_v54, %v6343_v61  ;;  %v2020_v52 = vpop.f32.mrb[80].mxu1 }
 0x1c4   :  { %v2011_v9 = vadd.f32 %v2010_v32, %v6345_v53  ;;  %v4671_v46 = vadd.f32 %v4663_v55, %v4167_v41  ;;  %v4670_v5 = vadd.f32 %v4662_v22, %v4166_v24  ;;  %v1660_v39 = vadd.f32 %v1659_v43, %v6355_v40  ;;  %v2022_v54 = vpop.f32.mrb[81].mxu1  ;;  %v1671_v41 = vpop.f32.mrb[82].mxu0 }
 0x1c5   :  { %v2013_v49 = vadd.f32 %v2012_v28, %v6357_v4  ;;  %v4672_v29 = vadd.f32 %v4664_v3, %v4168_v56  ;;  %3149 = vst [vmem:[%s8675_s5 + $0x980] sm:$0xff] %v1658_v14  ;;  %v3653_v26 = vadd.f32 %v3645_v8, %v1658_v14  ;;  %v4173_v31 = vmul.f32 %v1658_v14, %v1658_v14  ;;  %v2024_v43 = vpop.f32.mrb[82].mxu1 }
 0x1c6   :  { %3151 = vst [vmem:[%s8675_s5 + $0x990] sm:$0xff] %v2011_v9  ;;  %v3655_v20 = vadd.f32 %v3647_v23, %v2011_v9  ;;  %v4175_v7 = vmul.f32 %v2011_v9, %v2011_v9  ;;  %3150 = vst [vmem:[%s8675_s5 + $0x988] sm:$0xff] %v1660_v39  ;;  %v3654_v62 = vadd.f32 %v3646_v33, %v1660_v39  ;;  %2312 = vmatmul.mubr.bf16.gmra.mrb[184].mxu0 %v8787_v44 }
 0x1c7   :  { %v4174_v51 = vmul.f32 %v1660_v39, %v1660_v39  ;;  %3152 = vst [vmem:[%s8675_s5 + $0x998] sm:$0xff] %v2013_v49  ;;  %v3656_v21 = vadd.f32 %v3648_v48, %v2013_v49  ;;  %v4677_v18 = vadd.f32 %v4669_v10, %v4173_v31  ;;  %v4176_v16 = vmul.f32 %v2013_v49, %v2013_v49  ;;  %v1673_v10 = vpop.f32.mrb[83].mxu0 }
 0x1c8   :  { %v1662_v2 = vadd.f32 %v1661_v36, %v6343_v61  ;;  %v2015_v11 = vadd.f32 %v2014_v35, %v6345_v53  ;;  %2665 = vmatmul.mubr.bf16.gmra.mrb[184].mxu1 %v8787_v44  ;;  %v4679_v50 = vadd.f32 %v4671_v46, %v4175_v7  ;;  %v1664_v34 = vadd.f32 %v1663_v6, %v6355_v40  ;;  %v2026_v36 = vpop.f32.mrb[83].mxu1  ;;  %v8789_v35 = vld [vmem:[#allocation10_spill] sm:$0xff] }
 0x1c9   :  { %v4678_v57 = vadd.f32 %v4670_v5, %v4174_v51  ;;  %v2017_v63 = vadd.f32 %v2016_v38, %v6357_v4  ;;  %2321 = vmatprep.mubr.bf16.mxu0 %v8788_v47  ;;  %v4680_v17 = vadd.f32 %v4672_v29, %v4176_v16  ;;  %2674 = vmatprep.mubr.bf16.mxu1 %v8788_v47  ;;  %v8790_v51 = vld [vmem:[#allocation11_spill] sm:$0xff] }
 0x1ca   :  { %3157 = vst [vmem:[%s8675_s5 + $0x9c0] sm:$0xff] %v1662_v2  ;;  %v3661_v15 = vadd.f32 %v3653_v26, %v1662_v2  ;;  %v4181_v42 = vmul.f32 %v1662_v2, %v1662_v2  ;;  %3159 = vst [vmem:[%s8675_s5 + $0x9d0] sm:$0xff] %v2015_v11  ;;  %v3663_v45 = vadd.f32 %v3655_v20, %v2015_v11  ;;  %v1677_v2 = vpop.f32.mrb[84].mxu0 }
 0x1cb   :  { %v4183_v27 = vmul.f32 %v2015_v11, %v2015_v11  ;;  %3158 = vst [vmem:[%s8675_s5 + $0x9c8] sm:$0xff] %v1664_v34  ;;  %v3662_v55 = vadd.f32 %v3654_v62, %v1664_v34  ;;  %v4182_v22 = vmul.f32 %v1664_v34, %v1664_v34  ;;  %3160 = vst [vmem:[%s8675_s5 + $0x9d8] sm:$0xff] %v2017_v63  ;;  %v1679_v47 = vpop.f32.mrb[85].mxu0 }
 0x1cc   :  { %v3664_v58 = vadd.f32 %v3656_v21, %v2017_v63  ;;  %v4685_v3 = vadd.f32 %v4677_v18, %v4181_v42  ;;  %v4184_v8 = vmul.f32 %v2017_v63, %v2017_v63  ;;  %v1668_v12 = vadd.f32 %v1667_v1, %v6343_v61  ;;  %v2030_v63 = vpop.f32.mrb[84].mxu1 }
 0x1cd   :  { %v2021_v23 = vadd.f32 %v2020_v52, %v6345_v53  ;;  %v4687_v33 = vadd.f32 %v4679_v50, %v4183_v27  ;;  %v4686_v24 = vadd.f32 %v4678_v57, %v4182_v22  ;;  %v1670_v48 = vadd.f32 %v1669_v25, %v6355_v40  ;;  %v2032_v1 = vpop.f32.mrb[85].mxu1  ;;  %v1681_v27 = vpop.f32.mrb[86].mxu0 }
 0x1ce   :  { %v2023_v32 = vadd.f32 %v2022_v54, %v6357_v4  ;;  %v4688_v56 = vadd.f32 %v4680_v17, %v4184_v8  ;;  %3165 = vst [vmem:[%s8675_s5 + $0xa00] sm:$0xff] %v1668_v12  ;;  %v3669_v14 = vadd.f32 %v3661_v15, %v1668_v12  ;;  %v4189_v9 = vmul.f32 %v1668_v12, %v1668_v12  ;;  %v2034_v25 = vpop.f32.mrb[86].mxu1 }
 0x1cf   :  { %3167 = vst [vmem:[%s8675_s5 + $0xa10] sm:$0xff] %v2021_v23  ;;  %v3671_v28 = vadd.f32 %v3663_v45, %v2021_v23  ;;  %v4191_v46 = vmul.f32 %v2021_v23, %v2021_v23  ;;  %3166 = vst [vmem:[%s8675_s5 + $0xa08] sm:$0xff] %v1670_v48  ;;  %v3670_v5 = vadd.f32 %v3662_v55, %v1670_v48  ;;  %2322 = vmatmul.mubr.bf16.gmra.mrb[188].mxu0 %v8789_v35 }
 0x1d0   :  { %v4190_v39 = vmul.f32 %v1670_v48, %v1670_v48  ;;  %3168 = vst [vmem:[%s8675_s5 + $0xa18] sm:$0xff] %v2023_v32  ;;  %v3672_v49 = vadd.f32 %v3664_v58, %v2023_v32  ;;  %v4693_v6 = vadd.f32 %v4685_v3, %v4189_v9  ;;  %v4192_v29 = vmul.f32 %v2023_v32, %v2023_v32  ;;  %v1683_v3 = vpop.f32.mrb[87].mxu0 }
 0x1d1   :  { %v1672_v26 = vadd.f32 %v1671_v41, %v6343_v61  ;;  %v2025_v31 = vadd.f32 %v2024_v43, %v6345_v53  ;;  %2675 = vmatmul.mubr.bf16.gmra.mrb[188].mxu1 %v8789_v35  ;;  %v4695_v20 = vadd.f32 %v4687_v33, %v4191_v46  ;;  %v1674_v7 = vadd.f32 %v1673_v10, %v6355_v40  ;;  %v2036_v41 = vpop.f32.mrb[87].mxu1  ;;  %v8791_v43 = vld [vmem:[#allocation12_spill] sm:$0xff] }
 0x1d2   :  { %v4694_v38 = vadd.f32 %v4686_v24, %v4190_v39  ;;  %v2027_v62 = vadd.f32 %v2026_v36, %v6357_v4  ;;  %2331 = vmatprep.mubr.bf16.mxu0 %v8790_v51  ;;  %v4696_v21 = vadd.f32 %v4688_v56, %v4192_v29  ;;  %2684 = vmatprep.mubr.bf16.mxu1 %v8790_v51  ;;  %v8792_v39 = vld [vmem:[#allocation13_spill] sm:$0xff] }
 0x1d3   :  { %3173 = vst [vmem:[%s8675_s5 + $0xa40] sm:$0xff] %v1672_v26  ;;  %v3677_v44 = vadd.f32 %v3669_v14, %v1672_v26  ;;  %v4197_v18 = vmul.f32 %v1672_v26, %v1672_v26  ;;  %3175 = vst [vmem:[%s8675_s5 + $0xa50] sm:$0xff] %v2025_v31  ;;  %v3679_v16 = vadd.f32 %v3671_v28, %v2025_v31  ;;  %v1687_v26 = vpop.f32.mrb[88].mxu0 }
 0x1d4   :  { %v4199_v11 = vmul.f32 %v2025_v31, %v2025_v31  ;;  %3174 = vst [vmem:[%s8675_s5 + $0xa48] sm:$0xff] %v1674_v7  ;;  %v3678_v50 = vadd.f32 %v3670_v5, %v1674_v7  ;;  %v4198_v57 = vmul.f32 %v1674_v7, %v1674_v7  ;;  %3176 = vst [vmem:[%s8675_s5 + $0xa58] sm:$0xff] %v2027_v62  ;;  %v1689_v51 = vpop.f32.mrb[89].mxu0 }
 0x1d5   :  { %v3680_v34 = vadd.f32 %v3672_v49, %v2027_v62  ;;  %v4701_v17 = vadd.f32 %v4693_v6, %v4197_v18  ;;  %v4200_v15 = vmul.f32 %v2027_v62, %v2027_v62  ;;  %v1678_v42 = vadd.f32 %v1677_v2, %v6343_v61  ;;  %v2040_v62 = vpop.f32.mrb[88].mxu1 }
 0x1d6   :  { %v2031_v45 = vadd.f32 %v2030_v63, %v6345_v53  ;;  %v4703_v55 = vadd.f32 %v4695_v20, %v4199_v11  ;;  %v4702_v22 = vadd.f32 %v4694_v38, %v4198_v57  ;;  %v1680_v58 = vadd.f32 %v1679_v47, %v6355_v40  ;;  %v2042_v2 = vpop.f32.mrb[89].mxu1  ;;  %v1691_v11 = vpop.f32.mrb[90].mxu0 }
 0x1d7   :  { %v2033_v52 = vadd.f32 %v2032_v1, %v6357_v4  ;;  %v4704_v8 = vadd.f32 %v4696_v21, %v4200_v15  ;;  %3181 = vst [vmem:[%s8675_s5 + $0xa80] sm:$0xff] %v1678_v42  ;;  %v3685_v12 = vadd.f32 %v3677_v44, %v1678_v42  ;;  %v4205_v23 = vmul.f32 %v1678_v42, %v1678_v42  ;;  %v2044_v47 = vpop.f32.mrb[90].mxu1 }
 0x1d8   :  { %3183 = vst [vmem:[%s8675_s5 + $0xa90] sm:$0xff] %v2031_v45  ;;  %v3687_v54 = vadd.f32 %v3679_v16, %v2031_v45  ;;  %v4207_v33 = vmul.f32 %v2031_v45, %v2031_v45  ;;  %3182 = vst [vmem:[%s8675_s5 + $0xa88] sm:$0xff] %v1680_v58  ;;  %v3686_v24 = vadd.f32 %v3678_v50, %v1680_v58  ;;  %2332 = vmatmul.mubr.bf16.gmra.mrb[192].mxu0 %v8791_v43 }
 0x1d9   :  { %v4206_v48 = vmul.f32 %v1680_v58, %v1680_v58  ;;  %3184 = vst [vmem:[%s8675_s5 + $0xa98] sm:$0xff] %v2033_v52  ;;  %v3688_v32 = vadd.f32 %v3680_v34, %v2033_v52  ;;  %v4709_v10 = vadd.f32 %v4701_v17, %v4205_v23  ;;  %v4208_v56 = vmul.f32 %v2033_v52, %v2033_v52  ;;  %v1693_v17 = vpop.f32.mrb[91].mxu0 }
 0x1da   :  { %v1682_v14 = vadd.f32 %v1681_v27, %v6343_v61  ;;  %v2035_v9 = vadd.f32 %v2034_v25, %v6345_v53  ;;  %2685 = vmatmul.mubr.bf16.gmra.mrb[192].mxu1 %v8791_v43  ;;  %v4711_v28 = vadd.f32 %v4703_v55, %v4207_v33  ;;  %v1684_v46 = vadd.f32 %v1683_v3, %v6355_v40  ;;  %v2046_v27 = vpop.f32.mrb[91].mxu1  ;;  %v8793_v25 = vld [vmem:[#allocation14_spill] sm:$0xff] }
 0x1db   :  { %v4710_v36 = vadd.f32 %v4702_v22, %v4206_v48  ;;  %v2037_v5 = vadd.f32 %v2036_v41, %v6357_v4  ;;  %2341 = vmatprep.mubr.bf16.mxu0 %v8792_v39  ;;  %v4712_v49 = vadd.f32 %v4704_v8, %v4208_v56  ;;  %2694 = vmatprep.mubr.bf16.mxu1 %v8792_v39  ;;  %v8794_v48 = vld [vmem:[#allocation15_spill] sm:$0xff] }
 0x1dc   :  { %3189 = vst [vmem:[%s8675_s5 + $0xac0] sm:$0xff] %v1682_v14  ;;  %v3693_v35 = vadd.f32 %v3685_v12, %v1682_v14  ;;  %v4213_v6 = vmul.f32 %v1682_v14, %v1682_v14  ;;  %3191 = vst [vmem:[%s8675_s5 + $0xad0] sm:$0xff] %v2035_v9  ;;  %v3695_v29 = vadd.f32 %v3687_v54, %v2035_v9  ;;  %v1697_v14 = vpop.f32.mrb[92].mxu0 }
 0x1dd   :  { %v4215_v31 = vmul.f32 %v2035_v9, %v2035_v9  ;;  %3190 = vst [vmem:[%s8675_s5 + $0xac8] sm:$0xff] %v1684_v46  ;;  %v3694_v20 = vadd.f32 %v3686_v24, %v1684_v46  ;;  %v4214_v38 = vmul.f32 %v1684_v46, %v1684_v46  ;;  %3192 = vst [vmem:[%s8675_s5 + $0xad8] sm:$0xff] %v2037_v5  ;;  %v1699_v39 = vpop.f32.mrb[93].mxu0 }
 0x1de   :  { %v3696_v7 = vadd.f32 %v3688_v32, %v2037_v5  ;;  %v4717_v21 = vadd.f32 %v4709_v10, %v4213_v6  ;;  %v4216_v44 = vmul.f32 %v2037_v5, %v2037_v5  ;;  %v1688_v18 = vadd.f32 %v1687_v26, %v6343_v61  ;;  %v2050_v5 = vpop.f32.mrb[92].mxu1 }
 0x1df   :  { %v2041_v16 = vadd.f32 %v2040_v62, %v6345_v53  ;;  %v4719_v50 = vadd.f32 %v4711_v28, %v4215_v31  ;;  %v4718_v57 = vadd.f32 %v4710_v36, %v4214_v38  ;;  %v1690_v34 = vadd.f32 %v1689_v51, %v6355_v40  ;;  %v2052_v26 = vpop.f32.mrb[93].mxu1  ;;  %v1701_v31 = vpop.f32.mrb[94].mxu0 }
 0x1e0   :  { %v2043_v63 = vadd.f32 %v2042_v2, %v6357_v4  ;;  %v4720_v15 = vadd.f32 %v4712_v49, %v4216_v44  ;;  %3197 = vst [vmem:[%s8675_s5 + $0xb00] sm:$0xff] %v1688_v18  ;;  %v3701_v42 = vadd.f32 %v3693_v35, %v1688_v18  ;;  %v4221_v45 = vmul.f32 %v1688_v18, %v1688_v18  ;;  %v2054_v51 = vpop.f32.mrb[94].mxu1 }
 0x1e1   :  { %3199 = vst [vmem:[%s8675_s5 + $0xb10] sm:$0xff] %v2041_v16  ;;  %v3703_v1 = vadd.f32 %v3695_v29, %v2041_v16  ;;  %v4223_v55 = vmul.f32 %v2041_v16, %v2041_v16  ;;  %3198 = vst [vmem:[%s8675_s5 + $0xb08] sm:$0xff] %v1690_v34  ;;  %v3702_v22 = vadd.f32 %v3694_v20, %v1690_v34  ;;  %2342 = vmatmul.mubr.bf16.gmra.mrb[196].mxu0 %v8793_v25 }
 0x1e2   :  { %v4222_v58 = vmul.f32 %v1690_v34, %v1690_v34  ;;  %3200 = vst [vmem:[%s8675_s5 + $0xb18] sm:$0xff] %v2043_v63  ;;  %v3704_v52 = vadd.f32 %v3696_v7, %v2043_v63  ;;  %v4725_v3 = vadd.f32 %v4717_v21, %v4221_v45  ;;  %v4224_v8 = vmul.f32 %v2043_v63, %v2043_v63  ;;  %v1703_v21 = vpop.f32.mrb[95].mxu0 }
 0x1e3   :  { %v1692_v12 = vadd.f32 %v1691_v11, %v6343_v61  ;;  %v2045_v23 = vadd.f32 %v2044_v47, %v6345_v53  ;;  %2695 = vmatmul.mubr.bf16.gmra.mrb[196].mxu1 %v8793_v25  ;;  %v4727_v54 = vadd.f32 %v4719_v50, %v4223_v55  ;;  %v1694_v33 = vadd.f32 %v1693_v17, %v6355_v40  ;;  %v2056_v11 = vpop.f32.mrb[95].mxu1  ;;  %v8795_v47 = vld [vmem:[#allocation16_spill] sm:$0xff] }
 0x1e4   :  { %v4726_v41 = vadd.f32 %v4718_v57, %v4222_v58  ;;  %v2047_v24 = vadd.f32 %v2046_v27, %v6357_v4  ;;  %2351 = vmatprep.mubr.bf16.mxu0 %v8794_v48  ;;  %v4728_v32 = vadd.f32 %v4720_v15, %v4224_v8  ;;  %2704 = vmatprep.mubr.bf16.mxu1 %v8794_v48  ;;  %v8796_v58 = vld [vmem:[#allocation17_spill] sm:$0xff] }
 0x1e5   :  { %3205 = vst [vmem:[%s8675_s5 + $0xb40] sm:$0xff] %v1692_v12  ;;  %v3709_v43 = vadd.f32 %v3701_v42, %v1692_v12  ;;  %v4229_v10 = vmul.f32 %v1692_v12, %v1692_v12  ;;  %3207 = vst [vmem:[%s8675_s5 + $0xb50] sm:$0xff] %v2045_v23  ;;  %v3711_v56 = vadd.f32 %v3703_v1, %v2045_v23  ;;  %v1707_v12 = vpop.f32.mrb[96].mxu0 }
 0x1e6   :  { %v4231_v9 = vmul.f32 %v2045_v23, %v2045_v23  ;;  %3206 = vst [vmem:[%s8675_s5 + $0xb48] sm:$0xff] %v1694_v33  ;;  %v3710_v28 = vadd.f32 %v3702_v22, %v1694_v33  ;;  %v4230_v36 = vmul.f32 %v1694_v33, %v1694_v33  ;;  %3208 = vst [vmem:[%s8675_s5 + $0xb58] sm:$0xff] %v2047_v24  ;;  %v1709_v48 = vpop.f32.mrb[97].mxu0 }
 0x1e7   :  { %v3712_v46 = vadd.f32 %v3704_v52, %v2047_v24  ;;  %v4733_v49 = vadd.f32 %v4725_v3, %v4229_v10  ;;  %v4232_v35 = vmul.f32 %v2047_v24, %v2047_v24  ;;  %v1698_v6 = vadd.f32 %v1697_v14, %v6343_v61  ;;  %v2060_v24 = vpop.f32.mrb[96].mxu1 }
 0x1e8   :  { %v2051_v29 = vadd.f32 %v2050_v5, %v6345_v53  ;;  %v4735_v20 = vadd.f32 %v4727_v54, %v4231_v9  ;;  %v4734_v38 = vadd.f32 %v4726_v41, %v4230_v36  ;;  %v1700_v7 = vadd.f32 %v1699_v39, %v6355_v40  ;;  %v2062_v14 = vpop.f32.mrb[97].mxu1  ;;  %v1711_v9 = vpop.f32.mrb[98].mxu0 }
 0x1e9   :  { %v2053_v62 = vadd.f32 %v2052_v26, %v6357_v4  ;;  %v4736_v44 = vadd.f32 %v4728_v32, %v4232_v35  ;;  %3213 = vst [vmem:[%s8675_s5 + $0xb80] sm:$0xff] %v1698_v6  ;;  %v3717_v18 = vadd.f32 %v3709_v43, %v1698_v6  ;;  %v4237_v16 = vmul.f32 %v1698_v6, %v1698_v6  ;;  %v2064_v39 = vpop.f32.mrb[98].mxu1 }
 0x1ea   :  { %3215 = vst [vmem:[%s8675_s5 + $0xb90] sm:$0xff] %v2051_v29  ;;  %v3719_v2 = vadd.f32 %v3711_v56, %v2051_v29  ;;  %v4239_v50 = vmul.f32 %v2051_v29, %v2051_v29  ;;  %3214 = vst [vmem:[%s8675_s5 + $0xb88] sm:$0xff] %v1700_v7  ;;  %v3718_v57 = vadd.f32 %v3710_v28, %v1700_v7  ;;  %2352 = vmatmul.mubr.bf16.gmra.mrb[200].mxu0 %v8795_v47 }
 0x1eb   :  { %v4238_v34 = vmul.f32 %v1700_v7, %v1700_v7  ;;  %3216 = vst [vmem:[%s8675_s5 + $0xb98] sm:$0xff] %v2053_v62  ;;  %v3720_v63 = vadd.f32 %v3712_v46, %v2053_v62  ;;  %v4741_v17 = vadd.f32 %v4733_v49, %v4237_v16  ;;  %v4240_v15 = vmul.f32 %v2053_v62, %v2053_v62  ;;  %v1713_v49 = vpop.f32.mrb[99].mxu0 }
 0x1ec   :  { %v1702_v42 = vadd.f32 %v1701_v31, %v6343_v61  ;;  %v2055_v45 = vadd.f32 %v2054_v51, %v6345_v53  ;;  %2705 = vmatmul.mubr.bf16.gmra.mrb[200].mxu1 %v8795_v47  ;;  %v4743_v1 = vadd.f32 %v4735_v20, %v4239_v50  ;;  %v1704_v55 = vadd.f32 %v1703_v21, %v6355_v40  ;;  %v2066_v31 = vpop.f32.mrb[99].mxu1  ;;  %v8797_v51 = vld [vmem:[#allocation18_spill] sm:$0xff] }
 0x1ed   :  { %v4742_v27 = vadd.f32 %v4734_v38, %v4238_v34  ;;  %v2057_v22 = vadd.f32 %v2056_v11, %v6357_v4  ;;  %2361 = vmatprep.mubr.bf16.mxu0 %v8796_v58  ;;  %v4744_v52 = vadd.f32 %v4736_v44, %v4240_v15  ;;  %2714 = vmatprep.mubr.bf16.mxu1 %v8796_v58  ;;  %v8798_v34 = vld [vmem:[#allocation19_spill] sm:$0xff] }
 0x1ee   :  { %3221 = vst [vmem:[%s8675_s5 + $0xbc0] sm:$0xff] %v1702_v42  ;;  %v3725_v25 = vadd.f32 %v3717_v18, %v1702_v42  ;;  %v4245_v3 = vmul.f32 %v1702_v42, %v1702_v42  ;;  %3223 = vst [vmem:[%s8675_s5 + $0xbd0] sm:$0xff] %v2055_v45  ;;  %v3727_v8 = vadd.f32 %v3719_v2, %v2055_v45  ;;  %v1717_v42 = vpop.f32.mrb[100].mxu0 }
 0x1ef   :  { %v4247_v23 = vmul.f32 %v2055_v45, %v2055_v45  ;;  %3222 = vst [vmem:[%s8675_s5 + $0xbc8] sm:$0xff] %v1704_v55  ;;  %v3726_v54 = vadd.f32 %v3718_v57, %v1704_v55  ;;  %v4246_v41 = vmul.f32 %v1704_v55, %v1704_v55  ;;  %3224 = vst [vmem:[%s8675_s5 + $0xbd8] sm:$0xff] %v2057_v22  ;;  %v1719_v58 = vpop.f32.mrb[101].mxu0 }
 0x1f0   :  { %v3728_v33 = vadd.f32 %v3720_v63, %v2057_v22  ;;  %v4749_v32 = vadd.f32 %v4741_v17, %v4245_v3  ;;  %v4248_v43 = vmul.f32 %v2057_v22, %v2057_v22  ;;  %v1708_v10 = vadd.f32 %v1707_v12, %v6343_v61  ;;  %v2070_v22 = vpop.f32.mrb[100].mxu1 }
 0x1f1   :  { %v2061_v56 = vadd.f32 %v2060_v24, %v6345_v53  ;;  %v4751_v28 = vadd.f32 %v4743_v1, %v4247_v23  ;;  %v4750_v36 = vadd.f32 %v4742_v27, %v4246_v41  ;;  %v1710_v46 = vadd.f32 %v1709_v48, %v6355_v40  ;;  %v2072_v12 = vpop.f32.mrb[101].mxu1  ;;  %v1721_v23 = vpop.f32.mrb[102].mxu0 }
 0x1f2   :  { %v2063_v5 = vadd.f32 %v2062_v14, %v6357_v4  ;;  %v4752_v35 = vadd.f32 %v4744_v52, %v4248_v43  ;;  %3229 = vst [vmem:[%s8675_s5 + $0xc00] sm:$0xff] %v1708_v10  ;;  %v3733_v6 = vadd.f32 %v3725_v25, %v1708_v10  ;;  %v4253_v29 = vmul.f32 %v1708_v10, %v1708_v10  ;;  %v2074_v48 = vpop.f32.mrb[102].mxu1 }
 0x1f3   :  { %3231 = vst [vmem:[%s8675_s5 + $0xc10] sm:$0xff] %v2061_v56  ;;  %v3735_v26 = vadd.f32 %v3727_v8, %v2061_v56  ;;  %v4255_v20 = vmul.f32 %v2061_v56, %v2061_v56  ;;  %3230 = vst [vmem:[%s8675_s5 + $0xc08] sm:$0xff] %v1710_v46  ;;  %v3734_v38 = vadd.f32 %v3726_v54, %v1710_v46  ;;  %2362 = vmatmul.mubr.bf16.gmra.mrb[204].mxu0 %v8797_v51 }
 0x1f4   :  { %v4254_v7 = vmul.f32 %v1710_v46, %v1710_v46  ;;  %3232 = vst [vmem:[%s8675_s5 + $0xc18] sm:$0xff] %v2063_v5  ;;  %v3736_v62 = vadd.f32 %v3728_v33, %v2063_v5  ;;  %v4757_v21 = vadd.f32 %v4749_v32, %v4253_v29  ;;  %v4256_v44 = vmul.f32 %v2063_v5, %v2063_v5  ;;  %v1723_v32 = vpop.f32.mrb[103].mxu0 }
 0x1f5   :  { %v1712_v18 = vadd.f32 %v1711_v9, %v6343_v61  ;;  %v2065_v16 = vadd.f32 %v2064_v39, %v6345_v53  ;;  %2715 = vmatmul.mubr.bf16.gmra.mrb[204].mxu1 %v8797_v51  ;;  %v4759_v2 = vadd.f32 %v4751_v28, %v4255_v20  ;;  %v1714_v50 = vadd.f32 %v1713_v49, %v6355_v40  ;;  %v2076_v9 = vpop.f32.mrb[103].mxu1  ;;  %v8799_v39 = vld [vmem:[#allocation20_spill] sm:$0xff] }
 0x1f6   :  { %v4758_v11 = vadd.f32 %v4750_v36, %v4254_v7  ;;  %v2067_v57 = vadd.f32 %v2066_v31, %v6357_v4  ;;  %2371 = vmatprep.mubr.bf16.mxu0 %v8798_v34  ;;  %v4760_v63 = vadd.f32 %v4752_v35, %v4256_v44  ;;  %2724 = vmatprep.mubr.bf16.mxu1 %v8798_v34  ;;  %v8800_v7 = vld [vmem:[#allocation21_spill] sm:$0xff] }
 0x1f7   :  { %3237 = vst [vmem:[%s8675_s5 + $0xc40] sm:$0xff] %v1712_v18  ;;  %v3741_v47 = vadd.f32 %v3733_v6, %v1712_v18  ;;  %v4261_v17 = vmul.f32 %v1712_v18, %v1712_v18  ;;  %3239 = vst [vmem:[%s8675_s5 + $0xc50] sm:$0xff] %v2065_v16  ;;  %v3743_v15 = vadd.f32 %v3735_v26, %v2065_v16  ;;  %v1727_v18 = vpop.f32.mrb[104].mxu0 }
 0x1f8   :  { %v4263_v45 = vmul.f32 %v2065_v16, %v2065_v16  ;;  %3238 = vst [vmem:[%s8675_s5 + $0xc48] sm:$0xff] %v1714_v50  ;;  %v3742_v1 = vadd.f32 %v3734_v38, %v1714_v50  ;;  %v4262_v27 = vmul.f32 %v1714_v50, %v1714_v50  ;;  %3240 = vst [vmem:[%s8675_s5 + $0xc58] sm:$0xff] %v2067_v57  ;;  %v1729_v34 = vpop.f32.mrb[105].mxu0 }
 0x1f9   :  { %v3744_v55 = vadd.f32 %v3736_v62, %v2067_v57  ;;  %v4765_v52 = vadd.f32 %v4757_v21, %v4261_v17  ;;  %v4264_v25 = vmul.f32 %v2067_v57, %v2067_v57  ;;  %v1718_v3 = vadd.f32 %v1717_v42, %v6343_v61  ;;  %v2080_v57 = vpop.f32.mrb[104].mxu1 }
 0x1fa   :  { %v2071_v8 = vadd.f32 %v2070_v22, %v6345_v53  ;;  %v4767_v54 = vadd.f32 %v4759_v2, %v4263_v45  ;;  %v4766_v41 = vadd.f32 %v4758_v11, %v4262_v27  ;;  %v1720_v33 = vadd.f32 %v1719_v58, %v6355_v40  ;;  %v2082_v42 = vpop.f32.mrb[105].mxu1  ;;  %v1731_v45 = vpop.f32.mrb[106].mxu0 }
 0x1fb   :  { %v2073_v24 = vadd.f32 %v2072_v12, %v6357_v4  ;;  %v4768_v43 = vadd.f32 %v4760_v63, %v4264_v25  ;;  %3245 = vst [vmem:[%s8675_s5 + $0xc80] sm:$0xff] %v1718_v3  ;;  %v3749_v10 = vadd.f32 %v3741_v47, %v1718_v3  ;;  %v4269_v56 = vmul.f32 %v1718_v3, %v1718_v3  ;;  %v2084_v58 = vpop.f32.mrb[106].mxu1 }
 0x1fc   :  { %3247 = vst [vmem:[%s8675_s5 + $0xc90] sm:$0xff] %v2071_v8  ;;  %v3751_v14 = vadd.f32 %v3743_v15, %v2071_v8  ;;  %v4271_v28 = vmul.f32 %v2071_v8, %v2071_v8  ;;  %3246 = vst [vmem:[%s8675_s5 + $0xc88] sm:$0xff] %v1720_v33  ;;  %v3750_v36 = vadd.f32 %v3742_v1, %v1720_v33  ;;  %2372 = vmatmul.mubr.bf16.gmra.mrb[208].mxu0 %v8799_v39 }
 0x1fd   :  { %v4270_v46 = vmul.f32 %v1720_v33, %v1720_v33  ;;  %3248 = vst [vmem:[%s8675_s5 + $0xc98] sm:$0xff] %v2073_v24  ;;  %v3752_v5 = vadd.f32 %v3744_v55, %v2073_v24  ;;  %v4773_v49 = vadd.f32 %v4765_v52, %v4269_v56  ;;  %v4272_v35 = vmul.f32 %v2073_v24, %v2073_v24  ;;  %v1733_v52 = vpop.f32.mrb[107].mxu0 }
 0x1fe   :  { %v1722_v6 = vadd.f32 %v1721_v23, %v6343_v61  ;;  %v2075_v29 = vadd.f32 %v2074_v48, %v6345_v53  ;;  %2725 = vmatmul.mubr.bf16.gmra.mrb[208].mxu1 %v8799_v39  ;;  %v4775_v26 = vadd.f32 %v4767_v54, %v4271_v28  ;;  %v1724_v20 = vadd.f32 %v1723_v32, %v6355_v40  ;;  %v2086_v23 = vpop.f32.mrb[107].mxu1  ;;  %v8801_v48 = vld [vmem:[#allocation22_spill] sm:$0xff] }
 0x1ff   :  { %v4774_v31 = vadd.f32 %v4766_v41, %v4270_v46  ;;  %v2077_v38 = vadd.f32 %v2076_v9, %v6357_v4  ;;  %2381 = vmatprep.mubr.bf16.mxu0 %v8800_v7  ;;  %v4776_v62 = vadd.f32 %v4768_v43, %v4272_v35  ;;  %2734 = vmatprep.mubr.bf16.mxu1 %v8800_v7  ;;  %v8802_v46 = vld [vmem:[#allocation23_spill] sm:$0xff] }
 0x200   :  { %3253 = vst [vmem:[%s8675_s5 + $0xcc0] sm:$0xff] %v1722_v6  ;;  %v3757_v51 = vadd.f32 %v3749_v10, %v1722_v6  ;;  %v4277_v21 = vmul.f32 %v1722_v6, %v1722_v6  ;;  %3255 = vst [vmem:[%s8675_s5 + $0xcd0] sm:$0xff] %v2075_v29  ;;  %v3759_v44 = vadd.f32 %v3751_v14, %v2075_v29  ;;  %v1737_v6 = vpop.f32.mrb[108].mxu0 }
 0x201   :  { %v4279_v16 = vmul.f32 %v2075_v29, %v2075_v29  ;;  %3254 = vst [vmem:[%s8675_s5 + $0xcc8] sm:$0xff] %v1724_v20  ;;  %v3758_v2 = vadd.f32 %v3750_v36, %v1724_v20  ;;  %v4278_v11 = vmul.f32 %v1724_v20, %v1724_v20  ;;  %3256 = vst [vmem:[%s8675_s5 + $0xcd8] sm:$0xff] %v2077_v38  ;;  %v1739_v7 = vpop.f32.mrb[109].mxu0 }
 0x202   :  { %v3760_v50 = vadd.f32 %v3752_v5, %v2077_v38  ;;  %v4781_v63 = vadd.f32 %v4773_v49, %v4277_v21  ;;  %v4280_v47 = vmul.f32 %v2077_v38, %v2077_v38  ;;  %v1728_v17 = vadd.f32 %v1727_v18, %v6343_v61  ;;  %v2090_v38 = vpop.f32.mrb[108].mxu1 }
 0x203   :  { %v2081_v15 = vadd.f32 %v2080_v57, %v6345_v53  ;;  %v4783_v1 = vadd.f32 %v4775_v26, %v4279_v16  ;;  %v4782_v27 = vadd.f32 %v4774_v31, %v4278_v11  ;;  %v1730_v55 = vadd.f32 %v1729_v34, %v6355_v40  ;;  %v2092_v18 = vpop.f32.mrb[109].mxu1  ;;  %v1741_v16 = vpop.f32.mrb[110].mxu0 }
 0x204   :  { %v2083_v22 = vadd.f32 %v2082_v42, %v6357_v4  ;;  %v4784_v25 = vadd.f32 %v4776_v62, %v4280_v47  ;;  %3261 = vst [vmem:[%s8675_s5 + $0xd00] sm:$0xff] %v1728_v17  ;;  %v3765_v3 = vadd.f32 %v3757_v51, %v1728_v17  ;;  %v4285_v8 = vmul.f32 %v1728_v17, %v1728_v17  ;;  %v2094_v34 = vpop.f32.mrb[110].mxu1 }
 0x205   :  { %3263 = vst [vmem:[%s8675_s5 + $0xd10] sm:$0xff] %v2081_v15  ;;  %v3767_v12 = vadd.f32 %v3759_v44, %v2081_v15  ;;  %v4287_v54 = vmul.f32 %v2081_v15, %v2081_v15  ;;  %3262 = vst [vmem:[%s8675_s5 + $0xd08] sm:$0xff] %v1730_v55  ;;  %v3766_v41 = vadd.f32 %v3758_v2, %v1730_v55  ;;  %2382 = vmatmul.mubr.bf16.gmra.mrb[212].mxu0 %v8801_v48 }
 0x206   :  { %v4286_v33 = vmul.f32 %v1730_v55, %v1730_v55  ;;  %3264 = vst [vmem:[%s8675_s5 + $0xd18] sm:$0xff] %v2083_v22  ;;  %v3768_v24 = vadd.f32 %v3760_v50, %v2083_v22  ;;  %v4789_v32 = vadd.f32 %v4781_v63, %v4285_v8  ;;  %v4288_v43 = vmul.f32 %v2083_v22, %v2083_v22  ;;  %v1743_v63 = vpop.f32.mrb[111].mxu0 }
 0x207   :  { %v1732_v10 = vadd.f32 %v1731_v45, %v6343_v61  ;;  %v2085_v56 = vadd.f32 %v2084_v58, %v6345_v53  ;;  %2735 = vmatmul.mubr.bf16.gmra.mrb[212].mxu1 %v8801_v48  ;;  %v4791_v14 = vadd.f32 %v4783_v1, %v4287_v54  ;;  %v1734_v28 = vadd.f32 %v1733_v52, %v6355_v40  ;;  %v2096_v45 = vpop.f32.mrb[111].mxu1  ;;  %v8803_v58 = vld [vmem:[#allocation24_spill] sm:$0xff] }
 0x208   :  { %v4790_v9 = vadd.f32 %v4782_v27, %v4286_v33  ;;  %v2087_v36 = vadd.f32 %v2086_v23, %v6357_v4  ;;  %2391 = vmatprep.mubr.bf16.mxu0 %v8802_v46  ;;  %v4792_v5 = vadd.f32 %v4784_v25, %v4288_v43  ;;  %2744 = vmatprep.mubr.bf16.mxu1 %v8802_v46  ;;  %v8804_v33 = vld [vmem:[#allocation25_spill] sm:$0xff] }
 0x209   :  { %3269 = vst [vmem:[%s8675_s5 + $0xd40] sm:$0xff] %v1732_v10  ;;  %v3773_v39 = vadd.f32 %v3765_v3, %v1732_v10  ;;  %v4293_v49 = vmul.f32 %v1732_v10, %v1732_v10  ;;  %3271 = vst [vmem:[%s8675_s5 + $0xd50] sm:$0xff] %v2085_v56  ;;  %v3775_v35 = vadd.f32 %v3767_v12, %v2085_v56  ;;  %v1747_v10 = vpop.f32.mrb[112].mxu0 }
 0x20a   :  { %v4295_v29 = vmul.f32 %v2085_v56, %v2085_v56  ;;  %3270 = vst [vmem:[%s8675_s5 + $0xd48] sm:$0xff] %v1734_v28  ;;  %v3774_v26 = vadd.f32 %v3766_v41, %v1734_v28  ;;  %v4294_v31 = vmul.f32 %v1734_v28, %v1734_v28  ;;  %3272 = vst [vmem:[%s8675_s5 + $0xd58] sm:$0xff] %v2087_v36  ;;  %v1749_v46 = vpop.f32.mrb[113].mxu0 }
 0x20b   :  { %v3776_v20 = vadd.f32 %v3768_v24, %v2087_v36  ;;  %v4797_v62 = vadd.f32 %v4789_v32, %v4293_v49  ;;  %v4296_v51 = vmul.f32 %v2087_v36, %v2087_v36  ;;  %v1738_v21 = vadd.f32 %v1737_v6, %v6343_v61  ;;  %v2100_v36 = vpop.f32.mrb[112].mxu1 }
 0x20c   :  { %v2091_v44 = vadd.f32 %v2090_v38, %v6345_v53  ;;  %v4799_v2 = vadd.f32 %v4791_v14, %v4295_v29  ;;  %v4798_v11 = vadd.f32 %v4790_v9, %v4294_v31  ;;  %v1740_v50 = vadd.f32 %v1739_v7, %v6355_v40  ;;  %v2102_v6 = vpop.f32.mrb[113].mxu1  ;;  %v1751_v29 = vpop.f32.mrb[114].mxu0 }
 0x20d   :  { %v2093_v57 = vadd.f32 %v2092_v18, %v6357_v4  ;;  %v4800_v47 = vadd.f32 %v4792_v5, %v4296_v51  ;;  %3277 = vst [vmem:[%s8675_s5 + $0xd80] sm:$0xff] %v1738_v21  ;;  %v3781_v17 = vadd.f32 %v3773_v39, %v1738_v21  ;;  %v4301_v15 = vmul.f32 %v1738_v21, %v1738_v21  ;;  %v2104_v7 = vpop.f32.mrb[114].mxu1 }
 0x20e   :  { %3279 = vst [vmem:[%s8675_s5 + $0xd90] sm:$0xff] %v2091_v44  ;;  %v3783_v42 = vadd.f32 %v3775_v35, %v2091_v44  ;;  %v4303_v1 = vmul.f32 %v2091_v44, %v2091_v44  ;;  %3278 = vst [vmem:[%s8675_s5 + $0xd88] sm:$0xff] %v1740_v50  ;;  %v3782_v27 = vadd.f32 %v3774_v26, %v1740_v50  ;;  %2392 = vmatmul.mubr.bf16.gmra.mrb[216].mxu0 %v8803_v58 }
 0x20f   :  { %v4302_v55 = vmul.f32 %v1740_v50, %v1740_v50  ;;  %3280 = vst [vmem:[%s8675_s5 + $0xd98] sm:$0xff] %v2093_v57  ;;  %v3784_v22 = vadd.f32 %v3776_v20, %v2093_v57  ;;  %v4805_v52 = vadd.f32 %v4797_v62, %v4301_v15  ;;  %v4304_v25 = vmul.f32 %v2093_v57, %v2093_v57  ;;  %v1753_v62 = vpop.f32.mrb[115].mxu0 }
 0x210   :  { %v1742_v3 = vadd.f32 %v1741_v16, %v6343_v61  ;;  %v2095_v8 = vadd.f32 %v2094_v34, %v6345_v53  ;;  %2745 = vmatmul.mubr.bf16.gmra.mrb[216].mxu1 %v8803_v58  ;;  %v4807_v12 = vadd.f32 %v4799_v2, %v4303_v1  ;;  %v1744_v54 = vadd.f32 %v1743_v63, %v6355_v40  ;;  %v2106_v16 = vpop.f32.mrb[115].mxu1  ;;  %v8805_v34 = vld [vmem:[#allocation26_spill] sm:$0xff] }
 0x211   :  { %v4806_v23 = vadd.f32 %v4798_v11, %v4302_v55  ;;  %v2097_v41 = vadd.f32 %v2096_v45, %v6357_v4  ;;  %2401 = vmatprep.mubr.bf16.mxu0 %v8804_v33  ;;  %v4808_v24 = vadd.f32 %v4800_v47, %v4304_v25  ;;  %2754 = vmatprep.mubr.bf16.mxu1 %v8804_v33  ;;  %v8806_v55 = vld [vmem:[#allocation27_spill] sm:$0xff] }
 0x212   :  { %3285 = vst [vmem:[%s8675_s5 + $0xdc0] sm:$0xff] %v1742_v3  ;;  %v3789_v48 = vadd.f32 %v3781_v17, %v1742_v3  ;;  %v4309_v32 = vmul.f32 %v1742_v3, %v1742_v3  ;;  %3287 = vst [vmem:[%s8675_s5 + $0xdd0] sm:$0xff] %v2095_v8  ;;  %v3791_v43 = vadd.f32 %v3783_v42, %v2095_v8  ;;  %v1757_v3 = vpop.f32.mrb[116].mxu0 }
 0x213   :  { %v4311_v56 = vmul.f32 %v2095_v8, %v2095_v8  ;;  %3286 = vst [vmem:[%s8675_s5 + $0xdc8] sm:$0xff] %v1744_v54  ;;  %v3790_v14 = vadd.f32 %v3782_v27, %v1744_v54  ;;  %v4310_v9 = vmul.f32 %v1744_v54, %v1744_v54  ;;  %3288 = vst [vmem:[%s8675_s5 + $0xdd8] sm:$0xff] %v2097_v41  ;;  %v1759_v33 = vpop.f32.mrb[117].mxu0 }
 0x214   :  { %v3792_v28 = vadd.f32 %v3784_v22, %v2097_v41  ;;  %v4813_v5 = vadd.f32 %v4805_v52, %v4309_v32  ;;  %v4312_v39 = vmul.f32 %v2097_v41, %v2097_v41  ;;  %v1748_v49 = vadd.f32 %v1747_v10, %v6343_v61  ;;  %v2110_v41 = vpop.f32.mrb[116].mxu1 }
 0x215   :  { %v2101_v35 = vadd.f32 %v2100_v36, %v6345_v53  ;;  %v4815_v26 = vadd.f32 %v4807_v12, %v4311_v56  ;;  %v4814_v31 = vadd.f32 %v4806_v23, %v4310_v9  ;;  %v1750_v20 = vadd.f32 %v1749_v46, %v6355_v40  ;;  %v2112_v10 = vpop.f32.mrb[117].mxu1  ;;  %v1761_v56 = vpop.f32.mrb[118].mxu0 }
 0x216   :  { %v2103_v38 = vadd.f32 %v2102_v6, %v6357_v4  ;;  %v4816_v51 = vadd.f32 %v4808_v24, %v4312_v39  ;;  %3293 = vst [vmem:[%s8675_s5 + $0xe00] sm:$0xff] %v1748_v49  ;;  %v3797_v21 = vadd.f32 %v3789_v48, %v1748_v49  ;;  %v4317_v44 = vmul.f32 %v1748_v49, %v1748_v49  ;;  %v2114_v46 = vpop.f32.mrb[118].mxu1 }
 0x217   :  { %3295 = vst [vmem:[%s8675_s5 + $0xe10] sm:$0xff] %v2101_v35  ;;  %v3799_v18 = vadd.f32 %v3791_v43, %v2101_v35  ;;  %v4319_v2 = vmul.f32 %v2101_v35, %v2101_v35  ;;  %3294 = vst [vmem:[%s8675_s5 + $0xe08] sm:$0xff] %v1750_v20  ;;  %v3798_v11 = vadd.f32 %v3790_v14, %v1750_v20  ;;  %2402 = vmatmul.mubr.bf16.gmra.mrb[220].mxu0 %v8805_v34 }
 0x218   :  { %v4318_v50 = vmul.f32 %v1750_v20, %v1750_v20  ;;  %3296 = vst [vmem:[%s8675_s5 + $0xe18] sm:$0xff] %v2103_v38  ;;  %v3800_v57 = vadd.f32 %v3792_v28, %v2103_v38  ;;  %v4821_v63 = vadd.f32 %v4813_v5, %v4317_v44  ;;  %v4320_v47 = vmul.f32 %v2103_v38, %v2103_v38  ;;  %v1763_v5 = vpop.f32.mrb[119].mxu0 }
 0x219   :  { %v1752_v17 = vadd.f32 %v1751_v29, %v6343_v61  ;;  %v2105_v15 = vadd.f32 %v2104_v7, %v6345_v53  ;;  %2755 = vmatmul.mubr.bf16.gmra.mrb[220].mxu1 %v8805_v34  ;;  %v4823_v42 = vadd.f32 %v4815_v26, %v4319_v2  ;;  %v1754_v1 = vadd.f32 %v1753_v62, %v6355_v40  ;;  %v2116_v29 = vpop.f32.mrb[119].mxu1  ;;  %v8807_v7 = vld [vmem:[#allocation28_spill] sm:$0xff] }
 0x21a   :  { %v4822_v45 = vadd.f32 %v4814_v31, %v4318_v50  ;;  %v2107_v27 = vadd.f32 %v2106_v16, %v6357_v4  ;;  %2411 = vmatprep.mubr.bf16.mxu0 %v8806_v55  ;;  %v4824_v22 = vadd.f32 %v4816_v51, %v4320_v47  ;;  %2764 = vmatprep.mubr.bf16.mxu1 %v8806_v55  ;;  %v8808_v50 = vld [vmem:[#allocation29_spill] sm:$0xff] }
 0x21b   :  { %3301 = vst [vmem:[%s8675_s5 + $0xe40] sm:$0xff] %v1752_v17  ;;  %v3805_v58 = vadd.f32 %v3797_v21, %v1752_v17  ;;  %v4325_v52 = vmul.f32 %v1752_v17, %v1752_v17  ;;  %3303 = vst [vmem:[%s8675_s5 + $0xe50] sm:$0xff] %v2105_v15  ;;  %v3807_v25 = vadd.f32 %v3799_v18, %v2105_v15  ;;  %v1767_v17 = vpop.f32.mrb[120].mxu0 }
 0x21c   :  { %v4327_v8 = vmul.f32 %v2105_v15, %v2105_v15  ;;  %3302 = vst [vmem:[%s8675_s5 + $0xe48] sm:$0xff] %v1754_v1  ;;  %v3806_v12 = vadd.f32 %v3798_v11, %v1754_v1  ;;  %v4326_v23 = vmul.f32 %v1754_v1, %v1754_v1  ;;  %3304 = vst [vmem:[%s8675_s5 + $0xe58] sm:$0xff] %v2107_v27  ;;  %v1769_v55 = vpop.f32.mrb[121].mxu0 }
 0x21d   :  { %v3808_v54 = vadd.f32 %v3800_v57, %v2107_v27  ;;  %v4829_v24 = vadd.f32 %v4821_v63, %v4325_v52  ;;  %v4328_v48 = vmul.f32 %v2107_v27, %v2107_v27  ;;  %v1758_v32 = vadd.f32 %v1757_v3, %v6343_v61  ;;  %v2120_v27 = vpop.f32.mrb[120].mxu1 }
 0x21e   :  { %v2111_v43 = vadd.f32 %v2110_v41, %v6345_v53  ;;  %v4831_v14 = vadd.f32 %v4823_v42, %v4327_v8  ;;  %v4830_v9 = vadd.f32 %v4822_v45, %v4326_v23  ;;  %v1760_v28 = vadd.f32 %v1759_v33, %v6355_v40  ;;  %v2122_v3 = vpop.f32.mrb[121].mxu1  ;;  %v1771_v8 = vpop.f32.mrb[122].mxu0 }
 0x21f   :  { %v2113_v36 = vadd.f32 %v2112_v10, %v6357_v4  ;;  %v4832_v39 = vadd.f32 %v4824_v22, %v4328_v48  ;;  %3309 = vst [vmem:[%s8675_s5 + $0xe80] sm:$0xff] %v1758_v32  ;;  %v3813_v49 = vadd.f32 %v3805_v58, %v1758_v32  ;;  %v4333_v35 = vmul.f32 %v1758_v32, %v1758_v32  ;;  %v2124_v33 = vpop.f32.mrb[122].mxu1 }
 0x220   :  { %3311 = vst [vmem:[%s8675_s5 + $0xe90] sm:$0xff] %v2111_v43  ;;  %v3815_v6 = vadd.f32 %v3807_v25, %v2111_v43  ;;  %v4335_v26 = vmul.f32 %v2111_v43, %v2111_v43  ;;  %3310 = vst [vmem:[%s8675_s5 + $0xe88] sm:$0xff] %v1760_v28  ;;  %v3814_v31 = vadd.f32 %v3806_v12, %v1760_v28  ;;  %2412 = vmatmul.mubr.bf16.gmra.mrb[224].mxu0 %v8807_v7 }
 0x221   :  { %v4334_v20 = vmul.f32 %v1760_v28, %v1760_v28  ;;  %3312 = vst [vmem:[%s8675_s5 + $0xe98] sm:$0xff] %v2113_v36  ;;  %v3816_v38 = vadd.f32 %v3808_v54, %v2113_v36  ;;  %v4837_v62 = vadd.f32 %v4829_v24, %v4333_v35  ;;  %v4336_v51 = vmul.f32 %v2113_v36, %v2113_v36  ;;  %v1773_v24 = vpop.f32.mrb[123].mxu0 }
 0x222   :  { %v1762_v21 = vadd.f32 %v1761_v56, %v6343_v61  ;;  %v2115_v44 = vadd.f32 %v2114_v46, %v6345_v53  ;;  %2765 = vmatmul.mubr.bf16.gmra.mrb[224].mxu1 %v8807_v7  ;;  %v4839_v18 = vadd.f32 %v4831_v14, %v4335_v26  ;;  %v1764_v2 = vadd.f32 %v1763_v5, %v6355_v40  ;;  %v2126_v56 = vpop.f32.mrb[123].mxu1  ;;  %v8809_v46 = vld [vmem:[#allocation30_spill] sm:$0xff] }
 0x223   :  { %v4838_v16 = vadd.f32 %v4830_v9, %v4334_v20  ;;  %v2117_v11 = vadd.f32 %v2116_v29, %v6357_v4  ;;  %2421 = vmatprep.mubr.bf16.mxu0 %v8808_v50  ;;  %v4840_v57 = vadd.f32 %v4832_v39, %v4336_v51  ;;  %2774 = vmatprep.mubr.bf16.mxu1 %v8808_v50  ;;  %v8810_v20 = vld [vmem:[#allocation31_spill] sm:$0xff] }
 0x224   :  { %3317 = vst [vmem:[%s8675_s5 + $0xec0] sm:$0xff] %v1762_v21  ;;  %v3821_v34 = vadd.f32 %v3813_v49, %v1762_v21  ;;  %v4341_v63 = vmul.f32 %v1762_v21, %v1762_v21  ;;  %3319 = vst [vmem:[%s8675_s5 + $0xed0] sm:$0xff] %v2115_v44  ;;  %v3823_v47 = vadd.f32 %v3815_v6, %v2115_v44  ;;  %v1777_v21 = vpop.f32.mrb[124].mxu0 }
 0x225   :  { %v4343_v15 = vmul.f32 %v2115_v44, %v2115_v44  ;;  %3318 = vst [vmem:[%s8675_s5 + $0xec8] sm:$0xff] %v1764_v2  ;;  %v3822_v42 = vadd.f32 %v3814_v31, %v1764_v2  ;;  %v4342_v45 = vmul.f32 %v1764_v2, %v1764_v2  ;;  %3320 = vst [vmem:[%s8675_s5 + $0xed8] sm:$0xff] %v2117_v11  ;;  %v1779_v50 = vpop.f32.mrb[125].mxu0 }
 0x226   :  { %v3824_v1 = vadd.f32 %v3816_v38, %v2117_v11  ;;  %v4845_v22 = vadd.f32 %v4837_v62, %v4341_v63  ;;  %v4344_v58 = vmul.f32 %v2117_v11, %v2117_v11  ;;  %v1768_v52 = vadd.f32 %v1767_v17, %v6343_v61  ;;  %v2130_v11 = vpop.f32.mrb[124].mxu1 }
 0x227   :  { %v2121_v25 = vadd.f32 %v2120_v27, %v6345_v53  ;;  %v4847_v12 = vadd.f32 %v4839_v18, %v4343_v15  ;;  %v4846_v23 = vadd.f32 %v4838_v16, %v4342_v45  ;;  %v1770_v54 = vadd.f32 %v1769_v55, %v6355_v40  ;;  %v2132_v17 = vpop.f32.mrb[125].mxu1  ;;  %v1781_v15 = vpop.f32.mrb[126].mxu0 }
 0x228   :  { %v2123_v41 = vadd.f32 %v2122_v3, %v6357_v4  ;;  %v4848_v48 = vadd.f32 %v4840_v57, %v4344_v58  ;;  %3325 = vst [vmem:[%s8675_s5 + $0xf00] sm:$0xff] %v1768_v52  ;;  %v3829_v32 = vadd.f32 %v3821_v34, %v1768_v52  ;;  %v4349_v43 = vmul.f32 %v1768_v52, %v1768_v52  ;;  %v2134_v55 = vpop.f32.mrb[126].mxu1 }
 0x229   :  { %3327 = vst [vmem:[%s8675_s5 + $0xf10] sm:$0xff] %v2121_v25  ;;  %v3831_v10 = vadd.f32 %v3823_v47, %v2121_v25  ;;  %v4351_v14 = vmul.f32 %v2121_v25, %v2121_v25  ;;  %3326 = vst [vmem:[%s8675_s5 + $0xf08] sm:$0xff] %v1770_v54  ;;  %v3830_v9 = vadd.f32 %v3822_v42, %v1770_v54  ;;  %2422 = vmatmul.mubr.bf16.gmra.mrb[228].mxu0 %v8809_v46 }
 0x22a   :  { %v4350_v28 = vmul.f32 %v1770_v54, %v1770_v54  ;;  %3328 = vst [vmem:[%s8675_s5 + $0xf18] sm:$0xff] %v2123_v41  ;;  %v3832_v36 = vadd.f32 %v3824_v1, %v2123_v41  ;;  %v4853_v5 = vadd.f32 %v4845_v22, %v4349_v43  ;;  %v4352_v39 = vmul.f32 %v2123_v41, %v2123_v41  ;;  %v1783_v22 = vpop.f32.mrb[127].mxu0 }
 0x22b   :  { %v1772_v49 = vadd.f32 %v1771_v8, %v6343_v61  ;;  %v2125_v35 = vadd.f32 %v2124_v33, %v6345_v53  ;;  %2775 = vmatmul.mubr.bf16.gmra.mrb[228].mxu1 %v8809_v46  ;;  %v4855_v6 = vadd.f32 %v4847_v12, %v4351_v14  ;;  %v1774_v26 = vadd.f32 %v1773_v24, %v6355_v40  ;;  %v2136_v8 = vpop.f32.mrb[127].mxu1  ;;  %v8811_v33 = vld [vmem:[#allocation32_spill] sm:$0xff] }
 0x22c   :  { %v4854_v29 = vadd.f32 %v4846_v23, %v4350_v28  ;;  %v2127_v31 = vadd.f32 %v2126_v56, %v6357_v4  ;;  %2431 = vmatprep.mubr.bf16.mxu0 %v8810_v20  ;;  %v4856_v38 = vadd.f32 %v4848_v48, %v4352_v39  ;;  %2784 = vmatprep.mubr.bf16.mxu1 %v8810_v20  ;;  %v8812_v28 = vld [vmem:[#allocation33_spill] sm:$0xff] }
 0x22d   :  { %3333 = vst [vmem:[%s8675_s5 + $0xf40] sm:$0xff] %v1772_v49  ;;  %v3837_v7 = vadd.f32 %v3829_v32, %v1772_v49  ;;  %v4357_v62 = vmul.f32 %v1772_v49, %v1772_v49  ;;  %3335 = vst [vmem:[%s8675_s5 + $0xf50] sm:$0xff] %v2125_v35  ;;  %v3839_v51 = vadd.f32 %v3831_v10, %v2125_v35 }
 0x22e   :  { %v4359_v44 = vmul.f32 %v2125_v35, %v2125_v35  ;;  %3334 = vst [vmem:[%s8675_s5 + $0xf48] sm:$0xff] %v1774_v26  ;;  %v3838_v18 = vadd.f32 %v3830_v9, %v1774_v26  ;;  %v4358_v16 = vmul.f32 %v1774_v26, %v1774_v26  ;;  %3336 = vst [vmem:[%s8675_s5 + $0xf58] sm:$0xff] %v2127_v31  ;;  %v2526_v35 = vpop.f32.mrb[128].mxu1 }
 0x22f   :  { %v3840_v2 = vadd.f32 %v3832_v36, %v2127_v31  ;;  %v4861_v57 = vadd.f32 %v4853_v5, %v4357_v62  ;;  %v4360_v34 = vmul.f32 %v2127_v31, %v2127_v31  ;;  %v1778_v63 = vadd.f32 %v1777_v21, %v6343_v61  ;;  %v8813_v31 = vld [vmem:[#allocation2_spill] sm:$0xff] }
 0x230   :  { %v2131_v47 = vadd.f32 %v2130_v11, %v6345_v53  ;;  %v4863_v42 = vadd.f32 %v4855_v6, %v4359_v44  ;;  %v4862_v45 = vadd.f32 %v4854_v29, %v4358_v16  ;;  %v1780_v1 = vadd.f32 %v1779_v50, %v6355_v40  ;;  %v5033_v50 = vld [vmem:[%s8674_s2] sm:$0xff] }
 0x231   :  { %v2133_v27 = vadd.f32 %v2132_v17, %v6357_v4  ;;  %v4864_v58 = vadd.f32 %v4856_v38, %v4360_v34  ;;  %3341 = vst [vmem:[%s8675_s5 + $0xf80] sm:$0xff] %v1778_v63  ;;  %v3845_v52 = vadd.f32 %v3837_v7, %v1778_v63  ;;  %v4365_v25 = vmul.f32 %v1778_v63, %v1778_v63  ;;  %v2528_v7 = vpop.f32.mrb[129].mxu1 }
 0x232   :  { %3343 = vst [vmem:[%s8675_s5 + $0xf90] sm:$0xff] %v2131_v47  ;;  %v3847_v3 = vadd.f32 %v3839_v51, %v2131_v47  ;;  %v4367_v12 = vmul.f32 %v2131_v47, %v2131_v47  ;;  %3342 = vst [vmem:[%s8675_s5 + $0xf88] sm:$0xff] %v1780_v1  ;;  %v3846_v23 = vadd.f32 %v3838_v18, %v1780_v1  ;;  %2432 = vmatmul.mubr.bf16.gmra.mrb[232].mxu0 %v8811_v33  ;;  %v2530_v16 = vpop.f32.mrb[130].mxu1 }
 0x233   :  { %v4366_v54 = vmul.f32 %v1780_v1, %v1780_v1  ;;  %3344 = vst [vmem:[%s8675_s5 + $0xf98] sm:$0xff] %v2133_v27  ;;  %v3848_v41 = vadd.f32 %v3840_v2, %v2133_v27  ;;  %v4869_v24 = vadd.f32 %v4861_v57, %v4365_v25  ;;  %v4368_v48 = vmul.f32 %v2133_v27, %v2133_v27  ;;  %v2532_v63 = vpop.f32.mrb[131].mxu1 }
 0x234   :  { %v1782_v32 = vadd.f32 %v1781_v15, %v6343_v61  ;;  %v2135_v43 = vadd.f32 %v2134_v55, %v6345_v53  ;;  %2785 = vmatmul.mubr.bf16.gmra.mrb[232].mxu1 %v8811_v33  ;;  %v4871_v10 = vadd.f32 %v4863_v42, %v4367_v12  ;;  %v1784_v14 = vadd.f32 %v1783_v22, %v6355_v40  ;;  %v2173_v53 = vpop.f32.mrb[128].mxu0  ;;  %v8814_v15 = vld [vmem:[#allocation34_spill] sm:$0xff] }
 0x235   :  { %v4870_v56 = vadd.f32 %v4862_v45, %v4366_v54  ;;  %v2137_v9 = vadd.f32 %v2136_v8, %v6357_v4  ;;  %2441 = vmatprep.mubr.bf16.mxu0 %v8812_v28  ;;  %v4872_v36 = vadd.f32 %v4864_v58, %v4368_v48  ;;  %2794 = vmatprep.mubr.bf16.mxu1 %v8812_v28  ;;  %v2175_v6 = vpop.f32.mrb[129].mxu0  ;;  %v771_v20 = vsub.s32 4, %v8813_v31 }
 0x236   :  { %3349 = vst [vmem:[%s8675_s5 + $0xfc0] sm:$0xff] %v1782_v32  ;;  %v3853_v46 = vadd.f32 %v3845_v52, %v1782_v32  ;;  %v4373_v5 = vmul.f32 %v1782_v32, %v1782_v32  ;;  %3351 = vst [vmem:[%s8675_s5 + $0xfd0] sm:$0xff] %v2135_v43  ;;  %v3855_v61 = vadd.f32 %v3847_v3, %v2135_v43  ;;  %v779_v38 = vsub.s32 6, %v8813_v31  ;;  %v2177_v62 = vpop.f32.mrb[130].mxu0 }
 0x237   :  { %v4375_v40 = vmul.f32 %v2135_v43, %v2135_v43  ;;  %3350 = vst [vmem:[%s8675_s5 + $0xfc8] sm:$0xff] %v1784_v14  ;;  %v3854_v4 = vadd.f32 %v3846_v23, %v1784_v14  ;;  %v4374_v39 = vmul.f32 %v1784_v14, %v1784_v14  ;;  %3352 = vst [vmem:[%s8675_s5 + $0xfd8] sm:$0xff] %v2137_v9  ;;  %v775_v44 = vsub.s32 5, %v8813_v31  ;;  %v2179_v2 = vpop.f32.mrb[131].mxu0 }
 0x238   :  { %v3856_v49 = vadd.f32 %v3848_v41, %v2137_v9  ;;  %3861 = vst [vmem:[%s8676_s6] sm:$0xff] %v3853_v46  ;;  %v4877_v29 = vadd.f32 %v4869_v24, %v4373_v5  ;;  %3863 = vst [vmem:[%s8676_s6 + $0x10] sm:$0xff] %v3855_v61  ;;  %v4376_v26 = vmul.f32 %v2137_v9, %v2137_v9  ;;  %v783_v18 = vsub.s32 7, %v8813_v31  ;;  %v2183_v23 = vpop.f32.mrb[132].mxu0 }
 0x239   :  { %v4879_v51 = vadd.f32 %v4871_v10, %v4375_v40  ;;  %3862 = vst [vmem:[%s8676_s6 + $0x8] sm:$0xff] %v3854_v4  ;;  %v4878_v21 = vadd.f32 %v4870_v56, %v4374_v39  ;;  %v7587_v57 = vrot.slane %v5033_v50, %v771_v20  ;;  %v7589_v34 = vrot.slane %v5033_v50, %v779_v38  ;;  %v2185_v48 = vpop.f32.mrb[133].mxu0 }
 0x23a   :  { %3864 = vst [vmem:[%s8676_s6 + $0x18] sm:$0xff] %v3856_v49  ;;  %4885 = vst [vmem:[%s8677_s7] sm:$0xff] %v4877_v29  ;;  %v4880_v11 = vadd.f32 %v4872_v36, %v4376_v26  ;;  %v7597_v47 = vrot.slane %v5033_v50, %v775_v44  ;;  %v7599_v17 = vrot.slane %v5033_v50, %v783_v18  ;;  %2442 = vmatmul.mubr.bf16.gmra.mrb[236].mxu0 %v8814_v15  ;;  %v2187_v9 = vpop.f32.mrb[134].mxu0 }
 0x23b   :  { %4887 = vst [vmem:[%s8677_s7 + $0x10] sm:$0xff] %v4879_v51  ;;  %4886 = vst [vmem:[%s8677_s7 + $0x8] sm:$0xff] %v4878_v21  ;;  %v2174_v42 = vadd.f32 %v2173_v53, %v7587_v57  ;;  %v2527_v45 = vadd.f32 %v2526_v35, %v7589_v34  ;;  %v2178_v1 = vadd.f32 %v2177_v62, %v7587_v57  ;;  %2451 = vmatprep.mubr.bf16.mxu0 %v6367_v37  ;;  %v2189_v53 = vpop.f32.mrb[135].mxu0 }
 0x23c   :  { %4888 = vst [vmem:[%s8677_s7 + $0x18] sm:$0xff] %v4880_v11  ;;  %v2531_v27 = vadd.f32 %v2530_v16, %v7589_v34  ;;  %2795 = vmatmul.mubr.bf16.gmra.mrb[236].mxu1 %v8814_v15  ;;  %v2176_v55 = vadd.f32 %v2175_v6, %v7597_v47  ;;  %v2529_v22 = vadd.f32 %v2528_v7, %v7599_v17  ;;  %v8815_v16 = vld [vmem:[#allocation35_spill] sm:$0xff]  ;;  %v2193_v15 = vpop.f32.mrb[136].mxu0 }
 0x23d   :  { %v2180_v58 = vadd.f32 %v2179_v2, %v7597_v47  ;;  %v2533_v52 = vadd.f32 %v2532_v63, %v7599_v17  ;;  %2849 = vst [vmem:[%s8675_s5 + $0x20] sm:$0xff] %v2174_v42  ;;  %v3873_v25 = vmul.f32 %v2174_v42, %v2174_v42  ;;  %2851 = vst [vmem:[%s8675_s5 + $0x30] sm:$0xff] %v2527_v45  ;;  %2804 = vmatprep.mubr.bf16.mxu1 %v6367_v37  ;;  %v2536_v37 = vpop.f32.mrb[132].mxu1 }
 0x23e   :  { %v3875_v3 = vmul.f32 %v2527_v45, %v2527_v45  ;;  %2857 = vst [vmem:[%s8675_s5 + $0x60] sm:$0xff] %v2178_v1  ;;  %v3361_v8 = vadd.f32 %v2178_v1, %v2174_v42  ;;  %v3881_v12 = vmul.f32 %v2178_v1, %v2178_v1  ;;  %2859 = vst [vmem:[%s8675_s5 + $0x70] sm:$0xff] %v2531_v27  ;;  %v2538_v14 = vpop.f32.mrb[133].mxu1 }
 0x23f   :  { %2850 = vst [vmem:[%s8675_s5 + $0x28] sm:$0xff] %v2176_v55  ;;  %v3874_v54 = vmul.f32 %v2176_v55, %v2176_v55  ;;  %2852 = vst [vmem:[%s8675_s5 + $0x38] sm:$0xff] %v2529_v22  ;;  %v3876_v41 = vmul.f32 %v2529_v22, %v2529_v22  ;;  %v3363_v33 = vadd.f32 %v2531_v27, %v2527_v45  ;;  %v2540_v61 = vpop.f32.mrb[134].mxu1 }
 0x240   :  { %v3883_v24 = vmul.f32 %v2531_v27, %v2531_v27  ;;  %2858 = vst [vmem:[%s8675_s5 + $0x68] sm:$0xff] %v2180_v58  ;;  %2860 = vst [vmem:[%s8675_s5 + $0x78] sm:$0xff] %v2533_v52  ;;  %v4385_v32 = vadd.f32 %v3881_v12, %v3873_v25  ;;  %v3362_v43 = vadd.f32 %v2180_v58, %v2176_v55  ;;  %v2542_v35 = vpop.f32.mrb[135].mxu1  ;;  %v2195_v55 = vpop.f32.mrb[137].mxu0 }
 0x241   :  { %v3882_v10 = vmul.f32 %v2180_v58, %v2180_v58  ;;  %v3364_v56 = vadd.f32 %v2533_v52, %v2529_v22  ;;  %v3884_v36 = vmul.f32 %v2533_v52, %v2533_v52  ;;  %v2184_v46 = vadd.f32 %v2183_v23, %v7587_v57  ;;  %v2546_v27 = vpop.f32.mrb[136].mxu1 }
 0x242   :  { %v4387_v28 = vadd.f32 %v3883_v24, %v3875_v3  ;;  %v2537_v5 = vadd.f32 %v2536_v37, %v7589_v34  ;;  %v2186_v4 = vadd.f32 %v2185_v48, %v7597_v47  ;;  %v2539_v39 = vadd.f32 %v2538_v14, %v7599_v17  ;;  %2452 = vmatmul.mubr.bf16.gmra.mrb[240].mxu0 %v6369_v60  ;;  %v2548_v3 = vpop.f32.mrb[137].mxu1 }
 0x243   :  { %v4386_v40 = vadd.f32 %v3882_v10, %v3874_v54  ;;  %v2188_v49 = vadd.f32 %v2187_v9, %v7587_v57  ;;  %v4388_v6 = vadd.f32 %v3884_v36, %v3876_v41  ;;  %2865 = vst [vmem:[%s8675_s5 + $0xa0] sm:$0xff] %v2184_v46  ;;  %v3369_v29 = vadd.f32 %v3361_v8, %v2184_v46  ;;  %v2197_v8 = vpop.f32.mrb[138].mxu0 }
 0x244   :  { %v3889_v26 = vmul.f32 %v2184_v46, %v2184_v46  ;;  %2867 = vst [vmem:[%s8675_s5 + $0xb0] sm:$0xff] %v2537_v5  ;;  %v3371_v31 = vadd.f32 %v3363_v33, %v2537_v5  ;;  %v3891_v20 = vmul.f32 %v2537_v5, %v2537_v5  ;;  %2866 = vst [vmem:[%s8675_s5 + $0xa8] sm:$0xff] %v2186_v4  ;;  %2805 = vmatmul.mubr.bf16.gmra.mrb[240].mxu1 %v6369_v60  ;;  %v2550_v33 = vpop.f32.mrb[138].mxu1  ;;  %v2199_v24 = vpop.f32.mrb[139].mxu0 }
 0x245   :  { %v3370_v38 = vadd.f32 %v3362_v43, %v2186_v4  ;;  %v3890_v7 = vmul.f32 %v2186_v4, %v2186_v4  ;;  %2868 = vst [vmem:[%s8675_s5 + $0xb8] sm:$0xff] %v2539_v39  ;;  %v3372_v62 = vadd.f32 %v3364_v56, %v2539_v39  ;;  %2873 = vst [vmem:[%s8675_s5 + $0xe0] sm:$0xff] %v2188_v49  ;;  %2461 = vmatprep.mubr.bf16.mxu0 %v8815_v16  ;;  %v2552_v10 = vpop.f32.mrb[139].mxu1 }
 0x246   :  { %v4393_v51 = vadd.f32 %v4385_v32, %v3889_v26  ;;  %v3892_v21 = vmul.f32 %v2539_v39, %v2539_v39  ;;  %v3377_v44 = vadd.f32 %v3369_v29, %v2188_v49  ;;  %v3897_v18 = vmul.f32 %v2188_v49, %v2188_v49  ;;  %2814 = vmatprep.mubr.bf16.mxu1 %v8815_v16  ;;  %v2203_v29 = vpop.f32.mrb[140].mxu0 }
 0x247   :  { %v4395_v2 = vadd.f32 %v4387_v28, %v3891_v20  ;;  %v4394_v11 = vadd.f32 %v4386_v40, %v3890_v7  ;;  %v2541_v50 = vadd.f32 %v2540_v61, %v7589_v34  ;;  %v2190_v63 = vadd.f32 %v2189_v53, %v7597_v47  ;;  %v2556_v7 = vpop.f32.mrb[140].mxu1 }
 0x248   :  { %v4396_v42 = vadd.f32 %v4388_v6, %v3892_v21  ;;  %v4401_v45 = vadd.f32 %v4393_v51, %v3897_v18  ;;  %v2543_v1 = vadd.f32 %v2542_v35, %v7599_v17  ;;  %v2194_v60 = vadd.f32 %v2193_v15, %v7587_v57  ;;  %v2558_v18 = vpop.f32.mrb[141].mxu1 }
 0x249   :  { %2875 = vst [vmem:[%s8675_s5 + $0xf0] sm:$0xff] %v2541_v50  ;;  %v3379_v22 = vadd.f32 %v3371_v31, %v2541_v50  ;;  %v3899_v58 = vmul.f32 %v2541_v50, %v2541_v50  ;;  %2874 = vst [vmem:[%s8675_s5 + $0xe8] sm:$0xff] %v2190_v63  ;;  %v3378_v52 = vadd.f32 %v3370_v38, %v2190_v63  ;;  %v2560_v15 = vpop.f32.mrb[142].mxu1 }
 0x24a   :  { %v3898_v25 = vmul.f32 %v2190_v63, %v2190_v63  ;;  %2876 = vst [vmem:[%s8675_s5 + $0xf8] sm:$0xff] %v2543_v1  ;;  %v3380_v12 = vadd.f32 %v3372_v62, %v2543_v1  ;;  %v3900_v23 = vmul.f32 %v2543_v1, %v2543_v1  ;;  %2881 = vst [vmem:[%s8675_s5 + $0x120] sm:$0xff] %v2194_v60  ;;  %2462 = vmatmul.mubr.bf16.gmra.mrb[244].mxu0 %v6377_v30  ;;  %v2205_v62 = vpop.f32.mrb[141].mxu0 }
 0x24b   :  { %v3385_v54 = vadd.f32 %v3377_v44, %v2194_v60  ;;  %v3905_v41 = vmul.f32 %v2194_v60, %v2194_v60  ;;  %v4403_v37 = vadd.f32 %v4395_v2, %v3899_v58  ;;  %v2547_v32 = vadd.f32 %v2546_v27, %v7589_v34  ;;  %2471 = vmatprep.mubr.bf16.mxu0 %v6427_v59  ;;  %v2207_v16 = vpop.f32.mrb[142].mxu0 }
 0x24c   :  { %v4402_v48 = vadd.f32 %v4394_v11, %v3898_v25  ;;  %v2196_v43 = vadd.f32 %v2195_v55, %v7597_v47  ;;  %v4404_v56 = vadd.f32 %v4396_v42, %v3900_v23  ;;  %v2549_v9 = vadd.f32 %v2548_v3, %v7599_v17  ;;  %2815 = vmatmul.mubr.bf16.gmra.mrb[244].mxu1 %v6377_v30  ;;  %v2209_v42 = vpop.f32.mrb[143].mxu0  ;;  %v2562_v55 = vpop.f32.mrb[143].mxu1 }
 0x24d   :  { %v4409_v14 = vadd.f32 %v4401_v45, %v3905_v41  ;;  %v2198_v28 = vadd.f32 %v2197_v8, %v7587_v57  ;;  %2883 = vst [vmem:[%s8675_s5 + $0x130] sm:$0xff] %v2547_v32  ;;  %v3387_v36 = vadd.f32 %v3379_v22, %v2547_v32  ;;  %v3907_v46 = vmul.f32 %v2547_v32, %v2547_v32 }
 0x24e   :  { %2882 = vst [vmem:[%s8675_s5 + $0x128] sm:$0xff] %v2196_v43  ;;  %v3386_v5 = vadd.f32 %v3378_v52, %v2196_v43  ;;  %v3906_v61 = vmul.f32 %v2196_v43, %v2196_v43  ;;  %2884 = vst [vmem:[%s8675_s5 + $0x138] sm:$0xff] %v2549_v9  ;;  %v3388_v53 = vadd.f32 %v3380_v12, %v2549_v9  ;;  %2824 = vmatprep.mubr.bf16.mxu1 %v6427_v59  ;;  %v2213_v43 = vpop.f32.mrb[144].mxu0 }
 0x24f   :  { %v3908_v40 = vmul.f32 %v2549_v9, %v2549_v9  ;;  %2889 = vst [vmem:[%s8675_s5 + $0x160] sm:$0xff] %v2198_v28  ;;  %v3393_v4 = vadd.f32 %v3385_v54, %v2198_v28  ;;  %v3913_v39 = vmul.f32 %v2198_v28, %v2198_v28  ;;  %v4411_v49 = vadd.f32 %v4403_v37, %v3907_v46  ;;  %v2566_v28 = vpop.f32.mrb[144].mxu1 }
 0x250   :  { %v4410_v35 = vadd.f32 %v4402_v48, %v3906_v61  ;;  %v2551_v6 = vadd.f32 %v2550_v33, %v7589_v34  ;;  %v2200_v30 = vadd.f32 %v2199_v24, %v7597_v47  ;;  %v2553_v20 = vadd.f32 %v2552_v10, %v7599_v17 }
 0x251   :  { %v4412_v26 = vadd.f32 %v4404_v56, %v3908_v40  ;;  %v4417_v31 = vadd.f32 %v4409_v14, %v3913_v39  ;;  %v2204_v38 = vadd.f32 %v2203_v29, %v7587_v57  ;;  %v2557_v60 = vadd.f32 %v2556_v7, %v7589_v34 }
 0x252   :  { %2891 = vst [vmem:[%s8675_s5 + $0x170] sm:$0xff] %v2551_v6  ;;  %v3395_v51 = vadd.f32 %v3387_v36, %v2551_v6  ;;  %v3915_v21 = vmul.f32 %v2551_v6, %v2551_v6  ;;  %2890 = vst [vmem:[%s8675_s5 + $0x168] sm:$0xff] %v2200_v30  ;;  %v3394_v44 = vadd.f32 %v3386_v5, %v2200_v30  ;;  %2472 = vmatmul.mubr.bf16.gmra.mrb[248].mxu0 %v6429_v13  ;;  %v2215_v36 = vpop.f32.mrb[145].mxu0 }
 0x253   :  { %v3914_v59 = vmul.f32 %v2200_v30, %v2200_v30  ;;  %2892 = vst [vmem:[%s8675_s5 + $0x178] sm:$0xff] %v2553_v20  ;;  %v3396_v2 = vadd.f32 %v3388_v53, %v2553_v20  ;;  %v3916_v11 = vmul.f32 %v2553_v20, %v2553_v20  ;;  %2897 = vst [vmem:[%s8675_s5 + $0x1a0] sm:$0xff] %v2204_v38  ;;  %2481 = vmatprep.mubr.bf16.mxu0 %v6508_v19  ;;  %v2568_v53 = vpop.f32.mrb[145].mxu1  ;;  %v2217_v40 = vpop.f32.mrb[146].mxu0 }
 0x254   :  { %v3401_v50 = vadd.f32 %v3393_v4, %v2204_v38  ;;  %v3921_v63 = vmul.f32 %v2204_v38, %v2204_v38  ;;  %v4419_v45 = vadd.f32 %v4411_v49, %v3915_v21  ;;  %v2206_v27 = vadd.f32 %v2205_v62, %v7597_v47  ;;  %2899 = vst [vmem:[%s8675_s5 + $0x1b0] sm:$0xff] %v2557_v60  ;;  %v2570_v6 = vpop.f32.mrb[146].mxu1  ;;  %v2219_v30 = vpop.f32.mrb[147].mxu0 }
 0x255   :  { %v4418_v1 = vadd.f32 %v4410_v35, %v3914_v59  ;;  %v4420_v22 = vadd.f32 %v4412_v26, %v3916_v11  ;;  %v2559_v52 = vadd.f32 %v2558_v18, %v7599_v17  ;;  %v2208_v25 = vadd.f32 %v2207_v16, %v7587_v57  ;;  %2825 = vmatmul.mubr.bf16.gmra.mrb[248].mxu1 %v6429_v13  ;;  %v2572_v38 = vpop.f32.mrb[147].mxu1 }
 0x256   :  { %v4425_v58 = vadd.f32 %v4417_v31, %v3921_v63  ;;  %v3403_v3 = vadd.f32 %v3395_v51, %v2557_v60  ;;  %v3923_v8 = vmul.f32 %v2557_v60, %v2557_v60  ;;  %2898 = vst [vmem:[%s8675_s5 + $0x1a8] sm:$0xff] %v2206_v27  ;;  %v3402_v12 = vadd.f32 %v3394_v44, %v2206_v27  ;;  %v2223_v60 = vpop.f32.mrb[148].mxu0 }
 0x257   :  { %v3922_v23 = vmul.f32 %v2206_v27, %v2206_v27  ;;  %2900 = vst [vmem:[%s8675_s5 + $0x1b8] sm:$0xff] %v2559_v52  ;;  %v3404_v54 = vadd.f32 %v3396_v2, %v2559_v52  ;;  %v3924_v41 = vmul.f32 %v2559_v52, %v2559_v52  ;;  %2905 = vst [vmem:[%s8675_s5 + $0x1e0] sm:$0xff] %v2208_v25  ;;  %2834 = vmatprep.mubr.bf16.mxu1 %v6508_v19  ;;  %v2225_v52 = vpop.f32.mrb[149].mxu0 }
 0x258   :  { %v3409_v33 = vadd.f32 %v3401_v50, %v2208_v25  ;;  %v3929_v24 = vmul.f32 %v2208_v25, %v2208_v25  ;;  %v4427_v37 = vadd.f32 %v4419_v45, %v3923_v8  ;;  %v2561_v32 = vadd.f32 %v2560_v15, %v7589_v34 }
 0x259   :  { %v4426_v48 = vadd.f32 %v4418_v1, %v3922_v23  ;;  %v2210_v13 = vadd.f32 %v2209_v42, %v7597_v47  ;;  %v4428_v10 = vadd.f32 %v4420_v22, %v3924_v41  ;;  %v2563_v14 = vadd.f32 %v2562_v55, %v7599_v17 }
 0x25a   :  { %v4433_v56 = vadd.f32 %v4425_v58, %v3929_v24  ;;  %v2214_v9 = vadd.f32 %v2213_v43, %v7587_v57  ;;  %2907 = vst [vmem:[%s8675_s5 + $0x1f0] sm:$0xff] %v2561_v32  ;;  %v3411_v46 = vadd.f32 %v3403_v3, %v2561_v32  ;;  %v3931_v5 = vmul.f32 %v2561_v32, %v2561_v32  ;;  %v2576_v58 = vpop.f32.mrb[148].mxu1 }
 0x25b   :  { %2906 = vst [vmem:[%s8675_s5 + $0x1e8] sm:$0xff] %v2210_v13  ;;  %v3410_v61 = vadd.f32 %v3402_v12, %v2210_v13  ;;  %v3930_v19 = vmul.f32 %v2210_v13, %v2210_v13  ;;  %2908 = vst [vmem:[%s8675_s5 + $0x1f8] sm:$0xff] %v2563_v14  ;;  %v3412_v4 = vadd.f32 %v3404_v54, %v2563_v14  ;;  %2482 = vmatmul.mubr.bf16.gmra.mrb[252].mxu0 %v6510_v0  ;;  %v2578_v23 = vpop.f32.mrb[149].mxu1  ;;  %v2227_v54 = vpop.f32.mrb[150].mxu0 }
 0x25c   :  { %v3932_v39 = vmul.f32 %v2563_v14, %v2563_v14  ;;  %2913 = vst [vmem:[%s8675_s5 + $0x220] sm:$0xff] %v2214_v9  ;;  %v3417_v49 = vadd.f32 %v3409_v33, %v2214_v9  ;;  %v3937_v35 = vmul.f32 %v2214_v9, %v2214_v9  ;;  %v4435_v29 = vadd.f32 %v4427_v37, %v3931_v5  ;;  %v2229_v32 = vpop.f32.mrb[151].mxu0 }
 0x25d   :  { %v4434_v26 = vadd.f32 %v4426_v48, %v3930_v19  ;;  %v2567_v31 = vadd.f32 %v2566_v28, %v7589_v34  ;;  %v2216_v20 = vadd.f32 %v2215_v36, %v7597_v47  ;;  %v2569_v51 = vadd.f32 %v2568_v53, %v7599_v17  ;;  %2835 = vmatmul.mubr.bf16.gmra.mrb[252].mxu1 %v6510_v0  ;;  %v2580_v48 = vpop.f32.mrb[150].mxu1 }
 0x25e   :  { %v4436_v7 = vadd.f32 %v4428_v10, %v3932_v39  ;;  %v4441_v62 = vadd.f32 %v4433_v56, %v3937_v35  ;;  %v2218_v21 = vadd.f32 %v2217_v40, %v7587_v57  ;;  %v2571_v45 = vadd.f32 %v2570_v6, %v7589_v34  ;;  %v2582_v14 = vpop.f32.mrb[151].mxu1 }
 0x25f   :  { %2915 = vst [vmem:[%s8675_s5 + $0x230] sm:$0xff] %v2567_v31  ;;  %v3419_v44 = vadd.f32 %v3411_v46, %v2567_v31  ;;  %v3939_v59 = vmul.f32 %v2567_v31, %v2567_v31  ;;  %2914 = vst [vmem:[%s8675_s5 + $0x228] sm:$0xff] %v2216_v20  ;;  %v3418_v18 = vadd.f32 %v3410_v61, %v2216_v20 }
 0x260   :  { %v3938_v16 = vmul.f32 %v2216_v20, %v2216_v20  ;;  %2916 = vst [vmem:[%s8675_s5 + $0x238] sm:$0xff] %v2569_v51  ;;  %v3420_v2 = vadd.f32 %v3412_v4, %v2569_v51  ;;  %v3940_v11 = vmul.f32 %v2569_v51, %v2569_v51  ;;  %2921 = vst [vmem:[%s8675_s5 + $0x260] sm:$0xff] %v2218_v21 }
 0x261   :  { %v3425_v50 = vadd.f32 %v3417_v49, %v2218_v21  ;;  %v3945_v63 = vmul.f32 %v2218_v21, %v2218_v21  ;;  %v4443_v15 = vadd.f32 %v4435_v29, %v3939_v59  ;;  %v2220_v1 = vadd.f32 %v2219_v30, %v7597_v47  ;;  %2923 = vst [vmem:[%s8675_s5 + $0x270] sm:$0xff] %v2571_v45 }
 0x262   :  { %v4442_v42 = vadd.f32 %v4434_v26, %v3938_v16  ;;  %v4444_v0 = vadd.f32 %v4436_v7, %v3940_v11  ;;  %v2573_v55 = vadd.f32 %v2572_v38, %v7599_v17  ;;  %v2224_v22 = vadd.f32 %v2223_v60, %v7587_v57  ;;  %v2233_v26 = vpop.f32.mrb[152].mxu0 }
 0x263   :  { %v4449_v27 = vadd.f32 %v4441_v62, %v3945_v63  ;;  %v3427_v25 = vadd.f32 %v3419_v44, %v2571_v45  ;;  %v3947_v3 = vmul.f32 %v2571_v45, %v2571_v45  ;;  %2922 = vst [vmem:[%s8675_s5 + $0x268] sm:$0xff] %v2220_v1  ;;  %v3426_v8 = vadd.f32 %v3418_v18, %v2220_v1  ;;  %v2586_v62 = vpop.f32.mrb[152].mxu1  ;;  %v2235_v51 = vpop.f32.mrb[153].mxu0 }
 0x264   :  { %v3946_v12 = vmul.f32 %v2220_v1, %v2220_v1  ;;  %2924 = vst [vmem:[%s8675_s5 + $0x278] sm:$0xff] %v2573_v55  ;;  %v3428_v41 = vadd.f32 %v3420_v2, %v2573_v55  ;;  %v3948_v33 = vmul.f32 %v2573_v55, %v2573_v55  ;;  %2929 = vst [vmem:[%s8675_s5 + $0x2a0] sm:$0xff] %v2224_v22  ;;  %v2588_v16 = vpop.f32.mrb[153].mxu1  ;;  %v2237_v2 = vpop.f32.mrb[154].mxu0 }
 0x265   :  { %v3433_v24 = vadd.f32 %v3425_v50, %v2224_v22  ;;  %v3953_v37 = vmul.f32 %v2224_v22, %v2224_v22  ;;  %v4451_v13 = vadd.f32 %v4443_v15, %v3947_v3  ;;  %v2577_v10 = vadd.f32 %v2576_v58, %v7589_v34  ;;  %v2239_v45 = vpop.f32.mrb[155].mxu0 }
 0x266   :  { %v4450_v43 = vadd.f32 %v4442_v42, %v3946_v12  ;;  %v2226_v56 = vadd.f32 %v2225_v52, %v7597_v47  ;;  %v4452_v9 = vadd.f32 %v4444_v0, %v3948_v33  ;;  %v2579_v36 = vadd.f32 %v2578_v23, %v7599_v17  ;;  %v2590_v42 = vpop.f32.mrb[154].mxu1 }
 0x267   :  { %v4457_v28 = vadd.f32 %v4449_v27, %v3953_v37  ;;  %v2228_v46 = vadd.f32 %v2227_v54, %v7587_v57  ;;  %2931 = vst [vmem:[%s8675_s5 + $0x2b0] sm:$0xff] %v2577_v10  ;;  %v3435_v5 = vadd.f32 %v3427_v25, %v2577_v10  ;;  %v3955_v61 = vmul.f32 %v2577_v10, %v2577_v10  ;;  %v2592_v55 = vpop.f32.mrb[155].mxu1 }
 0x268   :  { %2930 = vst [vmem:[%s8675_s5 + $0x2a8] sm:$0xff] %v2226_v56  ;;  %v3434_v19 = vadd.f32 %v3426_v8, %v2226_v56  ;;  %v3954_v53 = vmul.f32 %v2226_v56, %v2226_v56  ;;  %2932 = vst [vmem:[%s8675_s5 + $0x2b8] sm:$0xff] %v2579_v36  ;;  %v3436_v40 = vadd.f32 %v3428_v41, %v2579_v36 }
 0x269   :  { %v3956_v4 = vmul.f32 %v2579_v36, %v2579_v36  ;;  %2937 = vst [vmem:[%s8675_s5 + $0x2e0] sm:$0xff] %v2228_v46  ;;  %v3441_v39 = vadd.f32 %v3433_v24, %v2228_v46  ;;  %v3961_v49 = vmul.f32 %v2228_v46, %v2228_v46  ;;  %v4459_v35 = vadd.f32 %v4451_v13, %v3955_v61 }
 0x26a   :  { %v4458_v6 = vadd.f32 %v4450_v43, %v3954_v53  ;;  %v2581_v30 = vadd.f32 %v2580_v48, %v7589_v34  ;;  %v2230_v29 = vadd.f32 %v2229_v32, %v7597_v47  ;;  %v2583_v38 = vadd.f32 %v2582_v14, %v7599_v17  ;;  %v2243_v43 = vpop.f32.mrb[156].mxu0 }
 0x26b   :  { %v4460_v31 = vadd.f32 %v4452_v9, %v3956_v4  ;;  %v4465_v20 = vadd.f32 %v4457_v28, %v3961_v49  ;;  %v2234_v7 = vadd.f32 %v2233_v26, %v7587_v57  ;;  %v2587_v0 = vadd.f32 %v2586_v62, %v7589_v34  ;;  %v2596_v28 = vpop.f32.mrb[156].mxu1  ;;  %v2245_v36 = vpop.f32.mrb[157].mxu0 }
 0x26c   :  { %2939 = vst [vmem:[%s8675_s5 + $0x2f0] sm:$0xff] %v2581_v30  ;;  %v3443_v21 = vadd.f32 %v3435_v5, %v2581_v30  ;;  %v3963_v44 = vmul.f32 %v2581_v30, %v2581_v30  ;;  %2938 = vst [vmem:[%s8675_s5 + $0x2e8] sm:$0xff] %v2230_v29  ;;  %v3442_v59 = vadd.f32 %v3434_v19, %v2230_v29  ;;  %v2598_v53 = vpop.f32.mrb[157].mxu1 }
 0x26d   :  { %v3962_v18 = vmul.f32 %v2230_v29, %v2230_v29  ;;  %2940 = vst [vmem:[%s8675_s5 + $0x2f8] sm:$0xff] %v2583_v38  ;;  %v3444_v11 = vadd.f32 %v3436_v40, %v2583_v38  ;;  %v3964_v50 = vmul.f32 %v2583_v38, %v2583_v38  ;;  %2945 = vst [vmem:[%s8675_s5 + $0x320] sm:$0xff] %v2234_v7  ;;  %v2247_v40 = vpop.f32.mrb[158].mxu0 }
 0x26e   :  { %v3449_v63 = vadd.f32 %v3441_v39, %v2234_v7  ;;  %v3969_v15 = vmul.f32 %v2234_v7, %v2234_v7  ;;  %v4467_v1 = vadd.f32 %v4459_v35, %v3963_v44  ;;  %v2236_v27 = vadd.f32 %v2235_v51, %v7597_v47  ;;  %2947 = vst [vmem:[%s8675_s5 + $0x330] sm:$0xff] %v2587_v0  ;;  %v2249_v30 = vpop.f32.mrb[159].mxu0 }
 0x26f   :  { %v4466_v60 = vadd.f32 %v4458_v6, %v3962_v18  ;;  %v4468_v22 = vadd.f32 %v4460_v31, %v3964_v50  ;;  %v2589_v52 = vadd.f32 %v2588_v16, %v7599_v17  ;;  %v2238_v25 = vadd.f32 %v2237_v2, %v7587_v57  ;;  %v2600_v6 = vpop.f32.mrb[158].mxu1 }
 0x270   :  { %v4473_v58 = vadd.f32 %v4465_v20, %v3969_v15  ;;  %v3451_v3 = vadd.f32 %v3443_v21, %v2587_v0  ;;  %v3971_v8 = vmul.f32 %v2587_v0, %v2587_v0  ;;  %2946 = vst [vmem:[%s8675_s5 + $0x328] sm:$0xff] %v2236_v27  ;;  %v3450_v12 = vadd.f32 %v3442_v59, %v2236_v27  ;;  %v2602_v38 = vpop.f32.mrb[159].mxu1 }
 0x271   :  { %v3970_v23 = vmul.f32 %v2236_v27, %v2236_v27  ;;  %2948 = vst [vmem:[%s8675_s5 + $0x338] sm:$0xff] %v2589_v52  ;;  %v3452_v54 = vadd.f32 %v3444_v11, %v2589_v52  ;;  %v3972_v41 = vmul.f32 %v2589_v52, %v2589_v52  ;;  %2953 = vst [vmem:[%s8675_s5 + $0x360] sm:$0xff] %v2238_v25 }
 0x272   :  { %v3457_v33 = vadd.f32 %v3449_v63, %v2238_v25  ;;  %v3977_v24 = vmul.f32 %v2238_v25, %v2238_v25  ;;  %v4475_v37 = vadd.f32 %v4467_v1, %v3971_v8  ;;  %v2591_v32 = vadd.f32 %v2590_v42, %v7589_v34 }
 0x273   :  { %v4474_v48 = vadd.f32 %v4466_v60, %v3970_v23  ;;  %v2240_v13 = vadd.f32 %v2239_v45, %v7597_v47  ;;  %v4476_v10 = vadd.f32 %v4468_v22, %v3972_v41  ;;  %v2593_v14 = vadd.f32 %v2592_v55, %v7599_v17  ;;  %v2253_v60 = vpop.f32.mrb[160].mxu0 }
 0x274   :  { %v4481_v56 = vadd.f32 %v4473_v58, %v3977_v24  ;;  %v2244_v9 = vadd.f32 %v2243_v43, %v7587_v57  ;;  %2955 = vst [vmem:[%s8675_s5 + $0x370] sm:$0xff] %v2591_v32  ;;  %v3459_v46 = vadd.f32 %v3451_v3, %v2591_v32  ;;  %v3979_v5 = vmul.f32 %v2591_v32, %v2591_v32  ;;  %v2606_v58 = vpop.f32.mrb[160].mxu1  ;;  %v2255_v52 = vpop.f32.mrb[161].mxu0 }
 0x275   :  { %2954 = vst [vmem:[%s8675_s5 + $0x368] sm:$0xff] %v2240_v13  ;;  %v3458_v61 = vadd.f32 %v3450_v12, %v2240_v13  ;;  %v3978_v19 = vmul.f32 %v2240_v13, %v2240_v13  ;;  %2956 = vst [vmem:[%s8675_s5 + $0x378] sm:$0xff] %v2593_v14  ;;  %v3460_v4 = vadd.f32 %v3452_v54, %v2593_v14  ;;  %v2608_v23 = vpop.f32.mrb[161].mxu1  ;;  %v2257_v54 = vpop.f32.mrb[162].mxu0 }
 0x276   :  { %v3980_v39 = vmul.f32 %v2593_v14, %v2593_v14  ;;  %2961 = vst [vmem:[%s8675_s5 + $0x3a0] sm:$0xff] %v2244_v9  ;;  %v3465_v49 = vadd.f32 %v3457_v33, %v2244_v9  ;;  %v3985_v35 = vmul.f32 %v2244_v9, %v2244_v9  ;;  %v4483_v29 = vadd.f32 %v4475_v37, %v3979_v5  ;;  %v2259_v32 = vpop.f32.mrb[163].mxu0 }
 0x277   :  { %v4482_v26 = vadd.f32 %v4474_v48, %v3978_v19  ;;  %v2597_v31 = vadd.f32 %v2596_v28, %v7589_v34  ;;  %v2246_v20 = vadd.f32 %v2245_v36, %v7597_v47  ;;  %v2599_v51 = vadd.f32 %v2598_v53, %v7599_v17  ;;  %v2610_v48 = vpop.f32.mrb[162].mxu1 }
 0x278   :  { %v4484_v7 = vadd.f32 %v4476_v10, %v3980_v39  ;;  %v4489_v62 = vadd.f32 %v4481_v56, %v3985_v35  ;;  %v2248_v21 = vadd.f32 %v2247_v40, %v7587_v57  ;;  %v2601_v45 = vadd.f32 %v2600_v6, %v7589_v34  ;;  %v2612_v14 = vpop.f32.mrb[163].mxu1 }
 0x279   :  { %2963 = vst [vmem:[%s8675_s5 + $0x3b0] sm:$0xff] %v2597_v31  ;;  %v3467_v44 = vadd.f32 %v3459_v46, %v2597_v31  ;;  %v3987_v59 = vmul.f32 %v2597_v31, %v2597_v31  ;;  %2962 = vst [vmem:[%s8675_s5 + $0x3a8] sm:$0xff] %v2246_v20  ;;  %v3466_v18 = vadd.f32 %v3458_v61, %v2246_v20 }
 0x27a   :  { %v3986_v16 = vmul.f32 %v2246_v20, %v2246_v20  ;;  %2964 = vst [vmem:[%s8675_s5 + $0x3b8] sm:$0xff] %v2599_v51  ;;  %v3468_v2 = vadd.f32 %v3460_v4, %v2599_v51  ;;  %v3988_v11 = vmul.f32 %v2599_v51, %v2599_v51  ;;  %2969 = vst [vmem:[%s8675_s5 + $0x3e0] sm:$0xff] %v2248_v21 }
 0x27b   :  { %v3473_v50 = vadd.f32 %v3465_v49, %v2248_v21  ;;  %v3993_v63 = vmul.f32 %v2248_v21, %v2248_v21  ;;  %v4491_v15 = vadd.f32 %v4483_v29, %v3987_v59  ;;  %v2250_v1 = vadd.f32 %v2249_v30, %v7597_v47  ;;  %2971 = vst [vmem:[%s8675_s5 + $0x3f0] sm:$0xff] %v2601_v45 }
 0x27c   :  { %v4490_v42 = vadd.f32 %v4482_v26, %v3986_v16  ;;  %v4492_v0 = vadd.f32 %v4484_v7, %v3988_v11  ;;  %v2603_v55 = vadd.f32 %v2602_v38, %v7599_v17  ;;  %v2254_v22 = vadd.f32 %v2253_v60, %v7587_v57  ;;  %v2263_v26 = vpop.f32.mrb[164].mxu0 }
 0x27d   :  { %v4497_v27 = vadd.f32 %v4489_v62, %v3993_v63  ;;  %v3475_v25 = vadd.f32 %v3467_v44, %v2601_v45  ;;  %v3995_v3 = vmul.f32 %v2601_v45, %v2601_v45  ;;  %2970 = vst [vmem:[%s8675_s5 + $0x3e8] sm:$0xff] %v2250_v1  ;;  %v3474_v8 = vadd.f32 %v3466_v18, %v2250_v1  ;;  %v2616_v62 = vpop.f32.mrb[164].mxu1  ;;  %v2265_v51 = vpop.f32.mrb[165].mxu0 }
 0x27e   :  { %v3994_v12 = vmul.f32 %v2250_v1, %v2250_v1  ;;  %2972 = vst [vmem:[%s8675_s5 + $0x3f8] sm:$0xff] %v2603_v55  ;;  %v3476_v41 = vadd.f32 %v3468_v2, %v2603_v55  ;;  %v3996_v33 = vmul.f32 %v2603_v55, %v2603_v55  ;;  %2977 = vst [vmem:[%s8675_s5 + $0x420] sm:$0xff] %v2254_v22  ;;  %v2618_v16 = vpop.f32.mrb[165].mxu1  ;;  %v2267_v2 = vpop.f32.mrb[166].mxu0 }
 0x27f   :  { %v3481_v24 = vadd.f32 %v3473_v50, %v2254_v22  ;;  %v4001_v37 = vmul.f32 %v2254_v22, %v2254_v22  ;;  %v4499_v13 = vadd.f32 %v4491_v15, %v3995_v3  ;;  %v2607_v10 = vadd.f32 %v2606_v58, %v7589_v34  ;;  %v2269_v45 = vpop.f32.mrb[167].mxu0 }
 0x280   :  { %v4498_v43 = vadd.f32 %v4490_v42, %v3994_v12  ;;  %v2256_v56 = vadd.f32 %v2255_v52, %v7597_v47  ;;  %v4500_v9 = vadd.f32 %v4492_v0, %v3996_v33  ;;  %v2609_v36 = vadd.f32 %v2608_v23, %v7599_v17  ;;  %v2620_v42 = vpop.f32.mrb[166].mxu1 }
 0x281   :  { %v4505_v28 = vadd.f32 %v4497_v27, %v4001_v37  ;;  %v2258_v46 = vadd.f32 %v2257_v54, %v7587_v57  ;;  %2979 = vst [vmem:[%s8675_s5 + $0x430] sm:$0xff] %v2607_v10  ;;  %v3483_v5 = vadd.f32 %v3475_v25, %v2607_v10  ;;  %v4003_v61 = vmul.f32 %v2607_v10, %v2607_v10  ;;  %v2622_v55 = vpop.f32.mrb[167].mxu1 }
 0x282   :  { %2978 = vst [vmem:[%s8675_s5 + $0x428] sm:$0xff] %v2256_v56  ;;  %v3482_v19 = vadd.f32 %v3474_v8, %v2256_v56  ;;  %v4002_v53 = vmul.f32 %v2256_v56, %v2256_v56  ;;  %2980 = vst [vmem:[%s8675_s5 + $0x438] sm:$0xff] %v2609_v36  ;;  %v3484_v40 = vadd.f32 %v3476_v41, %v2609_v36 }
 0x283   :  { %v4004_v4 = vmul.f32 %v2609_v36, %v2609_v36  ;;  %2985 = vst [vmem:[%s8675_s5 + $0x460] sm:$0xff] %v2258_v46  ;;  %v3489_v39 = vadd.f32 %v3481_v24, %v2258_v46  ;;  %v4009_v49 = vmul.f32 %v2258_v46, %v2258_v46  ;;  %v4507_v35 = vadd.f32 %v4499_v13, %v4003_v61 }
 0x284   :  { %v4506_v6 = vadd.f32 %v4498_v43, %v4002_v53  ;;  %v2611_v30 = vadd.f32 %v2610_v48, %v7589_v34  ;;  %v2260_v29 = vadd.f32 %v2259_v32, %v7597_v47  ;;  %v2613_v38 = vadd.f32 %v2612_v14, %v7599_v17  ;;  %v2273_v43 = vpop.f32.mrb[168].mxu0 }
 0x285   :  { %v4508_v31 = vadd.f32 %v4500_v9, %v4004_v4  ;;  %v4513_v20 = vadd.f32 %v4505_v28, %v4009_v49  ;;  %v2264_v7 = vadd.f32 %v2263_v26, %v7587_v57  ;;  %v2617_v0 = vadd.f32 %v2616_v62, %v7589_v34  ;;  %v2626_v28 = vpop.f32.mrb[168].mxu1  ;;  %v2275_v36 = vpop.f32.mrb[169].mxu0 }
 0x286   :  { %2987 = vst [vmem:[%s8675_s5 + $0x470] sm:$0xff] %v2611_v30  ;;  %v3491_v21 = vadd.f32 %v3483_v5, %v2611_v30  ;;  %v4011_v44 = vmul.f32 %v2611_v30, %v2611_v30  ;;  %2986 = vst [vmem:[%s8675_s5 + $0x468] sm:$0xff] %v2260_v29  ;;  %v3490_v59 = vadd.f32 %v3482_v19, %v2260_v29  ;;  %v2628_v53 = vpop.f32.mrb[169].mxu1 }
 0x287   :  { %v4010_v18 = vmul.f32 %v2260_v29, %v2260_v29  ;;  %2988 = vst [vmem:[%s8675_s5 + $0x478] sm:$0xff] %v2613_v38  ;;  %v3492_v11 = vadd.f32 %v3484_v40, %v2613_v38  ;;  %v4012_v50 = vmul.f32 %v2613_v38, %v2613_v38  ;;  %2993 = vst [vmem:[%s8675_s5 + $0x4a0] sm:$0xff] %v2264_v7  ;;  %v2277_v40 = vpop.f32.mrb[170].mxu0 }
 0x288   :  { %v3497_v63 = vadd.f32 %v3489_v39, %v2264_v7  ;;  %v4017_v15 = vmul.f32 %v2264_v7, %v2264_v7  ;;  %v4515_v1 = vadd.f32 %v4507_v35, %v4011_v44  ;;  %v2266_v27 = vadd.f32 %v2265_v51, %v7597_v47  ;;  %2995 = vst [vmem:[%s8675_s5 + $0x4b0] sm:$0xff] %v2617_v0  ;;  %v2279_v30 = vpop.f32.mrb[171].mxu0 }
 0x289   :  { %v4514_v60 = vadd.f32 %v4506_v6, %v4010_v18  ;;  %v4516_v22 = vadd.f32 %v4508_v31, %v4012_v50  ;;  %v2619_v52 = vadd.f32 %v2618_v16, %v7599_v17  ;;  %v2268_v25 = vadd.f32 %v2267_v2, %v7587_v57  ;;  %v2630_v6 = vpop.f32.mrb[170].mxu1 }
 0x28a   :  { %v4521_v58 = vadd.f32 %v4513_v20, %v4017_v15  ;;  %v3499_v3 = vadd.f32 %v3491_v21, %v2617_v0  ;;  %v4019_v8 = vmul.f32 %v2617_v0, %v2617_v0  ;;  %2994 = vst [vmem:[%s8675_s5 + $0x4a8] sm:$0xff] %v2266_v27  ;;  %v3498_v12 = vadd.f32 %v3490_v59, %v2266_v27  ;;  %v2632_v38 = vpop.f32.mrb[171].mxu1 }
 0x28b   :  { %v4018_v23 = vmul.f32 %v2266_v27, %v2266_v27  ;;  %2996 = vst [vmem:[%s8675_s5 + $0x4b8] sm:$0xff] %v2619_v52  ;;  %v3500_v54 = vadd.f32 %v3492_v11, %v2619_v52  ;;  %v4020_v41 = vmul.f32 %v2619_v52, %v2619_v52  ;;  %3001 = vst [vmem:[%s8675_s5 + $0x4e0] sm:$0xff] %v2268_v25 }
 0x28c   :  { %v3505_v33 = vadd.f32 %v3497_v63, %v2268_v25  ;;  %v4025_v24 = vmul.f32 %v2268_v25, %v2268_v25  ;;  %v4523_v37 = vadd.f32 %v4515_v1, %v4019_v8  ;;  %v2621_v32 = vadd.f32 %v2620_v42, %v7589_v34 }
 0x28d   :  { %v4522_v48 = vadd.f32 %v4514_v60, %v4018_v23  ;;  %v2270_v13 = vadd.f32 %v2269_v45, %v7597_v47  ;;  %v4524_v10 = vadd.f32 %v4516_v22, %v4020_v41  ;;  %v2623_v14 = vadd.f32 %v2622_v55, %v7599_v17  ;;  %v2283_v60 = vpop.f32.mrb[172].mxu0 }
 0x28e   :  { %v4529_v56 = vadd.f32 %v4521_v58, %v4025_v24  ;;  %v2274_v9 = vadd.f32 %v2273_v43, %v7587_v57  ;;  %3003 = vst [vmem:[%s8675_s5 + $0x4f0] sm:$0xff] %v2621_v32  ;;  %v3507_v46 = vadd.f32 %v3499_v3, %v2621_v32  ;;  %v4027_v5 = vmul.f32 %v2621_v32, %v2621_v32  ;;  %v2636_v58 = vpop.f32.mrb[172].mxu1  ;;  %v2285_v52 = vpop.f32.mrb[173].mxu0 }
 0x28f   :  { %3002 = vst [vmem:[%s8675_s5 + $0x4e8] sm:$0xff] %v2270_v13  ;;  %v3506_v61 = vadd.f32 %v3498_v12, %v2270_v13  ;;  %v4026_v19 = vmul.f32 %v2270_v13, %v2270_v13  ;;  %3004 = vst [vmem:[%s8675_s5 + $0x4f8] sm:$0xff] %v2623_v14  ;;  %v3508_v4 = vadd.f32 %v3500_v54, %v2623_v14  ;;  %v2638_v23 = vpop.f32.mrb[173].mxu1  ;;  %v2287_v54 = vpop.f32.mrb[174].mxu0 }
 0x290   :  { %v4028_v39 = vmul.f32 %v2623_v14, %v2623_v14  ;;  %3009 = vst [vmem:[%s8675_s5 + $0x520] sm:$0xff] %v2274_v9  ;;  %v3513_v49 = vadd.f32 %v3505_v33, %v2274_v9  ;;  %v4033_v35 = vmul.f32 %v2274_v9, %v2274_v9  ;;  %v4531_v29 = vadd.f32 %v4523_v37, %v4027_v5  ;;  %v2289_v32 = vpop.f32.mrb[175].mxu0 }
 0x291   :  { %v4530_v26 = vadd.f32 %v4522_v48, %v4026_v19  ;;  %v2627_v31 = vadd.f32 %v2626_v28, %v7589_v34  ;;  %v2276_v20 = vadd.f32 %v2275_v36, %v7597_v47  ;;  %v2629_v51 = vadd.f32 %v2628_v53, %v7599_v17  ;;  %v2640_v48 = vpop.f32.mrb[174].mxu1 }
 0x292   :  { %v4532_v7 = vadd.f32 %v4524_v10, %v4028_v39  ;;  %v4537_v62 = vadd.f32 %v4529_v56, %v4033_v35  ;;  %v2278_v21 = vadd.f32 %v2277_v40, %v7587_v57  ;;  %v2631_v45 = vadd.f32 %v2630_v6, %v7589_v34  ;;  %v2642_v14 = vpop.f32.mrb[175].mxu1 }
 0x293   :  { %3011 = vst [vmem:[%s8675_s5 + $0x530] sm:$0xff] %v2627_v31  ;;  %v3515_v44 = vadd.f32 %v3507_v46, %v2627_v31  ;;  %v4035_v59 = vmul.f32 %v2627_v31, %v2627_v31  ;;  %3010 = vst [vmem:[%s8675_s5 + $0x528] sm:$0xff] %v2276_v20  ;;  %v3514_v18 = vadd.f32 %v3506_v61, %v2276_v20 }
 0x294   :  { %v4034_v16 = vmul.f32 %v2276_v20, %v2276_v20  ;;  %3012 = vst [vmem:[%s8675_s5 + $0x538] sm:$0xff] %v2629_v51  ;;  %v3516_v2 = vadd.f32 %v3508_v4, %v2629_v51  ;;  %v4036_v11 = vmul.f32 %v2629_v51, %v2629_v51  ;;  %3017 = vst [vmem:[%s8675_s5 + $0x560] sm:$0xff] %v2278_v21 }
 0x295   :  { %v3521_v50 = vadd.f32 %v3513_v49, %v2278_v21  ;;  %v4041_v63 = vmul.f32 %v2278_v21, %v2278_v21  ;;  %v4539_v15 = vadd.f32 %v4531_v29, %v4035_v59  ;;  %v2280_v1 = vadd.f32 %v2279_v30, %v7597_v47  ;;  %3019 = vst [vmem:[%s8675_s5 + $0x570] sm:$0xff] %v2631_v45 }
 0x296   :  { %v4538_v42 = vadd.f32 %v4530_v26, %v4034_v16  ;;  %v4540_v0 = vadd.f32 %v4532_v7, %v4036_v11  ;;  %v2633_v55 = vadd.f32 %v2632_v38, %v7599_v17  ;;  %v2284_v22 = vadd.f32 %v2283_v60, %v7587_v57  ;;  %v2293_v26 = vpop.f32.mrb[176].mxu0 }
 0x297   :  { %v4545_v27 = vadd.f32 %v4537_v62, %v4041_v63  ;;  %v3523_v25 = vadd.f32 %v3515_v44, %v2631_v45  ;;  %v4043_v3 = vmul.f32 %v2631_v45, %v2631_v45  ;;  %3018 = vst [vmem:[%s8675_s5 + $0x568] sm:$0xff] %v2280_v1  ;;  %v3522_v8 = vadd.f32 %v3514_v18, %v2280_v1  ;;  %v2646_v62 = vpop.f32.mrb[176].mxu1  ;;  %v2295_v51 = vpop.f32.mrb[177].mxu0 }
 0x298   :  { %v4042_v12 = vmul.f32 %v2280_v1, %v2280_v1  ;;  %3020 = vst [vmem:[%s8675_s5 + $0x578] sm:$0xff] %v2633_v55  ;;  %v3524_v41 = vadd.f32 %v3516_v2, %v2633_v55  ;;  %v4044_v33 = vmul.f32 %v2633_v55, %v2633_v55  ;;  %3025 = vst [vmem:[%s8675_s5 + $0x5a0] sm:$0xff] %v2284_v22  ;;  %v2648_v16 = vpop.f32.mrb[177].mxu1  ;;  %v2297_v2 = vpop.f32.mrb[178].mxu0 }
 0x299   :  { %v3529_v24 = vadd.f32 %v3521_v50, %v2284_v22  ;;  %v4049_v37 = vmul.f32 %v2284_v22, %v2284_v22  ;;  %v4547_v13 = vadd.f32 %v4539_v15, %v4043_v3  ;;  %v2637_v10 = vadd.f32 %v2636_v58, %v7589_v34  ;;  %v2299_v45 = vpop.f32.mrb[179].mxu0 }
 0x29a   :  { %v4546_v43 = vadd.f32 %v4538_v42, %v4042_v12  ;;  %v2286_v56 = vadd.f32 %v2285_v52, %v7597_v47  ;;  %v4548_v9 = vadd.f32 %v4540_v0, %v4044_v33  ;;  %v2639_v36 = vadd.f32 %v2638_v23, %v7599_v17  ;;  %v2650_v42 = vpop.f32.mrb[178].mxu1 }
 0x29b   :  { %v4553_v28 = vadd.f32 %v4545_v27, %v4049_v37  ;;  %v2288_v46 = vadd.f32 %v2287_v54, %v7587_v57  ;;  %3027 = vst [vmem:[%s8675_s5 + $0x5b0] sm:$0xff] %v2637_v10  ;;  %v3531_v5 = vadd.f32 %v3523_v25, %v2637_v10  ;;  %v4051_v61 = vmul.f32 %v2637_v10, %v2637_v10  ;;  %v2652_v55 = vpop.f32.mrb[179].mxu1 }
 0x29c   :  { %3026 = vst [vmem:[%s8675_s5 + $0x5a8] sm:$0xff] %v2286_v56  ;;  %v3530_v19 = vadd.f32 %v3522_v8, %v2286_v56  ;;  %v4050_v53 = vmul.f32 %v2286_v56, %v2286_v56  ;;  %3028 = vst [vmem:[%s8675_s5 + $0x5b8] sm:$0xff] %v2639_v36  ;;  %v3532_v40 = vadd.f32 %v3524_v41, %v2639_v36 }
 0x29d   :  { %v4052_v4 = vmul.f32 %v2639_v36, %v2639_v36  ;;  %3033 = vst [vmem:[%s8675_s5 + $0x5e0] sm:$0xff] %v2288_v46  ;;  %v3537_v39 = vadd.f32 %v3529_v24, %v2288_v46  ;;  %v4057_v49 = vmul.f32 %v2288_v46, %v2288_v46  ;;  %v4555_v35 = vadd.f32 %v4547_v13, %v4051_v61 }
 0x29e   :  { %v4554_v6 = vadd.f32 %v4546_v43, %v4050_v53  ;;  %v2641_v30 = vadd.f32 %v2640_v48, %v7589_v34  ;;  %v2290_v29 = vadd.f32 %v2289_v32, %v7597_v47  ;;  %v2643_v38 = vadd.f32 %v2642_v14, %v7599_v17  ;;  %v2303_v43 = vpop.f32.mrb[180].mxu0 }
 0x29f   :  { %v4556_v31 = vadd.f32 %v4548_v9, %v4052_v4  ;;  %v4561_v20 = vadd.f32 %v4553_v28, %v4057_v49  ;;  %v2294_v7 = vadd.f32 %v2293_v26, %v7587_v57  ;;  %v2647_v0 = vadd.f32 %v2646_v62, %v7589_v34  ;;  %v2656_v28 = vpop.f32.mrb[180].mxu1  ;;  %v2305_v36 = vpop.f32.mrb[181].mxu0 }
 0x2a0   :  { %3035 = vst [vmem:[%s8675_s5 + $0x5f0] sm:$0xff] %v2641_v30  ;;  %v3539_v21 = vadd.f32 %v3531_v5, %v2641_v30  ;;  %v4059_v44 = vmul.f32 %v2641_v30, %v2641_v30  ;;  %3034 = vst [vmem:[%s8675_s5 + $0x5e8] sm:$0xff] %v2290_v29  ;;  %v3538_v59 = vadd.f32 %v3530_v19, %v2290_v29  ;;  %v2658_v53 = vpop.f32.mrb[181].mxu1 }
 0x2a1   :  { %v4058_v18 = vmul.f32 %v2290_v29, %v2290_v29  ;;  %3036 = vst [vmem:[%s8675_s5 + $0x5f8] sm:$0xff] %v2643_v38  ;;  %v3540_v11 = vadd.f32 %v3532_v40, %v2643_v38  ;;  %v4060_v50 = vmul.f32 %v2643_v38, %v2643_v38  ;;  %3041 = vst [vmem:[%s8675_s5 + $0x620] sm:$0xff] %v2294_v7  ;;  %v2307_v40 = vpop.f32.mrb[182].mxu0 }
 0x2a2   :  { %v3545_v63 = vadd.f32 %v3537_v39, %v2294_v7  ;;  %v4065_v15 = vmul.f32 %v2294_v7, %v2294_v7  ;;  %v4563_v1 = vadd.f32 %v4555_v35, %v4059_v44  ;;  %v2296_v27 = vadd.f32 %v2295_v51, %v7597_v47  ;;  %3043 = vst [vmem:[%s8675_s5 + $0x630] sm:$0xff] %v2647_v0  ;;  %v2309_v30 = vpop.f32.mrb[183].mxu0 }
 0x2a3   :  { %v4562_v60 = vadd.f32 %v4554_v6, %v4058_v18  ;;  %v4564_v22 = vadd.f32 %v4556_v31, %v4060_v50  ;;  %v2649_v52 = vadd.f32 %v2648_v16, %v7599_v17  ;;  %v2298_v25 = vadd.f32 %v2297_v2, %v7587_v57  ;;  %v2660_v6 = vpop.f32.mrb[182].mxu1 }
 0x2a4   :  { %v4569_v58 = vadd.f32 %v4561_v20, %v4065_v15  ;;  %v3547_v3 = vadd.f32 %v3539_v21, %v2647_v0  ;;  %v4067_v8 = vmul.f32 %v2647_v0, %v2647_v0  ;;  %3042 = vst [vmem:[%s8675_s5 + $0x628] sm:$0xff] %v2296_v27  ;;  %v3546_v12 = vadd.f32 %v3538_v59, %v2296_v27  ;;  %v2662_v38 = vpop.f32.mrb[183].mxu1 }
 0x2a5   :  { %v4066_v23 = vmul.f32 %v2296_v27, %v2296_v27  ;;  %3044 = vst [vmem:[%s8675_s5 + $0x638] sm:$0xff] %v2649_v52  ;;  %v3548_v54 = vadd.f32 %v3540_v11, %v2649_v52  ;;  %v4068_v41 = vmul.f32 %v2649_v52, %v2649_v52  ;;  %3049 = vst [vmem:[%s8675_s5 + $0x660] sm:$0xff] %v2298_v25 }
 0x2a6   :  { %v3553_v33 = vadd.f32 %v3545_v63, %v2298_v25  ;;  %v4073_v24 = vmul.f32 %v2298_v25, %v2298_v25  ;;  %v4571_v37 = vadd.f32 %v4563_v1, %v4067_v8  ;;  %v2651_v32 = vadd.f32 %v2650_v42, %v7589_v34 }
 0x2a7   :  { %v4570_v48 = vadd.f32 %v4562_v60, %v4066_v23  ;;  %v2300_v13 = vadd.f32 %v2299_v45, %v7597_v47  ;;  %v4572_v10 = vadd.f32 %v4564_v22, %v4068_v41  ;;  %v2653_v14 = vadd.f32 %v2652_v55, %v7599_v17  ;;  %v2313_v60 = vpop.f32.mrb[184].mxu0 }
 0x2a8   :  { %v4577_v56 = vadd.f32 %v4569_v58, %v4073_v24  ;;  %v2304_v9 = vadd.f32 %v2303_v43, %v7587_v57  ;;  %3051 = vst [vmem:[%s8675_s5 + $0x670] sm:$0xff] %v2651_v32  ;;  %v3555_v46 = vadd.f32 %v3547_v3, %v2651_v32  ;;  %v4075_v5 = vmul.f32 %v2651_v32, %v2651_v32  ;;  %v2666_v58 = vpop.f32.mrb[184].mxu1  ;;  %v2315_v52 = vpop.f32.mrb[185].mxu0 }
 0x2a9   :  { %3050 = vst [vmem:[%s8675_s5 + $0x668] sm:$0xff] %v2300_v13  ;;  %v3554_v61 = vadd.f32 %v3546_v12, %v2300_v13  ;;  %v4074_v19 = vmul.f32 %v2300_v13, %v2300_v13  ;;  %3052 = vst [vmem:[%s8675_s5 + $0x678] sm:$0xff] %v2653_v14  ;;  %v3556_v4 = vadd.f32 %v3548_v54, %v2653_v14  ;;  %v2668_v23 = vpop.f32.mrb[185].mxu1  ;;  %v2317_v54 = vpop.f32.mrb[186].mxu0 }
 0x2aa   :  { %v4076_v39 = vmul.f32 %v2653_v14, %v2653_v14  ;;  %3057 = vst [vmem:[%s8675_s5 + $0x6a0] sm:$0xff] %v2304_v9  ;;  %v3561_v49 = vadd.f32 %v3553_v33, %v2304_v9  ;;  %v4081_v35 = vmul.f32 %v2304_v9, %v2304_v9  ;;  %v4579_v29 = vadd.f32 %v4571_v37, %v4075_v5  ;;  %v2319_v32 = vpop.f32.mrb[187].mxu0 }
 0x2ab   :  { %v4578_v26 = vadd.f32 %v4570_v48, %v4074_v19  ;;  %v2657_v31 = vadd.f32 %v2656_v28, %v7589_v34  ;;  %v2306_v20 = vadd.f32 %v2305_v36, %v7597_v47  ;;  %v2659_v51 = vadd.f32 %v2658_v53, %v7599_v17  ;;  %v2670_v48 = vpop.f32.mrb[186].mxu1 }
 0x2ac   :  { %v4580_v7 = vadd.f32 %v4572_v10, %v4076_v39  ;;  %v4585_v62 = vadd.f32 %v4577_v56, %v4081_v35  ;;  %v2308_v21 = vadd.f32 %v2307_v40, %v7587_v57  ;;  %v2661_v45 = vadd.f32 %v2660_v6, %v7589_v34  ;;  %v2672_v14 = vpop.f32.mrb[187].mxu1 }
 0x2ad   :  { %3059 = vst [vmem:[%s8675_s5 + $0x6b0] sm:$0xff] %v2657_v31  ;;  %v3563_v44 = vadd.f32 %v3555_v46, %v2657_v31  ;;  %v4083_v59 = vmul.f32 %v2657_v31, %v2657_v31  ;;  %3058 = vst [vmem:[%s8675_s5 + $0x6a8] sm:$0xff] %v2306_v20  ;;  %v3562_v18 = vadd.f32 %v3554_v61, %v2306_v20 }
 0x2ae   :  { %v4082_v16 = vmul.f32 %v2306_v20, %v2306_v20  ;;  %3060 = vst [vmem:[%s8675_s5 + $0x6b8] sm:$0xff] %v2659_v51  ;;  %v3564_v2 = vadd.f32 %v3556_v4, %v2659_v51  ;;  %v4084_v11 = vmul.f32 %v2659_v51, %v2659_v51  ;;  %3065 = vst [vmem:[%s8675_s5 + $0x6e0] sm:$0xff] %v2308_v21 }
 0x2af   :  { %v3569_v50 = vadd.f32 %v3561_v49, %v2308_v21  ;;  %v4089_v63 = vmul.f32 %v2308_v21, %v2308_v21  ;;  %v4587_v15 = vadd.f32 %v4579_v29, %v4083_v59  ;;  %v2310_v1 = vadd.f32 %v2309_v30, %v7597_v47  ;;  %3067 = vst [vmem:[%s8675_s5 + $0x6f0] sm:$0xff] %v2661_v45 }
 0x2b0   :  { %v4586_v42 = vadd.f32 %v4578_v26, %v4082_v16  ;;  %v4588_v0 = vadd.f32 %v4580_v7, %v4084_v11  ;;  %v2663_v55 = vadd.f32 %v2662_v38, %v7599_v17  ;;  %v2314_v22 = vadd.f32 %v2313_v60, %v7587_v57  ;;  %v2323_v26 = vpop.f32.mrb[188].mxu0 }
 0x2b1   :  { %v4593_v27 = vadd.f32 %v4585_v62, %v4089_v63  ;;  %v3571_v25 = vadd.f32 %v3563_v44, %v2661_v45  ;;  %v4091_v3 = vmul.f32 %v2661_v45, %v2661_v45  ;;  %3066 = vst [vmem:[%s8675_s5 + $0x6e8] sm:$0xff] %v2310_v1  ;;  %v3570_v8 = vadd.f32 %v3562_v18, %v2310_v1  ;;  %v2676_v62 = vpop.f32.mrb[188].mxu1  ;;  %v2325_v51 = vpop.f32.mrb[189].mxu0 }
 0x2b2   :  { %v4090_v12 = vmul.f32 %v2310_v1, %v2310_v1  ;;  %3068 = vst [vmem:[%s8675_s5 + $0x6f8] sm:$0xff] %v2663_v55  ;;  %v3572_v41 = vadd.f32 %v3564_v2, %v2663_v55  ;;  %v4092_v33 = vmul.f32 %v2663_v55, %v2663_v55  ;;  %3073 = vst [vmem:[%s8675_s5 + $0x720] sm:$0xff] %v2314_v22  ;;  %v2678_v16 = vpop.f32.mrb[189].mxu1  ;;  %v2327_v2 = vpop.f32.mrb[190].mxu0 }
 0x2b3   :  { %v3577_v24 = vadd.f32 %v3569_v50, %v2314_v22  ;;  %v4097_v37 = vmul.f32 %v2314_v22, %v2314_v22  ;;  %v4595_v13 = vadd.f32 %v4587_v15, %v4091_v3  ;;  %v2667_v10 = vadd.f32 %v2666_v58, %v7589_v34  ;;  %v2329_v45 = vpop.f32.mrb[191].mxu0 }
 0x2b4   :  { %v4594_v43 = vadd.f32 %v4586_v42, %v4090_v12  ;;  %v2316_v56 = vadd.f32 %v2315_v52, %v7597_v47  ;;  %v4596_v9 = vadd.f32 %v4588_v0, %v4092_v33  ;;  %v2669_v36 = vadd.f32 %v2668_v23, %v7599_v17  ;;  %v2680_v42 = vpop.f32.mrb[190].mxu1 }
 0x2b5   :  { %v4601_v28 = vadd.f32 %v4593_v27, %v4097_v37  ;;  %v2318_v46 = vadd.f32 %v2317_v54, %v7587_v57  ;;  %3075 = vst [vmem:[%s8675_s5 + $0x730] sm:$0xff] %v2667_v10  ;;  %v3579_v5 = vadd.f32 %v3571_v25, %v2667_v10  ;;  %v4099_v61 = vmul.f32 %v2667_v10, %v2667_v10  ;;  %v2682_v55 = vpop.f32.mrb[191].mxu1 }
 0x2b6   :  { %3074 = vst [vmem:[%s8675_s5 + $0x728] sm:$0xff] %v2316_v56  ;;  %v3578_v19 = vadd.f32 %v3570_v8, %v2316_v56  ;;  %v4098_v53 = vmul.f32 %v2316_v56, %v2316_v56  ;;  %3076 = vst [vmem:[%s8675_s5 + $0x738] sm:$0xff] %v2669_v36  ;;  %v3580_v40 = vadd.f32 %v3572_v41, %v2669_v36 }
 0x2b7   :  { %v4100_v4 = vmul.f32 %v2669_v36, %v2669_v36  ;;  %3081 = vst [vmem:[%s8675_s5 + $0x760] sm:$0xff] %v2318_v46  ;;  %v3585_v39 = vadd.f32 %v3577_v24, %v2318_v46  ;;  %v4105_v49 = vmul.f32 %v2318_v46, %v2318_v46  ;;  %v4603_v35 = vadd.f32 %v4595_v13, %v4099_v61 }
 0x2b8   :  { %v4602_v6 = vadd.f32 %v4594_v43, %v4098_v53  ;;  %v2671_v30 = vadd.f32 %v2670_v48, %v7589_v34  ;;  %v2320_v29 = vadd.f32 %v2319_v32, %v7597_v47  ;;  %v2673_v38 = vadd.f32 %v2672_v14, %v7599_v17  ;;  %v2333_v43 = vpop.f32.mrb[192].mxu0 }
 0x2b9   :  { %v4604_v31 = vadd.f32 %v4596_v9, %v4100_v4  ;;  %v4609_v20 = vadd.f32 %v4601_v28, %v4105_v49  ;;  %v2324_v7 = vadd.f32 %v2323_v26, %v7587_v57  ;;  %v2677_v0 = vadd.f32 %v2676_v62, %v7589_v34  ;;  %v2686_v28 = vpop.f32.mrb[192].mxu1  ;;  %v2335_v36 = vpop.f32.mrb[193].mxu0 }
 0x2ba   :  { %3083 = vst [vmem:[%s8675_s5 + $0x770] sm:$0xff] %v2671_v30  ;;  %v3587_v21 = vadd.f32 %v3579_v5, %v2671_v30  ;;  %v4107_v44 = vmul.f32 %v2671_v30, %v2671_v30  ;;  %3082 = vst [vmem:[%s8675_s5 + $0x768] sm:$0xff] %v2320_v29  ;;  %v3586_v59 = vadd.f32 %v3578_v19, %v2320_v29  ;;  %v2688_v53 = vpop.f32.mrb[193].mxu1 }
 0x2bb   :  { %v4106_v18 = vmul.f32 %v2320_v29, %v2320_v29  ;;  %3084 = vst [vmem:[%s8675_s5 + $0x778] sm:$0xff] %v2673_v38  ;;  %v3588_v11 = vadd.f32 %v3580_v40, %v2673_v38  ;;  %v4108_v50 = vmul.f32 %v2673_v38, %v2673_v38  ;;  %3089 = vst [vmem:[%s8675_s5 + $0x7a0] sm:$0xff] %v2324_v7  ;;  %v2337_v40 = vpop.f32.mrb[194].mxu0 }
 0x2bc   :  { %v3593_v63 = vadd.f32 %v3585_v39, %v2324_v7  ;;  %v4113_v15 = vmul.f32 %v2324_v7, %v2324_v7  ;;  %v4611_v1 = vadd.f32 %v4603_v35, %v4107_v44  ;;  %v2326_v27 = vadd.f32 %v2325_v51, %v7597_v47  ;;  %3091 = vst [vmem:[%s8675_s5 + $0x7b0] sm:$0xff] %v2677_v0  ;;  %v2339_v30 = vpop.f32.mrb[195].mxu0 }
 0x2bd   :  { %v4610_v60 = vadd.f32 %v4602_v6, %v4106_v18  ;;  %v4612_v22 = vadd.f32 %v4604_v31, %v4108_v50  ;;  %v2679_v52 = vadd.f32 %v2678_v16, %v7599_v17  ;;  %v2328_v25 = vadd.f32 %v2327_v2, %v7587_v57  ;;  %v2690_v6 = vpop.f32.mrb[194].mxu1 }
 0x2be   :  { %v4617_v58 = vadd.f32 %v4609_v20, %v4113_v15  ;;  %v3595_v3 = vadd.f32 %v3587_v21, %v2677_v0  ;;  %v4115_v8 = vmul.f32 %v2677_v0, %v2677_v0  ;;  %3090 = vst [vmem:[%s8675_s5 + $0x7a8] sm:$0xff] %v2326_v27  ;;  %v3594_v12 = vadd.f32 %v3586_v59, %v2326_v27  ;;  %v2692_v38 = vpop.f32.mrb[195].mxu1 }
 0x2bf   :  { %v4114_v23 = vmul.f32 %v2326_v27, %v2326_v27  ;;  %3092 = vst [vmem:[%s8675_s5 + $0x7b8] sm:$0xff] %v2679_v52  ;;  %v3596_v54 = vadd.f32 %v3588_v11, %v2679_v52  ;;  %v4116_v41 = vmul.f32 %v2679_v52, %v2679_v52  ;;  %3097 = vst [vmem:[%s8675_s5 + $0x7e0] sm:$0xff] %v2328_v25 }
 0x2c0   :  { %v3601_v33 = vadd.f32 %v3593_v63, %v2328_v25  ;;  %v4121_v24 = vmul.f32 %v2328_v25, %v2328_v25  ;;  %v4619_v37 = vadd.f32 %v4611_v1, %v4115_v8  ;;  %v2681_v32 = vadd.f32 %v2680_v42, %v7589_v34 }
 0x2c1   :  { %v4618_v48 = vadd.f32 %v4610_v60, %v4114_v23  ;;  %v2330_v13 = vadd.f32 %v2329_v45, %v7597_v47  ;;  %v4620_v10 = vadd.f32 %v4612_v22, %v4116_v41  ;;  %v2683_v14 = vadd.f32 %v2682_v55, %v7599_v17  ;;  %v2343_v60 = vpop.f32.mrb[196].mxu0 }
 0x2c2   :  { %v4625_v56 = vadd.f32 %v4617_v58, %v4121_v24  ;;  %v2334_v9 = vadd.f32 %v2333_v43, %v7587_v57  ;;  %3099 = vst [vmem:[%s8675_s5 + $0x7f0] sm:$0xff] %v2681_v32  ;;  %v3603_v46 = vadd.f32 %v3595_v3, %v2681_v32  ;;  %v4123_v5 = vmul.f32 %v2681_v32, %v2681_v32  ;;  %v2696_v58 = vpop.f32.mrb[196].mxu1  ;;  %v2345_v52 = vpop.f32.mrb[197].mxu0 }
 0x2c3   :  { %3098 = vst [vmem:[%s8675_s5 + $0x7e8] sm:$0xff] %v2330_v13  ;;  %v3602_v61 = vadd.f32 %v3594_v12, %v2330_v13  ;;  %v4122_v19 = vmul.f32 %v2330_v13, %v2330_v13  ;;  %3100 = vst [vmem:[%s8675_s5 + $0x7f8] sm:$0xff] %v2683_v14  ;;  %v3604_v4 = vadd.f32 %v3596_v54, %v2683_v14  ;;  %v2698_v23 = vpop.f32.mrb[197].mxu1  ;;  %v2347_v54 = vpop.f32.mrb[198].mxu0 }
 0x2c4   :  { %v4124_v39 = vmul.f32 %v2683_v14, %v2683_v14  ;;  %3105 = vst [vmem:[%s8675_s5 + $0x820] sm:$0xff] %v2334_v9  ;;  %v3609_v49 = vadd.f32 %v3601_v33, %v2334_v9  ;;  %v4129_v35 = vmul.f32 %v2334_v9, %v2334_v9  ;;  %v4627_v29 = vadd.f32 %v4619_v37, %v4123_v5  ;;  %v2349_v32 = vpop.f32.mrb[199].mxu0 }
 0x2c5   :  { %v4626_v26 = vadd.f32 %v4618_v48, %v4122_v19  ;;  %v2687_v31 = vadd.f32 %v2686_v28, %v7589_v34  ;;  %v2336_v20 = vadd.f32 %v2335_v36, %v7597_v47  ;;  %v2689_v51 = vadd.f32 %v2688_v53, %v7599_v17  ;;  %v2700_v48 = vpop.f32.mrb[198].mxu1 }
 0x2c6   :  { %v4628_v7 = vadd.f32 %v4620_v10, %v4124_v39  ;;  %v4633_v62 = vadd.f32 %v4625_v56, %v4129_v35  ;;  %v2338_v21 = vadd.f32 %v2337_v40, %v7587_v57  ;;  %v2691_v45 = vadd.f32 %v2690_v6, %v7589_v34  ;;  %v2702_v14 = vpop.f32.mrb[199].mxu1 }
 0x2c7   :  { %3107 = vst [vmem:[%s8675_s5 + $0x830] sm:$0xff] %v2687_v31  ;;  %v3611_v44 = vadd.f32 %v3603_v46, %v2687_v31  ;;  %v4131_v59 = vmul.f32 %v2687_v31, %v2687_v31  ;;  %3106 = vst [vmem:[%s8675_s5 + $0x828] sm:$0xff] %v2336_v20  ;;  %v3610_v18 = vadd.f32 %v3602_v61, %v2336_v20 }
 0x2c8   :  { %v4130_v16 = vmul.f32 %v2336_v20, %v2336_v20  ;;  %3108 = vst [vmem:[%s8675_s5 + $0x838] sm:$0xff] %v2689_v51  ;;  %v3612_v2 = vadd.f32 %v3604_v4, %v2689_v51  ;;  %v4132_v11 = vmul.f32 %v2689_v51, %v2689_v51  ;;  %3113 = vst [vmem:[%s8675_s5 + $0x860] sm:$0xff] %v2338_v21 }
 0x2c9   :  { %v3617_v50 = vadd.f32 %v3609_v49, %v2338_v21  ;;  %v4137_v63 = vmul.f32 %v2338_v21, %v2338_v21  ;;  %v4635_v15 = vadd.f32 %v4627_v29, %v4131_v59  ;;  %v2340_v1 = vadd.f32 %v2339_v30, %v7597_v47  ;;  %3115 = vst [vmem:[%s8675_s5 + $0x870] sm:$0xff] %v2691_v45 }
 0x2ca   :  { %v4634_v42 = vadd.f32 %v4626_v26, %v4130_v16  ;;  %v4636_v0 = vadd.f32 %v4628_v7, %v4132_v11  ;;  %v2693_v55 = vadd.f32 %v2692_v38, %v7599_v17  ;;  %v2344_v22 = vadd.f32 %v2343_v60, %v7587_v57  ;;  %v2353_v26 = vpop.f32.mrb[200].mxu0 }
 0x2cb   :  { %v4641_v27 = vadd.f32 %v4633_v62, %v4137_v63  ;;  %v3619_v25 = vadd.f32 %v3611_v44, %v2691_v45  ;;  %v4139_v3 = vmul.f32 %v2691_v45, %v2691_v45  ;;  %3114 = vst [vmem:[%s8675_s5 + $0x868] sm:$0xff] %v2340_v1  ;;  %v3618_v8 = vadd.f32 %v3610_v18, %v2340_v1  ;;  %v2706_v62 = vpop.f32.mrb[200].mxu1  ;;  %v2355_v51 = vpop.f32.mrb[201].mxu0 }
 0x2cc   :  { %v4138_v12 = vmul.f32 %v2340_v1, %v2340_v1  ;;  %3116 = vst [vmem:[%s8675_s5 + $0x878] sm:$0xff] %v2693_v55  ;;  %v3620_v41 = vadd.f32 %v3612_v2, %v2693_v55  ;;  %v4140_v33 = vmul.f32 %v2693_v55, %v2693_v55  ;;  %3121 = vst [vmem:[%s8675_s5 + $0x8a0] sm:$0xff] %v2344_v22  ;;  %v2708_v16 = vpop.f32.mrb[201].mxu1  ;;  %v2357_v2 = vpop.f32.mrb[202].mxu0 }
 0x2cd   :  { %v3625_v24 = vadd.f32 %v3617_v50, %v2344_v22  ;;  %v4145_v37 = vmul.f32 %v2344_v22, %v2344_v22  ;;  %v4643_v13 = vadd.f32 %v4635_v15, %v4139_v3  ;;  %v2697_v10 = vadd.f32 %v2696_v58, %v7589_v34  ;;  %v2359_v45 = vpop.f32.mrb[203].mxu0 }
 0x2ce   :  { %v4642_v43 = vadd.f32 %v4634_v42, %v4138_v12  ;;  %v2346_v56 = vadd.f32 %v2345_v52, %v7597_v47  ;;  %v4644_v9 = vadd.f32 %v4636_v0, %v4140_v33  ;;  %v2699_v36 = vadd.f32 %v2698_v23, %v7599_v17  ;;  %v2710_v42 = vpop.f32.mrb[202].mxu1 }
 0x2cf   :  { %v4649_v28 = vadd.f32 %v4641_v27, %v4145_v37  ;;  %v2348_v46 = vadd.f32 %v2347_v54, %v7587_v57  ;;  %3123 = vst [vmem:[%s8675_s5 + $0x8b0] sm:$0xff] %v2697_v10  ;;  %v3627_v5 = vadd.f32 %v3619_v25, %v2697_v10  ;;  %v4147_v61 = vmul.f32 %v2697_v10, %v2697_v10  ;;  %v2712_v55 = vpop.f32.mrb[203].mxu1 }
 0x2d0   :  { %3122 = vst [vmem:[%s8675_s5 + $0x8a8] sm:$0xff] %v2346_v56  ;;  %v3626_v19 = vadd.f32 %v3618_v8, %v2346_v56  ;;  %v4146_v53 = vmul.f32 %v2346_v56, %v2346_v56  ;;  %3124 = vst [vmem:[%s8675_s5 + $0x8b8] sm:$0xff] %v2699_v36  ;;  %v3628_v40 = vadd.f32 %v3620_v41, %v2699_v36 }
 0x2d1   :  { %v4148_v4 = vmul.f32 %v2699_v36, %v2699_v36  ;;  %3129 = vst [vmem:[%s8675_s5 + $0x8e0] sm:$0xff] %v2348_v46  ;;  %v3633_v39 = vadd.f32 %v3625_v24, %v2348_v46  ;;  %v4153_v49 = vmul.f32 %v2348_v46, %v2348_v46  ;;  %v4651_v35 = vadd.f32 %v4643_v13, %v4147_v61 }
 0x2d2   :  { %v4650_v6 = vadd.f32 %v4642_v43, %v4146_v53  ;;  %v2701_v30 = vadd.f32 %v2700_v48, %v7589_v34  ;;  %v2350_v29 = vadd.f32 %v2349_v32, %v7597_v47  ;;  %v2703_v38 = vadd.f32 %v2702_v14, %v7599_v17  ;;  %v2363_v43 = vpop.f32.mrb[204].mxu0 }
 0x2d3   :  { %v4652_v31 = vadd.f32 %v4644_v9, %v4148_v4  ;;  %v4657_v20 = vadd.f32 %v4649_v28, %v4153_v49  ;;  %v2354_v7 = vadd.f32 %v2353_v26, %v7587_v57  ;;  %v2707_v0 = vadd.f32 %v2706_v62, %v7589_v34  ;;  %v2716_v28 = vpop.f32.mrb[204].mxu1  ;;  %v2365_v36 = vpop.f32.mrb[205].mxu0 }
 0x2d4   :  { %3131 = vst [vmem:[%s8675_s5 + $0x8f0] sm:$0xff] %v2701_v30  ;;  %v3635_v21 = vadd.f32 %v3627_v5, %v2701_v30  ;;  %v4155_v44 = vmul.f32 %v2701_v30, %v2701_v30  ;;  %3130 = vst [vmem:[%s8675_s5 + $0x8e8] sm:$0xff] %v2350_v29  ;;  %v3634_v59 = vadd.f32 %v3626_v19, %v2350_v29  ;;  %v2718_v53 = vpop.f32.mrb[205].mxu1 }
 0x2d5   :  { %v4154_v18 = vmul.f32 %v2350_v29, %v2350_v29  ;;  %3132 = vst [vmem:[%s8675_s5 + $0x8f8] sm:$0xff] %v2703_v38  ;;  %v3636_v11 = vadd.f32 %v3628_v40, %v2703_v38  ;;  %v4156_v50 = vmul.f32 %v2703_v38, %v2703_v38  ;;  %3137 = vst [vmem:[%s8675_s5 + $0x920] sm:$0xff] %v2354_v7  ;;  %v2367_v40 = vpop.f32.mrb[206].mxu0 }
 0x2d6   :  { %v3641_v63 = vadd.f32 %v3633_v39, %v2354_v7  ;;  %v4161_v15 = vmul.f32 %v2354_v7, %v2354_v7  ;;  %v4659_v1 = vadd.f32 %v4651_v35, %v4155_v44  ;;  %v2356_v27 = vadd.f32 %v2355_v51, %v7597_v47  ;;  %3139 = vst [vmem:[%s8675_s5 + $0x930] sm:$0xff] %v2707_v0  ;;  %v2369_v30 = vpop.f32.mrb[207].mxu0 }
 0x2d7   :  { %v4658_v60 = vadd.f32 %v4650_v6, %v4154_v18  ;;  %v4660_v22 = vadd.f32 %v4652_v31, %v4156_v50  ;;  %v2709_v52 = vadd.f32 %v2708_v16, %v7599_v17  ;;  %v2358_v25 = vadd.f32 %v2357_v2, %v7587_v57  ;;  %v2720_v6 = vpop.f32.mrb[206].mxu1 }
 0x2d8   :  { %v4665_v58 = vadd.f32 %v4657_v20, %v4161_v15  ;;  %v3643_v3 = vadd.f32 %v3635_v21, %v2707_v0  ;;  %v4163_v8 = vmul.f32 %v2707_v0, %v2707_v0  ;;  %3138 = vst [vmem:[%s8675_s5 + $0x928] sm:$0xff] %v2356_v27  ;;  %v3642_v12 = vadd.f32 %v3634_v59, %v2356_v27  ;;  %v2722_v38 = vpop.f32.mrb[207].mxu1 }
 0x2d9   :  { %v4162_v23 = vmul.f32 %v2356_v27, %v2356_v27  ;;  %3140 = vst [vmem:[%s8675_s5 + $0x938] sm:$0xff] %v2709_v52  ;;  %v3644_v54 = vadd.f32 %v3636_v11, %v2709_v52  ;;  %v4164_v41 = vmul.f32 %v2709_v52, %v2709_v52  ;;  %3145 = vst [vmem:[%s8675_s5 + $0x960] sm:$0xff] %v2358_v25 }
 0x2da   :  { %v3649_v33 = vadd.f32 %v3641_v63, %v2358_v25  ;;  %v4169_v24 = vmul.f32 %v2358_v25, %v2358_v25  ;;  %v4667_v37 = vadd.f32 %v4659_v1, %v4163_v8  ;;  %v2711_v32 = vadd.f32 %v2710_v42, %v7589_v34 }
 0x2db   :  { %v4666_v48 = vadd.f32 %v4658_v60, %v4162_v23  ;;  %v2360_v13 = vadd.f32 %v2359_v45, %v7597_v47  ;;  %v4668_v10 = vadd.f32 %v4660_v22, %v4164_v41  ;;  %v2713_v14 = vadd.f32 %v2712_v55, %v7599_v17  ;;  %v2373_v60 = vpop.f32.mrb[208].mxu0 }
 0x2dc   :  { %v4673_v56 = vadd.f32 %v4665_v58, %v4169_v24  ;;  %v2364_v9 = vadd.f32 %v2363_v43, %v7587_v57  ;;  %3147 = vst [vmem:[%s8675_s5 + $0x970] sm:$0xff] %v2711_v32  ;;  %v3651_v46 = vadd.f32 %v3643_v3, %v2711_v32  ;;  %v4171_v5 = vmul.f32 %v2711_v32, %v2711_v32  ;;  %v2726_v58 = vpop.f32.mrb[208].mxu1  ;;  %v2375_v52 = vpop.f32.mrb[209].mxu0 }
 0x2dd   :  { %3146 = vst [vmem:[%s8675_s5 + $0x968] sm:$0xff] %v2360_v13  ;;  %v3650_v61 = vadd.f32 %v3642_v12, %v2360_v13  ;;  %v4170_v19 = vmul.f32 %v2360_v13, %v2360_v13  ;;  %3148 = vst [vmem:[%s8675_s5 + $0x978] sm:$0xff] %v2713_v14  ;;  %v3652_v4 = vadd.f32 %v3644_v54, %v2713_v14  ;;  %v2728_v23 = vpop.f32.mrb[209].mxu1  ;;  %v2377_v54 = vpop.f32.mrb[210].mxu0 }
 0x2de   :  { %v4172_v39 = vmul.f32 %v2713_v14, %v2713_v14  ;;  %3153 = vst [vmem:[%s8675_s5 + $0x9a0] sm:$0xff] %v2364_v9  ;;  %v3657_v49 = vadd.f32 %v3649_v33, %v2364_v9  ;;  %v4177_v35 = vmul.f32 %v2364_v9, %v2364_v9  ;;  %v4675_v29 = vadd.f32 %v4667_v37, %v4171_v5  ;;  %v2379_v32 = vpop.f32.mrb[211].mxu0 }
 0x2df   :  { %v4674_v26 = vadd.f32 %v4666_v48, %v4170_v19  ;;  %v2717_v31 = vadd.f32 %v2716_v28, %v7589_v34  ;;  %v2366_v20 = vadd.f32 %v2365_v36, %v7597_v47  ;;  %v2719_v51 = vadd.f32 %v2718_v53, %v7599_v17  ;;  %v2730_v48 = vpop.f32.mrb[210].mxu1 }
 0x2e0   :  { %v4676_v7 = vadd.f32 %v4668_v10, %v4172_v39  ;;  %v4681_v62 = vadd.f32 %v4673_v56, %v4177_v35  ;;  %v2368_v21 = vadd.f32 %v2367_v40, %v7587_v57  ;;  %v2721_v45 = vadd.f32 %v2720_v6, %v7589_v34  ;;  %v2732_v14 = vpop.f32.mrb[211].mxu1 }
 0x2e1   :  { %3155 = vst [vmem:[%s8675_s5 + $0x9b0] sm:$0xff] %v2717_v31  ;;  %v3659_v44 = vadd.f32 %v3651_v46, %v2717_v31  ;;  %v4179_v59 = vmul.f32 %v2717_v31, %v2717_v31  ;;  %3154 = vst [vmem:[%s8675_s5 + $0x9a8] sm:$0xff] %v2366_v20  ;;  %v3658_v18 = vadd.f32 %v3650_v61, %v2366_v20 }
 0x2e2   :  { %v4178_v16 = vmul.f32 %v2366_v20, %v2366_v20  ;;  %3156 = vst [vmem:[%s8675_s5 + $0x9b8] sm:$0xff] %v2719_v51  ;;  %v3660_v2 = vadd.f32 %v3652_v4, %v2719_v51  ;;  %v4180_v11 = vmul.f32 %v2719_v51, %v2719_v51  ;;  %3161 = vst [vmem:[%s8675_s5 + $0x9e0] sm:$0xff] %v2368_v21 }
 0x2e3   :  { %v3665_v50 = vadd.f32 %v3657_v49, %v2368_v21  ;;  %v4185_v63 = vmul.f32 %v2368_v21, %v2368_v21  ;;  %v4683_v15 = vadd.f32 %v4675_v29, %v4179_v59  ;;  %v2370_v1 = vadd.f32 %v2369_v30, %v7597_v47  ;;  %3163 = vst [vmem:[%s8675_s5 + $0x9f0] sm:$0xff] %v2721_v45 }
 0x2e4   :  { %v4682_v42 = vadd.f32 %v4674_v26, %v4178_v16  ;;  %v4684_v0 = vadd.f32 %v4676_v7, %v4180_v11  ;;  %v2723_v55 = vadd.f32 %v2722_v38, %v7599_v17  ;;  %v2374_v22 = vadd.f32 %v2373_v60, %v7587_v57  ;;  %v2383_v26 = vpop.f32.mrb[212].mxu0 }
 0x2e5   :  { %v4689_v27 = vadd.f32 %v4681_v62, %v4185_v63  ;;  %v3667_v25 = vadd.f32 %v3659_v44, %v2721_v45  ;;  %v4187_v3 = vmul.f32 %v2721_v45, %v2721_v45  ;;  %3162 = vst [vmem:[%s8675_s5 + $0x9e8] sm:$0xff] %v2370_v1  ;;  %v3666_v8 = vadd.f32 %v3658_v18, %v2370_v1  ;;  %v2736_v62 = vpop.f32.mrb[212].mxu1  ;;  %v2385_v51 = vpop.f32.mrb[213].mxu0 }
 0x2e6   :  { %v4186_v12 = vmul.f32 %v2370_v1, %v2370_v1  ;;  %3164 = vst [vmem:[%s8675_s5 + $0x9f8] sm:$0xff] %v2723_v55  ;;  %v3668_v41 = vadd.f32 %v3660_v2, %v2723_v55  ;;  %v4188_v33 = vmul.f32 %v2723_v55, %v2723_v55  ;;  %3169 = vst [vmem:[%s8675_s5 + $0xa20] sm:$0xff] %v2374_v22  ;;  %v2738_v16 = vpop.f32.mrb[213].mxu1  ;;  %v2387_v2 = vpop.f32.mrb[214].mxu0 }
 0x2e7   :  { %v3673_v24 = vadd.f32 %v3665_v50, %v2374_v22  ;;  %v4193_v37 = vmul.f32 %v2374_v22, %v2374_v22  ;;  %v4691_v13 = vadd.f32 %v4683_v15, %v4187_v3  ;;  %v2727_v10 = vadd.f32 %v2726_v58, %v7589_v34  ;;  %v2389_v45 = vpop.f32.mrb[215].mxu0 }
 0x2e8   :  { %v4690_v43 = vadd.f32 %v4682_v42, %v4186_v12  ;;  %v2376_v56 = vadd.f32 %v2375_v52, %v7597_v47  ;;  %v4692_v9 = vadd.f32 %v4684_v0, %v4188_v33  ;;  %v2729_v36 = vadd.f32 %v2728_v23, %v7599_v17  ;;  %v2740_v42 = vpop.f32.mrb[214].mxu1 }
 0x2e9   :  { %v4697_v28 = vadd.f32 %v4689_v27, %v4193_v37  ;;  %v2378_v46 = vadd.f32 %v2377_v54, %v7587_v57  ;;  %3171 = vst [vmem:[%s8675_s5 + $0xa30] sm:$0xff] %v2727_v10  ;;  %v3675_v5 = vadd.f32 %v3667_v25, %v2727_v10  ;;  %v4195_v61 = vmul.f32 %v2727_v10, %v2727_v10  ;;  %v2742_v55 = vpop.f32.mrb[215].mxu1 }
 0x2ea   :  { %3170 = vst [vmem:[%s8675_s5 + $0xa28] sm:$0xff] %v2376_v56  ;;  %v3674_v19 = vadd.f32 %v3666_v8, %v2376_v56  ;;  %v4194_v53 = vmul.f32 %v2376_v56, %v2376_v56  ;;  %3172 = vst [vmem:[%s8675_s5 + $0xa38] sm:$0xff] %v2729_v36  ;;  %v3676_v40 = vadd.f32 %v3668_v41, %v2729_v36 }
 0x2eb   :  { %v4196_v4 = vmul.f32 %v2729_v36, %v2729_v36  ;;  %3177 = vst [vmem:[%s8675_s5 + $0xa60] sm:$0xff] %v2378_v46  ;;  %v3681_v39 = vadd.f32 %v3673_v24, %v2378_v46  ;;  %v4201_v49 = vmul.f32 %v2378_v46, %v2378_v46  ;;  %v4699_v35 = vadd.f32 %v4691_v13, %v4195_v61 }
 0x2ec   :  { %v4698_v6 = vadd.f32 %v4690_v43, %v4194_v53  ;;  %v2731_v30 = vadd.f32 %v2730_v48, %v7589_v34  ;;  %v2380_v29 = vadd.f32 %v2379_v32, %v7597_v47  ;;  %v2733_v38 = vadd.f32 %v2732_v14, %v7599_v17  ;;  %v2393_v43 = vpop.f32.mrb[216].mxu0 }
 0x2ed   :  { %v4700_v31 = vadd.f32 %v4692_v9, %v4196_v4  ;;  %v4705_v20 = vadd.f32 %v4697_v28, %v4201_v49  ;;  %v2384_v7 = vadd.f32 %v2383_v26, %v7587_v57  ;;  %v2737_v0 = vadd.f32 %v2736_v62, %v7589_v34  ;;  %v2746_v28 = vpop.f32.mrb[216].mxu1  ;;  %v2395_v36 = vpop.f32.mrb[217].mxu0 }
 0x2ee   :  { %3179 = vst [vmem:[%s8675_s5 + $0xa70] sm:$0xff] %v2731_v30  ;;  %v3683_v21 = vadd.f32 %v3675_v5, %v2731_v30  ;;  %v4203_v44 = vmul.f32 %v2731_v30, %v2731_v30  ;;  %3178 = vst [vmem:[%s8675_s5 + $0xa68] sm:$0xff] %v2380_v29  ;;  %v3682_v59 = vadd.f32 %v3674_v19, %v2380_v29  ;;  %v2748_v53 = vpop.f32.mrb[217].mxu1 }
 0x2ef   :  { %v4202_v18 = vmul.f32 %v2380_v29, %v2380_v29  ;;  %3180 = vst [vmem:[%s8675_s5 + $0xa78] sm:$0xff] %v2733_v38  ;;  %v3684_v11 = vadd.f32 %v3676_v40, %v2733_v38  ;;  %v4204_v50 = vmul.f32 %v2733_v38, %v2733_v38  ;;  %3185 = vst [vmem:[%s8675_s5 + $0xaa0] sm:$0xff] %v2384_v7  ;;  %v2397_v40 = vpop.f32.mrb[218].mxu0 }
 0x2f0   :  { %v3689_v63 = vadd.f32 %v3681_v39, %v2384_v7  ;;  %v4209_v15 = vmul.f32 %v2384_v7, %v2384_v7  ;;  %v4707_v1 = vadd.f32 %v4699_v35, %v4203_v44  ;;  %v2386_v27 = vadd.f32 %v2385_v51, %v7597_v47  ;;  %3187 = vst [vmem:[%s8675_s5 + $0xab0] sm:$0xff] %v2737_v0  ;;  %v2399_v30 = vpop.f32.mrb[219].mxu0 }
 0x2f1   :  { %v4706_v60 = vadd.f32 %v4698_v6, %v4202_v18  ;;  %v4708_v22 = vadd.f32 %v4700_v31, %v4204_v50  ;;  %v2739_v52 = vadd.f32 %v2738_v16, %v7599_v17  ;;  %v2388_v25 = vadd.f32 %v2387_v2, %v7587_v57  ;;  %v2750_v6 = vpop.f32.mrb[218].mxu1 }
 0x2f2   :  { %v4713_v58 = vadd.f32 %v4705_v20, %v4209_v15  ;;  %v3691_v3 = vadd.f32 %v3683_v21, %v2737_v0  ;;  %v4211_v8 = vmul.f32 %v2737_v0, %v2737_v0  ;;  %3186 = vst [vmem:[%s8675_s5 + $0xaa8] sm:$0xff] %v2386_v27  ;;  %v3690_v12 = vadd.f32 %v3682_v59, %v2386_v27  ;;  %v2752_v38 = vpop.f32.mrb[219].mxu1 }
 0x2f3   :  { %v4210_v23 = vmul.f32 %v2386_v27, %v2386_v27  ;;  %3188 = vst [vmem:[%s8675_s5 + $0xab8] sm:$0xff] %v2739_v52  ;;  %v3692_v54 = vadd.f32 %v3684_v11, %v2739_v52  ;;  %v4212_v41 = vmul.f32 %v2739_v52, %v2739_v52  ;;  %3193 = vst [vmem:[%s8675_s5 + $0xae0] sm:$0xff] %v2388_v25 }
 0x2f4   :  { %v3697_v33 = vadd.f32 %v3689_v63, %v2388_v25  ;;  %v4217_v24 = vmul.f32 %v2388_v25, %v2388_v25  ;;  %v4715_v37 = vadd.f32 %v4707_v1, %v4211_v8  ;;  %v2741_v32 = vadd.f32 %v2740_v42, %v7589_v34 }
 0x2f5   :  { %v4714_v48 = vadd.f32 %v4706_v60, %v4210_v23  ;;  %v2390_v13 = vadd.f32 %v2389_v45, %v7597_v47  ;;  %v4716_v10 = vadd.f32 %v4708_v22, %v4212_v41  ;;  %v2743_v14 = vadd.f32 %v2742_v55, %v7599_v17  ;;  %v2403_v60 = vpop.f32.mrb[220].mxu0 }
 0x2f6   :  { %v4721_v56 = vadd.f32 %v4713_v58, %v4217_v24  ;;  %v2394_v9 = vadd.f32 %v2393_v43, %v7587_v57  ;;  %3195 = vst [vmem:[%s8675_s5 + $0xaf0] sm:$0xff] %v2741_v32  ;;  %v3699_v46 = vadd.f32 %v3691_v3, %v2741_v32  ;;  %v4219_v5 = vmul.f32 %v2741_v32, %v2741_v32  ;;  %v2756_v58 = vpop.f32.mrb[220].mxu1  ;;  %v2405_v52 = vpop.f32.mrb[221].mxu0 }
 0x2f7   :  { %3194 = vst [vmem:[%s8675_s5 + $0xae8] sm:$0xff] %v2390_v13  ;;  %v3698_v61 = vadd.f32 %v3690_v12, %v2390_v13  ;;  %v4218_v19 = vmul.f32 %v2390_v13, %v2390_v13  ;;  %3196 = vst [vmem:[%s8675_s5 + $0xaf8] sm:$0xff] %v2743_v14  ;;  %v3700_v4 = vadd.f32 %v3692_v54, %v2743_v14  ;;  %v2758_v23 = vpop.f32.mrb[221].mxu1  ;;  %v2407_v54 = vpop.f32.mrb[222].mxu0 }
 0x2f8   :  { %v4220_v39 = vmul.f32 %v2743_v14, %v2743_v14  ;;  %3201 = vst [vmem:[%s8675_s5 + $0xb20] sm:$0xff] %v2394_v9  ;;  %v3705_v49 = vadd.f32 %v3697_v33, %v2394_v9  ;;  %v4225_v35 = vmul.f32 %v2394_v9, %v2394_v9  ;;  %v4723_v29 = vadd.f32 %v4715_v37, %v4219_v5  ;;  %v2409_v32 = vpop.f32.mrb[223].mxu0 }
 0x2f9   :  { %v4722_v26 = vadd.f32 %v4714_v48, %v4218_v19  ;;  %v2747_v31 = vadd.f32 %v2746_v28, %v7589_v34  ;;  %v2396_v20 = vadd.f32 %v2395_v36, %v7597_v47  ;;  %v2749_v51 = vadd.f32 %v2748_v53, %v7599_v17  ;;  %v2760_v48 = vpop.f32.mrb[222].mxu1 }
 0x2fa   :  { %v4724_v7 = vadd.f32 %v4716_v10, %v4220_v39  ;;  %v4729_v62 = vadd.f32 %v4721_v56, %v4225_v35  ;;  %v2398_v21 = vadd.f32 %v2397_v40, %v7587_v57  ;;  %v2751_v45 = vadd.f32 %v2750_v6, %v7589_v34  ;;  %v2762_v14 = vpop.f32.mrb[223].mxu1 }
 0x2fb   :  { %3203 = vst [vmem:[%s8675_s5 + $0xb30] sm:$0xff] %v2747_v31  ;;  %v3707_v44 = vadd.f32 %v3699_v46, %v2747_v31  ;;  %v4227_v59 = vmul.f32 %v2747_v31, %v2747_v31  ;;  %3202 = vst [vmem:[%s8675_s5 + $0xb28] sm:$0xff] %v2396_v20  ;;  %v3706_v18 = vadd.f32 %v3698_v61, %v2396_v20 }
 0x2fc   :  { %v4226_v16 = vmul.f32 %v2396_v20, %v2396_v20  ;;  %3204 = vst [vmem:[%s8675_s5 + $0xb38] sm:$0xff] %v2749_v51  ;;  %v3708_v2 = vadd.f32 %v3700_v4, %v2749_v51  ;;  %v4228_v11 = vmul.f32 %v2749_v51, %v2749_v51  ;;  %3209 = vst [vmem:[%s8675_s5 + $0xb60] sm:$0xff] %v2398_v21 }
 0x2fd   :  { %v3713_v50 = vadd.f32 %v3705_v49, %v2398_v21  ;;  %v4233_v63 = vmul.f32 %v2398_v21, %v2398_v21  ;;  %v4731_v15 = vadd.f32 %v4723_v29, %v4227_v59  ;;  %v2400_v1 = vadd.f32 %v2399_v30, %v7597_v47  ;;  %3211 = vst [vmem:[%s8675_s5 + $0xb70] sm:$0xff] %v2751_v45 }
 0x2fe   :  { %v4730_v42 = vadd.f32 %v4722_v26, %v4226_v16  ;;  %v4732_v0 = vadd.f32 %v4724_v7, %v4228_v11  ;;  %v2753_v55 = vadd.f32 %v2752_v38, %v7599_v17  ;;  %v2404_v22 = vadd.f32 %v2403_v60, %v7587_v57  ;;  %v2413_v26 = vpop.f32.mrb[224].mxu0 }
 0x2ff   :  { %v4737_v27 = vadd.f32 %v4729_v62, %v4233_v63  ;;  %v3715_v25 = vadd.f32 %v3707_v44, %v2751_v45  ;;  %v4235_v3 = vmul.f32 %v2751_v45, %v2751_v45  ;;  %3210 = vst [vmem:[%s8675_s5 + $0xb68] sm:$0xff] %v2400_v1  ;;  %v3714_v8 = vadd.f32 %v3706_v18, %v2400_v1  ;;  %v2766_v62 = vpop.f32.mrb[224].mxu1  ;;  %v2415_v51 = vpop.f32.mrb[225].mxu0 }
 0x300   :  { %v4234_v12 = vmul.f32 %v2400_v1, %v2400_v1  ;;  %3212 = vst [vmem:[%s8675_s5 + $0xb78] sm:$0xff] %v2753_v55  ;;  %v3716_v41 = vadd.f32 %v3708_v2, %v2753_v55  ;;  %v4236_v33 = vmul.f32 %v2753_v55, %v2753_v55  ;;  %3217 = vst [vmem:[%s8675_s5 + $0xba0] sm:$0xff] %v2404_v22  ;;  %v2768_v16 = vpop.f32.mrb[225].mxu1  ;;  %v2417_v2 = vpop.f32.mrb[226].mxu0 }
 0x301   :  { %v3721_v24 = vadd.f32 %v3713_v50, %v2404_v22  ;;  %v4241_v37 = vmul.f32 %v2404_v22, %v2404_v22  ;;  %v4739_v13 = vadd.f32 %v4731_v15, %v4235_v3  ;;  %v2757_v10 = vadd.f32 %v2756_v58, %v7589_v34  ;;  %v2419_v45 = vpop.f32.mrb[227].mxu0 }
 0x302   :  { %v4738_v43 = vadd.f32 %v4730_v42, %v4234_v12  ;;  %v2406_v56 = vadd.f32 %v2405_v52, %v7597_v47  ;;  %v4740_v9 = vadd.f32 %v4732_v0, %v4236_v33  ;;  %v2759_v36 = vadd.f32 %v2758_v23, %v7599_v17  ;;  %v2770_v42 = vpop.f32.mrb[226].mxu1 }
 0x303   :  { %v4745_v28 = vadd.f32 %v4737_v27, %v4241_v37  ;;  %v2408_v46 = vadd.f32 %v2407_v54, %v7587_v57  ;;  %3219 = vst [vmem:[%s8675_s5 + $0xbb0] sm:$0xff] %v2757_v10  ;;  %v3723_v5 = vadd.f32 %v3715_v25, %v2757_v10  ;;  %v4243_v61 = vmul.f32 %v2757_v10, %v2757_v10  ;;  %v2772_v55 = vpop.f32.mrb[227].mxu1 }
 0x304   :  { %3218 = vst [vmem:[%s8675_s5 + $0xba8] sm:$0xff] %v2406_v56  ;;  %v3722_v19 = vadd.f32 %v3714_v8, %v2406_v56  ;;  %v4242_v53 = vmul.f32 %v2406_v56, %v2406_v56  ;;  %3220 = vst [vmem:[%s8675_s5 + $0xbb8] sm:$0xff] %v2759_v36  ;;  %v3724_v40 = vadd.f32 %v3716_v41, %v2759_v36 }
 0x305   :  { %v4244_v4 = vmul.f32 %v2759_v36, %v2759_v36  ;;  %3225 = vst [vmem:[%s8675_s5 + $0xbe0] sm:$0xff] %v2408_v46  ;;  %v3729_v39 = vadd.f32 %v3721_v24, %v2408_v46  ;;  %v4249_v49 = vmul.f32 %v2408_v46, %v2408_v46  ;;  %v4747_v35 = vadd.f32 %v4739_v13, %v4243_v61 }
 0x306   :  { %v4746_v6 = vadd.f32 %v4738_v43, %v4242_v53  ;;  %v2761_v30 = vadd.f32 %v2760_v48, %v7589_v34  ;;  %v2410_v29 = vadd.f32 %v2409_v32, %v7597_v47  ;;  %v2763_v38 = vadd.f32 %v2762_v14, %v7599_v17  ;;  %v2423_v43 = vpop.f32.mrb[228].mxu0 }
 0x307   :  { %v4748_v31 = vadd.f32 %v4740_v9, %v4244_v4  ;;  %v4753_v20 = vadd.f32 %v4745_v28, %v4249_v49  ;;  %v2414_v7 = vadd.f32 %v2413_v26, %v7587_v57  ;;  %v2767_v0 = vadd.f32 %v2766_v62, %v7589_v34  ;;  %v2776_v28 = vpop.f32.mrb[228].mxu1  ;;  %v2425_v36 = vpop.f32.mrb[229].mxu0 }
 0x308   :  { %3227 = vst [vmem:[%s8675_s5 + $0xbf0] sm:$0xff] %v2761_v30  ;;  %v3731_v21 = vadd.f32 %v3723_v5, %v2761_v30  ;;  %v4251_v44 = vmul.f32 %v2761_v30, %v2761_v30  ;;  %3226 = vst [vmem:[%s8675_s5 + $0xbe8] sm:$0xff] %v2410_v29  ;;  %v3730_v59 = vadd.f32 %v3722_v19, %v2410_v29  ;;  %v2778_v53 = vpop.f32.mrb[229].mxu1 }
 0x309   :  { %v4250_v18 = vmul.f32 %v2410_v29, %v2410_v29  ;;  %3228 = vst [vmem:[%s8675_s5 + $0xbf8] sm:$0xff] %v2763_v38  ;;  %v3732_v11 = vadd.f32 %v3724_v40, %v2763_v38  ;;  %v4252_v50 = vmul.f32 %v2763_v38, %v2763_v38  ;;  %3233 = vst [vmem:[%s8675_s5 + $0xc20] sm:$0xff] %v2414_v7  ;;  %v2427_v40 = vpop.f32.mrb[230].mxu0 }
 0x30a   :  { %v3737_v63 = vadd.f32 %v3729_v39, %v2414_v7  ;;  %v4257_v15 = vmul.f32 %v2414_v7, %v2414_v7  ;;  %v4755_v1 = vadd.f32 %v4747_v35, %v4251_v44  ;;  %v2416_v27 = vadd.f32 %v2415_v51, %v7597_v47  ;;  %3235 = vst [vmem:[%s8675_s5 + $0xc30] sm:$0xff] %v2767_v0  ;;  %v2429_v30 = vpop.f32.mrb[231].mxu0 }
 0x30b   :  { %v4754_v60 = vadd.f32 %v4746_v6, %v4250_v18  ;;  %v4756_v22 = vadd.f32 %v4748_v31, %v4252_v50  ;;  %v2769_v52 = vadd.f32 %v2768_v16, %v7599_v17  ;;  %v2418_v25 = vadd.f32 %v2417_v2, %v7587_v57  ;;  %v2780_v6 = vpop.f32.mrb[230].mxu1 }
 0x30c   :  { %v4761_v58 = vadd.f32 %v4753_v20, %v4257_v15  ;;  %v3739_v3 = vadd.f32 %v3731_v21, %v2767_v0  ;;  %v4259_v8 = vmul.f32 %v2767_v0, %v2767_v0  ;;  %3234 = vst [vmem:[%s8675_s5 + $0xc28] sm:$0xff] %v2416_v27  ;;  %v3738_v12 = vadd.f32 %v3730_v59, %v2416_v27  ;;  %v2782_v38 = vpop.f32.mrb[231].mxu1 }
 0x30d   :  { %v4258_v23 = vmul.f32 %v2416_v27, %v2416_v27  ;;  %3236 = vst [vmem:[%s8675_s5 + $0xc38] sm:$0xff] %v2769_v52  ;;  %v3740_v54 = vadd.f32 %v3732_v11, %v2769_v52  ;;  %v4260_v41 = vmul.f32 %v2769_v52, %v2769_v52  ;;  %3241 = vst [vmem:[%s8675_s5 + $0xc60] sm:$0xff] %v2418_v25 }
 0x30e   :  { %v3745_v33 = vadd.f32 %v3737_v63, %v2418_v25  ;;  %v4265_v24 = vmul.f32 %v2418_v25, %v2418_v25  ;;  %v4763_v37 = vadd.f32 %v4755_v1, %v4259_v8  ;;  %v2771_v32 = vadd.f32 %v2770_v42, %v7589_v34 }
 0x30f   :  { %v4762_v48 = vadd.f32 %v4754_v60, %v4258_v23  ;;  %v2420_v13 = vadd.f32 %v2419_v45, %v7597_v47  ;;  %v4764_v10 = vadd.f32 %v4756_v22, %v4260_v41  ;;  %v2773_v14 = vadd.f32 %v2772_v55, %v7599_v17  ;;  %v2433_v60 = vpop.f32.mrb[232].mxu0 }
 0x310   :  { %v4769_v56 = vadd.f32 %v4761_v58, %v4265_v24  ;;  %v2424_v9 = vadd.f32 %v2423_v43, %v7587_v57  ;;  %3243 = vst [vmem:[%s8675_s5 + $0xc70] sm:$0xff] %v2771_v32  ;;  %v3747_v46 = vadd.f32 %v3739_v3, %v2771_v32  ;;  %v4267_v5 = vmul.f32 %v2771_v32, %v2771_v32  ;;  %v2786_v58 = vpop.f32.mrb[232].mxu1  ;;  %v2435_v52 = vpop.f32.mrb[233].mxu0 }
 0x311   :  { %3242 = vst [vmem:[%s8675_s5 + $0xc68] sm:$0xff] %v2420_v13  ;;  %v3746_v61 = vadd.f32 %v3738_v12, %v2420_v13  ;;  %v4266_v19 = vmul.f32 %v2420_v13, %v2420_v13  ;;  %3244 = vst [vmem:[%s8675_s5 + $0xc78] sm:$0xff] %v2773_v14  ;;  %v3748_v4 = vadd.f32 %v3740_v54, %v2773_v14  ;;  %v2788_v23 = vpop.f32.mrb[233].mxu1  ;;  %v2437_v54 = vpop.f32.mrb[234].mxu0 }
 0x312   :  { %v4268_v39 = vmul.f32 %v2773_v14, %v2773_v14  ;;  %3249 = vst [vmem:[%s8675_s5 + $0xca0] sm:$0xff] %v2424_v9  ;;  %v3753_v49 = vadd.f32 %v3745_v33, %v2424_v9  ;;  %v4273_v35 = vmul.f32 %v2424_v9, %v2424_v9  ;;  %v4771_v29 = vadd.f32 %v4763_v37, %v4267_v5  ;;  %v2439_v32 = vpop.f32.mrb[235].mxu0 }
 0x313   :  { %v4770_v26 = vadd.f32 %v4762_v48, %v4266_v19  ;;  %v2777_v31 = vadd.f32 %v2776_v28, %v7589_v34  ;;  %v2426_v20 = vadd.f32 %v2425_v36, %v7597_v47  ;;  %v2779_v51 = vadd.f32 %v2778_v53, %v7599_v17  ;;  %v2790_v48 = vpop.f32.mrb[234].mxu1 }
 0x314   :  { %v4772_v7 = vadd.f32 %v4764_v10, %v4268_v39  ;;  %v4777_v62 = vadd.f32 %v4769_v56, %v4273_v35  ;;  %v2428_v21 = vadd.f32 %v2427_v40, %v7587_v57  ;;  %v2781_v45 = vadd.f32 %v2780_v6, %v7589_v34  ;;  %v2792_v14 = vpop.f32.mrb[235].mxu1 }
 0x315   :  { %3251 = vst [vmem:[%s8675_s5 + $0xcb0] sm:$0xff] %v2777_v31  ;;  %v3755_v44 = vadd.f32 %v3747_v46, %v2777_v31  ;;  %v4275_v59 = vmul.f32 %v2777_v31, %v2777_v31  ;;  %3250 = vst [vmem:[%s8675_s5 + $0xca8] sm:$0xff] %v2426_v20  ;;  %v3754_v18 = vadd.f32 %v3746_v61, %v2426_v20 }
 0x316   :  { %v4274_v16 = vmul.f32 %v2426_v20, %v2426_v20  ;;  %3252 = vst [vmem:[%s8675_s5 + $0xcb8] sm:$0xff] %v2779_v51  ;;  %v3756_v2 = vadd.f32 %v3748_v4, %v2779_v51  ;;  %v4276_v11 = vmul.f32 %v2779_v51, %v2779_v51  ;;  %3257 = vst [vmem:[%s8675_s5 + $0xce0] sm:$0xff] %v2428_v21 }
 0x317   :  { %v3761_v50 = vadd.f32 %v3753_v49, %v2428_v21  ;;  %v4281_v63 = vmul.f32 %v2428_v21, %v2428_v21  ;;  %v4779_v15 = vadd.f32 %v4771_v29, %v4275_v59  ;;  %v2430_v1 = vadd.f32 %v2429_v30, %v7597_v47  ;;  %3259 = vst [vmem:[%s8675_s5 + $0xcf0] sm:$0xff] %v2781_v45 }
 0x318   :  { %v4778_v42 = vadd.f32 %v4770_v26, %v4274_v16  ;;  %v4780_v0 = vadd.f32 %v4772_v7, %v4276_v11  ;;  %v2783_v55 = vadd.f32 %v2782_v38, %v7599_v17  ;;  %v2434_v22 = vadd.f32 %v2433_v60, %v7587_v57  ;;  %v2443_v26 = vpop.f32.mrb[236].mxu0 }
 0x319   :  { %v4785_v27 = vadd.f32 %v4777_v62, %v4281_v63  ;;  %v3763_v25 = vadd.f32 %v3755_v44, %v2781_v45  ;;  %v4283_v3 = vmul.f32 %v2781_v45, %v2781_v45  ;;  %3258 = vst [vmem:[%s8675_s5 + $0xce8] sm:$0xff] %v2430_v1  ;;  %v3762_v8 = vadd.f32 %v3754_v18, %v2430_v1  ;;  %v2796_v62 = vpop.f32.mrb[236].mxu1  ;;  %v2445_v51 = vpop.f32.mrb[237].mxu0 }
 0x31a   :  { %v4282_v12 = vmul.f32 %v2430_v1, %v2430_v1  ;;  %3260 = vst [vmem:[%s8675_s5 + $0xcf8] sm:$0xff] %v2783_v55  ;;  %v3764_v41 = vadd.f32 %v3756_v2, %v2783_v55  ;;  %v4284_v33 = vmul.f32 %v2783_v55, %v2783_v55  ;;  %3265 = vst [vmem:[%s8675_s5 + $0xd20] sm:$0xff] %v2434_v22  ;;  %v2798_v16 = vpop.f32.mrb[237].mxu1  ;;  %v2447_v2 = vpop.f32.mrb[238].mxu0 }
 0x31b   :  { %v3769_v24 = vadd.f32 %v3761_v50, %v2434_v22  ;;  %v4289_v37 = vmul.f32 %v2434_v22, %v2434_v22  ;;  %v4787_v13 = vadd.f32 %v4779_v15, %v4283_v3  ;;  %v2787_v10 = vadd.f32 %v2786_v58, %v7589_v34  ;;  %v2449_v45 = vpop.f32.mrb[239].mxu0 }
 0x31c   :  { %v4786_v43 = vadd.f32 %v4778_v42, %v4282_v12  ;;  %v2436_v56 = vadd.f32 %v2435_v52, %v7597_v47  ;;  %v4788_v9 = vadd.f32 %v4780_v0, %v4284_v33  ;;  %v2789_v36 = vadd.f32 %v2788_v23, %v7599_v17  ;;  %v2800_v42 = vpop.f32.mrb[238].mxu1 }
 0x31d   :  { %v4793_v28 = vadd.f32 %v4785_v27, %v4289_v37  ;;  %v2438_v46 = vadd.f32 %v2437_v54, %v7587_v57  ;;  %3267 = vst [vmem:[%s8675_s5 + $0xd30] sm:$0xff] %v2787_v10  ;;  %v3771_v5 = vadd.f32 %v3763_v25, %v2787_v10  ;;  %v4291_v61 = vmul.f32 %v2787_v10, %v2787_v10  ;;  %v2802_v55 = vpop.f32.mrb[239].mxu1 }
 0x31e   :  { %3266 = vst [vmem:[%s8675_s5 + $0xd28] sm:$0xff] %v2436_v56  ;;  %v3770_v19 = vadd.f32 %v3762_v8, %v2436_v56  ;;  %v4290_v53 = vmul.f32 %v2436_v56, %v2436_v56  ;;  %3268 = vst [vmem:[%s8675_s5 + $0xd38] sm:$0xff] %v2789_v36  ;;  %v3772_v40 = vadd.f32 %v3764_v41, %v2789_v36 }
 0x31f   :  { %v4292_v4 = vmul.f32 %v2789_v36, %v2789_v36  ;;  %3273 = vst [vmem:[%s8675_s5 + $0xd60] sm:$0xff] %v2438_v46  ;;  %v3777_v39 = vadd.f32 %v3769_v24, %v2438_v46  ;;  %v4297_v49 = vmul.f32 %v2438_v46, %v2438_v46  ;;  %v4795_v35 = vadd.f32 %v4787_v13, %v4291_v61 }
 0x320   :  { %v4794_v6 = vadd.f32 %v4786_v43, %v4290_v53  ;;  %v2791_v30 = vadd.f32 %v2790_v48, %v7589_v34  ;;  %v2440_v29 = vadd.f32 %v2439_v32, %v7597_v47  ;;  %v2793_v38 = vadd.f32 %v2792_v14, %v7599_v17  ;;  %v2453_v43 = vpop.f32.mrb[240].mxu0 }
 0x321   :  { %v4796_v31 = vadd.f32 %v4788_v9, %v4292_v4  ;;  %v4801_v20 = vadd.f32 %v4793_v28, %v4297_v49  ;;  %v2444_v7 = vadd.f32 %v2443_v26, %v7587_v57  ;;  %v2797_v0 = vadd.f32 %v2796_v62, %v7589_v34  ;;  %v2806_v28 = vpop.f32.mrb[240].mxu1  ;;  %v2455_v36 = vpop.f32.mrb[241].mxu0 }
 0x322   :  { %3275 = vst [vmem:[%s8675_s5 + $0xd70] sm:$0xff] %v2791_v30  ;;  %v3779_v21 = vadd.f32 %v3771_v5, %v2791_v30  ;;  %v4299_v44 = vmul.f32 %v2791_v30, %v2791_v30  ;;  %3274 = vst [vmem:[%s8675_s5 + $0xd68] sm:$0xff] %v2440_v29  ;;  %v3778_v59 = vadd.f32 %v3770_v19, %v2440_v29  ;;  %v2808_v53 = vpop.f32.mrb[241].mxu1 }
 0x323   :  { %v4298_v18 = vmul.f32 %v2440_v29, %v2440_v29  ;;  %3276 = vst [vmem:[%s8675_s5 + $0xd78] sm:$0xff] %v2793_v38  ;;  %v3780_v11 = vadd.f32 %v3772_v40, %v2793_v38  ;;  %v4300_v50 = vmul.f32 %v2793_v38, %v2793_v38  ;;  %3281 = vst [vmem:[%s8675_s5 + $0xda0] sm:$0xff] %v2444_v7  ;;  %v2457_v40 = vpop.f32.mrb[242].mxu0 }
 0x324   :  { %v3785_v63 = vadd.f32 %v3777_v39, %v2444_v7  ;;  %v4305_v15 = vmul.f32 %v2444_v7, %v2444_v7  ;;  %v4803_v1 = vadd.f32 %v4795_v35, %v4299_v44  ;;  %v2446_v27 = vadd.f32 %v2445_v51, %v7597_v47  ;;  %3283 = vst [vmem:[%s8675_s5 + $0xdb0] sm:$0xff] %v2797_v0  ;;  %v2459_v30 = vpop.f32.mrb[243].mxu0 }
 0x325   :  { %v4802_v60 = vadd.f32 %v4794_v6, %v4298_v18  ;;  %v4804_v22 = vadd.f32 %v4796_v31, %v4300_v50  ;;  %v2799_v52 = vadd.f32 %v2798_v16, %v7599_v17  ;;  %v2448_v25 = vadd.f32 %v2447_v2, %v7587_v57  ;;  %v2810_v6 = vpop.f32.mrb[242].mxu1 }
 0x326   :  { %v4809_v58 = vadd.f32 %v4801_v20, %v4305_v15  ;;  %v3787_v3 = vadd.f32 %v3779_v21, %v2797_v0  ;;  %v4307_v8 = vmul.f32 %v2797_v0, %v2797_v0  ;;  %3282 = vst [vmem:[%s8675_s5 + $0xda8] sm:$0xff] %v2446_v27  ;;  %v3786_v12 = vadd.f32 %v3778_v59, %v2446_v27  ;;  %v2812_v38 = vpop.f32.mrb[243].mxu1 }
 0x327   :  { %v4306_v23 = vmul.f32 %v2446_v27, %v2446_v27  ;;  %3284 = vst [vmem:[%s8675_s5 + $0xdb8] sm:$0xff] %v2799_v52  ;;  %v3788_v54 = vadd.f32 %v3780_v11, %v2799_v52  ;;  %v4308_v41 = vmul.f32 %v2799_v52, %v2799_v52  ;;  %3289 = vst [vmem:[%s8675_s5 + $0xde0] sm:$0xff] %v2448_v25 }
 0x328   :  { %v3793_v33 = vadd.f32 %v3785_v63, %v2448_v25  ;;  %v4313_v24 = vmul.f32 %v2448_v25, %v2448_v25  ;;  %v4811_v37 = vadd.f32 %v4803_v1, %v4307_v8  ;;  %v2801_v32 = vadd.f32 %v2800_v42, %v7589_v34 }
 0x329   :  { %v4810_v48 = vadd.f32 %v4802_v60, %v4306_v23  ;;  %v2450_v13 = vadd.f32 %v2449_v45, %v7597_v47  ;;  %v4812_v10 = vadd.f32 %v4804_v22, %v4308_v41  ;;  %v2803_v14 = vadd.f32 %v2802_v55, %v7599_v17  ;;  %v2463_v60 = vpop.f32.mrb[244].mxu0 }
 0x32a   :  { %v4817_v56 = vadd.f32 %v4809_v58, %v4313_v24  ;;  %v2454_v9 = vadd.f32 %v2453_v43, %v7587_v57  ;;  %3291 = vst [vmem:[%s8675_s5 + $0xdf0] sm:$0xff] %v2801_v32  ;;  %v3795_v46 = vadd.f32 %v3787_v3, %v2801_v32  ;;  %v4315_v5 = vmul.f32 %v2801_v32, %v2801_v32  ;;  %v2816_v58 = vpop.f32.mrb[244].mxu1  ;;  %v2465_v52 = vpop.f32.mrb[245].mxu0 }
 0x32b   :  { %3290 = vst [vmem:[%s8675_s5 + $0xde8] sm:$0xff] %v2450_v13  ;;  %v3794_v61 = vadd.f32 %v3786_v12, %v2450_v13  ;;  %v4314_v19 = vmul.f32 %v2450_v13, %v2450_v13  ;;  %3292 = vst [vmem:[%s8675_s5 + $0xdf8] sm:$0xff] %v2803_v14  ;;  %v3796_v4 = vadd.f32 %v3788_v54, %v2803_v14  ;;  %v2818_v23 = vpop.f32.mrb[245].mxu1  ;;  %v2467_v54 = vpop.f32.mrb[246].mxu0 }
 0x32c   :  { %v4316_v39 = vmul.f32 %v2803_v14, %v2803_v14  ;;  %3297 = vst [vmem:[%s8675_s5 + $0xe20] sm:$0xff] %v2454_v9  ;;  %v3801_v49 = vadd.f32 %v3793_v33, %v2454_v9  ;;  %v4321_v35 = vmul.f32 %v2454_v9, %v2454_v9  ;;  %v4819_v29 = vadd.f32 %v4811_v37, %v4315_v5  ;;  %v2469_v32 = vpop.f32.mrb[247].mxu0 }
 0x32d   :  { %v4818_v26 = vadd.f32 %v4810_v48, %v4314_v19  ;;  %v2807_v31 = vadd.f32 %v2806_v28, %v7589_v34  ;;  %v2456_v20 = vadd.f32 %v2455_v36, %v7597_v47  ;;  %v2809_v51 = vadd.f32 %v2808_v53, %v7599_v17  ;;  %v2820_v48 = vpop.f32.mrb[246].mxu1 }
 0x32e   :  { %v4820_v7 = vadd.f32 %v4812_v10, %v4316_v39  ;;  %v4825_v62 = vadd.f32 %v4817_v56, %v4321_v35  ;;  %v2458_v21 = vadd.f32 %v2457_v40, %v7587_v57  ;;  %v2811_v45 = vadd.f32 %v2810_v6, %v7589_v34  ;;  %v2822_v14 = vpop.f32.mrb[247].mxu1 }
 0x32f   :  { %3299 = vst [vmem:[%s8675_s5 + $0xe30] sm:$0xff] %v2807_v31  ;;  %v3803_v44 = vadd.f32 %v3795_v46, %v2807_v31  ;;  %v4323_v59 = vmul.f32 %v2807_v31, %v2807_v31  ;;  %3298 = vst [vmem:[%s8675_s5 + $0xe28] sm:$0xff] %v2456_v20  ;;  %v3802_v18 = vadd.f32 %v3794_v61, %v2456_v20 }
 0x330   :  { %v4322_v16 = vmul.f32 %v2456_v20, %v2456_v20  ;;  %3300 = vst [vmem:[%s8675_s5 + $0xe38] sm:$0xff] %v2809_v51  ;;  %v3804_v2 = vadd.f32 %v3796_v4, %v2809_v51  ;;  %v4324_v11 = vmul.f32 %v2809_v51, %v2809_v51  ;;  %3305 = vst [vmem:[%s8675_s5 + $0xe60] sm:$0xff] %v2458_v21 }
 0x331   :  { %v3809_v50 = vadd.f32 %v3801_v49, %v2458_v21  ;;  %v4329_v63 = vmul.f32 %v2458_v21, %v2458_v21  ;;  %v4827_v15 = vadd.f32 %v4819_v29, %v4323_v59  ;;  %v2460_v1 = vadd.f32 %v2459_v30, %v7597_v47  ;;  %3307 = vst [vmem:[%s8675_s5 + $0xe70] sm:$0xff] %v2811_v45 }
 0x332   :  { %v4826_v42 = vadd.f32 %v4818_v26, %v4322_v16  ;;  %v4828_v0 = vadd.f32 %v4820_v7, %v4324_v11  ;;  %v2813_v55 = vadd.f32 %v2812_v38, %v7599_v17  ;;  %v2464_v22 = vadd.f32 %v2463_v60, %v7587_v57  ;;  %v2473_v26 = vpop.f32.mrb[248].mxu0 }
 0x333   :  { %v4833_v27 = vadd.f32 %v4825_v62, %v4329_v63  ;;  %v3811_v25 = vadd.f32 %v3803_v44, %v2811_v45  ;;  %v4331_v3 = vmul.f32 %v2811_v45, %v2811_v45  ;;  %3306 = vst [vmem:[%s8675_s5 + $0xe68] sm:$0xff] %v2460_v1  ;;  %v3810_v8 = vadd.f32 %v3802_v18, %v2460_v1  ;;  %v2826_v62 = vpop.f32.mrb[248].mxu1  ;;  %v2475_v51 = vpop.f32.mrb[249].mxu0 }
 0x334   :  { %v4330_v12 = vmul.f32 %v2460_v1, %v2460_v1  ;;  %3308 = vst [vmem:[%s8675_s5 + $0xe78] sm:$0xff] %v2813_v55  ;;  %v3812_v41 = vadd.f32 %v3804_v2, %v2813_v55  ;;  %v4332_v33 = vmul.f32 %v2813_v55, %v2813_v55  ;;  %3313 = vst [vmem:[%s8675_s5 + $0xea0] sm:$0xff] %v2464_v22  ;;  %v2828_v16 = vpop.f32.mrb[249].mxu1  ;;  %v2477_v2 = vpop.f32.mrb[250].mxu0 }
 0x335   :  { %v3817_v24 = vadd.f32 %v3809_v50, %v2464_v22  ;;  %v4337_v37 = vmul.f32 %v2464_v22, %v2464_v22  ;;  %v4835_v13 = vadd.f32 %v4827_v15, %v4331_v3  ;;  %v2817_v10 = vadd.f32 %v2816_v58, %v7589_v34  ;;  %v2479_v45 = vpop.f32.mrb[251].mxu0 }
 0x336   :  { %v4834_v43 = vadd.f32 %v4826_v42, %v4330_v12  ;;  %v2466_v56 = vadd.f32 %v2465_v52, %v7597_v47  ;;  %v4836_v9 = vadd.f32 %v4828_v0, %v4332_v33  ;;  %v2819_v36 = vadd.f32 %v2818_v23, %v7599_v17  ;;  %v2830_v42 = vpop.f32.mrb[250].mxu1 }
 0x337   :  { %v4841_v28 = vadd.f32 %v4833_v27, %v4337_v37  ;;  %v2468_v46 = vadd.f32 %v2467_v54, %v7587_v57  ;;  %3315 = vst [vmem:[%s8675_s5 + $0xeb0] sm:$0xff] %v2817_v10  ;;  %v3819_v5 = vadd.f32 %v3811_v25, %v2817_v10  ;;  %v4339_v61 = vmul.f32 %v2817_v10, %v2817_v10  ;;  %v2832_v55 = vpop.f32.mrb[251].mxu1 }
 0x338   :  { %3314 = vst [vmem:[%s8675_s5 + $0xea8] sm:$0xff] %v2466_v56  ;;  %v3818_v19 = vadd.f32 %v3810_v8, %v2466_v56  ;;  %v4338_v53 = vmul.f32 %v2466_v56, %v2466_v56  ;;  %3316 = vst [vmem:[%s8675_s5 + $0xeb8] sm:$0xff] %v2819_v36  ;;  %v3820_v40 = vadd.f32 %v3812_v41, %v2819_v36 }
 0x339   :  { %v4340_v4 = vmul.f32 %v2819_v36, %v2819_v36  ;;  %3321 = vst [vmem:[%s8675_s5 + $0xee0] sm:$0xff] %v2468_v46  ;;  %v3825_v39 = vadd.f32 %v3817_v24, %v2468_v46  ;;  %v4345_v49 = vmul.f32 %v2468_v46, %v2468_v46  ;;  %v4843_v35 = vadd.f32 %v4835_v13, %v4339_v61 }
 0x33a   :  { %v4842_v6 = vadd.f32 %v4834_v43, %v4338_v53  ;;  %v2821_v30 = vadd.f32 %v2820_v48, %v7589_v34  ;;  %v2470_v29 = vadd.f32 %v2469_v32, %v7597_v47  ;;  %v2823_v38 = vadd.f32 %v2822_v14, %v7599_v17  ;;  %v2483_v43 = vpop.f32.mrb[252].mxu0 }
 0x33b   :  { %v4844_v31 = vadd.f32 %v4836_v9, %v4340_v4  ;;  %v4849_v20 = vadd.f32 %v4841_v28, %v4345_v49  ;;  %v2474_v7 = vadd.f32 %v2473_v26, %v7587_v57  ;;  %v2827_v0 = vadd.f32 %v2826_v62, %v7589_v34  ;;  %v2836_v28 = vpop.f32.mrb[252].mxu1  ;;  %v2485_v36 = vpop.f32.mrb[253].mxu0 }
 0x33c   :  { %3323 = vst [vmem:[%s8675_s5 + $0xef0] sm:$0xff] %v2821_v30  ;;  %v3827_v21 = vadd.f32 %v3819_v5, %v2821_v30  ;;  %v4347_v44 = vmul.f32 %v2821_v30, %v2821_v30  ;;  %3322 = vst [vmem:[%s8675_s5 + $0xee8] sm:$0xff] %v2470_v29  ;;  %v3826_v59 = vadd.f32 %v3818_v19, %v2470_v29  ;;  %v2838_v53 = vpop.f32.mrb[253].mxu1 }
 0x33d   :  { %v4346_v18 = vmul.f32 %v2470_v29, %v2470_v29  ;;  %3324 = vst [vmem:[%s8675_s5 + $0xef8] sm:$0xff] %v2823_v38  ;;  %v3828_v11 = vadd.f32 %v3820_v40, %v2823_v38  ;;  %v4348_v50 = vmul.f32 %v2823_v38, %v2823_v38  ;;  %3329 = vst [vmem:[%s8675_s5 + $0xf20] sm:$0xff] %v2474_v7  ;;  %v2487_v40 = vpop.f32.mrb[254].mxu0 }
 0x33e   :  { %v3833_v63 = vadd.f32 %v3825_v39, %v2474_v7  ;;  %v4353_v15 = vmul.f32 %v2474_v7, %v2474_v7  ;;  %v4851_v1 = vadd.f32 %v4843_v35, %v4347_v44  ;;  %v2476_v27 = vadd.f32 %v2475_v51, %v7597_v47  ;;  %3331 = vst [vmem:[%s8675_s5 + $0xf30] sm:$0xff] %v2827_v0  ;;  %v2489_v30 = vpop.f32.mrb[255].mxu0 }
 0x33f   :  { %v4850_v60 = vadd.f32 %v4842_v6, %v4346_v18  ;;  %v4852_v22 = vadd.f32 %v4844_v31, %v4348_v50  ;;  %v2829_v52 = vadd.f32 %v2828_v16, %v7599_v17  ;;  %v2478_v25 = vadd.f32 %v2477_v2, %v7587_v57  ;;  %v2840_v6 = vpop.f32.mrb[254].mxu1 }
 0x340   :  { %v4857_v58 = vadd.f32 %v4849_v20, %v4353_v15  ;;  %v3835_v3 = vadd.f32 %v3827_v21, %v2827_v0  ;;  %v4355_v8 = vmul.f32 %v2827_v0, %v2827_v0  ;;  %3330 = vst [vmem:[%s8675_s5 + $0xf28] sm:$0xff] %v2476_v27  ;;  %v3834_v12 = vadd.f32 %v3826_v59, %v2476_v27  ;;  %v2842_v38 = vpop.f32.mrb[255].mxu1 }
 0x341   :  { %v4354_v23 = vmul.f32 %v2476_v27, %v2476_v27  ;;  %3332 = vst [vmem:[%s8675_s5 + $0xf38] sm:$0xff] %v2829_v52  ;;  %v3836_v54 = vadd.f32 %v3828_v11, %v2829_v52  ;;  %v4356_v41 = vmul.f32 %v2829_v52, %v2829_v52  ;;  %3337 = vst [vmem:[%s8675_s5 + $0xf60] sm:$0xff] %v2478_v25 }
 0x342   :  { %v3841_v33 = vadd.f32 %v3833_v63, %v2478_v25  ;;  %v4361_v24 = vmul.f32 %v2478_v25, %v2478_v25  ;;  %v4859_v37 = vadd.f32 %v4851_v1, %v4355_v8  ;;  %v2831_v32 = vadd.f32 %v2830_v42, %v7589_v34 }
 0x343   :  { %v4858_v48 = vadd.f32 %v4850_v60, %v4354_v23  ;;  %v2480_v13 = vadd.f32 %v2479_v45, %v7597_v47  ;;  %v4860_v10 = vadd.f32 %v4852_v22, %v4356_v41  ;;  %v2833_v14 = vadd.f32 %v2832_v55, %v7599_v17 }
 0x344   :  { %v4865_v56 = vadd.f32 %v4857_v58, %v4361_v24  ;;  %v2484_v9 = vadd.f32 %v2483_v43, %v7587_v57  ;;  %3339 = vst [vmem:[%s8675_s5 + $0xf70] sm:$0xff] %v2831_v32  ;;  %v3843_v46 = vadd.f32 %v3835_v3, %v2831_v32  ;;  %v4363_v5 = vmul.f32 %v2831_v32, %v2831_v32 }
 0x345   :  { %3338 = vst [vmem:[%s8675_s5 + $0xf68] sm:$0xff] %v2480_v13  ;;  %v3842_v61 = vadd.f32 %v3834_v12, %v2480_v13  ;;  %v4362_v19 = vmul.f32 %v2480_v13, %v2480_v13  ;;  %3340 = vst [vmem:[%s8675_s5 + $0xf78] sm:$0xff] %v2833_v14  ;;  %v3844_v4 = vadd.f32 %v3836_v54, %v2833_v14 }
 0x346   :  { %v4364_v39 = vmul.f32 %v2833_v14, %v2833_v14  ;;  %3345 = vst [vmem:[%s8675_s5 + $0xfa0] sm:$0xff] %v2484_v9  ;;  %v3849_v49 = vadd.f32 %v3841_v33, %v2484_v9  ;;  %v4369_v35 = vmul.f32 %v2484_v9, %v2484_v9  ;;  %v4867_v29 = vadd.f32 %v4859_v37, %v4363_v5 }
 0x347   :  { %v4866_v26 = vadd.f32 %v4858_v48, %v4362_v19  ;;  %v2837_v31 = vadd.f32 %v2836_v28, %v7589_v34  ;;  %v2486_v20 = vadd.f32 %v2485_v36, %v7597_v47  ;;  %v2839_v51 = vadd.f32 %v2838_v53, %v7599_v17 }
 0x348   :  { %v4868_v7 = vadd.f32 %v4860_v10, %v4364_v39  ;;  %v4873_v62 = vadd.f32 %v4865_v56, %v4369_v35  ;;  %v2488_v21 = vadd.f32 %v2487_v40, %v7587_v57  ;;  %v2841_v42 = vadd.f32 %v2840_v6, %v7589_v34 }
 0x349   :  { %3347 = vst [vmem:[%s8675_s5 + $0xfb0] sm:$0xff] %v2837_v31  ;;  %v3851_v44 = vadd.f32 %v3843_v46, %v2837_v31  ;;  %v4371_v59 = vmul.f32 %v2837_v31, %v2837_v31  ;;  %3346 = vst [vmem:[%s8675_s5 + $0xfa8] sm:$0xff] %v2486_v20  ;;  %v3850_v18 = vadd.f32 %v3842_v61, %v2486_v20 }
 0x34a   :  { %v4370_v16 = vmul.f32 %v2486_v20, %v2486_v20  ;;  %3348 = vst [vmem:[%s8675_s5 + $0xfb8] sm:$0xff] %v2839_v51  ;;  %v3852_v2 = vadd.f32 %v3844_v4, %v2839_v51  ;;  %v4372_v11 = vmul.f32 %v2839_v51, %v2839_v51  ;;  %3353 = vst [vmem:[%s8675_s5 + $0xfe0] sm:$0xff] %v2488_v21 }
 0x34b   :  { %v3857_v57 = vadd.f32 %v3849_v49, %v2488_v21  ;;  %v4377_v50 = vmul.f32 %v2488_v21, %v2488_v21  ;;  %v4875_v63 = vadd.f32 %v4867_v29, %v4371_v59  ;;  %v2490_v45 = vadd.f32 %v2489_v30, %v7597_v47  ;;  %3355 = vst [vmem:[%s8675_s5 + $0xff0] sm:$0xff] %v2841_v42 }
 0x34c   :  { %v4874_v15 = vadd.f32 %v4866_v26, %v4370_v16  ;;  %v4876_v1 = vadd.f32 %v4868_v7, %v4372_v11  ;;  %v2843_v0 = vadd.f32 %v2842_v38, %v7599_v17  ;;  %v3859_v27 = vadd.f32 %v3851_v44, %v2841_v42 }
 0x34d   :  { %3865 = vst [vmem:[%s8676_s6 + $0x20] sm:$0xff] %v3857_v57  ;;  %v4881_v60 = vadd.f32 %v4873_v62, %v4377_v50  ;;  %v4379_v55 = vmul.f32 %v2841_v42, %v2841_v42  ;;  %3354 = vst [vmem:[%s8675_s5 + $0xfe8] sm:$0xff] %v2490_v45  ;;  %v3858_v34 = vadd.f32 %v3850_v18, %v2490_v45 }
 0x34e   :  { %v4378_v47 = vmul.f32 %v2490_v45, %v2490_v45  ;;  %3356 = vst [vmem:[%s8675_s5 + $0xff8] sm:$0xff] %v2843_v0  ;;  %v3860_v17 = vadd.f32 %v3852_v2, %v2843_v0  ;;  %v4380_v22 = vmul.f32 %v2843_v0, %v2843_v0  ;;  %3867 = vst [vmem:[%s8676_s6 + $0x30] sm:$0xff] %v3859_v27 }
 0x34f   :  { %4889 = vst [vmem:[%s8677_s7 + $0x20] sm:$0xff] %v4881_v60  ;;  %v4883_v58 = vadd.f32 %v4875_v63, %v4379_v55  ;;  %3866 = vst [vmem:[%s8676_s6 + $0x28] sm:$0xff] %v3858_v34 }
 0x350   :  { %v4882_v52 = vadd.f32 %v4874_v15, %v4378_v47  ;;  %3868 = vst [vmem:[%s8676_s6 + $0x38] sm:$0xff] %v3860_v17  ;;  %v4884_v25 = vadd.f32 %v4876_v1, %v4380_v22 }
 0x351   :  { %4891 = vst [vmem:[%s8677_s7 + $0x30] sm:$0xff] %v4883_v58 }
 0x352   :  { %4890 = vst [vmem:[%s8677_s7 + $0x28] sm:$0xff] %v4882_v52  ;;  %4892 = vst [vmem:[%s8677_s7 + $0x38] sm:$0xff] %v4884_v25 }

</bundles_post_ra>
